<compile_context>
chip_gen: v5e
topology: v5e:2x2
jax: 0.10.0
libtpu: 0.0.40
codegen_flags: <defaults>
</compile_context>

<pallas_src>
import jax
import jax.numpy as jnp
import numpy as np
from jax import lax
from jax.experimental import pallas as pl
from jax.experimental.pallas import tpu as pltpu

# ---------------- model dimensions (small, consistent with the config) ----------------
C_IN = 3            # input_layer1/2/3 (input channels)
F1 = F2 = F3 = 3    # filter_num1/2/3
NF = F1 + F2 + F3   # 9 concatenated branch features
C_OUT = 3           # output_layer_1x1
SEQ = 8             # num_rows -> sequence_length
IN_DIM = 30         # input_dim (num_columns)
RDT = 15            # hidden_layer_rdt
HID = 128           # hidden_size
L = 3               # num_layers
FEAT = C_OUT * RDT  # 45, LSTM feature dim == input_size == num_assets
NA = FEAT           # num_assets
PADH = SEQ + 4      # padded image height (pad 2 top/bottom)
KW = 5              # max kernel width (5x5 branch)


# =============================== fused kernel ===============================
def flexnet_kernel(xpatch_ref, wb_ref, bb_ref, mix_ref, bcr_ref,
                   wd3_ref, bd3_ref, mask_ref, pool_ref,
                   wih_ref, whh_ref, bl_ref, wfc_ref, bfc_ref,
                   out_ref, seq_sc):
    f32 = jnp.float32

    # --- FlexCIM: all three conv branches as one MXU matmul on expanded weights ---
    brows = jnp.dot(wb_ref[...], xpatch_ref[...], preferred_element_type=f32) + bb_ref[...]
    brows = jnp.maximum(brows, 0.0)                                  # (NF*SEQ, IN_DIM) = (72, 30)

    # --- 1x1 mixing conv over the concatenated branches ---
    zrows = jnp.dot(mix_ref[...], brows, preferred_element_type=f32) + bcr_ref[...]
    zrows = jnp.maximum(zrows, 0.0)                                  # (C_OUT*SEQ, IN_DIM) = (24, 30)

    # --- dimension reduction + torch reshape + lane padding, all as matmuls ---
    rdt = jnp.dot(zrows, wd3_ref[...], preferred_element_type=f32) + bd3_ref[...]
    rdt = jnp.maximum(rdt, 0.0) * mask_ref[...]                      # (24, 128)
    seq_sc[...] = jnp.dot(pool_ref[...], rdt, preferred_element_type=f32)   # (8, 128) lane-dense LSTM input

    # --- 3-layer LSTM, fully unrolled; input projection hoisted out of the time loop ---
    h = jnp.zeros((1, HID), f32)
    for l in range(L):
        xp = jnp.dot(seq_sc[...], wih_ref[l], preferred_element_type=f32) + bl_ref[l]   # (8, 4*HID)
        h = jnp.zeros((1, HID), f32)
        c = jnp.zeros((1, HID), f32)
        for t in range(SEQ):
            g = xp[t:t + 1, :] + jnp.dot(h, whh_ref[l], preferred_element_type=f32)     # (1, 4*HID)
            sg = jax.nn.sigmoid(g[:, :3 * HID])       # gate columns pre-permuted to (i, f, o, g)
            i_g = sg[:, 0:HID]
            f_g = sg[:, HID:2 * HID]
            o_g = sg[:, 2 * HID:3 * HID]
            g_g = jnp.tanh(g[:, 3 * HID:])
            c = f_g * c + i_g * g_g
            h = o_g * jnp.tanh(c)
            if l + 1 < L:
                seq_sc[pl.ds(t, 1), :] = h            # next layer's input sequence

    # --- final FC + softmax ---
    logits = jnp.dot(h, wfc_ref[...], preferred_element_type=f32) + bfc_ref[...]
    m = jnp.max(logits, axis=-1, keepdims=True)
    e = jnp.exp(logits - m)
    out_ref[...] = e * pl.reciprocal(jnp.sum(e, axis=-1, keepdims=True), approx=True)


# ====================== kernel-ready parameter preprocessing ======================
def prepare_params(params):
    """Expand the conv weights into MXU-friendly matrices and permute LSTM gates.

    Done once per parameter set (not per forward call)."""
    (w1, b1, w3, b3, w5, b5, wc, bc, wd, bd, wih, whh, bl, wfc, bfc) = params

    # Wb_exp[f*SEQ + r, (ci*PADH + dhp)*KW + dwi] = W_branch[f, ci, dhp - r - o, dwi - o]
    # where o = (KW - k)//2 embeds each k x k kernel at the centre of the 5-wide window.
    def expand_branch(w):
        nf, cin, k, _ = w.shape
        o = (KW - k) // 2
        w_dw = jnp.pad(w, ((0, 0), (0, 0), (0, 0), (o, KW - k - o)))        # (nf, cin, k, 5)
        w_dh = jnp.pad(w_dw, ((0, 0), (0, 0), (o, PADH - k - o), (0, 0)))   # (nf, cin, 12, 5)
        rows = [jnp.roll(w_dh, r, axis=2) for r in range(SEQ)]              # shift band by output row r
        return jnp.stack(rows, axis=1)                                      # (nf, SEQ, cin, 12, 5)

    wb_exp = jnp.concatenate([expand_branch(w1), expand_branch(w3), expand_branch(w5)], axis=0)
    wb_exp = wb_exp.reshape(NF * SEQ, C_IN * PADH * KW)                     # (72, 180)
    bb_rows = jnp.repeat(jnp.concatenate([b1, b3, b5]), SEQ)[:, None]       # (72, 1)

    # 1x1 conv over the 9 concatenated features as a block matrix (row layout c*SEQ + r).
    eye8 = jnp.eye(SEQ, dtype=jnp.float32)
    wc2 = wc.reshape(C_OUT, NF)
    mix = (wc2[:, None, :, None] * eye8[None, :, None, :]).reshape(C_OUT * SEQ, NF * SEQ)  # (24, 72)
    bc_rows = jnp.repeat(bc, SEQ)[:, None]                                  # (24, 1)

    # Dimension reduction tiled over the 3 lane groups of the torch reshape, zero-padded to 128.
    wd3 = jnp.zeros((IN_DIM, HID), jnp.float32).at[:, :FEAT].set(jnp.tile(wd, (1, C_OUT)))
    bd3 = jnp.zeros((1, HID), jnp.float32).at[:, :FEAT].set(jnp.tile(bd, (1, C_OUT)))
    lane = jnp.arange(HID)[None, :]
    row = jnp.arange(C_OUT * SEQ)[:, None]
    # keep lane group m only for rows with (c*SEQ + r) % 3 == m  (torch reshape semantics)
    mask = ((lane < FEAT) & (lane // RDT == row % C_OUT)).astype(jnp.float32)        # (24, 128)
    # sum the 3 rows that make up each timestep
    pool = (jnp.arange(C_OUT * SEQ)[None, :] // C_OUT
            == jnp.arange(SEQ)[:, None]).astype(jnp.float32)                          # (8, 24)

    # LSTM gate columns reordered (i, f, g, o) -> (i, f, o, g) so sigmoid covers 3*HID lanes.
    def perm_gates(a):
        return jnp.concatenate([a[..., :2 * HID], a[..., 3 * HID:], a[..., 2 * HID:3 * HID]], axis=-1)

    return (wb_exp, bb_rows, mix, bc_rows, wd3, bd3, mask, pool,
            perm_gates(wih), perm_gates(whh), perm_gates(bl), wfc, bfc)


# =============================== forward ===============================
@jax.jit
def flex_net_forward(x_nchw, kparams):
    (wb_exp, bb_rows, mix, bc_rows, wd3, bd3, mask, pool, wih, whh, bl, wfc, bfc) = kparams
    x = x_nchw[0]                                           # batch==1 squeezed -> (C_IN, SEQ, IN_DIM)
    xpad = jnp.pad(x, ((0, 0), (2, 2), (2, 2)))             # (3, 12, 34)
    # Xpatch[(ci*PADH + dhp)*KW + dwi, w] = xpad[ci, dhp, w + dwi]
    xpatch = jnp.stack([xpad[:, :, d:d + IN_DIM] for d in range(KW)], axis=2)   # (3, 12, 5, 30)
    xpatch = xpatch.reshape(C_IN * PADH * KW, IN_DIM)                            # (180, 30)

    vm = pl.BlockSpec(memory_space=pltpu.MemorySpace.VMEM)
    return pl.pallas_call(
        flexnet_kernel,
        out_shape=jax.ShapeDtypeStruct((1, NA), jnp.float32),
        in_specs=[vm] * 14,
        out_specs=vm,
        scratch_shapes=[pltpu.VMEM((SEQ, HID), jnp.float32)],   # per-layer LSTM input sequence
    )(xpatch, wb_exp, bb_rows, mix, bc_rows, wd3, bd3, mask, pool,
      wih, whh, bl, wfc, bfc)


# =============================== parameter init ===============================
def init_params(key):
    ks = jax.random.split(key, 16)
    u = lambda k, s, sc: jax.random.uniform(k, s, jnp.float32, -sc, sc)
    w1 = u(ks[0], (F1, C_IN, 1, 1), 0.3); b1 = u(ks[1], (F1,), 0.1)
    w3 = u(ks[2], (F2, C_IN, 3, 3), 0.2); b3 = u(ks[3], (F2,), 0.1)
    w5 = u(ks[4], (F3, C_IN, 5, 5), 0.1); b5 = u(ks[5], (F3,), 0.1)
    wc = u(ks[6], (C_OUT, NF, 1, 1), 0.3); bc = u(ks[7], (C_OUT,), 0.1)
    wd = u(ks[8], (IN_DIM, RDT), 0.2); bd = u(ks[9], (1, RDT), 0.1)
    k_lstm = float(1.0 / np.sqrt(HID))
    wih0 = u(ks[10], (FEAT, 4 * HID), k_lstm)
    wih0 = jnp.pad(wih0, ((0, HID - FEAT), (0, 0)))        # zero-pad unused input rows
    wih = jnp.concatenate([wih0[None], u(ks[11], (L - 1, HID, 4 * HID), k_lstm)], axis=0)
    whh = u(ks[12], (L, HID, 4 * HID), k_lstm)
    bl = u(ks[13], (L, 1, 4 * HID), k_lstm)                # b_ih + b_hh combined
    wfc = u(ks[14], (HID, NA), k_lstm)
    bfc = u(ks[15], (1, NA), k_lstm)
    return (w1, b1, w3, b3, w5, b5, wc, bc, wd, bd, wih, whh, bl, wfc, bfc)


# =============================== pure-JAX reference ===============================
def ref_forward(x_nchw, params):
    (w1, b1, w3, b3, w5, b5, wc, bc, wd, bd, wih, whh, bl, wfc, bfc) = params
    dn = ('NCHW', 'OIHW', 'NCHW')
    conv = lambda x, w, p: lax.conv_general_dilated(
        x, w, (1, 1), [(p, p), (p, p)], dimension_numbers=dn)
    y1 = jax.nn.relu(conv(x_nchw, w1, 0) + b1[None, :, None, None])
    y3 = jax.nn.relu(conv(x_nchw, w3, 1) + b3[None, :, None, None])
    y5 = jax.nn.relu(conv(x_nchw, w5, 2) + b5[None, :, None, None])
    ycat = jnp.concatenate([y1, y3, y5], axis=1)
    z = jax.nn.relu(conv(ycat, wc, 0) + bc[None, :, None, None])
    x_rdt = jax.nn.relu(jnp.einsum('bchw,wr->bchr', z, wd) + bd)
    reshaped = x_rdt.reshape(SEQ, 1, FEAT)
    h_in = jnp.pad(reshaped, ((0, 0), (0, 0), (0, HID - FEAT)))
    for l in range(L):
        h = jnp.zeros((1, HID), jnp.float32)
        c = jnp.zeros((1, HID), jnp.float32)
        outs = []
        for t in range(SEQ):
            g = h_in[t] @ wih[l] + h @ whh[l] + bl[l]
            i_g = jax.nn.sigmoid(g[:, :HID])
            f_g = jax.nn.sigmoid(g[:, HID:2 * HID])
            g_g = jnp.tanh(g[:, 2 * HID:3 * HID])
            o_g = jax.nn.sigmoid(g[:, 3 * HID:])
            c = f_g * c + i_g * g_g
            h = o_g * jnp.tanh(c)
            outs.append(h)
        h_in = jnp.stack(outs, axis=0)
    logits = h @ wfc + bfc
    return jax.nn.softmax(logits, axis=-1)


if __name__ == "__main__":
    key = jax.random.PRNGKey(0)
    kx, kp = jax.random.split(key)
    x = jax.random.normal(kx, (1, C_IN, SEQ, IN_DIM), jnp.float32)
    params = init_params(kp)
    kparams = prepare_params(params)

    out = jax.block_until_ready(flex_net_forward(x, kparams))
    ref = jax.block_until_ready(ref_forward(x, params))

    assert out.shape == (1, NA)
    np.testing.assert_allclose(np.asarray(out), np.asarray(ref), rtol=5e-3, atol=1e-3)
    print("KERNEL_OK")
</pallas_src>

<mosaic_0001>
module attributes {stable_mosaic.version = 11 : i64} {
  func.func @flexnet_kernel(%arg0: memref<180x30xf32, #tpu.memory_space<vmem>>, %arg1: memref<72x180xf32, #tpu.memory_space<vmem>>, %arg2: memref<72x1xf32, #tpu.memory_space<vmem>>, %arg3: memref<24x72xf32, #tpu.memory_space<vmem>>, %arg4: memref<24x1xf32, #tpu.memory_space<vmem>>, %arg5: memref<30x128xf32, #tpu.memory_space<vmem>>, %arg6: memref<1x128xf32, #tpu.memory_space<vmem>>, %arg7: memref<24x128xf32, #tpu.memory_space<vmem>>, %arg8: memref<8x24xf32, #tpu.memory_space<vmem>>, %arg9: memref<3x128x512xf32, #tpu.memory_space<vmem>>, %arg10: memref<3x128x512xf32, #tpu.memory_space<vmem>>, %arg11: memref<3x1x512xf32, #tpu.memory_space<vmem>>, %arg12: memref<128x45xf32, #tpu.memory_space<vmem>>, %arg13: memref<1x45xf32, #tpu.memory_space<vmem>>, %arg14: memref<1x45xf32, #tpu.memory_space<vmem>>, %arg15: memref<8x128xf32, #tpu.memory_space<vmem>>) attributes {dimension_semantics = [], scalar_prefetch = 0 : i64, scratch_operands = 1 : i64, tpu.core_type = #tpu.core_type<tc>} {
    %c0 = arith.constant 0 : index
    %c0_0 = arith.constant 0 : index
    %0 = vector.load %arg1[%c0, %c0_0] : memref<72x180xf32, #tpu.memory_space<vmem>>, vector<72x180xf32>
    %c0_1 = arith.constant 0 : index
    %c0_2 = arith.constant 0 : index
    %1 = vector.load %arg0[%c0_1, %c0_2] : memref<180x30xf32, #tpu.memory_space<vmem>>, vector<180x30xf32>
    %cst = arith.constant dense<0.000000e+00> : vector<72x30xf32>
    %2 = tpu.matmul %0, %1, %cst {dimension_numbers = #tpu.dot_dimension_numbers<[1], [0], [0], [1], [0, 0, 1, 1], [], []>} : vector<72x180xf32>, vector<180x30xf32>, vector<72x30xf32> -> vector<72x30xf32>
    %c0_3 = arith.constant 0 : index
    %c0_4 = arith.constant 0 : index
    %3 = vector.load %arg2[%c0_3, %c0_4] : memref<72x1xf32, #tpu.memory_space<vmem>>, vector<72x1xf32>
    %4 = vector.broadcast %3 : vector<72x1xf32> to vector<72x30xf32>
    %5 = arith.addf %2, %4 : vector<72x30xf32>
    %cst_5 = arith.constant 0.000000e+00 : f32
    %6 = vector.broadcast %cst_5 : f32 to vector<72x30xf32>
    %7 = arith.maximumf %5, %6 : vector<72x30xf32>
    %c0_6 = arith.constant 0 : index
    %c0_7 = arith.constant 0 : index
    %8 = vector.load %arg3[%c0_6, %c0_7] : memref<24x72xf32, #tpu.memory_space<vmem>>, vector<24x72xf32>
    %cst_8 = arith.constant dense<0.000000e+00> : vector<24x30xf32>
    %9 = tpu.matmul %8, %7, %cst_8 {dimension_numbers = #tpu.dot_dimension_numbers<[1], [0], [0], [1], [0, 0, 1, 1], [], []>} : vector<24x72xf32>, vector<72x30xf32>, vector<24x30xf32> -> vector<24x30xf32>
    %c0_9 = arith.constant 0 : index
    %c0_10 = arith.constant 0 : index
    %10 = vector.load %arg4[%c0_9, %c0_10] : memref<24x1xf32, #tpu.memory_space<vmem>>, vector<24x1xf32>
    %11 = vector.broadcast %10 : vector<24x1xf32> to vector<24x30xf32>
    %12 = arith.addf %9, %11 : vector<24x30xf32>
    %cst_11 = arith.constant 0.000000e+00 : f32
    %13 = vector.broadcast %cst_11 : f32 to vector<24x30xf32>
    %14 = arith.maximumf %12, %13 : vector<24x30xf32>
    %c0_12 = arith.constant 0 : index
    %c0_13 = arith.constant 0 : index
    %15 = vector.load %arg5[%c0_12, %c0_13] : memref<30x128xf32, #tpu.memory_space<vmem>>, vector<30x128xf32>
    %cst_14 = arith.constant dense<0.000000e+00> : vector<24x128xf32>
    %16 = tpu.matmul %14, %15, %cst_14 {dimension_numbers = #tpu.dot_dimension_numbers<[1], [0], [0], [1], [0, 0, 1, 1], [], []>} : vector<24x30xf32>, vector<30x128xf32>, vector<24x128xf32> -> vector<24x128xf32>
    %c0_15 = arith.constant 0 : index
    %c0_16 = arith.constant 0 : index
    %17 = vector.load %arg6[%c0_15, %c0_16] : memref<1x128xf32, #tpu.memory_space<vmem>>, vector<1x128xf32>
    %18 = vector.broadcast %17 : vector<1x128xf32> to vector<24x128xf32>
    %19 = arith.addf %16, %18 : vector<24x128xf32>
    %cst_17 = arith.constant 0.000000e+00 : f32
    %20 = vector.broadcast %cst_17 : f32 to vector<24x128xf32>
    %21 = arith.maximumf %19, %20 : vector<24x128xf32>
    %c0_18 = arith.constant 0 : index
    %c0_19 = arith.constant 0 : index
    %22 = vector.load %arg7[%c0_18, %c0_19] : memref<24x128xf32, #tpu.memory_space<vmem>>, vector<24x128xf32>
    %23 = arith.mulf %21, %22 : vector<24x128xf32>
    %c0_20 = arith.constant 0 : index
    %c0_21 = arith.constant 0 : index
    %24 = vector.load %arg8[%c0_20, %c0_21] : memref<8x24xf32, #tpu.memory_space<vmem>>, vector<8x24xf32>
    %cst_22 = arith.constant dense<0.000000e+00> : vector<8x128xf32>
    %25 = tpu.matmul %24, %23, %cst_22 {dimension_numbers = #tpu.dot_dimension_numbers<[1], [0], [0], [1], [0, 0, 1, 1], [], []>} : vector<8x24xf32>, vector<24x128xf32>, vector<8x128xf32> -> vector<8x128xf32>
    %c0_23 = arith.constant 0 : index
    %c0_24 = arith.constant 0 : index
    %26 = vector.load %arg15[%c0_23, %c0_24] : memref<8x128xf32, #tpu.memory_space<vmem>>, vector<8x128xf32>
    tpu.vector_store %arg15[%c0_23, %c0_24], %25 {strides = array<i32>} : memref<8x128xf32, #tpu.memory_space<vmem>>, vector<8x128xf32>,
    %c0_25 = arith.constant 0 : index
    %c0_26 = arith.constant 0 : index
    %27 = vector.load %arg15[%c0_25, %c0_26] : memref<8x128xf32, #tpu.memory_space<vmem>>, vector<8x128xf32>
    %c0_27 = arith.constant 0 : index
    %c0_28 = arith.constant 0 : index
    %c0_29 = arith.constant 0 : index
    %28 = vector.load %arg9[%c0_27, %c0_28, %c0_29] : memref<3x128x512xf32, #tpu.memory_space<vmem>>, vector<1x128x512xf32>
    %29 = vector.shape_cast %28 : vector<1x128x512xf32> to vector<128x512xf32>
    %cst_30 = arith.constant dense<0.000000e+00> : vector<8x512xf32>
    %30 = tpu.matmul %27, %29, %cst_30 {dimension_numbers = #tpu.dot_dimension_numbers<[1], [0], [0], [1], [0, 0, 1, 1], [], []>} : vector<8x128xf32>, vector<128x512xf32>, vector<8x512xf32> -> vector<8x512xf32>
    %c0_31 = arith.constant 0 : index
    %c0_32 = arith.constant 0 : index
    %c0_33 = arith.constant 0 : index
    %31 = vector.load %arg11[%c0_31, %c0_32, %c0_33] : memref<3x1x512xf32, #tpu.memory_space<vmem>>, vector<1x1x512xf32>
    %32 = vector.shape_cast %31 : vector<1x1x512xf32> to vector<1x512xf32>
    %33 = vector.broadcast %32 : vector<1x512xf32> to vector<8x512xf32>
    %34 = arith.addf %30, %33 : vector<8x512xf32>
    %cst_34 = arith.constant 0.000000e+00 : f32
    %35 = vector.broadcast %cst_34 : f32 to vector<1x128xf32>
    %cst_35 = arith.constant 0.000000e+00 : f32
    %36 = vector.broadcast %cst_35 : f32 to vector<1x128xf32>
    %37 = vector.extract_strided_slice %34 {offsets = [0, 0], sizes = [1, 512], strides = [1, 1]} : vector<8x512xf32> to vector<1x512xf32>
    %c0_36 = arith.constant 0 : index
    %c0_37 = arith.constant 0 : index
    %c0_38 = arith.constant 0 : index
    %38 = vector.load %arg10[%c0_36, %c0_37, %c0_38] : memref<3x128x512xf32, #tpu.memory_space<vmem>>, vector<1x128x512xf32>
    %39 = vector.shape_cast %38 : vector<1x128x512xf32> to vector<128x512xf32>
    %cst_39 = arith.constant dense<0.000000e+00> : vector<1x512xf32>
    %40 = tpu.matmul %35, %39, %cst_39 {dimension_numbers = #tpu.dot_dimension_numbers<[1], [0], [0], [1], [0, 0, 1, 1], [], []>} : vector<1x128xf32>, vector<128x512xf32>, vector<1x512xf32> -> vector<1x512xf32>
    %41 = arith.addf %37, %40 : vector<1x512xf32>
    %42 = vector.extract_strided_slice %41 {offsets = [0, 0], sizes = [1, 384], strides = [1, 1]} : vector<1x512xf32> to vector<1x384xf32>
    %43 = arith.negf %42 : vector<1x384xf32>
    %44 = math.exp %43 : vector<1x384xf32>
    %cst_40 = arith.constant 1.000000e+00 : f32
    %45 = vector.broadcast %cst_40 : f32 to vector<1x384xf32>
    %46 = arith.addf %45, %44 : vector<1x384xf32>
    %47 = arith.divf %45, %46 : vector<1x384xf32>
    %48 = vector.extract_strided_slice %47 {offsets = [0, 0], sizes = [1, 128], strides = [1, 1]} : vector<1x384xf32> to vector<1x128xf32>
    %49 = vector.extract_strided_slice %47 {offsets = [0, 128], sizes = [1, 128], strides = [1, 1]} : vector<1x384xf32> to vector<1x128xf32>
    %50 = vector.extract_strided_slice %47 {offsets = [0, 256], sizes = [1, 128], strides = [1, 1]} : vector<1x384xf32> to vector<1x128xf32>
    %51 = vector.extract_strided_slice %41 {offsets = [0, 384], sizes = [1, 128], strides = [1, 1]} : vector<1x512xf32> to vector<1x128xf32>
    %52 = math.tanh %51 : vector<1x128xf32>
    %53 = arith.mulf %49, %36 : vector<1x128xf32>
    %54 = arith.mulf %48, %52 : vector<1x128xf32>
    %55 = arith.addf %53, %54 : vector<1x128xf32>
    %56 = math.tanh %55 : vector<1x128xf32>
    %57 = arith.mulf %50, %56 : vector<1x128xf32>
    %c0_41 = arith.constant 0 : index
    %c0_42 = arith.constant 0 : index
    %58 = vector.load %arg15[%c0_41, %c0_42] : memref<8x128xf32, #tpu.memory_space<vmem>>, vector<1x128xf32>
    tpu.vector_store %arg15[%c0_41, %c0_42], %57 {strides = array<i32>} : memref<8x128xf32, #tpu.memory_space<vmem>>, vector<1x128xf32>,
    %59 = vector.extract_strided_slice %34 {offsets = [1, 0], sizes = [1, 512], strides = [1, 1]} : vector<8x512xf32> to vector<1x512xf32>
    %c0_43 = arith.constant 0 : index
    %c0_44 = arith.constant 0 : index
    %c0_45 = arith.constant 0 : index
    %60 = vector.load %arg10[%c0_43, %c0_44, %c0_45] : memref<3x128x512xf32, #tpu.memory_space<vmem>>, vector<1x128x512xf32>
    %61 = vector.shape_cast %60 : vector<1x128x512xf32> to vector<128x512xf32>
    %cst_46 = arith.constant dense<0.000000e+00> : vector<1x512xf32>
    %62 = tpu.matmul %57, %61, %cst_46 {dimension_numbers = #tpu.dot_dimension_numbers<[1], [0], [0], [1], [0, 0, 1, 1], [], []>} : vector<1x128xf32>, vector<128x512xf32>, vector<1x512xf32> -> vector<1x512xf32>
    %63 = arith.addf %59, %62 : vector<1x512xf32>
    %64 = vector.extract_strided_slice %63 {offsets = [0, 0], sizes = [1, 384], strides = [1, 1]} : vector<1x512xf32> to vector<1x384xf32>
    %65 = arith.negf %64 : vector<1x384xf32>
    %66 = math.exp %65 : vector<1x384xf32>
    %cst_47 = arith.constant 1.000000e+00 : f32
    %67 = vector.broadcast %cst_47 : f32 to vector<1x384xf32>
    %68 = arith.addf %67, %66 : vector<1x384xf32>
    %69 = arith.divf %67, %68 : vector<1x384xf32>
    %70 = vector.extract_strided_slice %69 {offsets = [0, 0], sizes = [1, 128], strides = [1, 1]} : vector<1x384xf32> to vector<1x128xf32>
    %71 = vector.extract_strided_slice %69 {offsets = [0, 128], sizes = [1, 128], strides = [1, 1]} : vector<1x384xf32> to vector<1x128xf32>
    %72 = vector.extract_strided_slice %69 {offsets = [0, 256], sizes = [1, 128], strides = [1, 1]} : vector<1x384xf32> to vector<1x128xf32>
    %73 = vector.extract_strided_slice %63 {offsets = [0, 384], sizes = [1, 128], strides = [1, 1]} : vector<1x512xf32> to vector<1x128xf32>
    %74 = math.tanh %73 : vector<1x128xf32>
    %75 = arith.mulf %71, %55 : vector<1x128xf32>
    %76 = arith.mulf %70, %74 : vector<1x128xf32>
    %77 = arith.addf %75, %76 : vector<1x128xf32>
    %78 = math.tanh %77 : vector<1x128xf32>
    %79 = arith.mulf %72, %78 : vector<1x128xf32>
    %c1 = arith.constant 1 : index
    %c0_48 = arith.constant 0 : index
    %80 = vector.load %arg15[%c1, %c0_48] : memref<8x128xf32, #tpu.memory_space<vmem>>, vector<1x128xf32>
    tpu.vector_store %arg15[%c1, %c0_48], %79 {strides = array<i32>} : memref<8x128xf32, #tpu.memory_space<vmem>>, vector<1x128xf32>,
    %81 = vector.extract_strided_slice %34 {offsets = [2, 0], sizes = [1, 512], strides = [1, 1]} : vector<8x512xf32> to vector<1x512xf32>
    %c0_49 = arith.constant 0 : index
    %c0_50 = arith.constant 0 : index
    %c0_51 = arith.constant 0 : index
    %82 = vector.load %arg10[%c0_49, %c0_50, %c0_51] : memref<3x128x512xf32, #tpu.memory_space<vmem>>, vector<1x128x512xf32>
    %83 = vector.shape_cast %82 : vector<1x128x512xf32> to vector<128x512xf32>
    %cst_52 = arith.constant dense<0.000000e+00> : vector<1x512xf32>
    %84 = tpu.matmul %79, %83, %cst_52 {dimension_numbers = #tpu.dot_dimension_numbers<[1], [0], [0], [1], [0, 0, 1, 1], [], []>} : vector<1x128xf32>, vector<128x512xf32>, vector<1x512xf32> -> vector<1x512xf32>
    %85 = arith.addf %81, %84 : vector<1x512xf32>
    %86 = vector.extract_strided_slice %85 {offsets = [0, 0], sizes = [1, 384], strides = [1, 1]} : vector<1x512xf32> to vector<1x384xf32>
    %87 = arith.negf %86 : vector<1x384xf32>
    %88 = math.exp %87 : vector<1x384xf32>
    %cst_53 = arith.constant 1.000000e+00 : f32
    %89 = vector.broadcast %cst_53 : f32 to vector<1x384xf32>
    %90 = arith.addf %89, %88 : vector<1x384xf32>
    %91 = arith.divf %89, %90 : vector<1x384xf32>
    %92 = vector.extract_strided_slice %91 {offsets = [0, 0], sizes = [1, 128], strides = [1, 1]} : vector<1x384xf32> to vector<1x128xf32>
    %93 = vector.extract_strided_slice %91 {offsets = [0, 128], sizes = [1, 128], strides = [1, 1]} : vector<1x384xf32> to vector<1x128xf32>
    %94 = vector.extract_strided_slice %91 {offsets = [0, 256], sizes = [1, 128], strides = [1, 1]} : vector<1x384xf32> to vector<1x128xf32>
    %95 = vector.extract_strided_slice %85 {offsets = [0, 384], sizes = [1, 128], strides = [1, 1]} : vector<1x512xf32> to vector<1x128xf32>
    %96 = math.tanh %95 : vector<1x128xf32>
    %97 = arith.mulf %93, %77 : vector<1x128xf32>
    %98 = arith.mulf %92, %96 : vector<1x128xf32>
    %99 = arith.addf %97, %98 : vector<1x128xf32>
    %100 = math.tanh %99 : vector<1x128xf32>
    %101 = arith.mulf %94, %100 : vector<1x128xf32>
    %c2 = arith.constant 2 : index
    %c0_54 = arith.constant 0 : index
    %102 = vector.load %arg15[%c2, %c0_54] : memref<8x128xf32, #tpu.memory_space<vmem>>, vector<1x128xf32>
    tpu.vector_store %arg15[%c2, %c0_54], %101 {strides = array<i32>} : memref<8x128xf32, #tpu.memory_space<vmem>>, vector<1x128xf32>,
    %103 = vector.extract_strided_slice %34 {offsets = [3, 0], sizes = [1, 512], strides = [1, 1]} : vector<8x512xf32> to vector<1x512xf32>
    %c0_55 = arith.constant 0 : index
    %c0_56 = arith.constant 0 : index
    %c0_57 = arith.constant 0 : index
    %104 = vector.load %arg10[%c0_55, %c0_56, %c0_57] : memref<3x128x512xf32, #tpu.memory_space<vmem>>, vector<1x128x512xf32>
    %105 = vector.shape_cast %104 : vector<1x128x512xf32> to vector<128x512xf32>
    %cst_58 = arith.constant dense<0.000000e+00> : vector<1x512xf32>
    %106 = tpu.matmul %101, %105, %cst_58 {dimension_numbers = #tpu.dot_dimension_numbers<[1], [0], [0], [1], [0, 0, 1, 1], [], []>} : vector<1x128xf32>, vector<128x512xf32>, vector<1x512xf32> -> vector<1x512xf32>
    %107 = arith.addf %103, %106 : vector<1x512xf32>
    %108 = vector.extract_strided_slice %107 {offsets = [0, 0], sizes = [1, 384], strides = [1, 1]} : vector<1x512xf32> to vector<1x384xf32>
    %109 = arith.negf %108 : vector<1x384xf32>
    %110 = math.exp %109 : vector<1x384xf32>
    %cst_59 = arith.constant 1.000000e+00 : f32
    %111 = vector.broadcast %cst_59 : f32 to vector<1x384xf32>
    %112 = arith.addf %111, %110 : vector<1x384xf32>
    %113 = arith.divf %111, %112 : vector<1x384xf32>
    %114 = vector.extract_strided_slice %113 {offsets = [0, 0], sizes = [1, 128], strides = [1, 1]} : vector<1x384xf32> to vector<1x128xf32>
    %115 = vector.extract_strided_slice %113 {offsets = [0, 128], sizes = [1, 128], strides = [1, 1]} : vector<1x384xf32> to vector<1x128xf32>
    %116 = vector.extract_strided_slice %113 {offsets = [0, 256], sizes = [1, 128], strides = [1, 1]} : vector<1x384xf32> to vector<1x128xf32>
    %117 = vector.extract_strided_slice %107 {offsets = [0, 384], sizes = [1, 128], strides = [1, 1]} : vector<1x512xf32> to vector<1x128xf32>
    %118 = math.tanh %117 : vector<1x128xf32>
    %119 = arith.mulf %115, %99 : vector<1x128xf32>
    %120 = arith.mulf %114, %118 : vector<1x128xf32>
    %121 = arith.addf %119, %120 : vector<1x128xf32>
    %122 = math.tanh %121 : vector<1x128xf32>
    %123 = arith.mulf %116, %122 : vector<1x128xf32>
    %c3 = arith.constant 3 : index
    %c0_60 = arith.constant 0 : index
    %124 = vector.load %arg15[%c3, %c0_60] : memref<8x128xf32, #tpu.memory_space<vmem>>, vector<1x128xf32>
    tpu.vector_store %arg15[%c3, %c0_60], %123 {strides = array<i32>} : memref<8x128xf32, #tpu.memory_space<vmem>>, vector<1x128xf32>,
    %125 = vector.extract_strided_slice %34 {offsets = [4, 0], sizes = [1, 512], strides = [1, 1]} : vector<8x512xf32> to vector<1x512xf32>
    %c0_61 = arith.constant 0 : index
    %c0_62 = arith.constant 0 : index
    %c0_63 = arith.constant 0 : index
    %126 = vector.load %arg10[%c0_61, %c0_62, %c0_63] : memref<3x128x512xf32, #tpu.memory_space<vmem>>, vector<1x128x512xf32>
    %127 = vector.shape_cast %126 : vector<1x128x512xf32> to vector<128x512xf32>
    %cst_64 = arith.constant dense<0.000000e+00> : vector<1x512xf32>
    %128 = tpu.matmul %123, %127, %cst_64 {dimension_numbers = #tpu.dot_dimension_numbers<[1], [0], [0], [1], [0, 0, 1, 1], [], []>} : vector<1x128xf32>, vector<128x512xf32>, vector<1x512xf32> -> vector<1x512xf32>
    %129 = arith.addf %125, %128 : vector<1x512xf32>
    %130 = vector.extract_strided_slice %129 {offsets = [0, 0], sizes = [1, 384], strides = [1, 1]} : vector<1x512xf32> to vector<1x384xf32>
    %131 = arith.negf %130 : vector<1x384xf32>
    %132 = math.exp %131 : vector<1x384xf32>
    %cst_65 = arith.constant 1.000000e+00 : f32
    %133 = vector.broadcast %cst_65 : f32 to vector<1x384xf32>
    %134 = arith.addf %133, %132 : vector<1x384xf32>
    %135 = arith.divf %133, %134 : vector<1x384xf32>
    %136 = vector.extract_strided_slice %135 {offsets = [0, 0], sizes = [1, 128], strides = [1, 1]} : vector<1x384xf32> to vector<1x128xf32>
    %137 = vector.extract_strided_slice %135 {offsets = [0, 128], sizes = [1, 128], strides = [1, 1]} : vector<1x384xf32> to vector<1x128xf32>
    %138 = vector.extract_strided_slice %135 {offsets = [0, 256], sizes = [1, 128], strides = [1, 1]} : vector<1x384xf32> to vector<1x128xf32>
    %139 = vector.extract_strided_slice %129 {offsets = [0, 384], sizes = [1, 128], strides = [1, 1]} : vector<1x512xf32> to vector<1x128xf32>
    %140 = math.tanh %139 : vector<1x128xf32>
    %141 = arith.mulf %137, %121 : vector<1x128xf32>
    %142 = arith.mulf %136, %140 : vector<1x128xf32>
    %143 = arith.addf %141, %142 : vector<1x128xf32>
    %144 = math.tanh %143 : vector<1x128xf32>
    %145 = arith.mulf %138, %144 : vector<1x128xf32>
    %c4 = arith.constant 4 : index
    %c0_66 = arith.constant 0 : index
    %146 = vector.load %arg15[%c4, %c0_66] : memref<8x128xf32, #tpu.memory_space<vmem>>, vector<1x128xf32>
    tpu.vector_store %arg15[%c4, %c0_66], %145 {strides = array<i32>} : memref<8x128xf32, #tpu.memory_space<vmem>>, vector<1x128xf32>,
    %147 = vector.extract_strided_slice %34 {offsets = [5, 0], sizes = [1, 512], strides = [1, 1]} : vector<8x512xf32> to vector<1x512xf32>
    %c0_67 = arith.constant 0 : index
    %c0_68 = arith.constant 0 : index
    %c0_69 = arith.constant 0 : index
    %148 = vector.load %arg10[%c0_67, %c0_68, %c0_69] : memref<3x128x512xf32, #tpu.memory_space<vmem>>, vector<1x128x512xf32>
    %149 = vector.shape_cast %148 : vector<1x128x512xf32> to vector<128x512xf32>
    %cst_70 = arith.constant dense<0.000000e+00> : vector<1x512xf32>
    %150 = tpu.matmul %145, %149, %cst_70 {dimension_numbers = #tpu.dot_dimension_numbers<[1], [0], [0], [1], [0, 0, 1, 1], [], []>} : vector<1x128xf32>, vector<128x512xf32>, vector<1x512xf32> -> vector<1x512xf32>
    %151 = arith.addf %147, %150 : vector<1x512xf32>
    %152 = vector.extract_strided_slice %151 {offsets = [0, 0], sizes = [1, 384], strides = [1, 1]} : vector<1x512xf32> to vector<1x384xf32>
    %153 = arith.negf %152 : vector<1x384xf32>
    %154 = math.exp %153 : vector<1x384xf32>
    %cst_71 = arith.constant 1.000000e+00 : f32
    %155 = vector.broadcast %cst_71 : f32 to vector<1x384xf32>
    %156 = arith.addf %155, %154 : vector<1x384xf32>
    %157 = arith.divf %155, %156 : vector<1x384xf32>
    %158 = vector.extract_strided_slice %157 {offsets = [0, 0], sizes = [1, 128], strides = [1, 1]} : vector<1x384xf32> to vector<1x128xf32>
    %159 = vector.extract_strided_slice %157 {offsets = [0, 128], sizes = [1, 128], strides = [1, 1]} : vector<1x384xf32> to vector<1x128xf32>
    %160 = vector.extract_strided_slice %157 {offsets = [0, 256], sizes = [1, 128], strides = [1, 1]} : vector<1x384xf32> to vector<1x128xf32>
    %161 = vector.extract_strided_slice %151 {offsets = [0, 384], sizes = [1, 128], strides = [1, 1]} : vector<1x512xf32> to vector<1x128xf32>
    %162 = math.tanh %161 : vector<1x128xf32>
    %163 = arith.mulf %159, %143 : vector<1x128xf32>
    %164 = arith.mulf %158, %162 : vector<1x128xf32>
    %165 = arith.addf %163, %164 : vector<1x128xf32>
    %166 = math.tanh %165 : vector<1x128xf32>
    %167 = arith.mulf %160, %166 : vector<1x128xf32>
    %c5 = arith.constant 5 : index
    %c0_72 = arith.constant 0 : index
    %168 = vector.load %arg15[%c5, %c0_72] : memref<8x128xf32, #tpu.memory_space<vmem>>, vector<1x128xf32>
    tpu.vector_store %arg15[%c5, %c0_72], %167 {strides = array<i32>} : memref<8x128xf32, #tpu.memory_space<vmem>>, vector<1x128xf32>,
    %169 = vector.extract_strided_slice %34 {offsets = [6, 0], sizes = [1, 512], strides = [1, 1]} : vector<8x512xf32> to vector<1x512xf32>
    %c0_73 = arith.constant 0 : index
    %c0_74 = arith.constant 0 : index
    %c0_75 = arith.constant 0 : index
    %170 = vector.load %arg10[%c0_73, %c0_74, %c0_75] : memref<3x128x512xf32, #tpu.memory_space<vmem>>, vector<1x128x512xf32>
    %171 = vector.shape_cast %170 : vector<1x128x512xf32> to vector<128x512xf32>
    %cst_76 = arith.constant dense<0.000000e+00> : vector<1x512xf32>
    %172 = tpu.matmul %167, %171, %cst_76 {dimension_numbers = #tpu.dot_dimension_numbers<[1], [0], [0], [1], [0, 0, 1, 1], [], []>} : vector<1x128xf32>, vector<128x512xf32>, vector<1x512xf32> -> vector<1x512xf32>
    %173 = arith.addf %169, %172 : vector<1x512xf32>
    %174 = vector.extract_strided_slice %173 {offsets = [0, 0], sizes = [1, 384], strides = [1, 1]} : vector<1x512xf32> to vector<1x384xf32>
    %175 = arith.negf %174 : vector<1x384xf32>
    %176 = math.exp %175 : vector<1x384xf32>
    %cst_77 = arith.constant 1.000000e+00 : f32
    %177 = vector.broadcast %cst_77 : f32 to vector<1x384xf32>
    %178 = arith.addf %177, %176 : vector<1x384xf32>
    %179 = arith.divf %177, %178 : vector<1x384xf32>
    %180 = vector.extract_strided_slice %179 {offsets = [0, 0], sizes = [1, 128], strides = [1, 1]} : vector<1x384xf32> to vector<1x128xf32>
    %181 = vector.extract_strided_slice %179 {offsets = [0, 128], sizes = [1, 128], strides = [1, 1]} : vector<1x384xf32> to vector<1x128xf32>
    %182 = vector.extract_strided_slice %179 {offsets = [0, 256], sizes = [1, 128], strides = [1, 1]} : vector<1x384xf32> to vector<1x128xf32>
    %183 = vector.extract_strided_slice %173 {offsets = [0, 384], sizes = [1, 128], strides = [1, 1]} : vector<1x512xf32> to vector<1x128xf32>
    %184 = math.tanh %183 : vector<1x128xf32>
    %185 = arith.mulf %181, %165 : vector<1x128xf32>
    %186 = arith.mulf %180, %184 : vector<1x128xf32>
    %187 = arith.addf %185, %186 : vector<1x128xf32>
    %188 = math.tanh %187 : vector<1x128xf32>
    %189 = arith.mulf %182, %188 : vector<1x128xf32>
    %c6 = arith.constant 6 : index
    %c0_78 = arith.constant 0 : index
    %190 = vector.load %arg15[%c6, %c0_78] : memref<8x128xf32, #tpu.memory_space<vmem>>, vector<1x128xf32>
    tpu.vector_store %arg15[%c6, %c0_78], %189 {strides = array<i32>} : memref<8x128xf32, #tpu.memory_space<vmem>>, vector<1x128xf32>,
    %191 = vector.extract_strided_slice %34 {offsets = [7, 0], sizes = [1, 512], strides = [1, 1]} : vector<8x512xf32> to vector<1x512xf32>
    %c0_79 = arith.constant 0 : index
    %c0_80 = arith.constant 0 : index
    %c0_81 = arith.constant 0 : index
    %192 = vector.load %arg10[%c0_79, %c0_80, %c0_81] : memref<3x128x512xf32, #tpu.memory_space<vmem>>, vector<1x128x512xf32>
    %193 = vector.shape_cast %192 : vector<1x128x512xf32> to vector<128x512xf32>
    %cst_82 = arith.constant dense<0.000000e+00> : vector<1x512xf32>
    %194 = tpu.matmul %189, %193, %cst_82 {dimension_numbers = #tpu.dot_dimension_numbers<[1], [0], [0], [1], [0, 0, 1, 1], [], []>} : vector<1x128xf32>, vector<128x512xf32>, vector<1x512xf32> -> vector<1x512xf32>
    %195 = arith.addf %191, %194 : vector<1x512xf32>
    %196 = vector.extract_strided_slice %195 {offsets = [0, 0], sizes = [1, 384], strides = [1, 1]} : vector<1x512xf32> to vector<1x384xf32>
    %197 = arith.negf %196 : vector<1x384xf32>
    %198 = math.exp %197 : vector<1x384xf32>
    %cst_83 = arith.constant 1.000000e+00 : f32
    %199 = vector.broadcast %cst_83 : f32 to vector<1x384xf32>
    %200 = arith.addf %199, %198 : vector<1x384xf32>
    %201 = arith.divf %199, %200 : vector<1x384xf32>
    %202 = vector.extract_strided_slice %201 {offsets = [0, 0], sizes = [1, 128], strides = [1, 1]} : vector<1x384xf32> to vector<1x128xf32>
    %203 = vector.extract_strided_slice %201 {offsets = [0, 128], sizes = [1, 128], strides = [1, 1]} : vector<1x384xf32> to vector<1x128xf32>
    %204 = vector.extract_strided_slice %201 {offsets = [0, 256], sizes = [1, 128], strides = [1, 1]} : vector<1x384xf32> to vector<1x128xf32>
    %205 = vector.extract_strided_slice %195 {offsets = [0, 384], sizes = [1, 128], strides = [1, 1]} : vector<1x512xf32> to vector<1x128xf32>
    %206 = math.tanh %205 : vector<1x128xf32>
    %207 = arith.mulf %203, %187 : vector<1x128xf32>
    %208 = arith.mulf %202, %206 : vector<1x128xf32>
    %209 = arith.addf %207, %208 : vector<1x128xf32>
    %210 = math.tanh %209 : vector<1x128xf32>
    %211 = arith.mulf %204, %210 : vector<1x128xf32>
    %c7 = arith.constant 7 : index
    %c0_84 = arith.constant 0 : index
    %212 = vector.load %arg15[%c7, %c0_84] : memref<8x128xf32, #tpu.memory_space<vmem>>, vector<1x128xf32>
    tpu.vector_store %arg15[%c7, %c0_84], %211 {strides = array<i32>} : memref<8x128xf32, #tpu.memory_space<vmem>>, vector<1x128xf32>,
    %c0_85 = arith.constant 0 : index
    %c0_86 = arith.constant 0 : index
    %213 = vector.load %arg15[%c0_85, %c0_86] : memref<8x128xf32, #tpu.memory_space<vmem>>, vector<8x128xf32>
    %c1_87 = arith.constant 1 : index
    %c0_88 = arith.constant 0 : index
    %c0_89 = arith.constant 0 : index
    %214 = vector.load %arg9[%c1_87, %c0_88, %c0_89] : memref<3x128x512xf32, #tpu.memory_space<vmem>>, vector<1x128x512xf32>
    %215 = vector.shape_cast %214 : vector<1x128x512xf32> to vector<128x512xf32>
    %cst_90 = arith.constant dense<0.000000e+00> : vector<8x512xf32>
    %216 = tpu.matmul %213, %215, %cst_90 {dimension_numbers = #tpu.dot_dimension_numbers<[1], [0], [0], [1], [0, 0, 1, 1], [], []>} : vector<8x128xf32>, vector<128x512xf32>, vector<8x512xf32> -> vector<8x512xf32>
    %c1_91 = arith.constant 1 : index
    %c0_92 = arith.constant 0 : index
    %c0_93 = arith.constant 0 : index
    %217 = vector.load %arg11[%c1_91, %c0_92, %c0_93] : memref<3x1x512xf32, #tpu.memory_space<vmem>>, vector<1x1x512xf32>
    %218 = vector.shape_cast %217 : vector<1x1x512xf32> to vector<1x512xf32>
    %219 = vector.broadcast %218 : vector<1x512xf32> to vector<8x512xf32>
    %220 = arith.addf %216, %219 : vector<8x512xf32>
    %cst_94 = arith.constant 0.000000e+00 : f32
    %221 = vector.broadcast %cst_94 : f32 to vector<1x128xf32>
    %cst_95 = arith.constant 0.000000e+00 : f32
    %222 = vector.broadcast %cst_95 : f32 to vector<1x128xf32>
    %223 = vector.extract_strided_slice %220 {offsets = [0, 0], sizes = [1, 512], strides = [1, 1]} : vector<8x512xf32> to vector<1x512xf32>
    %c1_96 = arith.constant 1 : index
    %c0_97 = arith.constant 0 : index
    %c0_98 = arith.constant 0 : index
    %224 = vector.load %arg10[%c1_96, %c0_97, %c0_98] : memref<3x128x512xf32, #tpu.memory_space<vmem>>, vector<1x128x512xf32>
    %225 = vector.shape_cast %224 : vector<1x128x512xf32> to vector<128x512xf32>
    %cst_99 = arith.constant dense<0.000000e+00> : vector<1x512xf32>
    %226 = tpu.matmul %221, %225, %cst_99 {dimension_numbers = #tpu.dot_dimension_numbers<[1], [0], [0], [1], [0, 0, 1, 1], [], []>} : vector<1x128xf32>, vector<128x512xf32>, vector<1x512xf32> -> vector<1x512xf32>
    %227 = arith.addf %223, %226 : vector<1x512xf32>
    %228 = vector.extract_strided_slice %227 {offsets = [0, 0], sizes = [1, 384], strides = [1, 1]} : vector<1x512xf32> to vector<1x384xf32>
    %229 = arith.negf %228 : vector<1x384xf32>
    %230 = math.exp %229 : vector<1x384xf32>
    %cst_100 = arith.constant 1.000000e+00 : f32
    %231 = vector.broadcast %cst_100 : f32 to vector<1x384xf32>
    %232 = arith.addf %231, %230 : vector<1x384xf32>
    %233 = arith.divf %231, %232 : vector<1x384xf32>
    %234 = vector.extract_strided_slice %233 {offsets = [0, 0], sizes = [1, 128], strides = [1, 1]} : vector<1x384xf32> to vector<1x128xf32>
    %235 = vector.extract_strided_slice %233 {offsets = [0, 128], sizes = [1, 128], strides = [1, 1]} : vector<1x384xf32> to vector<1x128xf32>
    %236 = vector.extract_strided_slice %233 {offsets = [0, 256], sizes = [1, 128], strides = [1, 1]} : vector<1x384xf32> to vector<1x128xf32>
    %237 = vector.extract_strided_slice %227 {offsets = [0, 384], sizes = [1, 128], strides = [1, 1]} : vector<1x512xf32> to vector<1x128xf32>
    %238 = math.tanh %237 : vector<1x128xf32>
    %239 = arith.mulf %235, %222 : vector<1x128xf32>
    %240 = arith.mulf %234, %238 : vector<1x128xf32>
    %241 = arith.addf %239, %240 : vector<1x128xf32>
    %242 = math.tanh %241 : vector<1x128xf32>
    %243 = arith.mulf %236, %242 : vector<1x128xf32>
    %c0_101 = arith.constant 0 : index
    %c0_102 = arith.constant 0 : index
    %244 = vector.load %arg15[%c0_101, %c0_102] : memref<8x128xf32, #tpu.memory_space<vmem>>, vector<1x128xf32>
    tpu.vector_store %arg15[%c0_101, %c0_102], %243 {strides = array<i32>} : memref<8x128xf32, #tpu.memory_space<vmem>>, vector<1x128xf32>,
    %245 = vector.extract_strided_slice %220 {offsets = [1, 0], sizes = [1, 512], strides = [1, 1]} : vector<8x512xf32> to vector<1x512xf32>
    %c1_103 = arith.constant 1 : index
    %c0_104 = arith.constant 0 : index
    %c0_105 = arith.constant 0 : index
    %246 = vector.load %arg10[%c1_103, %c0_104, %c0_105] : memref<3x128x512xf32, #tpu.memory_space<vmem>>, vector<1x128x512xf32>
    %247 = vector.shape_cast %246 : vector<1x128x512xf32> to vector<128x512xf32>
    %cst_106 = arith.constant dense<0.000000e+00> : vector<1x512xf32>
    %248 = tpu.matmul %243, %247, %cst_106 {dimension_numbers = #tpu.dot_dimension_numbers<[1], [0], [0], [1], [0, 0, 1, 1], [], []>} : vector<1x128xf32>, vector<128x512xf32>, vector<1x512xf32> -> vector<1x512xf32>
    %249 = arith.addf %245, %248 : vector<1x512xf32>
    %250 = vector.extract_strided_slice %249 {offsets = [0, 0], sizes = [1, 384], strides = [1, 1]} : vector<1x512xf32> to vector<1x384xf32>
    %251 = arith.negf %250 : vector<1x384xf32>
    %252 = math.exp %251 : vector<1x384xf32>
    %cst_107 = arith.constant 1.000000e+00 : f32
    %253 = vector.broadcast %cst_107 : f32 to vector<1x384xf32>
    %254 = arith.addf %253, %252 : vector<1x384xf32>
    %255 = arith.divf %253, %254 : vector<1x384xf32>
    %256 = vector.extract_strided_slice %255 {offsets = [0, 0], sizes = [1, 128], strides = [1, 1]} : vector<1x384xf32> to vector<1x128xf32>
    %257 = vector.extract_strided_slice %255 {offsets = [0, 128], sizes = [1, 128], strides = [1, 1]} : vector<1x384xf32> to vector<1x128xf32>
    %258 = vector.extract_strided_slice %255 {offsets = [0, 256], sizes = [1, 128], strides = [1, 1]} : vector<1x384xf32> to vector<1x128xf32>
    %259 = vector.extract_strided_slice %249 {offsets = [0, 384], sizes = [1, 128], strides = [1, 1]} : vector<1x512xf32> to vector<1x128xf32>
    %260 = math.tanh %259 : vector<1x128xf32>
    %261 = arith.mulf %257, %241 : vector<1x128xf32>
    %262 = arith.mulf %256, %260 : vector<1x128xf32>
    %263 = arith.addf %261, %262 : vector<1x128xf32>
    %264 = math.tanh %263 : vector<1x128xf32>
    %265 = arith.mulf %258, %264 : vector<1x128xf32>
    %c1_108 = arith.constant 1 : index
    %c0_109 = arith.constant 0 : index
    %266 = vector.load %arg15[%c1_108, %c0_109] : memref<8x128xf32, #tpu.memory_space<vmem>>, vector<1x128xf32>
    tpu.vector_store %arg15[%c1_108, %c0_109], %265 {strides = array<i32>} : memref<8x128xf32, #tpu.memory_space<vmem>>, vector<1x128xf32>,
    %267 = vector.extract_strided_slice %220 {offsets = [2, 0], sizes = [1, 512], strides = [1, 1]} : vector<8x512xf32> to vector<1x512xf32>
    %c1_110 = arith.constant 1 : index
    %c0_111 = arith.constant 0 : index
    %c0_112 = arith.constant 0 : index
    %268 = vector.load %arg10[%c1_110, %c0_111, %c0_112] : memref<3x128x512xf32, #tpu.memory_space<vmem>>, vector<1x128x512xf32>
    %269 = vector.shape_cast %268 : vector<1x128x512xf32> to vector<128x512xf32>
    %cst_113 = arith.constant dense<0.000000e+00> : vector<1x512xf32>
    %270 = tpu.matmul %265, %269, %cst_113 {dimension_numbers = #tpu.dot_dimension_numbers<[1], [0], [0], [1], [0, 0, 1, 1], [], []>} : vector<1x128xf32>, vector<128x512xf32>, vector<1x512xf32> -> vector<1x512xf32>
    %271 = arith.addf %267, %270 : vector<1x512xf32>
    %272 = vector.extract_strided_slice %271 {offsets = [0, 0], sizes = [1, 384], strides = [1, 1]} : vector<1x512xf32> to vector<1x384xf32>
    %273 = arith.negf %272 : vector<1x384xf32>
    %274 = math.exp %273 : vector<1x384xf32>
    %cst_114 = arith.constant 1.000000e+00 : f32
    %275 = vector.broadcast %cst_114 : f32 to vector<1x384xf32>
    %276 = arith.addf %275, %274 : vector<1x384xf32>
    %277 = arith.divf %275, %276 : vector<1x384xf32>
    %278 = vector.extract_strided_slice %277 {offsets = [0, 0], sizes = [1, 128], strides = [1, 1]} : vector<1x384xf32> to vector<1x128xf32>
    %279 = vector.extract_strided_slice %277 {offsets = [0, 128], sizes = [1, 128], strides = [1, 1]} : vector<1x384xf32> to vector<1x128xf32>
    %280 = vector.extract_strided_slice %277 {offsets = [0, 256], sizes = [1, 128], strides = [1, 1]} : vector<1x384xf32> to vector<1x128xf32>
    %281 = vector.extract_strided_slice %271 {offsets = [0, 384], sizes = [1, 128], strides = [1, 1]} : vector<1x512xf32> to vector<1x128xf32>
    %282 = math.tanh %281 : vector<1x128xf32>
    %283 = arith.mulf %279, %263 : vector<1x128xf32>
    %284 = arith.mulf %278, %282 : vector<1x128xf32>
    %285 = arith.addf %283, %284 : vector<1x128xf32>
    %286 = math.tanh %285 : vector<1x128xf32>
    %287 = arith.mulf %280, %286 : vector<1x128xf32>
    %c2_115 = arith.constant 2 : index
    %c0_116 = arith.constant 0 : index
    %288 = vector.load %arg15[%c2_115, %c0_116] : memref<8x128xf32, #tpu.memory_space<vmem>>, vector<1x128xf32>
    tpu.vector_store %arg15[%c2_115, %c0_116], %287 {strides = array<i32>} : memref<8x128xf32, #tpu.memory_space<vmem>>, vector<1x128xf32>,
    %289 = vector.extract_strided_slice %220 {offsets = [3, 0], sizes = [1, 512], strides = [1, 1]} : vector<8x512xf32> to vector<1x512xf32>
    %c1_117 = arith.constant 1 : index
    %c0_118 = arith.constant 0 : index
    %c0_119 = arith.constant 0 : index
    %290 = vector.load %arg10[%c1_117, %c0_118, %c0_119] : memref<3x128x512xf32, #tpu.memory_space<vmem>>, vector<1x128x512xf32>
    %291 = vector.shape_cast %290 : vector<1x128x512xf32> to vector<128x512xf32>
    %cst_120 = arith.constant dense<0.000000e+00> : vector<1x512xf32>
    %292 = tpu.matmul %287, %291, %cst_120 {dimension_numbers = #tpu.dot_dimension_numbers<[1], [0], [0], [1], [0, 0, 1, 1], [], []>} : vector<1x128xf32>, vector<128x512xf32>, vector<1x512xf32> -> vector<1x512xf32>
    %293 = arith.addf %289, %292 : vector<1x512xf32>
    %294 = vector.extract_strided_slice %293 {offsets = [0, 0], sizes = [1, 384], strides = [1, 1]} : vector<1x512xf32> to vector<1x384xf32>
    %295 = arith.negf %294 : vector<1x384xf32>
    %296 = math.exp %295 : vector<1x384xf32>
    %cst_121 = arith.constant 1.000000e+00 : f32
    %297 = vector.broadcast %cst_121 : f32 to vector<1x384xf32>
    %298 = arith.addf %297, %296 : vector<1x384xf32>
    %299 = arith.divf %297, %298 : vector<1x384xf32>
    %300 = vector.extract_strided_slice %299 {offsets = [0, 0], sizes = [1, 128], strides = [1, 1]} : vector<1x384xf32> to vector<1x128xf32>
    %301 = vector.extract_strided_slice %299 {offsets = [0, 128], sizes = [1, 128], strides = [1, 1]} : vector<1x384xf32> to vector<1x128xf32>
    %302 = vector.extract_strided_slice %299 {offsets = [0, 256], sizes = [1, 128], strides = [1, 1]} : vector<1x384xf32> to vector<1x128xf32>
    %303 = vector.extract_strided_slice %293 {offsets = [0, 384], sizes = [1, 128], strides = [1, 1]} : vector<1x512xf32> to vector<1x128xf32>
    %304 = math.tanh %303 : vector<1x128xf32>
    %305 = arith.mulf %301, %285 : vector<1x128xf32>
    %306 = arith.mulf %300, %304 : vector<1x128xf32>
    %307 = arith.addf %305, %306 : vector<1x128xf32>
    %308 = math.tanh %307 : vector<1x128xf32>
    %309 = arith.mulf %302, %308 : vector<1x128xf32>
    %c3_122 = arith.constant 3 : index
    %c0_123 = arith.constant 0 : index
    %310 = vector.load %arg15[%c3_122, %c0_123] : memref<8x128xf32, #tpu.memory_space<vmem>>, vector<1x128xf32>
    tpu.vector_store %arg15[%c3_122, %c0_123], %309 {strides = array<i32>} : memref<8x128xf32, #tpu.memory_space<vmem>>, vector<1x128xf32>,
    %311 = vector.extract_strided_slice %220 {offsets = [4, 0], sizes = [1, 512], strides = [1, 1]} : vector<8x512xf32> to vector<1x512xf32>
    %c1_124 = arith.constant 1 : index
    %c0_125 = arith.constant 0 : index
    %c0_126 = arith.constant 0 : index
    %312 = vector.load %arg10[%c1_124, %c0_125, %c0_126] : memref<3x128x512xf32, #tpu.memory_space<vmem>>, vector<1x128x512xf32>
    %313 = vector.shape_cast %312 : vector<1x128x512xf32> to vector<128x512xf32>
    %cst_127 = arith.constant dense<0.000000e+00> : vector<1x512xf32>
    %314 = tpu.matmul %309, %313, %cst_127 {dimension_numbers = #tpu.dot_dimension_numbers<[1], [0], [0], [1], [0, 0, 1, 1], [], []>} : vector<1x128xf32>, vector<128x512xf32>, vector<1x512xf32> -> vector<1x512xf32>
    %315 = arith.addf %311, %314 : vector<1x512xf32>
    %316 = vector.extract_strided_slice %315 {offsets = [0, 0], sizes = [1, 384], strides = [1, 1]} : vector<1x512xf32> to vector<1x384xf32>
    %317 = arith.negf %316 : vector<1x384xf32>
    %318 = math.exp %317 : vector<1x384xf32>
    %cst_128 = arith.constant 1.000000e+00 : f32
    %319 = vector.broadcast %cst_128 : f32 to vector<1x384xf32>
    %320 = arith.addf %319, %318 : vector<1x384xf32>
    %321 = arith.divf %319, %320 : vector<1x384xf32>
    %322 = vector.extract_strided_slice %321 {offsets = [0, 0], sizes = [1, 128], strides = [1, 1]} : vector<1x384xf32> to vector<1x128xf32>
    %323 = vector.extract_strided_slice %321 {offsets = [0, 128], sizes = [1, 128], strides = [1, 1]} : vector<1x384xf32> to vector<1x128xf32>
    %324 = vector.extract_strided_slice %321 {offsets = [0, 256], sizes = [1, 128], strides = [1, 1]} : vector<1x384xf32> to vector<1x128xf32>
    %325 = vector.extract_strided_slice %315 {offsets = [0, 384], sizes = [1, 128], strides = [1, 1]} : vector<1x512xf32> to vector<1x128xf32>
    %326 = math.tanh %325 : vector<1x128xf32>
    %327 = arith.mulf %323, %307 : vector<1x128xf32>
    %328 = arith.mulf %322, %326 : vector<1x128xf32>
    %329 = arith.addf %327, %328 : vector<1x128xf32>
    %330 = math.tanh %329 : vector<1x128xf32>
    %331 = arith.mulf %324, %330 : vector<1x128xf32>
    %c4_129 = arith.constant 4 : index
    %c0_130 = arith.constant 0 : index
    %332 = vector.load %arg15[%c4_129, %c0_130] : memref<8x128xf32, #tpu.memory_space<vmem>>, vector<1x128xf32>
    tpu.vector_store %arg15[%c4_129, %c0_130], %331 {strides = array<i32>} : memref<8x128xf32, #tpu.memory_space<vmem>>, vector<1x128xf32>,
    %333 = vector.extract_strided_slice %220 {offsets = [5, 0], sizes = [1, 512], strides = [1, 1]} : vector<8x512xf32> to vector<1x512xf32>
    %c1_131 = arith.constant 1 : index
    %c0_132 = arith.constant 0 : index
    %c0_133 = arith.constant 0 : index
    %334 = vector.load %arg10[%c1_131, %c0_132, %c0_133] : memref<3x128x512xf32, #tpu.memory_space<vmem>>, vector<1x128x512xf32>
    %335 = vector.shape_cast %334 : vector<1x128x512xf32> to vector<128x512xf32>
    %cst_134 = arith.constant dense<0.000000e+00> : vector<1x512xf32>
    %336 = tpu.matmul %331, %335, %cst_134 {dimension_numbers = #tpu.dot_dimension_numbers<[1], [0], [0], [1], [0, 0, 1, 1], [], []>} : vector<1x128xf32>, vector<128x512xf32>, vector<1x512xf32> -> vector<1x512xf32>
    %337 = arith.addf %333, %336 : vector<1x512xf32>
    %338 = vector.extract_strided_slice %337 {offsets = [0, 0], sizes = [1, 384], strides = [1, 1]} : vector<1x512xf32> to vector<1x384xf32>
    %339 = arith.negf %338 : vector<1x384xf32>
    %340 = math.exp %339 : vector<1x384xf32>
    %cst_135 = arith.constant 1.000000e+00 : f32
    %341 = vector.broadcast %cst_135 : f32 to vector<1x384xf32>
    %342 = arith.addf %341, %340 : vector<1x384xf32>
    %343 = arith.divf %341, %342 : vector<1x384xf32>
    %344 = vector.extract_strided_slice %343 {offsets = [0, 0], sizes = [1, 128], strides = [1, 1]} : vector<1x384xf32> to vector<1x128xf32>
    %345 = vector.extract_strided_slice %343 {offsets = [0, 128], sizes = [1, 128], strides = [1, 1]} : vector<1x384xf32> to vector<1x128xf32>
    %346 = vector.extract_strided_slice %343 {offsets = [0, 256], sizes = [1, 128], strides = [1, 1]} : vector<1x384xf32> to vector<1x128xf32>
    %347 = vector.extract_strided_slice %337 {offsets = [0, 384], sizes = [1, 128], strides = [1, 1]} : vector<1x512xf32> to vector<1x128xf32>
    %348 = math.tanh %347 : vector<1x128xf32>
    %349 = arith.mulf %345, %329 : vector<1x128xf32>
    %350 = arith.mulf %344, %348 : vector<1x128xf32>
    %351 = arith.addf %349, %350 : vector<1x128xf32>
    %352 = math.tanh %351 : vector<1x128xf32>
    %353 = arith.mulf %346, %352 : vector<1x128xf32>
    %c5_136 = arith.constant 5 : index
    %c0_137 = arith.constant 0 : index
    %354 = vector.load %arg15[%c5_136, %c0_137] : memref<8x128xf32, #tpu.memory_space<vmem>>, vector<1x128xf32>
    tpu.vector_store %arg15[%c5_136, %c0_137], %353 {strides = array<i32>} : memref<8x128xf32, #tpu.memory_space<vmem>>, vector<1x128xf32>,
    %355 = vector.extract_strided_slice %220 {offsets = [6, 0], sizes = [1, 512], strides = [1, 1]} : vector<8x512xf32> to vector<1x512xf32>
    %c1_138 = arith.constant 1 : index
    %c0_139 = arith.constant 0 : index
    %c0_140 = arith.constant 0 : index
    %356 = vector.load %arg10[%c1_138, %c0_139, %c0_140] : memref<3x128x512xf32, #tpu.memory_space<vmem>>, vector<1x128x512xf32>
    %357 = vector.shape_cast %356 : vector<1x128x512xf32> to vector<128x512xf32>
    %cst_141 = arith.constant dense<0.000000e+00> : vector<1x512xf32>
    %358 = tpu.matmul %353, %357, %cst_141 {dimension_numbers = #tpu.dot_dimension_numbers<[1], [0], [0], [1], [0, 0, 1, 1], [], []>} : vector<1x128xf32>, vector<128x512xf32>, vector<1x512xf32> -> vector<1x512xf32>
    %359 = arith.addf %355, %358 : vector<1x512xf32>
    %360 = vector.extract_strided_slice %359 {offsets = [0, 0], sizes = [1, 384], strides = [1, 1]} : vector<1x512xf32> to vector<1x384xf32>
    %361 = arith.negf %360 : vector<1x384xf32>
    %362 = math.exp %361 : vector<1x384xf32>
    %cst_142 = arith.constant 1.000000e+00 : f32
    %363 = vector.broadcast %cst_142 : f32 to vector<1x384xf32>
    %364 = arith.addf %363, %362 : vector<1x384xf32>
    %365 = arith.divf %363, %364 : vector<1x384xf32>
    %366 = vector.extract_strided_slice %365 {offsets = [0, 0], sizes = [1, 128], strides = [1, 1]} : vector<1x384xf32> to vector<1x128xf32>
    %367 = vector.extract_strided_slice %365 {offsets = [0, 128], sizes = [1, 128], strides = [1, 1]} : vector<1x384xf32> to vector<1x128xf32>
    %368 = vector.extract_strided_slice %365 {offsets = [0, 256], sizes = [1, 128], strides = [1, 1]} : vector<1x384xf32> to vector<1x128xf32>
    %369 = vector.extract_strided_slice %359 {offsets = [0, 384], sizes = [1, 128], strides = [1, 1]} : vector<1x512xf32> to vector<1x128xf32>
    %370 = math.tanh %369 : vector<1x128xf32>
    %371 = arith.mulf %367, %351 : vector<1x128xf32>
    %372 = arith.mulf %366, %370 : vector<1x128xf32>
    %373 = arith.addf %371, %372 : vector<1x128xf32>
    %374 = math.tanh %373 : vector<1x128xf32>
    %375 = arith.mulf %368, %374 : vector<1x128xf32>
    %c6_143 = arith.constant 6 : index
    %c0_144 = arith.constant 0 : index
    %376 = vector.load %arg15[%c6_143, %c0_144] : memref<8x128xf32, #tpu.memory_space<vmem>>, vector<1x128xf32>
    tpu.vector_store %arg15[%c6_143, %c0_144], %375 {strides = array<i32>} : memref<8x128xf32, #tpu.memory_space<vmem>>, vector<1x128xf32>,
    %377 = vector.extract_strided_slice %220 {offsets = [7, 0], sizes = [1, 512], strides = [1, 1]} : vector<8x512xf32> to vector<1x512xf32>
    %c1_145 = arith.constant 1 : index
    %c0_146 = arith.constant 0 : index
    %c0_147 = arith.constant 0 : index
    %378 = vector.load %arg10[%c1_145, %c0_146, %c0_147] : memref<3x128x512xf32, #tpu.memory_space<vmem>>, vector<1x128x512xf32>
    %379 = vector.shape_cast %378 : vector<1x128x512xf32> to vector<128x512xf32>
    %cst_148 = arith.constant dense<0.000000e+00> : vector<1x512xf32>
    %380 = tpu.matmul %375, %379, %cst_148 {dimension_numbers = #tpu.dot_dimension_numbers<[1], [0], [0], [1], [0, 0, 1, 1], [], []>} : vector<1x128xf32>, vector<128x512xf32>, vector<1x512xf32> -> vector<1x512xf32>
    %381 = arith.addf %377, %380 : vector<1x512xf32>
    %382 = vector.extract_strided_slice %381 {offsets = [0, 0], sizes = [1, 384], strides = [1, 1]} : vector<1x512xf32> to vector<1x384xf32>
    %383 = arith.negf %382 : vector<1x384xf32>
    %384 = math.exp %383 : vector<1x384xf32>
    %cst_149 = arith.constant 1.000000e+00 : f32
    %385 = vector.broadcast %cst_149 : f32 to vector<1x384xf32>
    %386 = arith.addf %385, %384 : vector<1x384xf32>
    %387 = arith.divf %385, %386 : vector<1x384xf32>
    %388 = vector.extract_strided_slice %387 {offsets = [0, 0], sizes = [1, 128], strides = [1, 1]} : vector<1x384xf32> to vector<1x128xf32>
    %389 = vector.extract_strided_slice %387 {offsets = [0, 128], sizes = [1, 128], strides = [1, 1]} : vector<1x384xf32> to vector<1x128xf32>
    %390 = vector.extract_strided_slice %387 {offsets = [0, 256], sizes = [1, 128], strides = [1, 1]} : vector<1x384xf32> to vector<1x128xf32>
    %391 = vector.extract_strided_slice %381 {offsets = [0, 384], sizes = [1, 128], strides = [1, 1]} : vector<1x512xf32> to vector<1x128xf32>
    %392 = math.tanh %391 : vector<1x128xf32>
    %393 = arith.mulf %389, %373 : vector<1x128xf32>
    %394 = arith.mulf %388, %392 : vector<1x128xf32>
    %395 = arith.addf %393, %394 : vector<1x128xf32>
    %396 = math.tanh %395 : vector<1x128xf32>
    %397 = arith.mulf %390, %396 : vector<1x128xf32>
    %c7_150 = arith.constant 7 : index
    %c0_151 = arith.constant 0 : index
    %398 = vector.load %arg15[%c7_150, %c0_151] : memref<8x128xf32, #tpu.memory_space<vmem>>, vector<1x128xf32>
    tpu.vector_store %arg15[%c7_150, %c0_151], %397 {strides = array<i32>} : memref<8x128xf32, #tpu.memory_space<vmem>>, vector<1x128xf32>,
    %c0_152 = arith.constant 0 : index
    %c0_153 = arith.constant 0 : index
    %399 = vector.load %arg15[%c0_152, %c0_153] : memref<8x128xf32, #tpu.memory_space<vmem>>, vector<8x128xf32>
    %c2_154 = arith.constant 2 : index
    %c0_155 = arith.constant 0 : index
    %c0_156 = arith.constant 0 : index
    %400 = vector.load %arg9[%c2_154, %c0_155, %c0_156] : memref<3x128x512xf32, #tpu.memory_space<vmem>>, vector<1x128x512xf32>
    %401 = vector.shape_cast %400 : vector<1x128x512xf32> to vector<128x512xf32>
    %cst_157 = arith.constant dense<0.000000e+00> : vector<8x512xf32>
    %402 = tpu.matmul %399, %401, %cst_157 {dimension_numbers = #tpu.dot_dimension_numbers<[1], [0], [0], [1], [0, 0, 1, 1], [], []>} : vector<8x128xf32>, vector<128x512xf32>, vector<8x512xf32> -> vector<8x512xf32>
    %c2_158 = arith.constant 2 : index
    %c0_159 = arith.constant 0 : index
    %c0_160 = arith.constant 0 : index
    %403 = vector.load %arg11[%c2_158, %c0_159, %c0_160] : memref<3x1x512xf32, #tpu.memory_space<vmem>>, vector<1x1x512xf32>
    %404 = vector.shape_cast %403 : vector<1x1x512xf32> to vector<1x512xf32>
    %405 = vector.broadcast %404 : vector<1x512xf32> to vector<8x512xf32>
    %406 = arith.addf %402, %405 : vector<8x512xf32>
    %cst_161 = arith.constant 0.000000e+00 : f32
    %407 = vector.broadcast %cst_161 : f32 to vector<1x128xf32>
    %cst_162 = arith.constant 0.000000e+00 : f32
    %408 = vector.broadcast %cst_162 : f32 to vector<1x128xf32>
    %409 = vector.extract_strided_slice %406 {offsets = [0, 0], sizes = [1, 512], strides = [1, 1]} : vector<8x512xf32> to vector<1x512xf32>
    %c2_163 = arith.constant 2 : index
    %c0_164 = arith.constant 0 : index
    %c0_165 = arith.constant 0 : index
    %410 = vector.load %arg10[%c2_163, %c0_164, %c0_165] : memref<3x128x512xf32, #tpu.memory_space<vmem>>, vector<1x128x512xf32>
    %411 = vector.shape_cast %410 : vector<1x128x512xf32> to vector<128x512xf32>
    %cst_166 = arith.constant dense<0.000000e+00> : vector<1x512xf32>
    %412 = tpu.matmul %407, %411, %cst_166 {dimension_numbers = #tpu.dot_dimension_numbers<[1], [0], [0], [1], [0, 0, 1, 1], [], []>} : vector<1x128xf32>, vector<128x512xf32>, vector<1x512xf32> -> vector<1x512xf32>
    %413 = arith.addf %409, %412 : vector<1x512xf32>
    %414 = vector.extract_strided_slice %413 {offsets = [0, 0], sizes = [1, 384], strides = [1, 1]} : vector<1x512xf32> to vector<1x384xf32>
    %415 = arith.negf %414 : vector<1x384xf32>
    %416 = math.exp %415 : vector<1x384xf32>
    %cst_167 = arith.constant 1.000000e+00 : f32
    %417 = vector.broadcast %cst_167 : f32 to vector<1x384xf32>
    %418 = arith.addf %417, %416 : vector<1x384xf32>
    %419 = arith.divf %417, %418 : vector<1x384xf32>
    %420 = vector.extract_strided_slice %419 {offsets = [0, 0], sizes = [1, 128], strides = [1, 1]} : vector<1x384xf32> to vector<1x128xf32>
    %421 = vector.extract_strided_slice %419 {offsets = [0, 128], sizes = [1, 128], strides = [1, 1]} : vector<1x384xf32> to vector<1x128xf32>
    %422 = vector.extract_strided_slice %419 {offsets = [0, 256], sizes = [1, 128], strides = [1, 1]} : vector<1x384xf32> to vector<1x128xf32>
    %423 = vector.extract_strided_slice %413 {offsets = [0, 384], sizes = [1, 128], strides = [1, 1]} : vector<1x512xf32> to vector<1x128xf32>
    %424 = math.tanh %423 : vector<1x128xf32>
    %425 = arith.mulf %421, %408 : vector<1x128xf32>
    %426 = arith.mulf %420, %424 : vector<1x128xf32>
    %427 = arith.addf %425, %426 : vector<1x128xf32>
    %428 = math.tanh %427 : vector<1x128xf32>
    %429 = arith.mulf %422, %428 : vector<1x128xf32>
    %430 = vector.extract_strided_slice %406 {offsets = [1, 0], sizes = [1, 512], strides = [1, 1]} : vector<8x512xf32> to vector<1x512xf32>
    %c2_168 = arith.constant 2 : index
    %c0_169 = arith.constant 0 : index
    %c0_170 = arith.constant 0 : index
    %431 = vector.load %arg10[%c2_168, %c0_169, %c0_170] : memref<3x128x512xf32, #tpu.memory_space<vmem>>, vector<1x128x512xf32>
    %432 = vector.shape_cast %431 : vector<1x128x512xf32> to vector<128x512xf32>
    %cst_171 = arith.constant dense<0.000000e+00> : vector<1x512xf32>
    %433 = tpu.matmul %429, %432, %cst_171 {dimension_numbers = #tpu.dot_dimension_numbers<[1], [0], [0], [1], [0, 0, 1, 1], [], []>} : vector<1x128xf32>, vector<128x512xf32>, vector<1x512xf32> -> vector<1x512xf32>
    %434 = arith.addf %430, %433 : vector<1x512xf32>
    %435 = vector.extract_strided_slice %434 {offsets = [0, 0], sizes = [1, 384], strides = [1, 1]} : vector<1x512xf32> to vector<1x384xf32>
    %436 = arith.negf %435 : vector<1x384xf32>
    %437 = math.exp %436 : vector<1x384xf32>
    %cst_172 = arith.constant 1.000000e+00 : f32
    %438 = vector.broadcast %cst_172 : f32 to vector<1x384xf32>
    %439 = arith.addf %438, %437 : vector<1x384xf32>
    %440 = arith.divf %438, %439 : vector<1x384xf32>
    %441 = vector.extract_strided_slice %440 {offsets = [0, 0], sizes = [1, 128], strides = [1, 1]} : vector<1x384xf32> to vector<1x128xf32>
    %442 = vector.extract_strided_slice %440 {offsets = [0, 128], sizes = [1, 128], strides = [1, 1]} : vector<1x384xf32> to vector<1x128xf32>
    %443 = vector.extract_strided_slice %440 {offsets = [0, 256], sizes = [1, 128], strides = [1, 1]} : vector<1x384xf32> to vector<1x128xf32>
    %444 = vector.extract_strided_slice %434 {offsets = [0, 384], sizes = [1, 128], strides = [1, 1]} : vector<1x512xf32> to vector<1x128xf32>
    %445 = math.tanh %444 : vector<1x128xf32>
    %446 = arith.mulf %442, %427 : vector<1x128xf32>
    %447 = arith.mulf %441, %445 : vector<1x128xf32>
    %448 = arith.addf %446, %447 : vector<1x128xf32>
    %449 = math.tanh %448 : vector<1x128xf32>
    %450 = arith.mulf %443, %449 : vector<1x128xf32>
    %451 = vector.extract_strided_slice %406 {offsets = [2, 0], sizes = [1, 512], strides = [1, 1]} : vector<8x512xf32> to vector<1x512xf32>
    %c2_173 = arith.constant 2 : index
    %c0_174 = arith.constant 0 : index
    %c0_175 = arith.constant 0 : index
    %452 = vector.load %arg10[%c2_173, %c0_174, %c0_175] : memref<3x128x512xf32, #tpu.memory_space<vmem>>, vector<1x128x512xf32>
    %453 = vector.shape_cast %452 : vector<1x128x512xf32> to vector<128x512xf32>
    %cst_176 = arith.constant dense<0.000000e+00> : vector<1x512xf32>
    %454 = tpu.matmul %450, %453, %cst_176 {dimension_numbers = #tpu.dot_dimension_numbers<[1], [0], [0], [1], [0, 0, 1, 1], [], []>} : vector<1x128xf32>, vector<128x512xf32>, vector<1x512xf32> -> vector<1x512xf32>
    %455 = arith.addf %451, %454 : vector<1x512xf32>
    %456 = vector.extract_strided_slice %455 {offsets = [0, 0], sizes = [1, 384], strides = [1, 1]} : vector<1x512xf32> to vector<1x384xf32>
    %457 = arith.negf %456 : vector<1x384xf32>
    %458 = math.exp %457 : vector<1x384xf32>
    %cst_177 = arith.constant 1.000000e+00 : f32
    %459 = vector.broadcast %cst_177 : f32 to vector<1x384xf32>
    %460 = arith.addf %459, %458 : vector<1x384xf32>
    %461 = arith.divf %459, %460 : vector<1x384xf32>
    %462 = vector.extract_strided_slice %461 {offsets = [0, 0], sizes = [1, 128], strides = [1, 1]} : vector<1x384xf32> to vector<1x128xf32>
    %463 = vector.extract_strided_slice %461 {offsets = [0, 128], sizes = [1, 128], strides = [1, 1]} : vector<1x384xf32> to vector<1x128xf32>
    %464 = vector.extract_strided_slice %461 {offsets = [0, 256], sizes = [1, 128], strides = [1, 1]} : vector<1x384xf32> to vector<1x128xf32>
    %465 = vector.extract_strided_slice %455 {offsets = [0, 384], sizes = [1, 128], strides = [1, 1]} : vector<1x512xf32> to vector<1x128xf32>
    %466 = math.tanh %465 : vector<1x128xf32>
    %467 = arith.mulf %463, %448 : vector<1x128xf32>
    %468 = arith.mulf %462, %466 : vector<1x128xf32>
    %469 = arith.addf %467, %468 : vector<1x128xf32>
    %470 = math.tanh %469 : vector<1x128xf32>
    %471 = arith.mulf %464, %470 : vector<1x128xf32>
    %472 = vector.extract_strided_slice %406 {offsets = [3, 0], sizes = [1, 512], strides = [1, 1]} : vector<8x512xf32> to vector<1x512xf32>
    %c2_178 = arith.constant 2 : index
    %c0_179 = arith.constant 0 : index
    %c0_180 = arith.constant 0 : index
    %473 = vector.load %arg10[%c2_178, %c0_179, %c0_180] : memref<3x128x512xf32, #tpu.memory_space<vmem>>, vector<1x128x512xf32>
    %474 = vector.shape_cast %473 : vector<1x128x512xf32> to vector<128x512xf32>
    %cst_181 = arith.constant dense<0.000000e+00> : vector<1x512xf32>
    %475 = tpu.matmul %471, %474, %cst_181 {dimension_numbers = #tpu.dot_dimension_numbers<[1], [0], [0], [1], [0, 0, 1, 1], [], []>} : vector<1x128xf32>, vector<128x512xf32>, vector<1x512xf32> -> vector<1x512xf32>
    %476 = arith.addf %472, %475 : vector<1x512xf32>
    %477 = vector.extract_strided_slice %476 {offsets = [0, 0], sizes = [1, 384], strides = [1, 1]} : vector<1x512xf32> to vector<1x384xf32>
    %478 = arith.negf %477 : vector<1x384xf32>
    %479 = math.exp %478 : vector<1x384xf32>
    %cst_182 = arith.constant 1.000000e+00 : f32
    %480 = vector.broadcast %cst_182 : f32 to vector<1x384xf32>
    %481 = arith.addf %480, %479 : vector<1x384xf32>
    %482 = arith.divf %480, %481 : vector<1x384xf32>
    %483 = vector.extract_strided_slice %482 {offsets = [0, 0], sizes = [1, 128], strides = [1, 1]} : vector<1x384xf32> to vector<1x128xf32>
    %484 = vector.extract_strided_slice %482 {offsets = [0, 128], sizes = [1, 128], strides = [1, 1]} : vector<1x384xf32> to vector<1x128xf32>
    %485 = vector.extract_strided_slice %482 {offsets = [0, 256], sizes = [1, 128], strides = [1, 1]} : vector<1x384xf32> to vector<1x128xf32>
    %486 = vector.extract_strided_slice %476 {offsets = [0, 384], sizes = [1, 128], strides = [1, 1]} : vector<1x512xf32> to vector<1x128xf32>
    %487 = math.tanh %486 : vector<1x128xf32>
    %488 = arith.mulf %484, %469 : vector<1x128xf32>
    %489 = arith.mulf %483, %487 : vector<1x128xf32>
    %490 = arith.addf %488, %489 : vector<1x128xf32>
    %491 = math.tanh %490 : vector<1x128xf32>
    %492 = arith.mulf %485, %491 : vector<1x128xf32>
    %493 = vector.extract_strided_slice %406 {offsets = [4, 0], sizes = [1, 512], strides = [1, 1]} : vector<8x512xf32> to vector<1x512xf32>
    %c2_183 = arith.constant 2 : index
    %c0_184 = arith.constant 0 : index
    %c0_185 = arith.constant 0 : index
    %494 = vector.load %arg10[%c2_183, %c0_184, %c0_185] : memref<3x128x512xf32, #tpu.memory_space<vmem>>, vector<1x128x512xf32>
    %495 = vector.shape_cast %494 : vector<1x128x512xf32> to vector<128x512xf32>
    %cst_186 = arith.constant dense<0.000000e+00> : vector<1x512xf32>
    %496 = tpu.matmul %492, %495, %cst_186 {dimension_numbers = #tpu.dot_dimension_numbers<[1], [0], [0], [1], [0, 0, 1, 1], [], []>} : vector<1x128xf32>, vector<128x512xf32>, vector<1x512xf32> -> vector<1x512xf32>
    %497 = arith.addf %493, %496 : vector<1x512xf32>
    %498 = vector.extract_strided_slice %497 {offsets = [0, 0], sizes = [1, 384], strides = [1, 1]} : vector<1x512xf32> to vector<1x384xf32>
    %499 = arith.negf %498 : vector<1x384xf32>
    %500 = math.exp %499 : vector<1x384xf32>
    %cst_187 = arith.constant 1.000000e+00 : f32
    %501 = vector.broadcast %cst_187 : f32 to vector<1x384xf32>
    %502 = arith.addf %501, %500 : vector<1x384xf32>
    %503 = arith.divf %501, %502 : vector<1x384xf32>
    %504 = vector.extract_strided_slice %503 {offsets = [0, 0], sizes = [1, 128], strides = [1, 1]} : vector<1x384xf32> to vector<1x128xf32>
    %505 = vector.extract_strided_slice %503 {offsets = [0, 128], sizes = [1, 128], strides = [1, 1]} : vector<1x384xf32> to vector<1x128xf32>
    %506 = vector.extract_strided_slice %503 {offsets = [0, 256], sizes = [1, 128], strides = [1, 1]} : vector<1x384xf32> to vector<1x128xf32>
    %507 = vector.extract_strided_slice %497 {offsets = [0, 384], sizes = [1, 128], strides = [1, 1]} : vector<1x512xf32> to vector<1x128xf32>
    %508 = math.tanh %507 : vector<1x128xf32>
    %509 = arith.mulf %505, %490 : vector<1x128xf32>
    %510 = arith.mulf %504, %508 : vector<1x128xf32>
    %511 = arith.addf %509, %510 : vector<1x128xf32>
    %512 = math.tanh %511 : vector<1x128xf32>
    %513 = arith.mulf %506, %512 : vector<1x128xf32>
    %514 = vector.extract_strided_slice %406 {offsets = [5, 0], sizes = [1, 512], strides = [1, 1]} : vector<8x512xf32> to vector<1x512xf32>
    %c2_188 = arith.constant 2 : index
    %c0_189 = arith.constant 0 : index
    %c0_190 = arith.constant 0 : index
    %515 = vector.load %arg10[%c2_188, %c0_189, %c0_190] : memref<3x128x512xf32, #tpu.memory_space<vmem>>, vector<1x128x512xf32>
    %516 = vector.shape_cast %515 : vector<1x128x512xf32> to vector<128x512xf32>
    %cst_191 = arith.constant dense<0.000000e+00> : vector<1x512xf32>
    %517 = tpu.matmul %513, %516, %cst_191 {dimension_numbers = #tpu.dot_dimension_numbers<[1], [0], [0], [1], [0, 0, 1, 1], [], []>} : vector<1x128xf32>, vector<128x512xf32>, vector<1x512xf32> -> vector<1x512xf32>
    %518 = arith.addf %514, %517 : vector<1x512xf32>
    %519 = vector.extract_strided_slice %518 {offsets = [0, 0], sizes = [1, 384], strides = [1, 1]} : vector<1x512xf32> to vector<1x384xf32>
    %520 = arith.negf %519 : vector<1x384xf32>
    %521 = math.exp %520 : vector<1x384xf32>
    %cst_192 = arith.constant 1.000000e+00 : f32
    %522 = vector.broadcast %cst_192 : f32 to vector<1x384xf32>
    %523 = arith.addf %522, %521 : vector<1x384xf32>
    %524 = arith.divf %522, %523 : vector<1x384xf32>
    %525 = vector.extract_strided_slice %524 {offsets = [0, 0], sizes = [1, 128], strides = [1, 1]} : vector<1x384xf32> to vector<1x128xf32>
    %526 = vector.extract_strided_slice %524 {offsets = [0, 128], sizes = [1, 128], strides = [1, 1]} : vector<1x384xf32> to vector<1x128xf32>
    %527 = vector.extract_strided_slice %524 {offsets = [0, 256], sizes = [1, 128], strides = [1, 1]} : vector<1x384xf32> to vector<1x128xf32>
    %528 = vector.extract_strided_slice %518 {offsets = [0, 384], sizes = [1, 128], strides = [1, 1]} : vector<1x512xf32> to vector<1x128xf32>
    %529 = math.tanh %528 : vector<1x128xf32>
    %530 = arith.mulf %526, %511 : vector<1x128xf32>
    %531 = arith.mulf %525, %529 : vector<1x128xf32>
    %532 = arith.addf %530, %531 : vector<1x128xf32>
    %533 = math.tanh %532 : vector<1x128xf32>
    %534 = arith.mulf %527, %533 : vector<1x128xf32>
    %535 = vector.extract_strided_slice %406 {offsets = [6, 0], sizes = [1, 512], strides = [1, 1]} : vector<8x512xf32> to vector<1x512xf32>
    %c2_193 = arith.constant 2 : index
    %c0_194 = arith.constant 0 : index
    %c0_195 = arith.constant 0 : index
    %536 = vector.load %arg10[%c2_193, %c0_194, %c0_195] : memref<3x128x512xf32, #tpu.memory_space<vmem>>, vector<1x128x512xf32>
    %537 = vector.shape_cast %536 : vector<1x128x512xf32> to vector<128x512xf32>
    %cst_196 = arith.constant dense<0.000000e+00> : vector<1x512xf32>
    %538 = tpu.matmul %534, %537, %cst_196 {dimension_numbers = #tpu.dot_dimension_numbers<[1], [0], [0], [1], [0, 0, 1, 1], [], []>} : vector<1x128xf32>, vector<128x512xf32>, vector<1x512xf32> -> vector<1x512xf32>
    %539 = arith.addf %535, %538 : vector<1x512xf32>
    %540 = vector.extract_strided_slice %539 {offsets = [0, 0], sizes = [1, 384], strides = [1, 1]} : vector<1x512xf32> to vector<1x384xf32>
    %541 = arith.negf %540 : vector<1x384xf32>
    %542 = math.exp %541 : vector<1x384xf32>
    %cst_197 = arith.constant 1.000000e+00 : f32
    %543 = vector.broadcast %cst_197 : f32 to vector<1x384xf32>
    %544 = arith.addf %543, %542 : vector<1x384xf32>
    %545 = arith.divf %543, %544 : vector<1x384xf32>
    %546 = vector.extract_strided_slice %545 {offsets = [0, 0], sizes = [1, 128], strides = [1, 1]} : vector<1x384xf32> to vector<1x128xf32>
    %547 = vector.extract_strided_slice %545 {offsets = [0, 128], sizes = [1, 128], strides = [1, 1]} : vector<1x384xf32> to vector<1x128xf32>
    %548 = vector.extract_strided_slice %545 {offsets = [0, 256], sizes = [1, 128], strides = [1, 1]} : vector<1x384xf32> to vector<1x128xf32>
    %549 = vector.extract_strided_slice %539 {offsets = [0, 384], sizes = [1, 128], strides = [1, 1]} : vector<1x512xf32> to vector<1x128xf32>
    %550 = math.tanh %549 : vector<1x128xf32>
    %551 = arith.mulf %547, %532 : vector<1x128xf32>
    %552 = arith.mulf %546, %550 : vector<1x128xf32>
    %553 = arith.addf %551, %552 : vector<1x128xf32>
    %554 = math.tanh %553 : vector<1x128xf32>
    %555 = arith.mulf %548, %554 : vector<1x128xf32>
    %556 = vector.extract_strided_slice %406 {offsets = [7, 0], sizes = [1, 512], strides = [1, 1]} : vector<8x512xf32> to vector<1x512xf32>
    %c2_198 = arith.constant 2 : index
    %c0_199 = arith.constant 0 : index
    %c0_200 = arith.constant 0 : index
    %557 = vector.load %arg10[%c2_198, %c0_199, %c0_200] : memref<3x128x512xf32, #tpu.memory_space<vmem>>, vector<1x128x512xf32>
    %558 = vector.shape_cast %557 : vector<1x128x512xf32> to vector<128x512xf32>
    %cst_201 = arith.constant dense<0.000000e+00> : vector<1x512xf32>
    %559 = tpu.matmul %555, %558, %cst_201 {dimension_numbers = #tpu.dot_dimension_numbers<[1], [0], [0], [1], [0, 0, 1, 1], [], []>} : vector<1x128xf32>, vector<128x512xf32>, vector<1x512xf32> -> vector<1x512xf32>
    %560 = arith.addf %556, %559 : vector<1x512xf32>
    %561 = vector.extract_strided_slice %560 {offsets = [0, 0], sizes = [1, 384], strides = [1, 1]} : vector<1x512xf32> to vector<1x384xf32>
    %562 = arith.negf %561 : vector<1x384xf32>
    %563 = math.exp %562 : vector<1x384xf32>
    %cst_202 = arith.constant 1.000000e+00 : f32
    %564 = vector.broadcast %cst_202 : f32 to vector<1x384xf32>
    %565 = arith.addf %564, %563 : vector<1x384xf32>
    %566 = arith.divf %564, %565 : vector<1x384xf32>
    %567 = vector.extract_strided_slice %566 {offsets = [0, 0], sizes = [1, 128], strides = [1, 1]} : vector<1x384xf32> to vector<1x128xf32>
    %568 = vector.extract_strided_slice %566 {offsets = [0, 128], sizes = [1, 128], strides = [1, 1]} : vector<1x384xf32> to vector<1x128xf32>
    %569 = vector.extract_strided_slice %566 {offsets = [0, 256], sizes = [1, 128], strides = [1, 1]} : vector<1x384xf32> to vector<1x128xf32>
    %570 = vector.extract_strided_slice %560 {offsets = [0, 384], sizes = [1, 128], strides = [1, 1]} : vector<1x512xf32> to vector<1x128xf32>
    %571 = math.tanh %570 : vector<1x128xf32>
    %572 = arith.mulf %568, %553 : vector<1x128xf32>
    %573 = arith.mulf %567, %571 : vector<1x128xf32>
    %574 = arith.addf %572, %573 : vector<1x128xf32>
    %575 = math.tanh %574 : vector<1x128xf32>
    %576 = arith.mulf %569, %575 : vector<1x128xf32>
    %c0_203 = arith.constant 0 : index
    %c0_204 = arith.constant 0 : index
    %577 = vector.load %arg12[%c0_203, %c0_204] : memref<128x45xf32, #tpu.memory_space<vmem>>, vector<128x45xf32>
    %cst_205 = arith.constant dense<0.000000e+00> : vector<1x45xf32>
    %578 = tpu.matmul %576, %577, %cst_205 {dimension_numbers = #tpu.dot_dimension_numbers<[1], [0], [0], [1], [0, 0, 1, 1], [], []>} : vector<1x128xf32>, vector<128x45xf32>, vector<1x45xf32> -> vector<1x45xf32>
    %c0_206 = arith.constant 0 : index
    %c0_207 = arith.constant 0 : index
    %579 = vector.load %arg13[%c0_206, %c0_207] : memref<1x45xf32, #tpu.memory_space<vmem>>, vector<1x45xf32>
    %580 = arith.addf %578, %579 : vector<1x45xf32>
    %cst_208 = arith.constant dense<0xFF800000> : vector<1xf32>
    %581 = vector.multi_reduction <maximumf>, %580, %cst_208 [1] : vector<1x45xf32> to vector<1xf32>
    %582 = vector.shape_cast %581 : vector<1xf32> to vector<1x1xf32>
    %583 = vector.broadcast %582 : vector<1x1xf32> to vector<1x45xf32>
    %584 = arith.subf %580, %583 : vector<1x45xf32>
    %585 = math.exp %584 : vector<1x45xf32>
    %cst_209 = arith.constant dense<0.000000e+00> : vector<1xf32>
    %586 = vector.multi_reduction <add>, %585, %cst_209 [1] : vector<1x45xf32> to vector<1xf32>
    %587 = vector.shape_cast %586 : vector<1xf32> to vector<1x1xf32>
    %588 = tpu.reciprocal %587 {approx = true} : vector<1x1xf32> -> vector<1x1xf32>
    %589 = vector.broadcast %588 : vector<1x1xf32> to vector<1x45xf32>
    %590 = arith.mulf %585, %589 : vector<1x45xf32>
    %c0_210 = arith.constant 0 : index
    %c0_211 = arith.constant 0 : index
    %591 = vector.load %arg14[%c0_210, %c0_211] : memref<1x45xf32, #tpu.memory_space<vmem>>, vector<1x45xf32>
    tpu.vector_store %arg14[%c0_210, %c0_211], %590 {strides = array<i32>} : memref<1x45xf32, #tpu.memory_space<vmem>>, vector<1x45xf32>,
    return
  }
}

</mosaic_0001>

<bundles_post_ra>
// kernel: flex_net_forward.1
= control target key start
LH: loop header
LB: loop body
LE: loop exit
PB: predicated region body
PF: predicated region fallthrough
CT: control target
= control target key end

     0   :  { %19 = vsyncpa [#allocation4], 0  ;;  %s9997_s0 = inlined_call_operand.vmem [shape: f32[180,30], index: 0, kind: input, shape index: {}]   ;;  %s9998_s1 = inlined_call_operand.vmem [shape: f32[72,180], index: 1, kind: input, shape index: {}]   ;;  %s9999_s2 = inlined_call_operand.vmem [shape: f32[72,1], index: 2, kind: input, shape index: {}]   ;;  %s10000_s3 = inlined_call_operand.vmem [shape: f32[24,72], index: 3, kind: input, shape index: {}]   ;;  %s10001_s4 = inlined_call_operand.vmem [shape: f32[24,1], index: 4, kind: input, shape index: {}]   ;;  %s10002_s5 = inlined_call_operand.vmem [shape: f32[30,128], index: 5, kind: input, shape index: {}]   ;;  %s10003_s6 = inlined_call_operand.vmem [shape: f32[1,128], index: 6, kind: input, shape index: {}]   ;;  %s10004_s7 = inlined_call_operand.vmem [shape: f32[24,128], index: 7, kind: input, shape index: {}]   ;;  %s10005_s8 = inlined_call_operand.vmem [shape: f32[8,24], index: 8, kind: input, shape index: {}]   ;;  %s10006_s9 = inlined_call_operand.hbm [shape: f32[3,128,512], index: 9, kind: input, shape index: {}]   ;;  %s10007_s10 = inlined_call_operand.hbm [shape: f32[3,128,512], index: 10, kind: input, shape index: {}]   ;;  %s10008_s11 = inlined_call_operand.vmem [shape: f32[3,1,512], index: 11, kind: input, shape index: {}]   ;;  %s10009_s12 = inlined_call_operand.vmem [shape: f32[128,45], index: 12, kind: input, shape index: {}]   ;;  %s10010_s13 = inlined_call_operand.vmem [shape: f32[1,45], index: 13, kind: input, shape index: {}]   ;;  %s10011_s14 = inlined_call_operand.hbm [shape: f32[1,45], index: 14, kind: output, shape index: {}]  }
   0x1   :  { %20 = vsyncpa [#allocation7], 0 }
   0x2   :  { %21 = vsyncpa [#allocation5], 0  ;;  %s44_s15 = sshll.u32 %s10006_s9, 4  ;;  %s6623_s16 = smov [#allocation3]   ;;  %s45_s15 = int_to_ptr.hbm [resolvable:$true] %s44_s15 }
   0x3   :  { %s46_s17 = sshll.u32 %s6623_s16, 4  ;;  %s57_s20 = sshll.u32 %s10007_s10, 4  ;;  %s47_s17 = int_to_ptr.vmem [resolvable:$true] %s46_s17  ;;  %s58_s20 = int_to_ptr.hbm [resolvable:$true] %s57_s20 }
   0x4   :  { %s6624_s21 = smov 512   ;;  %s6625_s22 = smov 32  }
   0x5   :  { %52 = dma.hbm_to_vmem [thread:$0]  %s45_s15, 24576, %s47_s17, [#allocation4], %s6624_s21, %s6624_s21, %s6625_s22  }
   0x6   :  { %s6626_s23 = smov [#allocation6]  }
   0x7   :  { %s59_s24 = sshll.u32 %s6626_s23, 4  ;;  %s60_s24 = int_to_ptr.vmem [resolvable:$true] %s59_s24 }
   0x8   :  { %65 = dma.hbm_to_vmem [thread:$0]  %s58_s20, 24576, %s60_s24, [#allocation7], %s6624_s21, %s6624_s21, %s6625_s22  }
   0x9   :  { %6617 = dma.done.wait [#allocation4], 24576  }
   0xa   :  { %6618 = vsyncadd [#allocation4], 4294942720 }
   0xb   :  { %6619 = dma.done.wait [#allocation7], 24576  }
   0xc   :  { %6620 = vsyncadd [#allocation7], 4294942720  ;;  %v113_v0 = vld [vmem:[%s9997_s0 + $0x78] sm:$0xff]  ;;  %v112_v1 = vld [vmem:[%s9997_s0 + $0x70] sm:$0xff]  ;;  %vm203_vm0 = vcmask 1043456   ;;  %v6627_v2 = vmov 0  }
   0xd   :  { %207 = vmatpush.msra.mxu0 %v113_v0  ;;  %6090 = vset.pattern.permute.xlu1 %v6627_v2  ;;  %v111_v3 = vld [vmem:[%s9997_s0 + $0x68] sm:$0xff]  ;;  %v120_v4 = vld [vmem:[%s9997_s0 + $0xb0] sm:$0xf]  ;;  %v110_v5 = vld [vmem:[%s9997_s0 + $0x60] sm:$0xff]  ;;  %vm175_vm1 = vcmask 424960   ;;  %vm382_vm2 = vcmask 1045504  }
   0xe   :  { %6089 = vset.pattern.permute.xlu0 %v6627_v2  ;;  %6091 = vset.pattern.permute.xlu2 %v6627_v2  ;;  %v119_v6 = vld [vmem:[%s9997_s0 + $0xa8] sm:$0xff]  ;;  %v118_v7 = vld [vmem:[%s9997_s0 + $0xa0] sm:$0xff]  ;;  %v109_v8 = vld [vmem:[%s9997_s0 + $0x58] sm:$0xff]  ;;  %vm325_vm3 = vcmask 588800   ;;  %vm372_vm4 = vcmask 244736   ;;  %vm422_vm5 = vcmask 195584  }
   0xf   :  { %208 = vmatpush.msra.mxu0 %v112_v1  ;;  %5990 = vmatpush.msk.msra.mxu1 %vm203_vm0, %v120_v4  ;;  %v117_v9 = vld [vmem:[%s9997_s0 + $0x98] sm:$0xff]  ;;  %v108_v10 = vld [vmem:[%s9997_s0 + $0x50] sm:$0xff]  ;;  %v129_v13 = vld [vmem:[%s9999_s2 + $0x40] sm:$0xff]  ;;  %s6629_s24 = smov [#allocation8]   ;;  %s5979_s25 = sshll.u32 %s10011_s14, 4  ;;  %s5980_s25 = int_to_ptr.hbm [resolvable:$true] %s5979_s25 }
  0x10   :  { %v127_v11 = vld [vmem:[%s9999_s2 + $0x30] sm:$0xff]  ;;  %v107_v14 = vld [vmem:[%s9997_s0 + $0x48] sm:$0xff]  ;;  %172 = vperm.xlu0 %6089, %v129_v13   ;;  %v106_v16 = vld [vmem:[%s9997_s0 + $0x40] sm:$0xff]  ;;  %s5977_s9 = sshll.u32 %s6629_s24, 4  ;;  %s5978_s9 = int_to_ptr.vmem [resolvable:$true] %s5977_s9 }
  0x11   :  { %209 = vmatpush.msra.mxu0 %v111_v3  ;;  %261 = vmatpush.msra.mxu1 %v119_v6  ;;  %v116_v12 = vld [vmem:[%s9997_s0 + $0x90] sm:$0xff]  ;;  %v115_v15 = vld [vmem:[%s9997_s0 + $0x88] sm:$0xff]  ;;  %v114_v17 = vld [vmem:[%s9997_s0 + $0x80] sm:$0xff] }
  0x12   :  { %162 = vperm.xlu1 %6090, %v127_v11   ;;  %v105_v18 = vld [vmem:[%s9997_s0 + $0x38] sm:$0xff]  ;;  %v81_v19 = vld [vmem:[%s9998_s1 + $0x8] sm:$0xff]  ;;  %v104_v21 = vld [vmem:[%s9997_s0 + $0x30] sm:$0xff] }
  0x13   :  { %210 = vmatpush.msra.mxu0 %v110_v5  ;;  %262 = vmatpush.msra.mxu1 %v118_v7  ;;  %v126_v20 = vld [vmem:[%s9999_s2 + $0x28] sm:$0xff]  ;;  %v128_v22 = vld [vmem:[%s9999_s2 + $0x38] sm:$0xff]  ;;  %v125_v23 = vld [vmem:[%s9999_s2 + $0x20] sm:$0xff] }
  0x14   :  { %v103_v24 = vld [vmem:[%s9997_s0 + $0x28] sm:$0xff]  ;;  %152 = vperm.xlu2 %6091, %v125_v23   ;;  %v102_v25 = vld [vmem:[%s9997_s0 + $0x20] sm:$0xff]  ;;  %v101_v26 = vld [vmem:[%s9997_s0 + $0x18] sm:$0xff] }
  0x15   :  { %211 = vmatpush.msra.mxu0 %v109_v8  ;;  %263 = vmatpush.msra.mxu1 %v117_v9  ;;  %v83_v27 = vld [vmem:[%s9998_s1 + $0x18] sm:$0xff]  ;;  %v122_v28 = vld [vmem:[%s9999_s2 + $0x8] sm:$0xff]  ;;  %v100_v29 = vld [vmem:[%s9997_s0 + $0x10] sm:$0xff] }
  0x16   :  { %v124_v30 = vld [vmem:[%s9999_s2 + $0x18] sm:$0xff]  ;;  %v123_v31 = vld [vmem:[%s9999_s2 + $0x10] sm:$0xff]  ;;  %v99_v32 = vld [vmem:[%s9997_s0 + $0x8] sm:$0xff] }
  0x17   :  { %212 = vmatpush.msra.mxu0 %v108_v10  ;;  %264 = vmatpush.msra.mxu1 %v116_v12  ;;  %v98_v33 = vld [vmem:[%s9997_s0] sm:$0xff]  ;;  %v85_v35 = vld [vmem:[%s9998_s1 + $0x28] sm:$0xff]  ;;  %v82_v37 = vld [vmem:[%s9998_s1 + $0x10] sm:$0xff] }
  0x18   :  { %167 = vperm.xlu0 %6089, %v128_v22   ;;  %v80_v34 = vld [vmem:[%s9998_s1] sm:$0xff]  ;;  %v87_v38 = vld [vmem:[%s9998_s1 + $0x38] sm:$0xff]  ;;  %v89_v40 = vld [vmem:[%s9998_s1 + $0x48] sm:$0xff] }
  0x19   :  { %213 = vmatpush.msra.mxu0 %v107_v14  ;;  %265 = vmatpush.msra.mxu1 %v115_v15  ;;  %v121_v36 = vld [vmem:[%s9999_s2] sm:$0xff]  ;;  %v86_v41 = vld [vmem:[%s9998_s1 + $0x30] sm:$0xff]  ;;  %v91_v42 = vld [vmem:[%s9998_s1 + $0x58] sm:$0xff] }
  0x1a   :  { %157 = vperm.xlu1 %6090, %v126_v20   ;;  %v84_v39 = vld [vmem:[%s9998_s1 + $0x20] sm:$0xff]  ;;  %v93_v44 = vld [vmem:[%s9998_s1 + $0x68] sm:$0xff]  ;;  %v309_v47 = vld [vmem:[%s10001_s4 + $0x10] sm:$0xff] }
  0x1b   :  { %214 = vmatpush.msra.mxu0 %v106_v16  ;;  %266 = vmatpush.msra.mxu1 %v114_v17  ;;  %v88_v43 = vld [vmem:[%s9998_s1 + $0x40] sm:$0xff]  ;;  %v308_v46 = vld [vmem:[%s10001_s4 + $0x8] sm:$0xff]  ;;  %v90_v48 = vld [vmem:[%s9998_s1 + $0x50] sm:$0xff] }
  0x1c   :  { %5991 = vmatmul.msk.f32.vlgmr.msra.gmra.mxu1 %vm175_vm1, %v81_v19  ;;  %147 = vperm.xlu2 %6091, %v124_v30   ;;  %v307_v45 = vld [vmem:[%s10001_s4] sm:$0xff]  ;;  %v95_v49 = vld [vmem:[%s9998_s1 + $0x78] sm:$0xff]  ;;  %v97_v51 = vld [vmem:[%s9998_s1 + $0x88] sm:$0xff] }
  0x1d   :  { %215 = vmatpush.msra.mxu0 %v105_v18  ;;  %v92_v50 = vld [vmem:[%s9998_s1 + $0x60] sm:$0xff]  ;;  %v94_v52 = vld [vmem:[%s9998_s1 + $0x70] sm:$0xff] }
  0x1e   :  { %v96_v53 = vld [vmem:[%s9998_s1 + $0x80] sm:$0xff] }
  0x1f   :  { %216 = vmatpush.msra.mxu0 %v104_v21 }
  0x20   :  { %142 = vperm.xlu0 %6089, %v123_v31  }
  0x21   :  { %217 = vmatpush.msra.mxu0 %v103_v24 }
  0x22   :  { %137 = vperm.xlu1 %6090, %v122_v28   ;;  %v367_v28 = vld [vmem:[%s10002_s5 + $0x18] sm:$0x3f] }
  0x23   :  { %218 = vmatpush.msra.mxu0 %v102_v25  ;;  %6003 = vmatpush.msk.msra.mxu3 %vm382_vm2, %v367_v28  ;;  %v416_v28 = vld [vmem:[%s10004_s7 + $0x8] sm:$0xff] }
  0x24   :  { %5992 = vmatmul.msk.f32.gmra.mxu1 %vm175_vm1, %v83_v27  ;;  %132 = vperm.xlu2 %6091, %v121_v36  }
  0x25   :  { %219 = vmatpush.msra.mxu0 %v101_v26 }
  0x27   :  { %220 = vmatpush.msra.mxu0 %v100_v29 }
  0x28   :  { %312 = vperm.xlu0 %6089, %v307_v45   ;;  %v304_v45 = vld [vmem:[%s10000_s3] sm:$0xff] }
  0x29   :  { %221 = vmatpush.msra.mxu0 %v99_v32 }
  0x2a   :  { %317 = vperm.xlu1 %6090, %v308_v46   ;;  %v305_v46 = vld [vmem:[%s10000_s3 + $0x8] sm:$0xff] }
  0x2b   :  { %222 = vmatpush.msra.mxu0 %v98_v33 }
  0x2c   :  { %223 = vmatmul.f32.vlgmr.msra.gmra.mxu0 %v80_v34  ;;  %5993 = vmatmul.msk.f32.gmra.mxu1 %vm175_vm1, %v85_v35 }
  0x2d   :  { %322 = vperm.xlu2 %6091, %v309_v47   ;;  %v306_v47 = vld [vmem:[%s10000_s3 + $0x10] sm:$0xff] }
  0x34   :  { %226 = vmatmul.f32.gmra.mxu0 %v82_v37  ;;  %5994 = vmatmul.msk.f32.gmra.mxu1 %vm175_vm1, %v87_v38 }
  0x3c   :  { %229 = vmatmul.f32.gmra.mxu0 %v84_v39  ;;  %5995 = vmatmul.msk.f32.gmra.mxu1 %vm175_vm1, %v89_v40 }
  0x44   :  { %232 = vmatmul.f32.gmra.mxu0 %v86_v41  ;;  %5996 = vmatmul.msk.f32.gmra.mxu1 %vm175_vm1, %v91_v42 }
  0x4c   :  { %235 = vmatmul.f32.gmra.mxu0 %v88_v43  ;;  %5997 = vmatmul.msk.f32.gmra.mxu1 %vm175_vm1, %v93_v44 }
  0x54   :  { %238 = vmatmul.f32.gmra.mxu0 %v90_v48  ;;  %5998 = vmatmul.msk.f32.gmra.mxu1 %vm175_vm1, %v95_v49  ;;  %v366_v48 = vld [vmem:[%s10002_s5 + $0x10] sm:$0xff]  ;;  %v365_v49 = vld [vmem:[%s10002_s5 + $0x8] sm:$0xff] }
  0x55   :  { %399 = vmatpush.msra.mxu3 %v366_v48  ;;  %v471_v48 = vld [vmem:[#allocation3 + $0xb8] sm:$0xff] }
  0x57   :  { %400 = vmatpush.msra.mxu3 %v365_v49  ;;  %v502_v49 = vld [vmem:[#allocation3 + $0x1b0] sm:$0xff] }
  0x5c   :  { %241 = vmatmul.f32.gmra.mxu0 %v92_v50  ;;  %5999 = vmatmul.msk.f32.gmra.mxu1 %vm175_vm1, %v97_v51  ;;  %v364_v50 = vld [vmem:[%s10002_s5] sm:$0xff] }
  0x5d   :  { %401 = vmatpush.msra.mxu3 %v364_v50  ;;  %v501_v50 = vld [vmem:[#allocation3 + $0x1a8] sm:$0xff] }
  0x64   :  { %244 = vmatmul.f32.gmra.mxu0 %v94_v52 }
  0x6c   :  { %247 = vmatmul.f32.gmra.mxu0 %v96_v53 }
  0x6e   :  { %v153_v6 = vpop.permute.xlu2 %152 }
  0x76   :  { %v148_v11 = vpop.permute.xlu2 %147 }
  0x7e   :  { %v133_v32 = vpop.permute.xlu2 %132 }
  0x82   :  { %v173_v4 = vpop.permute.xlu0 %172 }
  0x84   :  { %v163_v5 = vpop.permute.xlu1 %162 }
  0x8a   :  { %v168_v9 = vpop.permute.xlu0 %167 }
  0x8c   :  { %v158_v10 = vpop.permute.xlu1 %157 }
  0x92   :  { %v143_v23 = vpop.permute.xlu0 %142 }
  0x94   :  { %v138_v27 = vpop.permute.xlu1 %137 }
  0x99   :  { %v268_v54 = vpop.f32.mrf.mxu1 }
  0x9a   :  { %v313_v51 = vpop.permute.xlu0 %312 }
  0xa1   :  { %v271_v55 = vpop.f32.mrf.mxu1 }
  0xa9   :  { %v224_v56 = vpop.f32.mrf.mxu0  ;;  %v274_v57 = vpop.f32.mrf.mxu1 }
  0xaa   :  { %v225_v36 = vadd.f32 %v224_v56, %v133_v32  ;;  %v487_v32 = vld [vmem:[#allocation3 + $0x138] sm:$0xff] }
  0xac   :  { %v269_v41 = vadd.f32 %v268_v54, %v225_v36  ;;  %v483_v36 = vld [vmem:[#allocation3 + $0x118] sm:$0xff] }
  0xae   :  { %v295_v44 = vmax.f32 %v269_v41, 0.0  ;;  %v510_v41 = vld [vmem:[#allocation3 + $0x1f0] sm:$0xff] }
  0xb1   :  { %v227_v58 = vpop.f32.mrf.mxu0  ;;  %v277_v59 = vpop.f32.mrf.mxu1 }
  0xb2   :  { %v228_v33 = vadd.f32 %v227_v58, %v138_v27  ;;  %v491_v27 = vld [vmem:[#allocation3 + $0x158] sm:$0xff] }
  0xb4   :  { %v272_v39 = vadd.f32 %v271_v55, %v228_v33  ;;  %v318_v55 = vpop.permute.xlu1 %317  ;;  %v415_v33 = vld [vmem:[%s10004_s7] sm:$0xff] }
  0xb6   :  { %v296_v43 = vmax.f32 %v272_v39, 0.0 }
  0xb9   :  { %v230_v60 = vpop.f32.mrf.mxu0  ;;  %v280_v62 = vpop.f32.mrf.mxu1 }
  0xba   :  { %v231_v29 = vadd.f32 %v230_v60, %v143_v23  ;;  %v417_v23 = vld [vmem:[%s10004_s7 + $0x10] sm:$0xff] }
  0xbc   :  { %v275_v37 = vadd.f32 %v274_v57, %v231_v29  ;;  %v456_v29 = vld [vmem:[#allocation3 + $0x40] sm:$0xff] }
  0xbe   :  { %v297_v42 = vmax.f32 %v275_v37, 0.0  ;;  %v6912_v37 = vld [vmem:[#allocation6 + $0x1e8] sm:$0xff] }
  0xbf   :  { %686 = vmatpush.msrb.mxu0 %v6912_v37 }
  0xc1   :  { %v233_v61 = vpop.f32.mrf.mxu0  ;;  %v283_v0 = vpop.f32.mrf.mxu1 }
  0xc2   :  { %v234_v24 = vadd.f32 %v233_v61, %v148_v11  ;;  %v507_v11 = vld [vmem:[#allocation3 + $0x1d8] sm:$0xff] }
  0xc4   :  { %v278_v34 = vadd.f32 %v277_v59, %v234_v24  ;;  %v323_v59 = vpop.permute.xlu2 %322  ;;  %v460_v24 = vld [vmem:[#allocation3 + $0x60] sm:$0xff] }
  0xc6   :  { %v298_v40 = vmax.f32 %v278_v34, 0.0  ;;  %v452_v34 = vld [vmem:[#allocation3 + $0x20] sm:$0xff] }
  0xc9   :  { %v236_v63 = vpop.f32.mrf.mxu0  ;;  %v286_v2 = vpop.f32.mrf.mxu1 }
  0xca   :  { %v237_v20 = vadd.f32 %v236_v63, %v153_v6  ;;  %v508_v63 = vld [vmem:[#allocation3 + $0x1e0] sm:$0xff] }
  0xcb   :  { %v484_v6 = vld [vmem:[#allocation3 + $0x120] sm:$0xff] }
  0xcc   :  { %v281_v30 = vadd.f32 %v280_v62, %v237_v20 }
  0xce   :  { %v299_v38 = vmax.f32 %v281_v30, 0.0 }
  0xd1   :  { %v239_v1 = vpop.f32.mrf.mxu0  ;;  %v289_v7 = vpop.f32.mrf.mxu1 }
  0xd2   :  { %v240_v17 = vadd.f32 %v239_v1, %v158_v10  ;;  %v500_v1 = vld [vmem:[#allocation3 + $0x1a0] sm:$0xff] }
  0xd3   :  { %v476_v10 = vld [vmem:[#allocation3 + $0xe0] sm:$0xff] }
  0xd4   :  { %v284_v25 = vadd.f32 %v283_v0, %v240_v17  ;;  %v504_v0 = vld [vmem:[#allocation3 + $0x1c0] sm:$0xff]  ;;  %v499_v17 = vld [vmem:[#allocation3 + $0x198] sm:$0xff] }
  0xd6   :  { %v300_v35 = vmax.f32 %v284_v25, 0.0 }
  0xd9   :  { %v242_v3 = vpop.f32.mrf.mxu0  ;;  %v292_v14 = vpop.f32.mrf.mxu1 }
  0xda   :  { %v243_v15 = vadd.f32 %v242_v3, %v163_v5  ;;  %v496_v3 = vld [vmem:[#allocation3 + $0x180] sm:$0xff] }
  0xdb   :  { %v488_v5 = vld [vmem:[#allocation3 + $0x140] sm:$0xff] }
  0xdc   :  { %v287_v21 = vadd.f32 %v286_v2, %v243_v15  ;;  %v468_v15 = vld [vmem:[#allocation3 + $0xa0] sm:$0xff] }
  0xde   :  { %v301_v31 = vmax.f32 %v287_v21, 0.0 }
  0xe1   :  { %v245_v8 = vpop.f32.mrf.mxu0 }
  0xe2   :  { %v246_v12 = vadd.f32 %v245_v8, %v168_v9  ;;  %v480_v8 = vld [vmem:[#allocation3 + $0x100] sm:$0xff]  ;;  %v511_v9 = vld [vmem:[#allocation3 + $0x1f8] sm:$0xff] }
  0xe3   :  { %582 = vmatpush.msrb.mxu1 %v511_v9  ;;  %v470_v9 = vld [vmem:[#allocation3 + $0xb0] sm:$0xff] }
  0xe4   :  { %v290_v18 = vadd.f32 %v289_v7, %v246_v12  ;;  %v472_v12 = vld [vmem:[#allocation3 + $0xc0] sm:$0xff] }
  0xe5   :  { %583 = vmatpush.msrb.mxu1 %v507_v11  ;;  %v465_v11 = vld [vmem:[#allocation3 + $0x88] sm:$0xff] }
  0xe6   :  { %v302_v26 = vmax.f32 %v290_v18, 0.0 }
  0xe9   :  { %v248_v13 = vpop.f32.mrf.mxu0 }
  0xea   :  { %v249_v16 = vadd.f32 %v248_v13, %v173_v4  ;;  %v492_v4 = vld [vmem:[#allocation3 + $0x160] sm:$0xff]  ;;  %v6092_v13 = vld [vmem:[%s10003_s6] ss:$0 sm:$0xff] }
  0xec   :  { %v293_v19 = vadd.f32 %v292_v14, %v249_v16  ;;  %v503_v14 = vld [vmem:[#allocation3 + $0x1b8] sm:$0xff] }
  0xed   :  { %584 = vmatpush.msrb.mxu1 %v503_v14  ;;  %v453_v14 = vld [vmem:[#allocation3 + $0x28] sm:$0xff] }
  0xee   :  { %v303_v22 = vmax.f32 %v293_v19, 0.0  ;;  %v464_v19 = vld [vmem:[#allocation3 + $0x80] sm:$0xff] }
  0xef   :  { %585 = vmatpush.msrb.mxu1 %v499_v17  ;;  %v6932_v17 = vld [vmem:[#allocation6 + $0x1c0] sm:$0xff] }
  0xf0   :  { %342 = vmatpush.msra.mxu2 %v303_v22  ;;  %v495_v22 = vld [vmem:[#allocation3 + $0x178] sm:$0xff] }
  0xf1   :  { %586 = vmatpush.msrb.mxu1 %v495_v22  ;;  %v6947_v22 = vld [vmem:[#allocation6 + $0x120] sm:$0xff] }
  0xf2   :  { %343 = vmatpush.msra.mxu2 %v302_v26 }
  0xf3   :  { %587 = vmatpush.msrb.mxu1 %v491_v27  ;;  %v6962_v27 = vld [vmem:[#allocation6 + $0x178] sm:$0xff] }
  0xf4   :  { %344 = vmatpush.msra.mxu2 %v301_v31 }
  0xf5   :  { %588 = vmatpush.msrb.mxu1 %v487_v32  ;;  %v466_v32 = vld [vmem:[#allocation3 + $0x90] sm:$0xff] }
  0xf6   :  { %345 = vmatpush.msra.mxu2 %v300_v35 }
  0xf7   :  { %589 = vmatpush.msrb.mxu1 %v483_v36  ;;  %v462_v36 = vld [vmem:[#allocation3 + $0x70] sm:$0xff] }
  0xf8   :  { %346 = vmatpush.msra.mxu2 %v299_v38  ;;  %v448_v38 = vld [vmem:[#allocation3] sm:$0xff] }
  0xfa   :  { %347 = vmatpush.msra.mxu2 %v298_v40  ;;  %v421_v40 = vld [vmem:[%s10005_s8] sm:$0xff] }
  0xfc   :  { %348 = vmatpush.msra.mxu2 %v297_v42  ;;  %v479_v42 = vld [vmem:[#allocation3 + $0xf8] sm:$0xff] }
  0xfd   :  { %590 = vmatpush.msrb.mxu1 %v479_v42  ;;  %v6994_v42 = vld [vmem:[#allocation6 + $0xc0] sm:$0xff] }
  0xfe   :  { %349 = vmatpush.msra.mxu2 %v296_v43  ;;  %v509_v43 = vld [vmem:[#allocation3 + $0x1e8] sm:$0xff] }
 0x100   :  { %350 = vmatpush.msra.mxu2 %v295_v44  ;;  %v506_v44 = vld [vmem:[#allocation3 + $0x1d0] sm:$0xff] }
 0x101   :  { %6000 = vmatmul.msk.f32.vlgmr.msra.gmra.mxu2 %vm325_vm3, %v304_v45  ;;  %v475_v45 = vld [vmem:[#allocation3 + $0xd8] sm:$0xff] }
 0x102   :  { %522 = vmatpush.msrb.mxu2 %v508_v63  ;;  %591 = vmatpush.msrb.mxu1 %v475_v45  ;;  %v485_v63 = vld [vmem:[#allocation3 + $0x128] sm:$0xff]  ;;  %v454_v45 = vld [vmem:[#allocation3 + $0x30] sm:$0xff] }
 0x104   :  { %523 = vmatpush.msrb.mxu2 %v504_v0  ;;  %592 = vmatpush.msrb.mxu1 %v471_v48  ;;  %v6924_v0 = vld [vmem:[#allocation6 + $0x188] sm:$0xff] }
 0x105   :  { %v7008_v48 = vld [vmem:[#allocation6 + $0xa8] sm:$0xff] }
 0x106   :  { %524 = vmatpush.msrb.mxu2 %v500_v1  ;;  %v451_v1 = vld [vmem:[#allocation3 + $0x18] sm:$0xff] }
 0x108   :  { %525 = vmatpush.msrb.mxu2 %v496_v3  ;;  %v481_v3 = vld [vmem:[#allocation3 + $0x108] sm:$0xff] }
 0x109   :  { %6001 = vmatmul.msk.f32.gmra.mxu2 %vm325_vm3, %v305_v46  ;;  %v505_v46 = vld [vmem:[#allocation3 + $0x1c8] sm:$0xff] }
 0x10a   :  { %526 = vmatpush.msrb.mxu2 %v492_v4  ;;  %v6927_v4 = vld [vmem:[#allocation6 + $0x1f8] sm:$0xff] }
 0x10c   :  { %527 = vmatpush.msrb.mxu2 %v488_v5  ;;  %v478_v5 = vld [vmem:[#allocation3 + $0xf0] sm:$0xff] }
 0x10e   :  { %528 = vmatpush.msrb.mxu2 %v484_v6  ;;  %v477_v6 = vld [vmem:[#allocation3 + $0xe8] sm:$0xff] }
 0x110   :  { %529 = vmatpush.msrb.mxu2 %v480_v8  ;;  %v473_v8 = vld [vmem:[#allocation3 + $0xc8] sm:$0xff] }
 0x111   :  { %6002 = vmatmul.msk.f32.gmra.mxu2 %vm325_vm3, %v306_v47  ;;  %v6918_v47 = vld [vmem:[#allocation6 + $0x1c8] sm:$0xff] }
 0x112   :  { %530 = vmatpush.msrb.mxu2 %v476_v10  ;;  %687 = vmatpush.msrb.mxu0 %v6918_v47  ;;  %v469_v10 = vld [vmem:[#allocation3 + $0xa8] sm:$0xff] }
 0x114   :  { %531 = vmatpush.msrb.mxu2 %v472_v12  ;;  %v461_v12 = vld [vmem:[#allocation3 + $0x68] sm:$0xff] }
 0x116   :  { %532 = vmatpush.msrb.mxu2 %v468_v15  ;;  %v449_v15 = vld [vmem:[#allocation3 + $0x8] sm:$0xff] }
 0x118   :  { %533 = vmatpush.msrb.mxu2 %v464_v19  ;;  %v6938_v19 = vld [vmem:[#allocation6 + $0x180] sm:$0xff] }
 0x11a   :  { %534 = vmatpush.msrb.mxu2 %v460_v24  ;;  %v6954_v24 = vld [vmem:[#allocation6 + $0x1b8] sm:$0xff] }
 0x11c   :  { %535 = vmatpush.msrb.mxu2 %v456_v29  ;;  %v6969_v29 = vld [vmem:[#allocation6 + $0x158] sm:$0xff] }
 0x11e   :  { %536 = vmatpush.msrb.mxu2 %v452_v34  ;;  %v6979_v34 = vld [vmem:[#allocation6 + $0x108] sm:$0xff] }
 0x120   :  { %537 = vmatpush.msrb.mxu2 %v448_v38  ;;  %v6985_v38 = vld [vmem:[#allocation6 + $0xe0] sm:$0xff] }
 0x122   :  { %562 = vmatpush.msra.mxu2 %v510_v41  ;;  %v458_v41 = vld [vmem:[#allocation3 + $0x50] sm:$0xff] }
 0x124   :  { %563 = vmatpush.msra.mxu2 %v506_v44  ;;  %v7001_v44 = vld [vmem:[#allocation6 + $0xd8] sm:$0xff] }
 0x126   :  { %564 = vmatpush.msra.mxu2 %v502_v49  ;;  %v7010_v49 = vld [vmem:[#allocation6 + $0xb8] sm:$0xff] }
 0x184   :  { %v352_v52 = vpop.f32.mrf.mxu2 }
 0x185   :  { %v353_v53 = vadd.f32 %v352_v52, %v313_v51  ;;  %v467_v51 = vld [vmem:[#allocation3 + $0x98] sm:$0xff]  ;;  %v498_v52 = vld [vmem:[#allocation3 + $0x190] sm:$0xff] }
 0x186   :  { %593 = vmatpush.msrb.mxu1 %v467_v51  ;;  %565 = vmatpush.msra.mxu2 %v498_v52  ;;  %v7012_v51 = vld [vmem:[#allocation6 + $0x80] sm:$0xff]  ;;  %v7017_v52 = vld [vmem:[#allocation6 + $0x88] sm:$0xff] }
 0x187   :  { %v361_v54 = vmax.f32 %v353_v53, 0.0  ;;  %v497_v53 = vld [vmem:[#allocation3 + $0x188] sm:$0xff] }
 0x189   :  { %6004 = vmatmul.msk.f32.vlgmr.msra.gmra.mxu3 %vm372_vm4, %v361_v54  ;;  %v6921_v54 = vld [vmem:[#allocation6 + $0x1a8] sm:$0xff] }
 0x18a   :  { %688 = vmatpush.msrb.mxu0 %v6921_v54 }
 0x18c   :  { %v355_v56 = vpop.f32.mrf.mxu2  ;;  %689 = vmatpush.msrb.mxu0 %v6924_v0 }
 0x18d   :  { %v356_v57 = vadd.f32 %v355_v56, %v318_v55  ;;  %v463_v55 = vld [vmem:[#allocation3 + $0x78] sm:$0xff]  ;;  %v494_v56 = vld [vmem:[#allocation3 + $0x170] sm:$0xff] }
 0x18e   :  { %594 = vmatpush.msrb.mxu1 %v463_v55  ;;  %566 = vmatpush.msra.mxu2 %v494_v56  ;;  %v7023_v55 = vld [vmem:[#allocation6 + $0x60] sm:$0xff]  ;;  %v7025_v56 = vld [vmem:[#allocation6 + $0x68] sm:$0xff] }
 0x18f   :  { %v362_v58 = vmax.f32 %v356_v57, 0.0  ;;  %v493_v57 = vld [vmem:[#allocation3 + $0x168] sm:$0xff] }
 0x191   :  { %6005 = vmatmul.msk.f32.gmra.mxu3 %vm372_vm4, %v362_v58  ;;  %v459_v58 = vld [vmem:[#allocation3 + $0x58] sm:$0xff] }
 0x192   :  { %595 = vmatpush.msrb.mxu1 %v459_v58  ;;  %v7031_v58 = vld [vmem:[#allocation6 + $0x40] sm:$0xff] }
 0x194   :  { %v358_v60 = vpop.f32.mrf.mxu2 }
 0x195   :  { %v359_v61 = vadd.f32 %v358_v60, %v323_v59  ;;  %v490_v59 = vld [vmem:[#allocation3 + $0x150] sm:$0xff]  ;;  %v489_v60 = vld [vmem:[#allocation3 + $0x148] sm:$0xff] }
 0x196   :  { %567 = vmatpush.msra.mxu2 %v490_v59  ;;  %v7033_v59 = vld [vmem:[#allocation6 + $0x48] sm:$0xff] }
 0x197   :  { %v363_v62 = vmax.f32 %v359_v61, 0.0  ;;  %v455_v61 = vld [vmem:[#allocation3 + $0x38] sm:$0xff] }
 0x198   :  { %596 = vmatpush.msrb.mxu1 %v455_v61  ;;  %v7040_v61 = vld [vmem:[#allocation6 + $0x20] sm:$0xff] }
 0x199   :  { %6006 = vmatmul.msk.f32.gmra.mxu3 %vm372_vm4, %v363_v62  ;;  %v486_v62 = vld [vmem:[#allocation3 + $0x130] sm:$0xff] }
 0x19a   :  { %568 = vmatpush.msra.mxu2 %v486_v62  ;;  %597 = vmatpush.msrb.mxu1 %v451_v1  ;;  %v7042_v62 = vld [vmem:[#allocation6 + $0x28] sm:$0xff]  ;;  %v7049_v1 = vld [vmem:[#allocation6] sm:$0xff] }
 0x19c   :  { %726 = vmatpush.msra.mxu1 %v6927_v4 }
 0x20c   :  { %v403_v2 = vpop.f32.mrf.mxu3 }
 0x20d   :  { %v404_v20 = vadd.f32 %v6092_v13, %v403_v2  ;;  %v482_v2 = vld [vmem:[#allocation3 + $0x110] sm:$0xff] }
 0x20e   :  { %569 = vmatpush.msra.mxu2 %v482_v2  ;;  %v7051_v2 = vld [vmem:[#allocation6 + $0x8] sm:$0xff] }
 0x20f   :  { %v412_v30 = vmax.f32 %v404_v20, 0.0  ;;  %v6941_v20 = vld [vmem:[#allocation6 + $0x160] sm:$0xff] }
 0x210   :  { %570 = vmatpush.msra.mxu2 %v478_v5  ;;  %v10012_v5 = vmov 0.0  }
 0x211   :  { %v418_v39 = vmul.f32 %v415_v33, %v412_v30  ;;  %v6971_v30 = vld [vmem:[#allocation6 + $0x128] sm:$0xff]  ;;  %v6977_v33 = vld [vmem:[#allocation6 + $0x100] sm:$0xff] }
 0x214   :  { %v406_v7 = vpop.f32.mrf.mxu3 }
 0x215   :  { %v407_v16 = vadd.f32 %v6092_v13, %v406_v7  ;;  %v474_v7 = vld [vmem:[#allocation3 + $0xd0] sm:$0xff] }
 0x216   :  { %571 = vmatpush.msra.mxu2 %v474_v7 }
 0x217   :  { %v413_v25 = vmax.f32 %v407_v16, 0.0  ;;  %v6930_v16 = vld [vmem:[#allocation6 + $0x1e0] sm:$0xff] }
 0x218   :  { %572 = vmatpush.msra.mxu2 %v470_v9  ;;  %v7076_v9 = vld [vmem:[#allocation6 + $0x1b0] sm:$0xff] }
 0x219   :  { %v419_v35 = vmul.f32 %v416_v28, %v413_v25  ;;  %v6957_v25 = vld [vmem:[#allocation6 + $0x198] sm:$0xff]  ;;  %v6966_v28 = vld [vmem:[#allocation6 + $0x148] sm:$0xff] }
 0x21a   :  { %573 = vmatpush.msra.mxu2 %v466_v32  ;;  %v7117_v32 = vld [vmem:[#allocation6 + $0xd0] sm:$0xff] }
 0x21c   :  { %v409_v18 = vpop.f32.mrf.mxu3  ;;  %574 = vmatpush.msra.mxu2 %v462_v36  ;;  %v7123_v36 = vld [vmem:[#allocation6 + $0xb0] sm:$0xff] }
 0x21d   :  { %v410_v21 = vadd.f32 %v6092_v13, %v409_v18  ;;  %v457_v13 = vld [vmem:[#allocation3 + $0x48] sm:$0xff]  ;;  %v6935_v18 = vld [vmem:[#allocation6 + $0x1a0] sm:$0xff] }
 0x21e   :  { %575 = vmatpush.msra.mxu2 %v458_v41 }
 0x21f   :  { %v414_v26 = vmax.f32 %v410_v21, 0.0  ;;  %v6944_v21 = vld [vmem:[#allocation6 + $0x140] sm:$0xff] }
 0x220   :  { %576 = vmatpush.msra.mxu2 %v454_v45 }
 0x221   :  { %v420_v31 = vmul.f32 %v417_v23, %v414_v26  ;;  %v6951_v23 = vld [vmem:[#allocation6 + $0x1d8] sm:$0xff]  ;;  %v6960_v26 = vld [vmem:[#allocation6 + $0x168] sm:$0xff] }
 0x222   :  { %727 = vmatpush.msra.mxu1 %v6951_v23  ;;  %690 = vmatpush.msrb.mxu0 %v6960_v26 }
 0x223   :  { %439 = vmatpush.msrb.mxu3 %v420_v31  ;;  %v6975_v31 = vld [vmem:[#allocation6 + $0x138] sm:$0xff] }
 0x224   :  { %728 = vmatpush.msra.mxu1 %v6954_v24  ;;  %691 = vmatpush.msrb.mxu0 %v6966_v28 }
 0x225   :  { %440 = vmatpush.msrb.mxu3 %v419_v35  ;;  %v6983_v35 = vld [vmem:[#allocation6 + $0x118] sm:$0xff] }
 0x226   :  { %729 = vmatpush.msra.mxu1 %v6957_v25  ;;  %692 = vmatpush.msrb.mxu0 %v6971_v30 }
 0x227   :  { %441 = vmatpush.msrb.mxu3 %v418_v39  ;;  %v6988_v39 = vld [vmem:[#allocation6 + $0xe8] sm:$0xff] }
 0x228   :  { %6007 = vmatmul.msk.f32.vlgmr.msrb.gmra.mxu3 %vm422_vm5, %v421_v40  ;;  %730 = vmatpush.msra.mxu1 %v6962_v27  ;;  %v6992_v40 = vld [vmem:[#allocation6 + $0xf8] sm:$0xff] }
 0x229   :  { %542 = vmatpush.msra.mxu3 %v509_v43  ;;  %693 = vmatpush.msrb.mxu0 %v6979_v34  ;;  %v6999_v43 = vld [vmem:[#allocation6 + $0xc8] sm:$0xff] }
 0x22a   :  { %731 = vmatpush.msra.mxu1 %v6969_v29 }
 0x22b   :  { %543 = vmatpush.msra.mxu3 %v505_v46  ;;  %694 = vmatpush.msrb.mxu0 %v6988_v39  ;;  %v7003_v46 = vld [vmem:[#allocation6 + $0xa0] sm:$0xff] }
 0x22c   :  { %732 = vmatpush.msra.mxu1 %v6975_v31 }
 0x22d   :  { %544 = vmatpush.msra.mxu3 %v501_v50  ;;  %695 = vmatpush.msrb.mxu0 %v6999_v43  ;;  %v450_v50 = vld [vmem:[#allocation3 + $0x10] sm:$0xff] }
 0x22e   :  { %733 = vmatpush.msra.mxu1 %v6983_v35  ;;  %577 = vmatpush.msra.mxu2 %v450_v50 }
 0x22f   :  { %545 = vmatpush.msra.mxu3 %v497_v53  ;;  %696 = vmatpush.msrb.mxu0 %v7008_v48  ;;  %v7019_v53 = vld [vmem:[#allocation6 + $0x98] sm:$0xff] }
 0x230   :  { %734 = vmatpush.msra.mxu1 %v6992_v40 }
 0x231   :  { %546 = vmatpush.msra.mxu3 %v493_v57  ;;  %697 = vmatpush.msrb.mxu0 %v7017_v52  ;;  %v7029_v57 = vld [vmem:[#allocation6 + $0x78] sm:$0xff] }
 0x232   :  { %735 = vmatpush.msra.mxu1 %v7001_v44 }
 0x233   :  { %547 = vmatpush.msra.mxu3 %v489_v60  ;;  %698 = vmatpush.msrb.mxu0 %v7025_v56  ;;  %v7038_v60 = vld [vmem:[#allocation6 + $0x58] sm:$0xff] }
 0x234   :  { %736 = vmatpush.msra.mxu1 %v7010_v49 }
 0x235   :  { %548 = vmatpush.msra.mxu3 %v485_v63  ;;  %699 = vmatpush.msrb.mxu0 %v7033_v59  ;;  %v7047_v63 = vld [vmem:[#allocation6 + $0x38] sm:$0xff] }
 0x236   :  { %737 = vmatpush.msra.mxu1 %v7019_v53 }
 0x237   :  { %549 = vmatpush.msra.mxu3 %v481_v3  ;;  %700 = vmatpush.msrb.mxu0 %v7042_v62  ;;  %v7054_v3 = vld [vmem:[#allocation6 + $0x18] sm:$0xff] }
 0x238   :  { %738 = vmatpush.msra.mxu1 %v7029_v57 }
 0x239   :  { %550 = vmatpush.msra.mxu3 %v477_v6  ;;  %701 = vmatpush.msrb.mxu0 %v7051_v2  ;;  %v7070_v6 = vld [vmem:[#allocation6 + $0x1f0] sm:$0xff] }
 0x23a   :  { %739 = vmatpush.msra.mxu1 %v7038_v60  ;;  %702 = vmatmul.f32.vlgmr.msrb.gmra.mxu0 %v10012_v5 }
 0x23b   :  { %551 = vmatpush.msra.mxu3 %v473_v8  ;;  %898 = vmatpush.msra.mxu0 %v6912_v37  ;;  %v7073_v8 = vld [vmem:[#allocation6 + $0x1d0] sm:$0xff] }
 0x23c   :  { %740 = vmatpush.msra.mxu1 %v7047_v63 }
 0x23d   :  { %552 = vmatpush.msra.mxu3 %v469_v10  ;;  %899 = vmatpush.msra.mxu0 %v6918_v47  ;;  %v7082_v10 = vld [vmem:[#allocation6 + $0x190] sm:$0xff] }
 0x23e   :  { %741 = vmatpush.msra.mxu1 %v7054_v3 }
 0x23f   :  { %553 = vmatpush.msra.mxu3 %v465_v11  ;;  %900 = vmatpush.msra.mxu0 %v6921_v54  ;;  %v7088_v11 = vld [vmem:[#allocation6 + $0x170] sm:$0xff] }
 0x241   :  { %554 = vmatpush.msra.mxu3 %v461_v12  ;;  %901 = vmatpush.msra.mxu0 %v6924_v0  ;;  %v7095_v12 = vld [vmem:[#allocation6 + $0x150] sm:$0xff] }
 0x243   :  { %555 = vmatpush.msra.mxu3 %v457_v13  ;;  %902 = vmatpush.msra.mxu0 %v6960_v26  ;;  %v7099_v13 = vld [vmem:[#allocation6 + $0x130] sm:$0xff] }
 0x245   :  { %556 = vmatpush.msra.mxu3 %v453_v14  ;;  %903 = vmatpush.msra.mxu0 %v6966_v28  ;;  %v7105_v14 = vld [vmem:[#allocation6 + $0x110] sm:$0xff] }
 0x247   :  { %557 = vmatpush.msra.mxu3 %v449_v15  ;;  %904 = vmatpush.msra.mxu0 %v6971_v30  ;;  %v7111_v15 = vld [vmem:[#allocation6 + $0xf0] sm:$0xff] }
 0x249   :  { %666 = vmatpush.msrb.mxu3 %v6930_v16  ;;  %905 = vmatpush.msra.mxu0 %v6979_v34 }
 0x24b   :  { %667 = vmatpush.msrb.mxu3 %v6932_v17  ;;  %906 = vmatpush.msra.mxu0 %v6988_v39 }
 0x24d   :  { %668 = vmatpush.msrb.mxu3 %v6935_v18  ;;  %907 = vmatpush.msra.mxu0 %v6999_v43 }
 0x24f   :  { %669 = vmatpush.msrb.mxu3 %v6938_v19  ;;  %908 = vmatpush.msra.mxu0 %v7008_v48 }
 0x251   :  { %670 = vmatpush.msrb.mxu3 %v6941_v20  ;;  %909 = vmatpush.msra.mxu0 %v7017_v52 }
 0x253   :  { %671 = vmatpush.msrb.mxu3 %v6944_v21  ;;  %910 = vmatpush.msra.mxu0 %v7025_v56 }
 0x255   :  { %672 = vmatpush.msrb.mxu3 %v6947_v22  ;;  %911 = vmatpush.msra.mxu0 %v7033_v59 }
 0x257   :  { %673 = vmatpush.msrb.mxu3 %v6977_v33  ;;  %912 = vmatpush.msra.mxu0 %v7042_v62 }
 0x259   :  { %674 = vmatpush.msrb.mxu3 %v6985_v38  ;;  %913 = vmatpush.msra.mxu0 %v7051_v2 }
 0x25b   :  { %675 = vmatpush.msrb.mxu3 %v6994_v42  ;;  %1128 = vmatpush.msrb.mxu0 %v6912_v37  ;;  %v7129_v37 = vld [vmem:[#allocation6 + $0x90] sm:$0xff] }
 0x25d   :  { %676 = vmatpush.msrb.mxu3 %v7003_v46  ;;  %1129 = vmatpush.msrb.mxu0 %v6918_v47  ;;  %v7135_v47 = vld [vmem:[#allocation6 + $0x70] sm:$0xff] }
 0x25f   :  { %677 = vmatpush.msrb.mxu3 %v7012_v51  ;;  %1130 = vmatpush.msrb.mxu0 %v6921_v54  ;;  %v7141_v54 = vld [vmem:[#allocation6 + $0x50] sm:$0xff] }
 0x261   :  { %678 = vmatpush.msrb.mxu3 %v7023_v55  ;;  %1131 = vmatpush.msrb.mxu0 %v6924_v0  ;;  %v7147_v0 = vld [vmem:[#allocation6 + $0x30] sm:$0xff] }
 0x263   :  { %679 = vmatpush.msrb.mxu3 %v7031_v58  ;;  %1132 = vmatpush.msrb.mxu0 %v6960_v26  ;;  %v7153_v26 = vld [vmem:[#allocation6 + $0x10] sm:$0xff] }
 0x265   :  { %680 = vmatpush.msrb.mxu3 %v7040_v61  ;;  %1133 = vmatpush.msrb.mxu0 %v6966_v28 }
 0x267   :  { %681 = vmatpush.msrb.mxu3 %v7049_v1  ;;  %1134 = vmatpush.msrb.mxu0 %v6971_v30 }
 0x269   :  { %1135 = vmatpush.msrb.mxu0 %v6979_v34 }
 0x26b   :  { %1136 = vmatpush.msrb.mxu0 %v6988_v39 }
 0x26d   :  { %1137 = vmatpush.msrb.mxu0 %v6999_v43 }
 0x26f   :  { %1138 = vmatpush.msrb.mxu0 %v7008_v48 }
 0x271   :  { %1139 = vmatpush.msrb.mxu0 %v7017_v52 }
 0x273   :  { %1140 = vmatpush.msrb.mxu0 %v7025_v56 }
 0x275   :  { %1141 = vmatpush.msrb.mxu0 %v7033_v59 }
 0x277   :  { %1142 = vmatpush.msrb.mxu0 %v7042_v62 }
 0x279   :  { %1143 = vmatpush.msrb.mxu0 %v7051_v2 }
 0x2ab   :  { %v443_v7 = vpop.f32.mrf.mxu3 }
 0x2ac   :  { %446 = vst [vmem:[#allocation2] sm:$0xff] %v443_v7  ;;  %538 = vmatmul.f32.vlgmr.msrb.gmra.mxu2 %v443_v7  ;;  %558 = vmatmul.f32.vlgmr.msra.gmra.mxu3 %v443_v7 }
 0x2ad   :  { %706 = vmatpush.msrb.mxu2 %v7070_v6  ;;  %598 = vmatmul.f32.vlgmr.msrb.gmra.mxu1 %v443_v7 }
 0x2ae   :  { %878 = vmatpush.msra.mxu3 %v6930_v16  ;;  %938 = vmatpush.msrb.mxu1 %v6927_v4 }
 0x2af   :  { %707 = vmatpush.msrb.mxu2 %v7073_v8 }
 0x2b0   :  { %879 = vmatpush.msra.mxu3 %v6932_v17  ;;  %939 = vmatpush.msrb.mxu1 %v6951_v23 }
 0x2b1   :  { %708 = vmatpush.msrb.mxu2 %v7076_v9 }
 0x2b2   :  { %880 = vmatpush.msra.mxu3 %v6935_v18  ;;  %940 = vmatpush.msrb.mxu1 %v6954_v24 }
 0x2b3   :  { %709 = vmatpush.msrb.mxu2 %v7082_v10 }
 0x2b4   :  { %682 = vmatmul.f32.vlgmr.msrb.gmra.mxu3 %v10012_v5  ;;  %578 = vmatmul.f32.vlgmr.msra.gmra.mxu2 %v443_v7 }
 0x2b5   :  { %710 = vmatpush.msrb.mxu2 %v7088_v11  ;;  %742 = vmatmul.f32.vlgmr.msra.gmra.mxu1 %v10012_v5 }
 0x2b6   :  { %881 = vmatpush.msra.mxu3 %v6938_v19  ;;  %941 = vmatpush.msrb.mxu1 %v6957_v25 }
 0x2b7   :  { %711 = vmatpush.msrb.mxu2 %v7095_v12 }
 0x2b8   :  { %882 = vmatpush.msra.mxu3 %v6941_v20  ;;  %942 = vmatpush.msrb.mxu1 %v6962_v27 }
 0x2b9   :  { %712 = vmatpush.msrb.mxu2 %v7099_v13 }
 0x2ba   :  { %883 = vmatpush.msra.mxu3 %v6944_v21  ;;  %943 = vmatpush.msrb.mxu1 %v6969_v29 }
 0x2bb   :  { %713 = vmatpush.msrb.mxu2 %v7105_v14 }
 0x2bc   :  { %884 = vmatpush.msra.mxu3 %v6947_v22  ;;  %944 = vmatpush.msrb.mxu1 %v6975_v31 }
 0x2bd   :  { %714 = vmatpush.msrb.mxu2 %v7111_v15 }
 0x2be   :  { %885 = vmatpush.msra.mxu3 %v6977_v33  ;;  %945 = vmatpush.msrb.mxu1 %v6983_v35 }
 0x2bf   :  { %715 = vmatpush.msrb.mxu2 %v7117_v32 }
 0x2c0   :  { %886 = vmatpush.msra.mxu3 %v6985_v38  ;;  %946 = vmatpush.msrb.mxu1 %v6992_v40 }
 0x2c1   :  { %716 = vmatpush.msrb.mxu2 %v7123_v36 }
 0x2c2   :  { %887 = vmatpush.msra.mxu3 %v6994_v42  ;;  %947 = vmatpush.msrb.mxu1 %v7001_v44 }
 0x2c3   :  { %717 = vmatpush.msrb.mxu2 %v7129_v37 }
 0x2c4   :  { %888 = vmatpush.msra.mxu3 %v7003_v46  ;;  %948 = vmatpush.msrb.mxu1 %v7010_v49 }
 0x2c5   :  { %718 = vmatpush.msrb.mxu2 %v7135_v47 }
 0x2c6   :  { %889 = vmatpush.msra.mxu3 %v7012_v51  ;;  %949 = vmatpush.msrb.mxu1 %v7019_v53 }
 0x2c7   :  { %719 = vmatpush.msrb.mxu2 %v7141_v54 }
 0x2c8   :  { %890 = vmatpush.msra.mxu3 %v7023_v55  ;;  %950 = vmatpush.msrb.mxu1 %v7029_v57 }
 0x2c9   :  { %720 = vmatpush.msrb.mxu2 %v7147_v0 }
 0x2ca   :  { %891 = vmatpush.msra.mxu3 %v7031_v58  ;;  %951 = vmatpush.msrb.mxu1 %v7038_v60 }
 0x2cb   :  { %721 = vmatpush.msrb.mxu2 %v7153_v26 }
 0x2cc   :  { %722 = vmatmul.f32.vlgmr.msrb.gmra.mxu2 %v10012_v5  ;;  %892 = vmatpush.msra.mxu3 %v7040_v61  ;;  %v7437_v5 = vld [vmem:[#allocation6 + $0x28] sm:$0xff] }
 0x2cd   :  { %918 = vmatpush.msra.mxu2 %v7070_v6  ;;  %952 = vmatpush.msrb.mxu1 %v7047_v63  ;;  %10317 = vst [vmem:[#allocation32_spill] sm:$0xff] %v7437_v5 }
 0x2ce   :  { %893 = vmatpush.msra.mxu3 %v7049_v1 }
 0x2cf   :  { %919 = vmatpush.msra.mxu2 %v7073_v8  ;;  %953 = vmatpush.msrb.mxu1 %v7054_v3 }
 0x2d0   :  { %1108 = vmatpush.msrb.mxu3 %v6930_v16 }
 0x2d1   :  { %1168 = vmatpush.msra.mxu1 %v6927_v4  ;;  %920 = vmatpush.msra.mxu2 %v7076_v9  ;;  %v512_v4 = vld [vmem:[%s10008_s11] sm:$0xf] }
 0x2d2   :  { %1109 = vmatpush.msrb.mxu3 %v6932_v17  ;;  %v515_v16 = vperm.slane %v512_v4, 1  ;;  %v516_v39 = vperm.slane %v512_v4, 2  ;;  %v517_v43 = vperm.slane %v512_v4, 3 }
 0x2d3   :  { %1169 = vmatpush.msra.mxu1 %v6951_v23  ;;  %921 = vmatpush.msra.mxu2 %v7082_v10 }
 0x2d4   :  { %1110 = vmatpush.msrb.mxu3 %v6935_v18  ;;  %v703_v18 = vpop.f32.mrf.mxu0 }
 0x2d5   :  { %1170 = vmatpush.msra.mxu1 %v6954_v24  ;;  %922 = vmatpush.msra.mxu2 %v7088_v11 }
 0x2d6   :  { %1111 = vmatpush.msrb.mxu3 %v6938_v19 }
 0x2d7   :  { %1171 = vmatpush.msra.mxu1 %v6957_v25  ;;  %923 = vmatpush.msra.mxu2 %v7095_v12 }
 0x2d8   :  { %1112 = vmatpush.msrb.mxu3 %v6941_v20  ;;  %v514_v20 = vperm.slane %v512_v4, 0 }
 0x2d9   :  { %1172 = vmatpush.msra.mxu1 %v6962_v27  ;;  %924 = vmatpush.msra.mxu2 %v7099_v13 }
 0x2da   :  { %1113 = vmatpush.msrb.mxu3 %v6944_v21 }
 0x2db   :  { %1173 = vmatpush.msra.mxu1 %v6969_v29  ;;  %925 = vmatpush.msra.mxu2 %v7105_v14 }
 0x2dc   :  { %1114 = vmatpush.msrb.mxu3 %v6947_v22 }
 0x2dd   :  { %1174 = vmatpush.msra.mxu1 %v6975_v31  ;;  %926 = vmatpush.msra.mxu2 %v7111_v15 }
 0x2de   :  { %1115 = vmatpush.msrb.mxu3 %v6977_v33 }
 0x2df   :  { %1175 = vmatpush.msra.mxu1 %v6983_v35  ;;  %927 = vmatpush.msra.mxu2 %v7117_v32 }
 0x2e0   :  { %1116 = vmatpush.msrb.mxu3 %v6985_v38 }
 0x2e1   :  { %1176 = vmatpush.msra.mxu1 %v6992_v40  ;;  %928 = vmatpush.msra.mxu2 %v7123_v36 }
 0x2e2   :  { %1117 = vmatpush.msrb.mxu3 %v6994_v42 }
 0x2e3   :  { %1177 = vmatpush.msra.mxu1 %v7001_v44  ;;  %929 = vmatpush.msra.mxu2 %v7129_v37 }
 0x2e4   :  { %1118 = vmatpush.msrb.mxu3 %v7003_v46 }
 0x2e5   :  { %1178 = vmatpush.msra.mxu1 %v7010_v49  ;;  %930 = vmatpush.msra.mxu2 %v7135_v47 }
 0x2e6   :  { %1119 = vmatpush.msrb.mxu3 %v7012_v51 }
 0x2e7   :  { %1179 = vmatpush.msra.mxu1 %v7019_v53  ;;  %931 = vmatpush.msra.mxu2 %v7141_v54 }
 0x2e8   :  { %1120 = vmatpush.msrb.mxu3 %v7023_v55 }
 0x2e9   :  { %1180 = vmatpush.msra.mxu1 %v7029_v57  ;;  %932 = vmatpush.msra.mxu2 %v7147_v0 }
 0x2ea   :  { %1121 = vmatpush.msrb.mxu3 %v7031_v58 }
 0x2eb   :  { %1181 = vmatpush.msra.mxu1 %v7038_v60  ;;  %933 = vmatpush.msra.mxu2 %v7153_v26 }
 0x2ec   :  { %1122 = vmatpush.msrb.mxu3 %v7040_v61 }
 0x2ed   :  { %1148 = vmatpush.msrb.mxu2 %v7070_v6  ;;  %1182 = vmatpush.msra.mxu1 %v7047_v63 }
 0x2ee   :  { %1123 = vmatpush.msrb.mxu3 %v7049_v1 }
 0x2ef   :  { %1149 = vmatpush.msrb.mxu2 %v7073_v8  ;;  %1183 = vmatpush.msra.mxu1 %v7054_v3 }
 0x2f1   :  { %1150 = vmatpush.msrb.mxu2 %v7076_v9 }
 0x2f3   :  { %1151 = vmatpush.msrb.mxu2 %v7082_v10 }
 0x2f5   :  { %1152 = vmatpush.msrb.mxu2 %v7088_v11 }
 0x2f7   :  { %1153 = vmatpush.msrb.mxu2 %v7095_v12 }
 0x2f9   :  { %1154 = vmatpush.msrb.mxu2 %v7099_v13 }
 0x2fb   :  { %1155 = vmatpush.msrb.mxu2 %v7105_v14 }
 0x2fd   :  { %1156 = vmatpush.msrb.mxu2 %v7111_v15 }
 0x2ff   :  { %1157 = vmatpush.msrb.mxu2 %v7117_v32 }
 0x301   :  { %1158 = vmatpush.msrb.mxu2 %v7123_v36 }
 0x303   :  { %1159 = vmatpush.msrb.mxu2 %v7129_v37 }
 0x305   :  { %1160 = vmatpush.msrb.mxu2 %v7135_v47 }
 0x307   :  { %1161 = vmatpush.msrb.mxu2 %v7141_v54 }
 0x309   :  { %1162 = vmatpush.msrb.mxu2 %v7147_v0 }
 0x30b   :  { %1163 = vmatpush.msrb.mxu2 %v7153_v26 }
 0x32a   :  { %v599_v34 = vpop.f32.mrf.mxu1 }
 0x32b   :  { %v7251_v52 = vadd.f32 %v599_v34, %v517_v43 }
 0x32d   :  { %10300 = vst [vmem:[#allocation15_spill] sm:$0xff] %v7251_v52 }
 0x32f   :  { %v559_v17 = vpop.f32.mrf.mxu3  ;;  %v539_v22 = vpop.f32.mrf.mxu2 }
 0x330   :  { %v7242_v19 = vadd.f32 %v559_v17, %v515_v16  ;;  %v7245_v24 = vadd.f32 %v539_v22, %v514_v20 }
 0x332   :  { %10297 = vst [vmem:[#allocation12_spill] sm:$0xff] %v7242_v19  ;;  %v747_v21 = vadd.f32 %v703_v18, %v7242_v19  ;;  %v743_v50 = vpop.f32.mrf.mxu1 }
 0x333   :  { %10298 = vst [vmem:[#allocation13_spill] sm:$0xff] %v7245_v24  ;;  %v749_v56 = vadd.f32 %v743_v50, %v7251_v52 }
 0x334   :  { %v6009_v23 = vmul.f32 -1.442695, %v747_v21 }
 0x336   :  { %6093 = vpow2.f32 %v6009_v23 }
 0x337   :  { %v683_v25 = vpop.f32.mrf.mxu3  ;;  %v579_v35 = vpop.f32.mrf.mxu2 }
 0x338   :  { %v746_v27 = vadd.f32 %v683_v25, %v7245_v24  ;;  %v7248_v45 = vadd.f32 %v579_v35, %v516_v39 }
 0x33a   :  { %v6008_v28 = vmul.f32 -1.442695, %v746_v27  ;;  %10299 = vst [vmem:[#allocation14_spill] sm:$0xff] %v7248_v45 }
 0x33c   :  { %v6094_v29 = vpop.eup %6093  ;;  %6095 = vpow2.f32 %v6008_v28 }
 0x33d   :  { %v760_v30 = vadd.f32 1.0, %v6094_v29 }
 0x33f   :  { %6097 = vrcp.f32 %v760_v30  ;;  %v788_v61 = vand.u32 2147483648, %v760_v30  ;;  %vm782_vm10 = vweird.f32 %v760_v30  ;;  %v786_v63 = vand.u32 2147483647, %v760_v30 }
 0x341   :  { %v789_v7 = vor.u32 1.1754944e-38, %v788_v61  ;;  %vm787_vm13 = vcmp.eq.f32.partialorder %v786_v63, 8.507059e+37 }
 0x342   :  { %v6096_v31 = vpop.eup %6095 }
 0x343   :  { %v759_v33 = vadd.f32 1.0, %v6096_v31 }
 0x345   :  { %6099 = vrcp.f32 %v759_v33  ;;  %v6098_v38 = vpop.eup %6097  ;;  %v773_v58 = vand.u32 2147483648, %v759_v33  ;;  %vm767_vm7 = vweird.f32 %v759_v33  ;;  %v771_v59 = vand.u32 2147483647, %v759_v33 }
 0x346   :  { %v778_v41 = vmul.f32 %v6098_v38, %v760_v30  ;;  %vm783_vm8 = vweird.f32 %v6098_v38 }
 0x347   :  { %v774_v2 = vor.u32 1.1754944e-38, %v773_v58  ;;  %vm784_vm11 = vmor %vm782_vm10, %vm783_vm8  ;;  %vm772_vm12 = vcmp.eq.f32.partialorder %v771_v59, 8.507059e+37 }
 0x348   :  { %v779_v46 = vsub.f32 1.0, %v778_v41 }
 0x34a   :  { %v780_v55 = vmul.f32 %v6098_v38, %v779_v46 }
 0x34b   :  { %v6100_v40 = vpop.eup %6099 }
 0x34c   :  { %v763_v42 = vmul.f32 %v6100_v40, %v759_v33  ;;  %vm768_vm6 = vweird.f32 %v6100_v40  ;;  %v781_v60 = vadd.f32 %v6098_v38, %v780_v55 }
 0x34d   :  { %vm769_vm9 = vmor %vm767_vm7, %vm768_vm6 }
 0x34e   :  { %v764_v44 = vsub.f32 1.0, %v763_v42  ;;  %v785_v3 = vsel %vm784_vm11, %v6098_v38, %v781_v60 }
 0x34f   :  { %v723_v48 = vpop.f32.mrf.mxu2  ;;  %v790_v10 = vsel %vm787_vm13, %v789_v7, %v785_v3 }
 0x350   :  { %v748_v49 = vadd.f32 %v723_v48, %v7248_v45  ;;  %v765_v51 = vmul.f32 %v6100_v40, %v764_v44  ;;  %v808_v12 = vmul.f32 0.0, %v790_v10 }
 0x352   :  { %v6010_v53 = vmul.f32 -1.442695, %v748_v49  ;;  %v766_v57 = vadd.f32 %v6100_v40, %v765_v51 }
 0x354   :  { %6101 = vpow2.f32 %v6010_v53  ;;  %v770_v62 = vsel %vm769_vm9, %v6100_v40, %v766_v57 }
 0x355   :  { %6103 = vtanh.f32 %v749_v56  ;;  %v775_v8 = vsel %vm772_vm12, %v774_v2, %v770_v62 }
 0x35a   :  { %v6102_v1 = vpop.eup %6101 }
 0x35b   :  { %v761_v6 = vadd.f32 1.0, %v6102_v1  ;;  %v6104_v9 = vpop.eup %6103 }
 0x35c   :  { %v809_v11 = vmul.f32 %v6104_v9, %v775_v8 }
 0x35d   :  { %6105 = vrcp.f32 %v761_v6  ;;  %v803_v36 = vand.u32 2147483648, %v761_v6  ;;  %v801_v47 = vand.u32 2147483647, %v761_v6  ;;  %vm797_vm15 = vweird.f32 %v761_v6 }
 0x35e   :  { %v7254_v14 = vadd.f32 %v809_v11, %v808_v12 }
 0x35f   :  { %v804_v0 = vor.u32 1.1754944e-38, %v803_v36  ;;  %vm802_vm1 = vcmp.eq.f32.partialorder %v801_v47, 8.507059e+37 }
 0x360   :  { %6107 = vtanh.f32 %v7254_v14  ;;  %v1033_v9 = vrot.slane %v7254_v14, 7 }
 0x363   :  { %v6106_v13 = vpop.eup %6105 }
 0x364   :  { %v793_v15 = vmul.f32 %v6106_v13, %v761_v6  ;;  %vm798_vm14 = vweird.f32 %v6106_v13 }
 0x365   :  { %vm799_vm0 = vmor %vm797_vm15, %vm798_vm14 }
 0x366   :  { %v794_v32 = vsub.f32 1.0, %v793_v15  ;;  %v6108_v4 = vpop.eup %6107 }
 0x368   :  { %v795_v37 = vmul.f32 %v6106_v13, %v794_v32 }
 0x36a   :  { %v796_v54 = vadd.f32 %v6106_v13, %v795_v37 }
 0x36c   :  { %v800_v26 = vsel %vm799_vm0, %v6106_v13, %v796_v54 }
 0x36d   :  { %v805_v16 = vsel %vm802_vm1, %v804_v0, %v800_v26 }
 0x36e   :  { %v812_v17 = vmul.f32 %v6108_v4, %v805_v16 }
 0x370   :  { %813 = vst [vmem:[#allocation2] sm:$0x1] %v812_v17  ;;  %894 = vmatmul.f32.vlgmr.msra.gmra.mxu3 %v812_v17  ;;  %914 = vmatmul.f32.vlgmr.msra.gmra.mxu0 %v812_v17 }
 0x371   :  { %934 = vmatmul.f32.vlgmr.msra.gmra.mxu2 %v812_v17  ;;  %954 = vmatmul.f32.vlgmr.msrb.gmra.mxu1 %v812_v17 }
 0x3ed   :  { %v915_v18 = vpop.f32.mrf.mxu0 }
 0x3ee   :  { %v963_v20 = vrot.slane %v915_v18, 7  ;;  %v955_v41 = vpop.f32.mrf.mxu1  ;;  %v7265_v18 = vld [vmem:[#allocation6 + $0x1e0] sm:$0xff] }
 0x3ef   :  { %v965_v46 = vrot.slane %v955_v41, 7  ;;  %10301 = vst [vmem:[#allocation16_spill] sm:$0xff] %v7265_v18  ;;  %1338 = vmatpush.msra.mxu3 %v7265_v18  ;;  %v7313_v41 = vld [vmem:[#allocation6 + $0x160] sm:$0xff] }
 0x3f0   :  { %v971_v21 = vadd.f32 %v963_v20, %v7242_v19  ;;  %v7267_v20 = vld [vmem:[#allocation6 + $0x1e8] sm:$0xff] }
 0x3f1   :  { %v973_v51 = vadd.f32 %v965_v46, %v7251_v52  ;;  %1358 = vmatpush.msra.mxu0 %v7267_v20  ;;  %v7321_v46 = vld [vmem:[#allocation6 + $0x178] sm:$0xff] }
 0x3f2   :  { %v6012_v22 = vmul.f32 -1.442695, %v971_v21  ;;  %v7269_v21 = vld [vmem:[#allocation6 + $0x1f0] sm:$0xff] }
 0x3f3   :  { %v895_v23 = vpop.f32.mrf.mxu3  ;;  %10302 = vst [vmem:[#allocation17_spill] sm:$0xff] %v7269_v21  ;;  %1378 = vmatpush.msra.mxu2 %v7269_v21 }
 0x3f4   :  { %6109 = vpow2.f32 %v6012_v22  ;;  %v962_v25 = vrot.slane %v895_v23, 7  ;;  %v935_v27 = vpop.f32.mrf.mxu2  ;;  %v7273_v22 = vld [vmem:[#allocation6 + $0x1f8] sm:$0xff]  ;;  %v7277_v23 = vld [vmem:[#allocation6 + $0x1c0] sm:$0xff] }
 0x3f5   :  { %v964_v28 = vrot.slane %v935_v27, 7  ;;  %1398 = vmatpush.msrb.mxu1 %v7273_v22  ;;  %v7281_v27 = vld [vmem:[#allocation6 + $0x1d0] sm:$0xff]  ;;  %1339 = vmatpush.msra.mxu3 %v7277_v23 }
 0x3f6   :  { %v970_v29 = vadd.f32 %v962_v25, %v7245_v24  ;;  %v7279_v25 = vld [vmem:[#allocation6 + $0x1c8] sm:$0xff]  ;;  %1379 = vmatpush.msra.mxu2 %v7281_v27 }
 0x3f7   :  { %v972_v30 = vadd.f32 %v964_v28, %v7248_v45  ;;  %10303 = vst [vmem:[#allocation18_spill] sm:$0xff] %v7279_v25  ;;  %1359 = vmatpush.msra.mxu0 %v7279_v25  ;;  %v7285_v28 = vld [vmem:[#allocation6 + $0x1d8] sm:$0xff] }
 0x3f8   :  { %v6011_v31 = vmul.f32 -1.442695, %v970_v29  ;;  %1399 = vmatpush.msrb.mxu1 %v7285_v28  ;;  %v7289_v29 = vld [vmem:[#allocation6 + $0x1a0] sm:$0xff] }
 0x3f9   :  { %v6013_v33 = vmul.f32 -1.442695, %v972_v30  ;;  %v7291_v30 = vld [vmem:[#allocation6 + $0x1a8] sm:$0xff]  ;;  %1340 = vmatpush.msra.mxu3 %v7289_v29 }
 0x3fa   :  { %v6110_v34 = vpop.eup %6109  ;;  %6111 = vpow2.f32 %v6011_v31  ;;  %10304 = vst [vmem:[#allocation19_spill] sm:$0xff] %v7291_v30  ;;  %v7293_v31 = vld [vmem:[#allocation6 + $0x1b0] sm:$0xff]  ;;  %1360 = vmatpush.msra.mxu0 %v7291_v30 }
 0x3fb   :  { %v984_v35 = vadd.f32 1.0, %v6110_v34  ;;  %6113 = vpow2.f32 %v6013_v33  ;;  %v7297_v33 = vld [vmem:[#allocation6 + $0x1b8] sm:$0xff]  ;;  %1380 = vmatpush.msra.mxu2 %v7293_v31  ;;  %v7301_v34 = vld [vmem:[#allocation6 + $0x180] sm:$0xff] }
 0x3fc   :  { %10305 = vst [vmem:[#allocation20_spill] sm:$0xff] %v7297_v33  ;;  %1400 = vmatpush.msrb.mxu1 %v7297_v33  ;;  %1341 = vmatpush.msra.mxu3 %v7301_v34 }
 0x3fd   :  { %6115 = vrcp.f32 %v984_v35  ;;  %v1012_v57 = vand.u32 2147483648, %v984_v35  ;;  %vm1006_vm3 = vweird.f32 %v984_v35  ;;  %v1010_v59 = vand.u32 2147483647, %v984_v35  ;;  %10306 = vst [vmem:[#allocation21_spill] sm:$0xff] %v7301_v34 }
 0x3fe   :  { %1342 = vmatpush.msra.mxu3 %v7313_v41 }
 0x3ff   :  { %v1013_v2 = vor.u32 1.1754944e-38, %v1012_v57  ;;  %vm1011_vm6 = vcmp.eq.f32.partialorder %v1010_v59, 8.507059e+37  ;;  %v7342_v57 = vld [vmem:[#allocation6 + $0x130] sm:$0xff]  ;;  %v7346_v59 = vld [vmem:[#allocation6 + $0x138] sm:$0xff] }
 0x400   :  { %v6112_v38 = vpop.eup %6111 }
 0x401   :  { %v6114_v39 = vpop.eup %6113  ;;  %v983_v40 = vadd.f32 1.0, %v6112_v38  ;;  %v7305_v38 = vld [vmem:[#allocation6 + $0x190] sm:$0xff] }
 0x402   :  { %v985_v42 = vadd.f32 1.0, %v6114_v39  ;;  %v7309_v39 = vld [vmem:[#allocation6 + $0x198] sm:$0xff]  ;;  %1381 = vmatpush.msra.mxu2 %v7305_v38 }
 0x403   :  { %v6116_v43 = vpop.eup %6115  ;;  %6117 = vrcp.f32 %v983_v40  ;;  %v997_v61 = vand.u32 2147483648, %v983_v40  ;;  %v995_v1 = vand.u32 2147483647, %v983_v40  ;;  %vm991_vm7 = vweird.f32 %v983_v40  ;;  %1401 = vmatpush.msrb.mxu1 %v7309_v39 }
 0x404   :  { %v1002_v44 = vmul.f32 %v6116_v43, %v984_v35  ;;  %6119 = vrcp.f32 %v985_v42  ;;  %vm1007_vm2 = vweird.f32 %v6116_v43  ;;  %v1027_v47 = vand.u32 2147483648, %v985_v42  ;;  %v7303_v35 = vld [vmem:[#allocation6 + $0x188] sm:$0xff] }
 0x405   :  { %vm1008_vm4 = vmor %vm1006_vm3, %vm1007_vm2  ;;  %6121 = vtanh.f32 %v973_v51  ;;  %v998_v7 = vor.u32 1.1754944e-38, %v997_v61  ;;  %vm996_vm9 = vcmp.eq.f32.partialorder %v995_v1, 8.507059e+37  ;;  %vm1021_vm11 = vweird.f32 %v985_v42  ;;  %10307 = vst [vmem:[#allocation22_spill] sm:$0xff] %v7303_v35  ;;  %1361 = vmatpush.msra.mxu0 %v7303_v35  ;;  %1402 = vmatpush.msrb.mxu1 %v7321_v46  ;;  %v7350_v61 = vld [vmem:[#allocation6 + $0x108] sm:$0xff]  ;;  %v7356_v1 = vld [vmem:[#allocation6 + $0x118] sm:$0xff] }
 0x406   :  { %v1003_v48 = vsub.f32 1.0, %v1002_v44  ;;  %v1025_v54 = vand.u32 2147483647, %v985_v42  ;;  %v1028_v26 = vor.u32 1.1754944e-38, %v1027_v47  ;;  %v7384_v47 = vld [vmem:[#allocation6 + $0xa0] sm:$0xff] }
 0x408   :  { %v1004_v49 = vmul.f32 %v6116_v43, %v1003_v48  ;;  %vm1026_vm13 = vcmp.eq.f32.partialorder %v1025_v54, 8.507059e+37  ;;  %v7325_v48 = vld [vmem:[#allocation6 + $0x140] sm:$0xff]  ;;  %v7386_v54 = vld [vmem:[#allocation6 + $0xa8] sm:$0xff] }
 0x409   :  { %v6118_v50 = vpop.eup %6117  ;;  %1343 = vmatpush.msra.mxu3 %v7325_v48 }
 0x40a   :  { %v6120_v53 = vpop.eup %6119  ;;  %v1005_v55 = vadd.f32 %v6116_v43, %v1004_v49  ;;  %v987_v56 = vmul.f32 %v6118_v50, %v983_v40  ;;  %vm992_vm5 = vweird.f32 %v6118_v50  ;;  %v7327_v49 = vld [vmem:[#allocation6 + $0x148] sm:$0xff] }
 0x40b   :  { %v1017_v58 = vmul.f32 %v6120_v53, %v985_v42  ;;  %vm993_vm8 = vmor %vm991_vm7, %vm992_vm5  ;;  %v6122_v11 = vpop.eup %6121  ;;  %vm1022_vm10 = vweird.f32 %v6120_v53  ;;  %v7315_v42 = vld [vmem:[#allocation6 + $0x168] sm:$0xff] }
 0x40c   :  { %v988_v60 = vsub.f32 1.0, %v987_v56  ;;  %v1009_v62 = vsel %vm1008_vm4, %v6116_v43, %v1005_v55  ;;  %vm1023_vm12 = vmor %vm1021_vm11, %vm1022_vm10  ;;  %v7317_v43 = vld [vmem:[#allocation6 + $0x170] sm:$0xff]  ;;  %1362 = vmatpush.msra.mxu0 %v7315_v42  ;;  %v7338_v55 = vld [vmem:[#allocation6 + $0x120] sm:$0xff] }
 0x40d   :  { %v1018_v3 = vsub.f32 1.0, %v1017_v58  ;;  %v1014_v8 = vsel %vm1011_vm6, %v1013_v2, %v1009_v62  ;;  %1382 = vmatpush.msra.mxu2 %v7317_v43  ;;  %v7340_v56 = vld [vmem:[#allocation6 + $0x128] sm:$0xff]  ;;  %1344 = vmatpush.msra.mxu3 %v7338_v55  ;;  %v7358_v2 = vld [vmem:[#allocation6 + $0xe0] sm:$0xff] }
 0x40e   :  { %v989_v63 = vmul.f32 %v6118_v50, %v988_v60  ;;  %v1035_v15 = vmul.f32 %v1033_v9, %v1014_v8  ;;  %1363 = vmatpush.msra.mxu0 %v7327_v49  ;;  %v7348_v60 = vld [vmem:[#allocation6 + $0x100] sm:$0xff]  ;;  %v7364_v8 = vld [vmem:[#allocation6 + $0xf0] sm:$0xff]  ;;  %v7366_v9 = vld [vmem:[#allocation6 + $0xf8] sm:$0xff] }
 0x40f   :  { %v1019_v13 = vmul.f32 %v6120_v53, %v1018_v3  ;;  %1345 = vmatpush.msra.mxu3 %v7348_v60 }
 0x410   :  { %v990_v6 = vadd.f32 %v6118_v50, %v989_v63  ;;  %1364 = vmatpush.msra.mxu0 %v7340_v56  ;;  %v7354_v63 = vld [vmem:[#allocation6 + $0x110] sm:$0xff] }
 0x411   :  { %v1020_v37 = vadd.f32 %v6120_v53, %v1019_v13  ;;  %1346 = vmatpush.msra.mxu3 %v7358_v2 }
 0x412   :  { %v994_v10 = vsel %vm993_vm8, %v6118_v50, %v990_v6  ;;  %v7329_v50 = vld [vmem:[#allocation6 + $0x150] sm:$0xff]  ;;  %1365 = vmatpush.msra.mxu0 %v7350_v61 }
 0x413   :  { %v999_v12 = vsel %vm996_vm9, %v998_v7, %v994_v10  ;;  %v1024_v0 = vsel %vm1023_vm12, %v6120_v53, %v1020_v37  ;;  %v7334_v53 = vld [vmem:[#allocation6 + $0x158] sm:$0xff]  ;;  %1383 = vmatpush.msra.mxu2 %v7329_v50  ;;  %v7362_v7 = vld [vmem:[#allocation6 + $0xe8] sm:$0xff] }
 0x414   :  { %v1036_v32 = vmul.f32 %v6122_v11, %v999_v12  ;;  %v1029_v4 = vsel %vm1026_vm13, %v1028_v26, %v1024_v0  ;;  %1403 = vmatpush.msrb.mxu1 %v7334_v53  ;;  %v7370_v11 = vld [vmem:[#allocation6 + $0xc0] sm:$0xff]  ;;  %v7372_v12 = vld [vmem:[#allocation6 + $0xc8] sm:$0xff]  ;;  %1366 = vmatpush.msra.mxu0 %v7362_v7  ;;  %v7390_v26 = vld [vmem:[#allocation6 + $0xb0] sm:$0xff] }
 0x415   :  { %1384 = vmatpush.msra.mxu2 %v7342_v57  ;;  %1347 = vmatpush.msra.mxu3 %v7370_v11 }
 0x416   :  { %v7262_v36 = vadd.f32 %v1036_v32, %v1035_v15  ;;  %1404 = vmatpush.msrb.mxu1 %v7346_v59  ;;  %v7377_v15 = vld [vmem:[#allocation6 + $0xd0] sm:$0xff]  ;;  %v7379_v32 = vld [vmem:[#allocation6 + $0xd8] sm:$0xff]  ;;  %1367 = vmatpush.msra.mxu0 %v7372_v12 }
 0x417   :  { %1385 = vmatpush.msra.mxu2 %v7354_v63  ;;  %1348 = vmatpush.msra.mxu3 %v7384_v47 }
 0x418   :  { %6123 = vtanh.f32 %v7262_v36  ;;  %1405 = vmatpush.msrb.mxu1 %v7356_v1  ;;  %1368 = vmatpush.msra.mxu0 %v7386_v54 }
 0x419   :  { %1386 = vmatpush.msra.mxu2 %v7364_v8 }
 0x41a   :  { %1406 = vmatpush.msrb.mxu1 %v7366_v9 }
 0x41b   :  { %1387 = vmatpush.msra.mxu2 %v7377_v15 }
 0x41c   :  { %1407 = vmatpush.msrb.mxu1 %v7379_v32 }
 0x41d   :  { %1388 = vmatpush.msra.mxu2 %v7390_v26 }
 0x41e   :  { %v6124_v14 = vpop.eup %6123 }
 0x41f   :  { %v1039_v16 = vmul.f32 %v6124_v14, %v1029_v4  ;;  %v7392_v14 = vld [vmem:[#allocation6 + $0xb8] sm:$0xff] }
 0x420   :  { %1408 = vmatpush.msrb.mxu1 %v7392_v14 }
 0x421   :  { %1040 = vst [vmem:[#allocation2] sm:$0x2] %v1039_v16  ;;  %v1106_v17 = vrot.slane %v1039_v16, 1  ;;  %v7396_v16 = vld [vmem:[#allocation6 + $0x80] sm:$0xff] }
 0x422   :  { %1349 = vmatpush.msra.mxu3 %v7396_v16 }
 0x423   :  { %1124 = vmatmul.f32.vlgmr.msrb.gmra.mxu3 %v1106_v17  ;;  %1144 = vmatmul.f32.vlgmr.msrb.gmra.mxu0 %v1106_v17 }
 0x424   :  { %1164 = vmatmul.f32.vlgmr.msrb.gmra.mxu2 %v1106_v17  ;;  %1184 = vmatmul.f32.vlgmr.msra.gmra.mxu1 %v1106_v17  ;;  %v7398_v17 = vld [vmem:[#allocation6 + $0x88] sm:$0xff] }
 0x425   :  { %1369 = vmatpush.msra.mxu0 %v7398_v17 }
 0x4a0   :  { %v1145_v40 = vpop.f32.mrf.mxu0 }
 0x4a1   :  { %v1193_v44 = vrot.slane %v1145_v40, 6 }
 0x4a3   :  { %v1201_v51 = vadd.f32 %v1193_v44, %v7242_v19  ;;  %v7402_v44 = vld [vmem:[#allocation6 + $0x90] sm:$0xff]  ;;  %v7443_v19 = vld [vmem:[#allocation6 + $0x38] sm:$0xff] }
 0x4a4   :  { %10308 = vst [vmem:[#allocation23_spill] sm:$0xff] %v7402_v44  ;;  %1389 = vmatpush.msra.mxu2 %v7402_v44 }
 0x4a5   :  { %v6015_v58 = vmul.f32 -1.442695, %v1201_v51  ;;  %v7404_v51 = vld [vmem:[#allocation6 + $0x98] sm:$0xff]  ;;  %10318 = vst [vmem:[#allocation33_spill] sm:$0xff] %v7443_v19 }
 0x4a6   :  { %v1125_v62 = vpop.f32.mrf.mxu3  ;;  %10309 = vst [vmem:[#allocation24_spill] sm:$0xff] %v7404_v51  ;;  %1409 = vmatpush.msrb.mxu1 %v7404_v51  ;;  %v1185_v51 = vpop.f32.mrf.mxu1 }
 0x4a7   :  { %6125 = vpow2.f32 %v6015_v58  ;;  %v1192_v3 = vrot.slane %v1125_v62, 6  ;;  %v1165_v6 = vpop.f32.mrf.mxu2  ;;  %v7410_v62 = vld [vmem:[#allocation6 + $0x60] sm:$0xff] }
 0x4a8   :  { %v1194_v10 = vrot.slane %v1165_v6, 6  ;;  %10310 = vst [vmem:[#allocation25_spill] sm:$0xff] %v7410_v62  ;;  %v7416_v6 = vld [vmem:[#allocation6 + $0x70] sm:$0xff]  ;;  %1350 = vmatpush.msra.mxu3 %v7410_v62 }
 0x4a9   :  { %v1200_v13 = vadd.f32 %v1192_v3, %v7245_v24  ;;  %v7412_v3 = vld [vmem:[#allocation6 + $0x68] sm:$0xff]  ;;  %10312 = vst [vmem:[#allocation27_spill] sm:$0xff] %v7416_v6  ;;  %1390 = vmatpush.msra.mxu2 %v7416_v6  ;;  %v7441_v24 = vld [vmem:[#allocation6 + $0x30] sm:$0xff] }
 0x4aa   :  { %v1202_v37 = vadd.f32 %v1194_v10, %v7248_v45  ;;  %10311 = vst [vmem:[#allocation26_spill] sm:$0xff] %v7412_v3  ;;  %v7418_v10 = vld [vmem:[#allocation6 + $0x78] sm:$0xff]  ;;  %1370 = vmatpush.msra.mxu0 %v7412_v3  ;;  %v7451_v6 = vld [vmem:[#allocation6 + $0x8] sm:$0xff] }
 0x4ab   :  { %v6014_v0 = vmul.f32 -1.442695, %v1200_v13  ;;  %10313 = vst [vmem:[#allocation28_spill] sm:$0xff] %v7418_v10  ;;  %v7423_v13 = vld [vmem:[#allocation6 + $0x40] sm:$0xff]  ;;  %1410 = vmatpush.msrb.mxu1 %v7418_v10 }
 0x4ac   :  { %v6016_v4 = vmul.f32 -1.442695, %v1202_v37  ;;  %10314 = vst [vmem:[#allocation29_spill] sm:$0xff] %v7423_v13  ;;  %v7425_v37 = vld [vmem:[#allocation6 + $0x48] sm:$0xff]  ;;  %1351 = vmatpush.msra.mxu3 %v7423_v13  ;;  %v7449_v10 = vld [vmem:[#allocation6] sm:$0xff]  ;;  %v7459_v13 = vld [vmem:[#allocation6 + $0x18] sm:$0xff] }
 0x4ad   :  { %v6126_v40 = vpop.eup %6125  ;;  %6127 = vpow2.f32 %v6014_v0  ;;  %10315 = vst [vmem:[#allocation30_spill] sm:$0xff] %v7425_v37  ;;  %v7429_v0 = vld [vmem:[#allocation6 + $0x50] sm:$0xff]  ;;  %1371 = vmatpush.msra.mxu0 %v7425_v37 }
 0x4ae   :  { %v7406_v58 = vadd.f32 1.0, %v6126_v40  ;;  %6129 = vpow2.f32 %v6016_v4  ;;  %v7431_v4 = vld [vmem:[#allocation6 + $0x58] sm:$0xff]  ;;  %v7435_v40 = vld [vmem:[#allocation6 + $0x20] sm:$0xff]  ;;  %1391 = vmatpush.msra.mxu2 %v7429_v0  ;;  %10319 = vst [vmem:[#allocation34_spill] sm:$0xff] %v7451_v6  ;;  %v7457_v37 = vld [vmem:[#allocation6 + $0x10] sm:$0xff] }
 0x4af   :  { %10316 = vst [vmem:[#allocation31_spill] sm:$0xff] %v7431_v4  ;;  %1411 = vmatpush.msrb.mxu1 %v7431_v4  ;;  %1352 = vmatpush.msra.mxu3 %v7435_v40 }
 0x4b0   :  { %6131 = vrcp.f32 %v7406_v58  ;;  %1372 = vmatpush.msra.mxu0 %v7437_v5  ;;  %1392 = vmatpush.msra.mxu2 %v7441_v24  ;;  %vm1236_vm15 = vweird.f32 %v7406_v58 }
 0x4b1   :  { %1412 = vmatpush.msrb.mxu1 %v7443_v19  ;;  %1353 = vmatpush.msra.mxu3 %v7449_v10 }
 0x4b2   :  { %1373 = vmatpush.msra.mxu0 %v7451_v6  ;;  %1393 = vmatpush.msra.mxu2 %v7457_v37 }
 0x4b3   :  { %v6128_v45 = vpop.eup %6127  ;;  %1413 = vmatpush.msrb.mxu1 %v7459_v13  ;;  %1568 = vmatpush.msrb.mxu3 %v7265_v18 }
 0x4b4   :  { %v6130_v3 = vpop.eup %6129  ;;  %v7445_v62 = vadd.f32 1.0, %v6128_v45  ;;  %1588 = vmatpush.msrb.mxu0 %v7267_v20  ;;  %1608 = vmatpush.msrb.mxu2 %v7269_v21 }
 0x4b5   :  { %v7453_v44 = vadd.f32 1.0, %v6130_v3  ;;  %v1195_v3 = vrot.slane %v1185_v51, 6  ;;  %1628 = vmatpush.msra.mxu1 %v7273_v22  ;;  %1569 = vmatpush.msrb.mxu3 %v7277_v23 }
 0x4b6   :  { %v6132_v45 = vpop.eup %6131  ;;  %6133 = vrcp.f32 %v7445_v62  ;;  %1589 = vmatpush.msrb.mxu0 %v7279_v25  ;;  %1609 = vmatpush.msrb.mxu2 %v7281_v27  ;;  %vm1221_vm3 = vweird.f32 %v7445_v62 }
 0x4b7   :  { %v1232_v4 = vmul.f32 %v6132_v45, %v7406_v58  ;;  %6135 = vrcp.f32 %v7453_v44  ;;  %v1203_v51 = vadd.f32 %v1195_v3, %v7251_v52  ;;  %1629 = vmatpush.msra.mxu1 %v7285_v28  ;;  %vm1237_vm14 = vweird.f32 %v6132_v45  ;;  %1570 = vmatpush.msrb.mxu3 %v7289_v29 }
 0x4b8   :  { %1590 = vmatpush.msrb.mxu0 %v7291_v30  ;;  %1610 = vmatpush.msrb.mxu2 %v7293_v31  ;;  %vm7493_vm0 = vmor %vm1236_vm15, %vm1237_vm14  ;;  %v1227_v30 = vand.u32 2147483648, %v7445_v62  ;;  %vm1251_vm7 = vweird.f32 %v7453_v44 }
 0x4b9   :  { %v1233_v5 = vsub.f32 1.0, %v1232_v4  ;;  %1630 = vmatpush.msra.mxu1 %v7297_v33  ;;  %1571 = vmatpush.msrb.mxu3 %v7301_v34  ;;  %6137 = vtanh.f32 %v1203_v51 }
 0x4ba   :  { %1591 = vmatpush.msrb.mxu0 %v7303_v35  ;;  %1611 = vmatpush.msrb.mxu2 %v7305_v38 }
 0x4bb   :  { %v1234_v19 = vmul.f32 %v6132_v45, %v1233_v5  ;;  %v1242_v5 = vand.u32 2147483648, %v7406_v58  ;;  %1631 = vmatpush.msra.mxu1 %v7309_v39  ;;  %1572 = vmatpush.msrb.mxu3 %v7313_v41 }
 0x4bc   :  { %v6134_v6 = vpop.eup %6133  ;;  %1592 = vmatpush.msrb.mxu0 %v7315_v42  ;;  %1612 = vmatpush.msrb.mxu2 %v7317_v43 }
 0x4bd   :  { %v7479_v4 = vpop.eup %6135  ;;  %v1235_v18 = vadd.f32 %v6132_v45, %v1234_v19  ;;  %v1217_v21 = vmul.f32 %v6134_v6, %v7445_v62  ;;  %v1240_v19 = vand.u32 2147483647, %v7406_v58  ;;  %vm1222_vm1 = vweird.f32 %v6134_v6  ;;  %1632 = vmatpush.msra.mxu1 %v7321_v46  ;;  %1573 = vmatpush.msrb.mxu3 %v7325_v48 }
 0x4be   :  { %v1247_v25 = vmul.f32 %v7479_v4, %v7453_v44  ;;  %v1243_v35 = vor.u32 1.1754944e-38, %v1242_v5  ;;  %1593 = vmatpush.msrb.mxu0 %v7327_v49  ;;  %vm1223_vm4 = vmor %vm1221_vm3, %vm1222_vm1  ;;  %1613 = vmatpush.msrb.mxu2 %v7329_v50  ;;  %vm1252_vm6 = vweird.f32 %v7479_v4 }
 0x4bf   :  { %v1218_v3 = vsub.f32 1.0, %v1217_v21  ;;  %v1239_v33 = vsel %vm7493_vm0, %v6132_v45, %v1235_v18  ;;  %v1225_v21 = vand.u32 2147483647, %v7445_v62  ;;  %vm1241_vm2 = vcmp.eq.f32.partialorder %v1240_v19, 8.507059e+37  ;;  %1633 = vmatpush.msra.mxu1 %v7334_v53  ;;  %1574 = vmatpush.msrb.mxu3 %v7338_v55  ;;  %v6138_v62 = vpop.eup %6137  ;;  %vm1253_vm8 = vmor %vm1251_vm7, %vm1252_vm6 }
 0x4c0   :  { %v1248_v34 = vsub.f32 1.0, %v1247_v25  ;;  %v1244_v52 = vsel %vm1241_vm2, %v1243_v35, %v1239_v33  ;;  %v1228_v18 = vor.u32 1.1754944e-38, %v1227_v30  ;;  %v1263_v25 = vrot.slane %v7262_v36, 7  ;;  %1594 = vmatpush.msrb.mxu0 %v7340_v56  ;;  %1614 = vmatpush.msrb.mxu2 %v7342_v57 }
 0x4c1   :  { %v1219_v58 = vmul.f32 %v6134_v6, %v1218_v3  ;;  %vm1226_vm5 = vcmp.eq.f32.partialorder %v1225_v21, 8.507059e+37  ;;  %1634 = vmatpush.msra.mxu1 %v7346_v59  ;;  %1575 = vmatpush.msrb.mxu3 %v7348_v60  ;;  %v1257_v35 = vand.u32 2147483648, %v7453_v44  ;;  %v10323_v21 = vld [vmem:[#allocation24_spill] sm:$0xff] }
 0x4c2   :  { %v1249_v19 = vmul.f32 %v7479_v4, %v1248_v34  ;;  %v1265_v30 = vmul.f32 %v1263_v25, %v1244_v52  ;;  %1595 = vmatpush.msrb.mxu0 %v7350_v61  ;;  %1615 = vmatpush.msrb.mxu2 %v7354_v63  ;;  %v10325_v25 = vld [vmem:[#allocation26_spill] sm:$0xff] }
 0x4c3   :  { %v1220_v51 = vadd.f32 %v6134_v6, %v1219_v58  ;;  %1635 = vmatpush.msra.mxu1 %v7356_v1  ;;  %1576 = vmatpush.msrb.mxu3 %v7358_v2  ;;  %v1258_v58 = vor.u32 1.1754944e-38, %v1257_v35  ;;  %v10332_v35 = vld [vmem:[#allocation33_spill] sm:$0xff] }
 0x4c4   :  { %1596 = vmatpush.msrb.mxu0 %v7362_v7  ;;  %v1250_v34 = vadd.f32 %v7479_v4, %v1249_v19  ;;  %1616 = vmatpush.msrb.mxu2 %v7364_v8  ;;  %v10329_v19 = vld [vmem:[#allocation30_spill] sm:$0xff] }
 0x4c5   :  { %v1224_v45 = vsel %vm1223_vm4, %v6134_v6, %v1220_v51  ;;  %1636 = vmatpush.msra.mxu1 %v7366_v9  ;;  %1577 = vmatpush.msrb.mxu3 %v7370_v11  ;;  %v1255_v6 = vand.u32 2147483647, %v7453_v44  ;;  %v10322_v44 = vld [vmem:[#allocation23_spill] sm:$0xff] }
 0x4c6   :  { %v1229_v5 = vsel %vm1226_vm5, %v1228_v18, %v1224_v45  ;;  %1597 = vmatpush.msrb.mxu0 %v7372_v12  ;;  %1617 = vmatpush.msrb.mxu2 %v7377_v15  ;;  %v1254_v3 = vsel %vm1253_vm8, %v7479_v4, %v1250_v34  ;;  %v10324_v18 = vld [vmem:[#allocation25_spill] sm:$0xff]  ;;  %v10326_v45 = vld [vmem:[#allocation27_spill] sm:$0xff]  ;;  %v10331_v34 = vld [vmem:[#allocation32_spill] sm:$0xff] }
 0x4c7   :  { %v1266_v33 = vmul.f32 %v6138_v62, %v1229_v5  ;;  %1637 = vmatpush.msra.mxu1 %v7379_v32  ;;  %1578 = vmatpush.msrb.mxu3 %v7384_v47  ;;  %vm1256_vm9 = vcmp.eq.f32.partialorder %v1255_v6, 8.507059e+37  ;;  %v10327_v62 = vld [vmem:[#allocation28_spill] sm:$0xff]  ;;  %v10328_v5 = vld [vmem:[#allocation29_spill] sm:$0xff]  ;;  %v10333_v6 = vld [vmem:[#allocation34_spill] sm:$0xff] }
 0x4c8   :  { %1598 = vmatpush.msrb.mxu0 %v7386_v54  ;;  %1618 = vmatpush.msrb.mxu2 %v7390_v26  ;;  %v1259_v52 = vsel %vm1256_vm9, %v1258_v58, %v1254_v3  ;;  %v10334_v3 = vld [vmem:[#allocation16_spill] sm:$0xff]  ;;  %v10335_v58 = vld [vmem:[#allocation17_spill] sm:$0xff] }
 0x4c9   :  { %v7522_v36 = vadd.f32 %v1266_v33, %v1265_v30  ;;  %1638 = vmatpush.msra.mxu1 %v7392_v14  ;;  %1579 = vmatpush.msrb.mxu3 %v7396_v16  ;;  %v10330_v33 = vld [vmem:[#allocation31_spill] sm:$0xff] }
 0x4ca   :  { %1599 = vmatpush.msrb.mxu0 %v7398_v17  ;;  %1619 = vmatpush.msrb.mxu2 %v10322_v44 }
 0x4cb   :  { %6139 = vtanh.f32 %v7522_v36  ;;  %1639 = vmatpush.msra.mxu1 %v10323_v21  ;;  %1580 = vmatpush.msrb.mxu3 %v10324_v18 }
 0x4cc   :  { %1600 = vmatpush.msrb.mxu0 %v10325_v25  ;;  %1620 = vmatpush.msrb.mxu2 %v10326_v45 }
 0x4cd   :  { %1640 = vmatpush.msra.mxu1 %v10327_v62  ;;  %1581 = vmatpush.msrb.mxu3 %v10328_v5 }
 0x4ce   :  { %1601 = vmatpush.msrb.mxu0 %v10329_v19  ;;  %1621 = vmatpush.msrb.mxu2 %v7429_v0 }
 0x4cf   :  { %1641 = vmatpush.msra.mxu1 %v10330_v33  ;;  %1582 = vmatpush.msrb.mxu3 %v7435_v40 }
 0x4d0   :  { %1602 = vmatpush.msrb.mxu0 %v10331_v34  ;;  %1622 = vmatpush.msrb.mxu2 %v7441_v24 }
 0x4d1   :  { %v6140_v51 = vpop.eup %6139  ;;  %1642 = vmatpush.msra.mxu1 %v10332_v35  ;;  %1583 = vmatpush.msrb.mxu3 %v7449_v10 }
 0x4d2   :  { %v1269_v4 = vmul.f32 %v6140_v51, %v1259_v52  ;;  %1603 = vmatpush.msrb.mxu0 %v10333_v6  ;;  %1623 = vmatpush.msrb.mxu2 %v7457_v37  ;;  %v10336_v51 = vld [vmem:[#allocation18_spill] sm:$0xff]  ;;  %v10337_v52 = vld [vmem:[#allocation19_spill] sm:$0xff] }
 0x4d3   :  { %1643 = vmatpush.msra.mxu1 %v7459_v13 }
 0x4d4   :  { %1270 = vst [vmem:[#allocation2] sm:$0x4] %v1269_v4  ;;  %v1336_v30 = vrot.slane %v1269_v4, 2  ;;  %v10338_v4 = vld [vmem:[#allocation20_spill] sm:$0xff] }
 0x4d6   :  { %1354 = vmatmul.f32.vlgmr.msra.gmra.mxu3 %v1336_v30  ;;  %1374 = vmatmul.f32.vlgmr.msra.gmra.mxu0 %v1336_v30 }
 0x4d7   :  { %1394 = vmatmul.f32.vlgmr.msra.gmra.mxu2 %v1336_v30  ;;  %1414 = vmatmul.f32.vlgmr.msrb.gmra.mxu1 %v1336_v30  ;;  %v10340_v30 = vld [vmem:[#allocation22_spill] sm:$0xff] }
 0x4d8   :  { %1798 = vmatpush.msra.mxu3 %v10334_v3  ;;  %1818 = vmatpush.msra.mxu0 %v7267_v20  ;;  %v10339_v20 = vld [vmem:[#allocation21_spill] sm:$0xff] }
 0x4d9   :  { %1838 = vmatpush.msra.mxu2 %v10335_v58  ;;  %1858 = vmatpush.msrb.mxu1 %v7273_v22 }
 0x4da   :  { %1799 = vmatpush.msra.mxu3 %v7277_v23  ;;  %1819 = vmatpush.msra.mxu0 %v10336_v51 }
 0x4db   :  { %1839 = vmatpush.msra.mxu2 %v7281_v27  ;;  %1859 = vmatpush.msrb.mxu1 %v7285_v28  ;;  %v10341_v27 = vld [vmem:[#allocation12_spill] sm:$0xff] }
 0x4dc   :  { %1800 = vmatpush.msra.mxu3 %v7289_v29  ;;  %1820 = vmatpush.msra.mxu0 %v10337_v52 }
 0x4dd   :  { %1840 = vmatpush.msra.mxu2 %v7293_v31  ;;  %1860 = vmatpush.msrb.mxu1 %v10338_v4 }
 0x4de   :  { %1801 = vmatpush.msra.mxu3 %v10339_v20  ;;  %1821 = vmatpush.msra.mxu0 %v10340_v30 }
 0x4df   :  { %1841 = vmatpush.msra.mxu2 %v7305_v38  ;;  %1861 = vmatpush.msrb.mxu1 %v7309_v39 }
 0x4e0   :  { %1802 = vmatpush.msra.mxu3 %v7313_v41  ;;  %1822 = vmatpush.msra.mxu0 %v7315_v42  ;;  %v10342_v41 = vld [vmem:[#allocation13_spill] sm:$0xff] }
 0x4e1   :  { %1842 = vmatpush.msra.mxu2 %v7317_v43  ;;  %1862 = vmatpush.msrb.mxu1 %v7321_v46  ;;  %v10343_v43 = vld [vmem:[#allocation14_spill] sm:$0xff] }
 0x4e2   :  { %1803 = vmatpush.msra.mxu3 %v7325_v48  ;;  %1823 = vmatpush.msra.mxu0 %v7327_v49 }
 0x4e3   :  { %1843 = vmatpush.msra.mxu2 %v7329_v50  ;;  %1863 = vmatpush.msrb.mxu1 %v7334_v53 }
 0x4e4   :  { %1804 = vmatpush.msra.mxu3 %v7338_v55  ;;  %1824 = vmatpush.msra.mxu0 %v7340_v56 }
 0x4e5   :  { %1844 = vmatpush.msra.mxu2 %v7342_v57  ;;  %1864 = vmatpush.msrb.mxu1 %v7346_v59 }
 0x4e6   :  { %1805 = vmatpush.msra.mxu3 %v7348_v60  ;;  %1825 = vmatpush.msra.mxu0 %v7350_v61 }
 0x4e7   :  { %1845 = vmatpush.msra.mxu2 %v7354_v63  ;;  %1865 = vmatpush.msrb.mxu1 %v7356_v1 }
 0x4e8   :  { %1806 = vmatpush.msra.mxu3 %v7358_v2  ;;  %1826 = vmatpush.msra.mxu0 %v7362_v7 }
 0x4e9   :  { %1846 = vmatpush.msra.mxu2 %v7364_v8  ;;  %1866 = vmatpush.msrb.mxu1 %v7366_v9  ;;  %v10344_v9 = vld [vmem:[#allocation15_spill] sm:$0xff] }
 0x4ea   :  { %1807 = vmatpush.msra.mxu3 %v7370_v11  ;;  %1827 = vmatpush.msra.mxu0 %v7372_v12 }
 0x4eb   :  { %1847 = vmatpush.msra.mxu2 %v7377_v15  ;;  %1867 = vmatpush.msrb.mxu1 %v7379_v32 }
 0x4ec   :  { %1808 = vmatpush.msra.mxu3 %v7384_v47  ;;  %1828 = vmatpush.msra.mxu0 %v7386_v54 }
 0x4ed   :  { %1848 = vmatpush.msra.mxu2 %v7390_v26  ;;  %1868 = vmatpush.msrb.mxu1 %v7392_v14 }
 0x4ee   :  { %1809 = vmatpush.msra.mxu3 %v7396_v16  ;;  %1829 = vmatpush.msra.mxu0 %v7398_v17 }
 0x4ef   :  { %1849 = vmatpush.msra.mxu2 %v10322_v44  ;;  %1869 = vmatpush.msrb.mxu1 %v10323_v21 }
 0x4f0   :  { %1810 = vmatpush.msra.mxu3 %v10324_v18  ;;  %1830 = vmatpush.msra.mxu0 %v10325_v25  ;;  %v1493_v18 = vrot.slane %v7522_v36, 7 }
 0x4f1   :  { %1850 = vmatpush.msra.mxu2 %v10326_v45  ;;  %1870 = vmatpush.msrb.mxu1 %v10327_v62 }
 0x4f2   :  { %1811 = vmatpush.msra.mxu3 %v10328_v5  ;;  %1831 = vmatpush.msra.mxu0 %v10329_v19 }
 0x4f3   :  { %1851 = vmatpush.msra.mxu2 %v7429_v0  ;;  %1871 = vmatpush.msrb.mxu1 %v10330_v33 }
 0x4f4   :  { %1812 = vmatpush.msra.mxu3 %v7435_v40  ;;  %1832 = vmatpush.msra.mxu0 %v10331_v34 }
 0x4f5   :  { %1852 = vmatpush.msra.mxu2 %v7441_v24  ;;  %1872 = vmatpush.msrb.mxu1 %v10332_v35 }
 0x4f6   :  { %1813 = vmatpush.msra.mxu3 %v7449_v10  ;;  %1833 = vmatpush.msra.mxu0 %v10333_v6 }
 0x4f7   :  { %1853 = vmatpush.msra.mxu2 %v7457_v37  ;;  %1873 = vmatpush.msrb.mxu1 %v7459_v13 }
 0x553   :  { %v1375_v22 = vpop.f32.mrf.mxu0 }
 0x554   :  { %v1423_v23 = vrot.slane %v1375_v22, 5  ;;  %v1415_v59 = vpop.f32.mrf.mxu1 }
 0x555   :  { %v1425_v1 = vrot.slane %v1415_v59, 5 }
 0x556   :  { %v1431_v28 = vadd.f32 %v1423_v23, %v10341_v27 }
 0x557   :  { %v1433_v11 = vadd.f32 %v1425_v1, %v10344_v9 }
 0x558   :  { %v6018_v29 = vmul.f32 -1.442695, %v1431_v28 }
 0x559   :  { %v1355_v31 = vpop.f32.mrf.mxu3 }
 0x55a   :  { %6141 = vpow2.f32 %v6018_v29  ;;  %v1422_v38 = vrot.slane %v1355_v31, 5  ;;  %v1395_v39 = vpop.f32.mrf.mxu2 }
 0x55b   :  { %v1424_v24 = vrot.slane %v1395_v39, 5 }
 0x55c   :  { %v1430_v42 = vadd.f32 %v1422_v38, %v10342_v41 }
 0x55d   :  { %v1432_v46 = vadd.f32 %v1424_v24, %v10343_v43 }
 0x55e   :  { %v6017_v48 = vmul.f32 -1.442695, %v1430_v42 }
 0x55f   :  { %v6019_v49 = vmul.f32 -1.442695, %v1432_v46 }
 0x560   :  { %v6142_v50 = vpop.eup %6141  ;;  %6143 = vpow2.f32 %v6017_v48 }
 0x561   :  { %v1444_v53 = vadd.f32 1.0, %v6142_v50  ;;  %6145 = vpow2.f32 %v6019_v49 }
 0x563   :  { %6147 = vrcp.f32 %v1444_v53  ;;  %v1472_v47 = vand.u32 2147483648, %v1444_v53  ;;  %vm1466_vm11 = vweird.f32 %v1444_v53  ;;  %v1470_v26 = vand.u32 2147483647, %v1444_v53 }
 0x565   :  { %v1473_v37 = vor.u32 1.1754944e-38, %v1472_v47  ;;  %vm1471_vm14 = vcmp.eq.f32.partialorder %v1470_v26, 8.507059e+37 }
 0x566   :  { %v6144_v55 = vpop.eup %6143 }
 0x567   :  { %v6146_v56 = vpop.eup %6145  ;;  %v1443_v57 = vadd.f32 1.0, %v6144_v55 }
 0x568   :  { %v1445_v60 = vadd.f32 1.0, %v6146_v56 }
 0x569   :  { %v6148_v61 = vpop.eup %6147  ;;  %6149 = vrcp.f32 %v1443_v57  ;;  %v1457_v16 = vand.u32 2147483648, %v1443_v57  ;;  %v1455_v13 = vand.u32 2147483647, %v1443_v57  ;;  %vm1451_vm15 = vweird.f32 %v1443_v57 }
 0x56a   :  { %v1462_v63 = vmul.f32 %v6148_v61, %v1444_v53  ;;  %6151 = vrcp.f32 %v1445_v60  ;;  %vm1467_vm10 = vweird.f32 %v6148_v61  ;;  %v1487_v6 = vand.u32 2147483648, %v1445_v60 }
 0x56b   :  { %vm1468_vm12 = vmor %vm1466_vm11, %vm1467_vm10  ;;  %6153 = vtanh.f32 %v1433_v11  ;;  %v1458_v21 = vor.u32 1.1754944e-38, %v1457_v16  ;;  %vm1456_vm1 = vcmp.eq.f32.partialorder %v1455_v13, 8.507059e+37  ;;  %vm1481_vm3 = vweird.f32 %v1445_v60 }
 0x56c   :  { %v1463_v2 = vsub.f32 1.0, %v1462_v63  ;;  %v1485_v3 = vand.u32 2147483647, %v1445_v60  ;;  %v1488_v51 = vor.u32 1.1754944e-38, %v1487_v6 }
 0x56e   :  { %v1464_v7 = vmul.f32 %v6148_v61, %v1463_v2  ;;  %vm1486_vm5 = vcmp.eq.f32.partialorder %v1485_v3, 8.507059e+37 }
 0x56f   :  { %v6150_v8 = vpop.eup %6149 }
 0x570   :  { %v6152_v12 = vpop.eup %6151  ;;  %v1465_v15 = vadd.f32 %v6148_v61, %v1464_v7  ;;  %v1447_v32 = vmul.f32 %v6150_v8, %v1443_v57  ;;  %vm1452_vm13 = vweird.f32 %v6150_v8 }
 0x571   :  { %v1477_v54 = vmul.f32 %v6152_v12, %v1445_v60  ;;  %vm1453_vm0 = vmor %vm1451_vm15, %vm1452_vm13  ;;  %v6154_v45 = vpop.eup %6153  ;;  %vm1482_vm2 = vweird.f32 %v6152_v12 }
 0x572   :  { %v1448_v14 = vsub.f32 1.0, %v1447_v32  ;;  %v1469_v17 = vsel %vm1468_vm12, %v6148_v61, %v1465_v15  ;;  %vm1483_vm4 = vmor %vm1481_vm3, %vm1482_vm2 }
 0x573   :  { %v1478_v0 = vsub.f32 1.0, %v1477_v54  ;;  %v1474_v44 = vsel %vm1471_vm14, %v1473_v37, %v1469_v17 }
 0x574   :  { %v1449_v10 = vmul.f32 %v6150_v8, %v1448_v14  ;;  %v1495_v19 = vmul.f32 %v1493_v18, %v1474_v44 }
 0x575   :  { %v1479_v5 = vmul.f32 %v6152_v12, %v1478_v0 }
 0x576   :  { %v1450_v40 = vadd.f32 %v6150_v8, %v1449_v10 }
 0x577   :  { %v1480_v35 = vadd.f32 %v6152_v12, %v1479_v5 }
 0x578   :  { %v1454_v25 = vsel %vm1453_vm0, %v6150_v8, %v1450_v40 }
 0x579   :  { %v1459_v62 = vsel %vm1456_vm1, %v1458_v21, %v1454_v25  ;;  %v1484_v58 = vsel %vm1483_vm4, %v6152_v12, %v1480_v35 }
 0x57a   :  { %v1496_v33 = vmul.f32 %v6154_v45, %v1459_v62  ;;  %v1489_v52 = vsel %vm1486_vm5, %v1488_v51, %v1484_v58 }
 0x57c   :  { %v7632_v34 = vadd.f32 %v1496_v33, %v1495_v19 }
 0x57e   :  { %6155 = vtanh.f32 %v7632_v34  ;;  %v1723_v21 = vrot.slane %v7632_v34, 7 }
 0x584   :  { %v6156_v36 = vpop.eup %6155 }
 0x585   :  { %v1499_v4 = vmul.f32 %v6156_v36, %v1489_v52 }
 0x587   :  { %1500 = vst [vmem:[#allocation2] sm:$0x8] %v1499_v4  ;;  %v1566_v20 = vrot.slane %v1499_v4, 3 }
 0x589   :  { %1584 = vmatmul.f32.vlgmr.msrb.gmra.mxu3 %v1566_v20  ;;  %1604 = vmatmul.f32.vlgmr.msrb.gmra.mxu0 %v1566_v20 }
 0x58a   :  { %1624 = vmatmul.f32.vlgmr.msrb.gmra.mxu2 %v1566_v20  ;;  %1644 = vmatmul.f32.vlgmr.msra.gmra.mxu1 %v1566_v20  ;;  %v7643_v20 = vld [vmem:[#allocation6 + $0x1e0] sm:$0xff] }
 0x58b   :  { %2028 = vmatpush.msrb.mxu3 %v7643_v20 }
 0x606   :  { %v1605_v30 = vpop.f32.mrf.mxu0 }
 0x607   :  { %v1653_v22 = vrot.slane %v1605_v30, 4  ;;  %v1645_v57 = vpop.f32.mrf.mxu1  ;;  %v7645_v30 = vld [vmem:[#allocation6 + $0x1e8] sm:$0xff] }
 0x608   :  { %v1655_v63 = vrot.slane %v1645_v57, 4  ;;  %2048 = vmatpush.msrb.mxu0 %v7645_v30  ;;  %v7693_v57 = vld [vmem:[#allocation6 + $0x168] sm:$0xff] }
 0x609   :  { %v1661_v23 = vadd.f32 %v1653_v22, %v10341_v27  ;;  %v7647_v22 = vld [vmem:[#allocation6 + $0x1f0] sm:$0xff] }
 0x60a   :  { %v1663_v8 = vadd.f32 %v1655_v63, %v10344_v9  ;;  %2068 = vmatpush.msrb.mxu2 %v7647_v22  ;;  %v7703_v63 = vld [vmem:[#allocation6 + $0x140] sm:$0xff] }
 0x60b   :  { %v6021_v28 = vmul.f32 -1.442695, %v1661_v23  ;;  %v7651_v23 = vld [vmem:[#allocation6 + $0x1f8] sm:$0xff] }
 0x60c   :  { %v1585_v29 = vpop.f32.mrf.mxu3  ;;  %2088 = vmatpush.msra.mxu1 %v7651_v23 }
 0x60d   :  { %6157 = vpow2.f32 %v6021_v28  ;;  %v1652_v31 = vrot.slane %v1585_v29, 4  ;;  %v1625_v38 = vpop.f32.mrf.mxu2  ;;  %v7655_v28 = vld [vmem:[#allocation6 + $0x1c0] sm:$0xff]  ;;  %v7657_v29 = vld [vmem:[#allocation6 + $0x1c8] sm:$0xff] }
 0x60e   :  { %v1654_v39 = vrot.slane %v1625_v38, 4  ;;  %2029 = vmatpush.msrb.mxu3 %v7655_v28  ;;  %2049 = vmatpush.msrb.mxu0 %v7657_v29  ;;  %v7663_v38 = vld [vmem:[#allocation6 + $0x1d8] sm:$0xff] }
 0x60f   :  { %v1660_v24 = vadd.f32 %v1652_v31, %v10342_v41  ;;  %v7659_v31 = vld [vmem:[#allocation6 + $0x1d0] sm:$0xff]  ;;  %2089 = vmatpush.msra.mxu1 %v7663_v38 }
 0x610   :  { %v1662_v42 = vadd.f32 %v1654_v39, %v10343_v43  ;;  %2069 = vmatpush.msrb.mxu2 %v7659_v31  ;;  %v7667_v39 = vld [vmem:[#allocation6 + $0x1a0] sm:$0xff] }
 0x611   :  { %v6020_v46 = vmul.f32 -1.442695, %v1660_v24  ;;  %v7669_v24 = vld [vmem:[#allocation6 + $0x1a8] sm:$0xff]  ;;  %2030 = vmatpush.msrb.mxu3 %v7667_v39 }
 0x612   :  { %v6022_v48 = vmul.f32 -1.442695, %v1662_v42  ;;  %v7671_v42 = vld [vmem:[#allocation6 + $0x1b0] sm:$0xff]  ;;  %2050 = vmatpush.msrb.mxu0 %v7669_v24 }
 0x613   :  { %v6158_v49 = vpop.eup %6157  ;;  %6159 = vpow2.f32 %v6020_v46  ;;  %v7675_v46 = vld [vmem:[#allocation6 + $0x1b8] sm:$0xff]  ;;  %2070 = vmatpush.msrb.mxu2 %v7671_v42 }
 0x614   :  { %v1674_v50 = vadd.f32 1.0, %v6158_v49  ;;  %6161 = vpow2.f32 %v6022_v48  ;;  %2090 = vmatpush.msra.mxu1 %v7675_v46  ;;  %v7679_v48 = vld [vmem:[#allocation6 + $0x180] sm:$0xff]  ;;  %v7681_v49 = vld [vmem:[#allocation6 + $0x188] sm:$0xff] }
 0x615   :  { %2031 = vmatpush.msrb.mxu3 %v7679_v48  ;;  %2051 = vmatpush.msrb.mxu0 %v7681_v49 }
 0x616   :  { %6163 = vrcp.f32 %v1674_v50  ;;  %v1702_v32 = vand.u32 2147483648, %v1674_v50  ;;  %vm1696_vm7 = vweird.f32 %v1674_v50  ;;  %v1700_v54 = vand.u32 2147483647, %v1674_v50 }
 0x617   :  { %2052 = vmatpush.msrb.mxu0 %v7693_v57 }
 0x618   :  { %v1703_v13 = vor.u32 1.1754944e-38, %v1702_v32  ;;  %vm1701_vm10 = vcmp.eq.f32.partialorder %v1700_v54, 8.507059e+37 }
 0x619   :  { %v6160_v53 = vpop.eup %6159 }
 0x61a   :  { %v6162_v55 = vpop.eup %6161  ;;  %v1673_v56 = vadd.f32 1.0, %v6160_v53  ;;  %v7687_v53 = vld [vmem:[#allocation6 + $0x198] sm:$0xff] }
 0x61b   :  { %v1675_v59 = vadd.f32 1.0, %v6162_v55  ;;  %2091 = vmatpush.msra.mxu1 %v7687_v53 }
 0x61c   :  { %v6164_v60 = vpop.eup %6163  ;;  %6165 = vrcp.f32 %v1673_v56  ;;  %v1687_v14 = vand.u32 2147483648, %v1673_v56  ;;  %v1685_v10 = vand.u32 2147483647, %v1673_v56  ;;  %vm1681_vm11 = vweird.f32 %v1673_v56 }
 0x61d   :  { %v1692_v61 = vmul.f32 %v6164_v60, %v1674_v50  ;;  %6167 = vrcp.f32 %v1675_v59  ;;  %vm1697_vm6 = vweird.f32 %v6164_v60  ;;  %v1717_v6 = vand.u32 2147483648, %v1675_v59  ;;  %v7683_v50 = vld [vmem:[#allocation6 + $0x190] sm:$0xff] }
 0x61e   :  { %vm1698_vm8 = vmor %vm1696_vm7, %vm1697_vm6  ;;  %6169 = vtanh.f32 %v1663_v8  ;;  %v1688_v44 = vor.u32 1.1754944e-38, %v1687_v14  ;;  %vm1686_vm13 = vcmp.eq.f32.partialorder %v1685_v10, 8.507059e+37  ;;  %vm1711_vm15 = vweird.f32 %v1675_v59  ;;  %2071 = vmatpush.msrb.mxu2 %v7683_v50  ;;  %v7712_v8 = vld [vmem:[#allocation6 + $0x158] sm:$0xff]  ;;  %v7730_v14 = vld [vmem:[#allocation6 + $0x108] sm:$0xff] }
 0x61f   :  { %v1693_v1 = vsub.f32 1.0, %v1692_v61  ;;  %v1715_v3 = vand.u32 2147483647, %v1675_v59  ;;  %v1718_v51 = vor.u32 1.1754944e-38, %v1717_v6  ;;  %v7699_v61 = vld [vmem:[#allocation6 + $0x178] sm:$0xff]  ;;  %v7764_v6 = vld [vmem:[#allocation6 + $0xa8] sm:$0xff] }
 0x620   :  { %2092 = vmatpush.msra.mxu1 %v7699_v61 }
 0x621   :  { %v1694_v2 = vmul.f32 %v6164_v60, %v1693_v1  ;;  %vm1716_vm1 = vcmp.eq.f32.partialorder %v1715_v3, 8.507059e+37  ;;  %v7705_v1 = vld [vmem:[#allocation6 + $0x148] sm:$0xff] }
 0x622   :  { %v6166_v7 = vpop.eup %6165  ;;  %2053 = vmatpush.msrb.mxu0 %v7705_v1  ;;  %2093 = vmatpush.msra.mxu1 %v7712_v8 }
 0x623   :  { %v6168_v11 = vpop.eup %6167  ;;  %v1695_v12 = vadd.f32 %v6164_v60, %v1694_v2  ;;  %v1677_v15 = vmul.f32 %v6166_v7, %v1673_v56  ;;  %vm1682_vm9 = vweird.f32 %v6166_v7  ;;  %v7691_v56 = vld [vmem:[#allocation6 + $0x160] sm:$0xff]  ;;  %v7707_v2 = vld [vmem:[#allocation6 + $0x150] sm:$0xff] }
 0x624   :  { %v1707_v47 = vmul.f32 %v6168_v11, %v1675_v59  ;;  %vm1683_vm12 = vmor %vm1681_vm11, %vm1682_vm9  ;;  %v6170_v25 = vpop.eup %6169  ;;  %vm1712_vm14 = vweird.f32 %v6168_v11  ;;  %v7695_v59 = vld [vmem:[#allocation6 + $0x170] sm:$0xff]  ;;  %2032 = vmatpush.msrb.mxu3 %v7691_v56 }
 0x625   :  { %v1678_v26 = vsub.f32 1.0, %v1677_v15  ;;  %v1699_v16 = vsel %vm1698_vm8, %v6164_v60, %v1695_v12  ;;  %vm1713_vm0 = vmor %vm1711_vm15, %vm1712_vm14  ;;  %2072 = vmatpush.msrb.mxu2 %v7695_v59  ;;  %v7718_v12 = vld [vmem:[#allocation6 + $0x128] sm:$0xff]  ;;  %v7720_v15 = vld [vmem:[#allocation6 + $0x130] sm:$0xff] }
 0x626   :  { %v1708_v37 = vsub.f32 1.0, %v1707_v47  ;;  %v1704_v40 = vsel %vm1701_vm10, %v1703_v13, %v1699_v16  ;;  %2033 = vmatpush.msrb.mxu3 %v7703_v63  ;;  %2054 = vmatpush.msrb.mxu0 %v7718_v12  ;;  %v7724_v47 = vld [vmem:[#allocation6 + $0x138] sm:$0xff]  ;;  %v7732_v16 = vld [vmem:[#allocation6 + $0x110] sm:$0xff] }
 0x627   :  { %v1679_v17 = vmul.f32 %v6166_v7, %v1678_v26  ;;  %v1725_v5 = vmul.f32 %v1723_v21, %v1704_v40  ;;  %2073 = vmatpush.msrb.mxu2 %v7707_v2  ;;  %2094 = vmatpush.msra.mxu1 %v7724_v47  ;;  %v7728_v26 = vld [vmem:[#allocation6 + $0x100] sm:$0xff]  ;;  %v7736_v13 = vld [vmem:[#allocation6 + $0x118] sm:$0xff] }
 0x628   :  { %v1709_v62 = vmul.f32 %v6168_v11, %v1708_v37  ;;  %2055 = vmatpush.msrb.mxu0 %v7730_v14  ;;  %v7738_v37 = vld [vmem:[#allocation6 + $0xe0] sm:$0xff]  ;;  %v7746_v21 = vld [vmem:[#allocation6 + $0xf8] sm:$0xff] }
 0x629   :  { %v1680_v0 = vadd.f32 %v6166_v7, %v1679_v17  ;;  %2074 = vmatpush.msrb.mxu2 %v7720_v15  ;;  %2095 = vmatpush.msra.mxu1 %v7736_v13 }
 0x62a   :  { %v1710_v35 = vadd.f32 %v6168_v11, %v1709_v62  ;;  %v7755_v62 = vld [vmem:[#allocation6 + $0xd0] sm:$0xff] }
 0x62b   :  { %v1684_v18 = vsel %vm1683_vm12, %v6166_v7, %v1680_v0  ;;  %v7740_v0 = vld [vmem:[#allocation6 + $0xe8] sm:$0xff]  ;;  %2075 = vmatpush.msrb.mxu2 %v7732_v16  ;;  %2096 = vmatpush.msra.mxu1 %v7746_v21 }
 0x62c   :  { %v1689_v45 = vsel %vm1686_vm13, %v1688_v44, %v1684_v18  ;;  %v1714_v58 = vsel %vm1713_vm0, %v6168_v11, %v1710_v35  ;;  %v7716_v11 = vld [vmem:[#allocation6 + $0x120] sm:$0xff]  ;;  %v7744_v44 = vld [vmem:[#allocation6 + $0xf0] sm:$0xff]  ;;  %2056 = vmatpush.msrb.mxu0 %v7740_v0 }
 0x62d   :  { %v1726_v19 = vmul.f32 %v6170_v25, %v1689_v45  ;;  %v1719_v36 = vsel %vm1716_vm1, %v1718_v51, %v1714_v58  ;;  %2034 = vmatpush.msrb.mxu3 %v7716_v11  ;;  %v7748_v18 = vld [vmem:[#allocation6 + $0xc0] sm:$0xff]  ;;  %v7753_v45 = vld [vmem:[#allocation6 + $0xc8] sm:$0xff]  ;;  %2076 = vmatpush.msrb.mxu2 %v7744_v44  ;;  %v7768_v58 = vld [vmem:[#allocation6 + $0xb0] sm:$0xff] }
 0x62e   :  { %v7762_v35 = vld [vmem:[#allocation6 + $0xa0] sm:$0xff]  ;;  %2057 = vmatpush.msrb.mxu0 %v7753_v45  ;;  %v7770_v51 = vld [vmem:[#allocation6 + $0xb8] sm:$0xff] }
 0x62f   :  { %v7640_v33 = vadd.f32 %v1726_v19, %v1725_v5  ;;  %2035 = vmatpush.msrb.mxu3 %v7728_v26  ;;  %v7757_v5 = vld [vmem:[#allocation6 + $0xd8] sm:$0xff]  ;;  %2077 = vmatpush.msrb.mxu2 %v7755_v62 }
 0x630   :  { %2097 = vmatpush.msra.mxu1 %v7757_v5  ;;  %2058 = vmatpush.msrb.mxu0 %v7764_v6 }
 0x631   :  { %6171 = vtanh.f32 %v7640_v33  ;;  %2036 = vmatpush.msrb.mxu3 %v7738_v37  ;;  %2078 = vmatpush.msrb.mxu2 %v7768_v58 }
 0x632   :  { %2098 = vmatpush.msra.mxu1 %v7770_v51 }
 0x633   :  { %2037 = vmatpush.msrb.mxu3 %v7748_v18 }
 0x635   :  { %2038 = vmatpush.msrb.mxu3 %v7762_v35 }
 0x637   :  { %v6172_v34 = vpop.eup %6171 }
 0x638   :  { %v1729_v52 = vmul.f32 %v6172_v34, %v1719_v36  ;;  %v7774_v36 = vld [vmem:[#allocation6 + $0x80] sm:$0xff] }
 0x639   :  { %2039 = vmatpush.msrb.mxu3 %v7774_v36 }
 0x63a   :  { %1730 = vst [vmem:[#allocation2] sm:$0x10] %v1729_v52  ;;  %v1796_v4 = vrot.slane %v1729_v52, 4  ;;  %v7776_v52 = vld [vmem:[#allocation6 + $0x88] sm:$0xff] }
 0x63b   :  { %2059 = vmatpush.msrb.mxu0 %v7776_v52 }
 0x63c   :  { %1814 = vmatmul.f32.vlgmr.msra.gmra.mxu3 %v1796_v4  ;;  %1834 = vmatmul.f32.vlgmr.msra.gmra.mxu0 %v1796_v4 }
 0x63d   :  { %1854 = vmatmul.f32.vlgmr.msra.gmra.mxu2 %v1796_v4  ;;  %1874 = vmatmul.f32.vlgmr.msrb.gmra.mxu1 %v1796_v4 }
 0x6b9   :  { %v1835_v55 = vpop.f32.mrf.mxu0 }
 0x6ba   :  { %v1883_v60 = vrot.slane %v1835_v55, 3  ;;  %v7780_v55 = vld [vmem:[#allocation6 + $0x90] sm:$0xff] }
 0x6bb   :  { %10345 = vst [vmem:[#allocation23_spill] sm:$0xff] %v7780_v55  ;;  %2079 = vmatpush.msrb.mxu2 %v7780_v55 }
 0x6bc   :  { %v1891_v7 = vadd.f32 %v1883_v60, %v10341_v27  ;;  %v7782_v60 = vld [vmem:[#allocation6 + $0x98] sm:$0xff] }
 0x6bd   :  { %10346 = vst [vmem:[#allocation24_spill] sm:$0xff] %v7782_v60  ;;  %2099 = vmatpush.msra.mxu1 %v7782_v60  ;;  %v7821_v27 = vld [vmem:[#allocation6 + $0x38] sm:$0xff]  ;;  %v1875_v60 = vpop.f32.mrf.mxu1 }
 0x6be   :  { %v6024_v32 = vmul.f32 -1.442695, %v1891_v7  ;;  %10355 = vst [vmem:[#allocation33_spill] sm:$0xff] %v7821_v27 }
 0x6bf   :  { %v1815_v54 = vpop.f32.mrf.mxu3 }
 0x6c0   :  { %6173 = vpow2.f32 %v6024_v32  ;;  %v1882_v17 = vrot.slane %v1815_v54, 3  ;;  %v1855_v10 = vpop.f32.mrf.mxu2  ;;  %v7788_v32 = vld [vmem:[#allocation6 + $0x60] sm:$0xff]  ;;  %v7790_v54 = vld [vmem:[#allocation6 + $0x68] sm:$0xff] }
 0x6c1   :  { %v1884_v40 = vrot.slane %v1855_v10, 3  ;;  %10347 = vst [vmem:[#allocation25_spill] sm:$0xff] %v7788_v32  ;;  %v7796_v10 = vld [vmem:[#allocation6 + $0x78] sm:$0xff]  ;;  %2040 = vmatpush.msrb.mxu3 %v7788_v32  ;;  %2060 = vmatpush.msrb.mxu0 %v7790_v54 }
 0x6c2   :  { %v1890_v25 = vadd.f32 %v1882_v17, %v10342_v41  ;;  %10348 = vst [vmem:[#allocation26_spill] sm:$0xff] %v7790_v54  ;;  %v7794_v17 = vld [vmem:[#allocation6 + $0x70] sm:$0xff]  ;;  %2100 = vmatpush.msra.mxu1 %v7796_v10 }
 0x6c3   :  { %v1892_v19 = vadd.f32 %v1884_v40, %v10343_v43  ;;  %10349 = vst [vmem:[#allocation27_spill] sm:$0xff] %v7794_v17  ;;  %v7801_v40 = vld [vmem:[#allocation6 + $0x40] sm:$0xff]  ;;  %2080 = vmatpush.msrb.mxu2 %v7794_v17  ;;  %v7819_v41 = vld [vmem:[#allocation6 + $0x30] sm:$0xff]  ;;  %v7829_v17 = vld [vmem:[#allocation6 + $0x8] sm:$0xff] }
 0x6c4   :  { %v6023_v3 = vmul.f32 -1.442695, %v1890_v25  ;;  %10350 = vst [vmem:[#allocation28_spill] sm:$0xff] %v7796_v10  ;;  %v7803_v25 = vld [vmem:[#allocation6 + $0x48] sm:$0xff]  ;;  %2041 = vmatpush.msrb.mxu3 %v7801_v40  ;;  %v7827_v10 = vld [vmem:[#allocation6] sm:$0xff] }
 0x6c5   :  { %v6025_v34 = vmul.f32 -1.442695, %v1892_v19  ;;  %10351 = vst [vmem:[#allocation29_spill] sm:$0xff] %v7801_v40  ;;  %v7807_v19 = vld [vmem:[#allocation6 + $0x50] sm:$0xff]  ;;  %2061 = vmatpush.msrb.mxu0 %v7803_v25  ;;  %v7837_v40 = vld [vmem:[#allocation6 + $0x18] sm:$0xff] }
 0x6c6   :  { %v6174_v4 = vpop.eup %6173  ;;  %6175 = vpow2.f32 %v6023_v3  ;;  %10352 = vst [vmem:[#allocation30_spill] sm:$0xff] %v7803_v25  ;;  %v7809_v3 = vld [vmem:[#allocation6 + $0x58] sm:$0xff]  ;;  %2081 = vmatpush.msrb.mxu2 %v7807_v19  ;;  %v7835_v25 = vld [vmem:[#allocation6 + $0x10] sm:$0xff] }
 0x6c7   :  { %v7784_v7 = vadd.f32 1.0, %v6174_v4  ;;  %6177 = vpow2.f32 %v6025_v34  ;;  %10353 = vst [vmem:[#allocation31_spill] sm:$0xff] %v7809_v3  ;;  %v7813_v34 = vld [vmem:[#allocation6 + $0x20] sm:$0xff]  ;;  %v7815_v4 = vld [vmem:[#allocation6 + $0x28] sm:$0xff]  ;;  %2101 = vmatpush.msra.mxu1 %v7809_v3 }
 0x6c8   :  { %10354 = vst [vmem:[#allocation32_spill] sm:$0xff] %v7815_v4  ;;  %2042 = vmatpush.msrb.mxu3 %v7813_v34  ;;  %2062 = vmatpush.msrb.mxu0 %v7815_v4 }
 0x6c9   :  { %6179 = vrcp.f32 %v7784_v7  ;;  %10356 = vst [vmem:[#allocation34_spill] sm:$0xff] %v7829_v17  ;;  %2082 = vmatpush.msrb.mxu2 %v7819_v41  ;;  %2102 = vmatpush.msra.mxu1 %v7821_v27  ;;  %vm1926_vm3 = vweird.f32 %v7784_v7 }
 0x6ca   :  { %2043 = vmatpush.msrb.mxu3 %v7827_v10  ;;  %2063 = vmatpush.msrb.mxu0 %v7829_v17 }
 0x6cb   :  { %2083 = vmatpush.msrb.mxu2 %v7835_v25  ;;  %2103 = vmatpush.msra.mxu1 %v7837_v40 }
 0x6cc   :  { %v6176_v43 = vpop.eup %6175  ;;  %2258 = vmatpush.msra.mxu3 %v7643_v20  ;;  %2278 = vmatpush.msra.mxu0 %v7645_v30 }
 0x6cd   :  { %v6178_v54 = vpop.eup %6177  ;;  %v7823_v32 = vadd.f32 1.0, %v6176_v43  ;;  %2298 = vmatpush.msra.mxu2 %v7647_v22  ;;  %2318 = vmatpush.msrb.mxu1 %v7651_v23  ;;  %v1932_v22 = vand.u32 2147483648, %v7784_v7 }
 0x6ce   :  { %v7831_v55 = vadd.f32 1.0, %v6178_v54  ;;  %v1885_v54 = vrot.slane %v1875_v60, 3  ;;  %2259 = vmatpush.msra.mxu3 %v7655_v28  ;;  %2279 = vmatpush.msra.mxu0 %v7657_v29 }
 0x6cf   :  { %v6180_v43 = vpop.eup %6179  ;;  %6181 = vrcp.f32 %v7823_v32  ;;  %2299 = vmatpush.msra.mxu2 %v7659_v31  ;;  %2319 = vmatpush.msrb.mxu1 %v7663_v38  ;;  %v1917_v31 = vand.u32 2147483648, %v7823_v32  ;;  %vm1911_vm7 = vweird.f32 %v7823_v32 }
 0x6d0   :  { %v1922_v3 = vmul.f32 %v6180_v43, %v7784_v7  ;;  %6183 = vrcp.f32 %v7831_v55  ;;  %v1893_v60 = vadd.f32 %v1885_v54, %v10344_v9  ;;  %vm1927_vm2 = vweird.f32 %v6180_v43  ;;  %2260 = vmatpush.msra.mxu3 %v7667_v39  ;;  %2280 = vmatpush.msra.mxu0 %v7669_v24 }
 0x6d1   :  { %2300 = vmatpush.msra.mxu2 %v7671_v42  ;;  %2320 = vmatpush.msrb.mxu1 %v7675_v46  ;;  %vm7871_vm4 = vmor %vm1926_vm3, %vm1927_vm2  ;;  %v1915_v24 = vand.u32 2147483647, %v7823_v32  ;;  %v1933_v42 = vor.u32 1.1754944e-38, %v1932_v22  ;;  %vm1941_vm11 = vweird.f32 %v7831_v55 }
 0x6d2   :  { %v1923_v4 = vsub.f32 1.0, %v1922_v3  ;;  %2261 = vmatpush.msra.mxu3 %v7679_v48  ;;  %2281 = vmatpush.msra.mxu0 %v7681_v49  ;;  %6185 = vtanh.f32 %v1893_v60 }
 0x6d3   :  { %2301 = vmatpush.msra.mxu2 %v7683_v50  ;;  %2321 = vmatpush.msrb.mxu1 %v7687_v53  ;;  %v1918_v50 = vor.u32 1.1754944e-38, %v1917_v31  ;;  %v1953_v53 = vrot.slane %v7640_v33, 7  ;;  %vm1916_vm9 = vcmp.eq.f32.partialorder %v1915_v24, 8.507059e+37 }
 0x6d4   :  { %v1924_v27 = vmul.f32 %v6180_v43, %v1923_v4  ;;  %2262 = vmatpush.msra.mxu3 %v7691_v56  ;;  %2282 = vmatpush.msra.mxu0 %v7693_v57 }
 0x6d5   :  { %v6182_v17 = vpop.eup %6181  ;;  %2302 = vmatpush.msra.mxu2 %v7695_v59  ;;  %2322 = vmatpush.msrb.mxu1 %v7699_v61 }
 0x6d6   :  { %v7857_v3 = vpop.eup %6183  ;;  %v1925_v20 = vadd.f32 %v6180_v43, %v1924_v27  ;;  %v1907_v30 = vmul.f32 %v6182_v17, %v7823_v32  ;;  %v1930_v27 = vand.u32 2147483647, %v7784_v7  ;;  %vm1912_vm5 = vweird.f32 %v6182_v17  ;;  %2263 = vmatpush.msra.mxu3 %v7703_v63  ;;  %2283 = vmatpush.msra.mxu0 %v7705_v1 }
 0x6d7   :  { %v1937_v23 = vmul.f32 %v7857_v3, %v7831_v55  ;;  %vm1913_vm8 = vmor %vm1911_vm7, %vm1912_vm5  ;;  %2303 = vmatpush.msra.mxu2 %v7707_v2  ;;  %2323 = vmatpush.msrb.mxu1 %v7712_v8  ;;  %vm1942_vm10 = vweird.f32 %v7857_v3  ;;  %v1947_v8 = vand.u32 2147483648, %v7831_v55 }
 0x6d8   :  { %v1908_v28 = vsub.f32 1.0, %v1907_v30  ;;  %v1929_v38 = vsel %vm7871_vm4, %v6180_v43, %v1925_v20  ;;  %vm1931_vm6 = vcmp.eq.f32.partialorder %v1930_v27, 8.507059e+37  ;;  %2264 = vmatpush.msra.mxu3 %v7716_v11  ;;  %2284 = vmatpush.msra.mxu0 %v7718_v12  ;;  %v6186_v57 = vpop.eup %6185  ;;  %v1945_v11 = vand.u32 2147483647, %v7831_v55  ;;  %vm1943_vm12 = vmor %vm1941_vm11, %vm1942_vm10  ;;  %v10373_v43 = vld [vmem:[#allocation14_spill] sm:$0xff] }
 0x6d9   :  { %v1938_v46 = vsub.f32 1.0, %v1937_v23  ;;  %v1934_v49 = vsel %vm1931_vm6, %v1933_v42, %v1929_v38  ;;  %2304 = vmatpush.msra.mxu2 %v7720_v15  ;;  %2324 = vmatpush.msrb.mxu1 %v7724_v47  ;;  %v1948_v15 = vor.u32 1.1754944e-38, %v1947_v8  ;;  %v10359_v47 = vld [vmem:[#allocation23_spill] sm:$0xff] }
 0x6da   :  { %v1909_v39 = vmul.f32 %v6182_v17, %v1908_v28  ;;  %v1955_v63 = vmul.f32 %v1953_v53, %v1934_v49  ;;  %2265 = vmatpush.msra.mxu3 %v7728_v26  ;;  %2285 = vmatpush.msra.mxu0 %v7730_v14  ;;  %vm1946_vm13 = vcmp.eq.f32.partialorder %v1945_v11, 8.507059e+37  ;;  %v10360_v26 = vld [vmem:[#allocation24_spill] sm:$0xff] }
 0x6db   :  { %v1939_v61 = vmul.f32 %v7857_v3, %v1938_v46  ;;  %2305 = vmatpush.msra.mxu2 %v7732_v16  ;;  %2325 = vmatpush.msrb.mxu1 %v7736_v13  ;;  %v10361_v13 = vld [vmem:[#allocation25_spill] sm:$0xff] }
 0x6dc   :  { %v1910_v48 = vadd.f32 %v6182_v17, %v1909_v39  ;;  %2266 = vmatpush.msra.mxu3 %v7738_v37  ;;  %2286 = vmatpush.msra.mxu0 %v7740_v0  ;;  %v10362_v37 = vld [vmem:[#allocation26_spill] sm:$0xff] }
 0x6dd   :  { %v1940_v2 = vadd.f32 %v7857_v3, %v1939_v61  ;;  %2306 = vmatpush.msra.mxu2 %v7744_v44  ;;  %2326 = vmatpush.msrb.mxu1 %v7746_v21  ;;  %v10363_v44 = vld [vmem:[#allocation27_spill] sm:$0xff]  ;;  %v10364_v21 = vld [vmem:[#allocation28_spill] sm:$0xff] }
 0x6de   :  { %v1914_v56 = vsel %vm1913_vm8, %v6182_v17, %v1910_v48  ;;  %2267 = vmatpush.msra.mxu3 %v7748_v18  ;;  %2287 = vmatpush.msra.mxu0 %v7753_v45  ;;  %v10365_v18 = vld [vmem:[#allocation29_spill] sm:$0xff]  ;;  %v10366_v45 = vld [vmem:[#allocation30_spill] sm:$0xff] }
 0x6df   :  { %v1919_v59 = vsel %vm1916_vm9, %v1918_v50, %v1914_v56  ;;  %2307 = vmatpush.msra.mxu2 %v7755_v62  ;;  %2327 = vmatpush.msrb.mxu1 %v7757_v5  ;;  %v1944_v12 = vsel %vm1943_vm12, %v7857_v3, %v1940_v2  ;;  %v10367_v5 = vld [vmem:[#allocation31_spill] sm:$0xff] }
 0x6e0   :  { %v1956_v1 = vmul.f32 %v6186_v57, %v1919_v59  ;;  %2268 = vmatpush.msra.mxu3 %v7762_v35  ;;  %2288 = vmatpush.msra.mxu0 %v7764_v6  ;;  %v1949_v16 = vsel %vm1946_vm13, %v1948_v15, %v1944_v12  ;;  %v10368_v35 = vld [vmem:[#allocation32_spill] sm:$0xff]  ;;  %v10369_v6 = vld [vmem:[#allocation33_spill] sm:$0xff] }
 0x6e1   :  { %2308 = vmatpush.msra.mxu2 %v7768_v58  ;;  %2328 = vmatpush.msrb.mxu1 %v7770_v51  ;;  %v10370_v58 = vld [vmem:[#allocation34_spill] sm:$0xff] }
 0x6e2   :  { %v7900_v33 = vadd.f32 %v1956_v1, %v1955_v63  ;;  %2269 = vmatpush.msra.mxu3 %v7774_v36  ;;  %2289 = vmatpush.msra.mxu0 %v7776_v52  ;;  %v10371_v52 = vld [vmem:[#allocation12_spill] sm:$0xff] }
 0x6e3   :  { %2309 = vmatpush.msra.mxu2 %v10359_v47  ;;  %2329 = vmatpush.msrb.mxu1 %v10360_v26 }
 0x6e4   :  { %6187 = vtanh.f32 %v7900_v33  ;;  %2270 = vmatpush.msra.mxu3 %v10361_v13  ;;  %2290 = vmatpush.msra.mxu0 %v10362_v37  ;;  %v2183_v15 = vrot.slane %v7900_v33, 7 }
 0x6e5   :  { %2310 = vmatpush.msra.mxu2 %v10363_v44  ;;  %2330 = vmatpush.msrb.mxu1 %v10364_v21 }
 0x6e6   :  { %2271 = vmatpush.msra.mxu3 %v10365_v18  ;;  %2291 = vmatpush.msra.mxu0 %v10366_v45 }
 0x6e7   :  { %2311 = vmatpush.msra.mxu2 %v7807_v19  ;;  %2331 = vmatpush.msrb.mxu1 %v10367_v5 }
 0x6e8   :  { %2272 = vmatpush.msra.mxu3 %v7813_v34  ;;  %2292 = vmatpush.msra.mxu0 %v10368_v35  ;;  %v10372_v34 = vld [vmem:[#allocation13_spill] sm:$0xff] }
 0x6e9   :  { %2312 = vmatpush.msra.mxu2 %v7819_v41  ;;  %2332 = vmatpush.msrb.mxu1 %v10369_v6 }
 0x6ea   :  { %v6188_v14 = vpop.eup %6187  ;;  %2273 = vmatpush.msra.mxu3 %v7827_v10  ;;  %2293 = vmatpush.msra.mxu0 %v10370_v58  ;;  %v2483_v58 = vld [vmem:[#allocation3 + $0x3e0] sm:$0xff] }
 0x6eb   :  { %v1959_v0 = vmul.f32 %v6188_v14, %v1949_v16  ;;  %2313 = vmatpush.msra.mxu2 %v7835_v25  ;;  %2333 = vmatpush.msrb.mxu1 %v7837_v40 }
 0x6ed   :  { %1960 = vst [vmem:[#allocation2] sm:$0x20] %v1959_v0  ;;  %v2026_v62 = vrot.slane %v1959_v0, 5 }
 0x6ef   :  { %2044 = vmatmul.f32.vlgmr.msrb.gmra.mxu3 %v2026_v62  ;;  %2064 = vmatmul.f32.vlgmr.msrb.gmra.mxu0 %v2026_v62 }
 0x6f0   :  { %2084 = vmatmul.f32.vlgmr.msrb.gmra.mxu2 %v2026_v62  ;;  %2104 = vmatmul.f32.vlgmr.msra.gmra.mxu1 %v2026_v62 }
 0x6f1   :  { %2498 = vmatpush.msrb.mxu3 %v2483_v58  ;;  %v2427_v58 = vld [vmem:[#allocation3 + $0x220] sm:$0xff] }
 0x76c   :  { %v2065_v51 = vpop.f32.mrf.mxu0 }
 0x76d   :  { %v2113_v36 = vrot.slane %v2065_v51, 2  ;;  %v2105_v22 = vpop.f32.mrf.mxu1  ;;  %v2484_v51 = vld [vmem:[#allocation3 + $0x3e8] sm:$0xff] }
 0x76e   :  { %v2115_v29 = vrot.slane %v2105_v22, 2  ;;  %2518 = vmatpush.msrb.mxu0 %v2484_v51  ;;  %v2469_v22 = vld [vmem:[#allocation3 + $0x370] sm:$0xff]  ;;  %v2428_v51 = vld [vmem:[#allocation3 + $0x228] sm:$0xff] }
 0x76f   :  { %v2121_v55 = vadd.f32 %v2113_v36, %v10371_v52  ;;  %v2485_v36 = vld [vmem:[#allocation3 + $0x3f0] sm:$0xff] }
 0x770   :  { %v2123_v24 = vadd.f32 %v2115_v29, %v10344_v9  ;;  %2538 = vmatpush.msrb.mxu2 %v2485_v36  ;;  %v2465_v29 = vld [vmem:[#allocation3 + $0x350] sm:$0xff] }
 0x771   :  { %v6027_v7 = vmul.f32 -1.442695, %v2121_v55  ;;  %v2486_v55 = vld [vmem:[#allocation3 + $0x3f8] sm:$0xff]  ;;  %v2429_v36 = vld [vmem:[#allocation3 + $0x230] sm:$0xff] }
 0x772   :  { %v2045_v32 = vpop.f32.mrf.mxu3  ;;  %2558 = vmatpush.msra.mxu1 %v2486_v55  ;;  %v2430_v55 = vld [vmem:[#allocation3 + $0x238] sm:$0xff] }
 0x773   :  { %6189 = vpow2.f32 %v6027_v7  ;;  %v2112_v17 = vrot.slane %v2045_v32, 2  ;;  %v2085_v19 = vpop.f32.mrf.mxu2  ;;  %v2479_v7 = vld [vmem:[#allocation3 + $0x3c0] sm:$0xff]  ;;  %v2480_v32 = vld [vmem:[#allocation3 + $0x3c8] sm:$0xff] }
 0x774   :  { %v2114_v41 = vrot.slane %v2085_v19, 2  ;;  %2499 = vmatpush.msrb.mxu3 %v2479_v7  ;;  %2519 = vmatpush.msrb.mxu0 %v2480_v32  ;;  %v2482_v19 = vld [vmem:[#allocation3 + $0x3d8] sm:$0xff]  ;;  %v2423_v32 = vld [vmem:[#allocation3 + $0x200] sm:$0xff] }
 0x775   :  { %v2120_v4 = vadd.f32 %v2112_v17, %v10372_v34  ;;  %v2481_v17 = vld [vmem:[#allocation3 + $0x3d0] sm:$0xff]  ;;  %2559 = vmatpush.msra.mxu1 %v2482_v19 }
 0x776   :  { %v2122_v10 = vadd.f32 %v2114_v41, %v10373_v43  ;;  %2539 = vmatpush.msrb.mxu2 %v2481_v17  ;;  %v2475_v41 = vld [vmem:[#allocation3 + $0x3a0] sm:$0xff]  ;;  %v2424_v17 = vld [vmem:[#allocation3 + $0x208] sm:$0xff]  ;;  %v2425_v19 = vld [vmem:[#allocation3 + $0x210] sm:$0xff] }
 0x777   :  { %v6026_v54 = vmul.f32 -1.442695, %v2120_v4  ;;  %v2476_v4 = vld [vmem:[#allocation3 + $0x3a8] sm:$0xff]  ;;  %2500 = vmatpush.msrb.mxu3 %v2475_v41 }
 0x778   :  { %v6028_v60 = vmul.f32 -1.442695, %v2122_v10  ;;  %v2477_v10 = vld [vmem:[#allocation3 + $0x3b0] sm:$0xff]  ;;  %2520 = vmatpush.msrb.mxu0 %v2476_v4  ;;  %v2426_v4 = vld [vmem:[#allocation3 + $0x218] sm:$0xff] }
 0x779   :  { %v6190_v3 = vpop.eup %6189  ;;  %6191 = vpow2.f32 %v6026_v54  ;;  %v2478_v54 = vld [vmem:[#allocation3 + $0x3b8] sm:$0xff]  ;;  %2540 = vmatpush.msrb.mxu2 %v2477_v10  ;;  %v7950_v10 = vld [vmem:[#allocation6 + $0x3e0] sm:$0xff] }
 0x77a   :  { %v2134_v25 = vadd.f32 1.0, %v6190_v3  ;;  %6193 = vpow2.f32 %v6028_v60  ;;  %2560 = vmatpush.msra.mxu1 %v2478_v54  ;;  %v2471_v60 = vld [vmem:[#allocation3 + $0x380] sm:$0xff]  ;;  %v2472_v3 = vld [vmem:[#allocation3 + $0x388] sm:$0xff] }
 0x77b   :  { %2501 = vmatpush.msrb.mxu3 %v2471_v60  ;;  %2521 = vmatpush.msrb.mxu0 %v2472_v3  ;;  %v7954_v3 = vld [vmem:[#allocation6 + $0x3f0] sm:$0xff] }
 0x77c   :  { %6195 = vrcp.f32 %v2134_v25  ;;  %v2162_v49 = vand.u32 2147483648, %v2134_v25  ;;  %vm2156_vm15 = vweird.f32 %v2134_v25  ;;  %v2160_v53 = vand.u32 2147483647, %v2134_v25 }
 0x77e   :  { %v2163_v1 = vor.u32 1.1754944e-38, %v2162_v49  ;;  %vm2161_vm2 = vcmp.eq.f32.partialorder %v2160_v53, 8.507059e+37  ;;  %v2457_v49 = vld [vmem:[#allocation3 + $0x310] sm:$0xff]  ;;  %v2451_v53 = vld [vmem:[#allocation3 + $0x2e0] sm:$0xff] }
 0x77f   :  { %v6192_v40 = vpop.eup %6191 }
 0x780   :  { %v6194_v20 = vpop.eup %6193  ;;  %v2133_v30 = vadd.f32 1.0, %v6192_v40  ;;  %v2474_v40 = vld [vmem:[#allocation3 + $0x398] sm:$0xff] }
 0x781   :  { %v2135_v23 = vadd.f32 1.0, %v6194_v20  ;;  %2561 = vmatpush.msra.mxu1 %v2474_v40  ;;  %v2467_v20 = vld [vmem:[#allocation3 + $0x360] sm:$0xff] }
 0x782   :  { %v6196_v27 = vpop.eup %6195  ;;  %6197 = vrcp.f32 %v2133_v30  ;;  %v2147_v57 = vand.u32 2147483648, %v2133_v30  ;;  %v2145_v63 = vand.u32 2147483647, %v2133_v30  ;;  %vm2141_vm3 = vweird.f32 %v2133_v30  ;;  %2502 = vmatpush.msrb.mxu3 %v2467_v20  ;;  %v7960_v20 = vld [vmem:[#allocation6 + $0x3c0] sm:$0xff] }
 0x783   :  { %v2152_v28 = vmul.f32 %v6196_v27, %v2134_v25  ;;  %6199 = vrcp.f32 %v2135_v23  ;;  %vm2157_vm14 = vweird.f32 %v6196_v27  ;;  %v2177_v21 = vand.u32 2147483648, %v2135_v23  ;;  %v2473_v25 = vld [vmem:[#allocation3 + $0x390] sm:$0xff] }
 0x784   :  { %vm2158_vm0 = vmor %vm2156_vm15, %vm2157_vm14  ;;  %6201 = vtanh.f32 %v2123_v24  ;;  %v2148_v12 = vor.u32 1.1754944e-38, %v2147_v57  ;;  %vm2146_vm5 = vcmp.eq.f32.partialorder %v2145_v63, 8.507059e+37  ;;  %vm2171_vm7 = vweird.f32 %v2135_v23  ;;  %2541 = vmatpush.msrb.mxu2 %v2473_v25  ;;  %v2461_v24 = vld [vmem:[#allocation3 + $0x330] sm:$0xff]  ;;  %v2448_v63 = vld [vmem:[#allocation3 + $0x2c8] sm:$0xff] }
 0x785   :  { %v2153_v31 = vsub.f32 1.0, %v2152_v28  ;;  %v2175_v18 = vand.u32 2147483647, %v2135_v23  ;;  %v2178_v62 = vor.u32 1.1754944e-38, %v2177_v21  ;;  %v2464_v28 = vld [vmem:[#allocation3 + $0x348] sm:$0xff]  ;;  %v2453_v57 = vld [vmem:[#allocation3 + $0x2f0] sm:$0xff] }
 0x786   :  { %2542 = vmatpush.msrb.mxu2 %v2469_v22  ;;  %v7956_v25 = vld [vmem:[#allocation6 + $0x3f8] sm:$0xff]  ;;  %v7964_v22 = vld [vmem:[#allocation6 + $0x3d0] sm:$0xff] }
 0x787   :  { %v2154_v38 = vmul.f32 %v6196_v27, %v2153_v31  ;;  %vm2176_vm9 = vcmp.eq.f32.partialorder %v2175_v18, 8.507059e+37  ;;  %v2466_v31 = vld [vmem:[#allocation3 + $0x358] sm:$0xff] }
 0x788   :  { %v6198_v39 = vpop.eup %6197  ;;  %2543 = vmatpush.msrb.mxu2 %v2465_v29  ;;  %v2438_v18 = vld [vmem:[#allocation3 + $0x278] sm:$0xff]  ;;  %v7974_v29 = vld [vmem:[#allocation6 + $0x3a0] sm:$0xff] }
 0x789   :  { %v6200_v42 = vpop.eup %6199  ;;  %v2155_v46 = vadd.f32 %v6196_v27, %v2154_v38  ;;  %v2137_v48 = vmul.f32 %v6198_v39, %v2133_v30  ;;  %vm2142_vm1 = vweird.f32 %v6198_v39  ;;  %v2468_v30 = vld [vmem:[#allocation3 + $0x368] sm:$0xff]  ;;  %v2459_v38 = vld [vmem:[#allocation3 + $0x320] sm:$0xff] }
 0x78a   :  { %v2167_v50 = vmul.f32 %v6200_v42, %v2135_v23  ;;  %vm2143_vm4 = vmor %vm2141_vm3, %vm2142_vm1  ;;  %v6202_v26 = vpop.eup %6201  ;;  %vm2172_vm6 = vweird.f32 %v6200_v42  ;;  %2522 = vmatpush.msrb.mxu0 %v2468_v30  ;;  %v2470_v23 = vld [vmem:[#allocation3 + $0x378] sm:$0xff]  ;;  %2544 = vmatpush.msrb.mxu2 %v2461_v24  ;;  %v7962_v30 = vld [vmem:[#allocation6 + $0x3c8] sm:$0xff] }
 0x78b   :  { %v2138_v56 = vsub.f32 1.0, %v2137_v48  ;;  %v2159_v59 = vsel %vm2158_vm0, %v6196_v27, %v2155_v46  ;;  %vm2173_vm8 = vmor %vm2171_vm7, %vm2172_vm6  ;;  %2562 = vmatpush.msra.mxu1 %v2470_v23  ;;  %v2463_v27 = vld [vmem:[#allocation3 + $0x340] sm:$0xff]  ;;  %v2456_v48 = vld [vmem:[#allocation3 + $0x308] sm:$0xff] }
 0x78c   :  { %v2168_v2 = vsub.f32 1.0, %v2167_v50  ;;  %v2164_v11 = vsel %vm2161_vm2, %v2163_v1, %v2159_v59  ;;  %2503 = vmatpush.msrb.mxu3 %v2463_v27  ;;  %2523 = vmatpush.msrb.mxu0 %v2464_v28  ;;  %v2455_v46 = vld [vmem:[#allocation3 + $0x300] sm:$0xff]  ;;  %v2458_v50 = vld [vmem:[#allocation3 + $0x318] sm:$0xff]  ;;  %v2449_v1 = vld [vmem:[#allocation3 + $0x2d0] sm:$0xff] }
 0x78d   :  { %v2139_v61 = vmul.f32 %v6198_v39, %v2138_v56  ;;  %v2185_v13 = vmul.f32 %v2183_v15, %v2164_v11  ;;  %2563 = vmatpush.msra.mxu1 %v2466_v31  ;;  %2545 = vmatpush.msrb.mxu2 %v2457_v49  ;;  %v2452_v56 = vld [vmem:[#allocation3 + $0x2e8] sm:$0xff]  ;;  %v2454_v59 = vld [vmem:[#allocation3 + $0x2f8] sm:$0xff] }
 0x78e   :  { %v2169_v16 = vmul.f32 %v6200_v42, %v2168_v2  ;;  %2504 = vmatpush.msrb.mxu3 %v2459_v38  ;;  %v2450_v2 = vld [vmem:[#allocation3 + $0x2d8] sm:$0xff]  ;;  %v2444_v11 = vld [vmem:[#allocation3 + $0x2a8] sm:$0xff]  ;;  %v7978_v38 = vld [vmem:[#allocation6 + $0x3b0] sm:$0xff] }
 0x78f   :  { %v2140_v8 = vadd.f32 %v6198_v39, %v2139_v61  ;;  %2546 = vmatpush.msrb.mxu2 %v2453_v57  ;;  %v2447_v61 = vld [vmem:[#allocation3 + $0x2c0] sm:$0xff]  ;;  %v2446_v15 = vld [vmem:[#allocation3 + $0x2b8] sm:$0xff]  ;;  %v7976_v31 = vld [vmem:[#allocation6 + $0x3a8] sm:$0xff] }
 0x790   :  { %v2170_v44 = vadd.f32 %v6200_v42, %v2169_v16  ;;  %2505 = vmatpush.msrb.mxu3 %v2455_v46  ;;  %v2442_v16 = vld [vmem:[#allocation3 + $0x298] sm:$0xff]  ;;  %v7990_v46 = vld [vmem:[#allocation6 + $0x390] sm:$0xff] }
 0x791   :  { %v2144_v47 = vsel %vm2143_vm4, %v6198_v39, %v2140_v8  ;;  %v2460_v39 = vld [vmem:[#allocation3 + $0x328] sm:$0xff]  ;;  %2547 = vmatpush.msrb.mxu2 %v2449_v1  ;;  %v2443_v8 = vld [vmem:[#allocation3 + $0x2a0] sm:$0xff]  ;;  %v7969_v27 = vld [vmem:[#allocation6 + $0x3d8] sm:$0xff] }
 0x792   :  { %v2149_v14 = vsel %vm2146_vm5, %v2148_v12, %v2144_v47  ;;  %v2174_v45 = vsel %vm2173_vm8, %v6200_v42, %v2170_v44  ;;  %2524 = vmatpush.msrb.mxu0 %v2460_v39  ;;  %v2462_v42 = vld [vmem:[#allocation3 + $0x338] sm:$0xff]  ;;  %2506 = vmatpush.msrb.mxu3 %v2451_v53  ;;  %v2445_v12 = vld [vmem:[#allocation3 + $0x2b0] sm:$0xff]  ;;  %v2439_v47 = vld [vmem:[#allocation3 + $0x280] sm:$0xff] }
 0x793   :  { %v2186_v37 = vmul.f32 %v6202_v26, %v2149_v14  ;;  %v2179_v5 = vsel %vm2176_vm9, %v2178_v62, %v2174_v45  ;;  %2564 = vmatpush.msra.mxu1 %v2462_v42  ;;  %2548 = vmatpush.msrb.mxu2 %v2445_v12  ;;  %v2440_v26 = vld [vmem:[#allocation3 + $0x288] sm:$0xff]  ;;  %v2441_v14 = vld [vmem:[#allocation3 + $0x290] sm:$0xff]  ;;  %v2431_v62 = vld [vmem:[#allocation3 + $0x240] sm:$0xff] }
 0x794   :  { %2525 = vmatpush.msrb.mxu0 %v2456_v48  ;;  %2507 = vmatpush.msrb.mxu3 %v2447_v61  ;;  %v2437_v44 = vld [vmem:[#allocation3 + $0x270] sm:$0xff]  ;;  %v7988_v42 = vld [vmem:[#allocation6 + $0x388] sm:$0xff]  ;;  %v7994_v49 = vld [vmem:[#allocation6 + $0x398] sm:$0xff] }
 0x795   :  { %v7946_v0 = vadd.f32 %v2186_v37, %v2185_v13  ;;  %2565 = vmatpush.msra.mxu1 %v2458_v50  ;;  %2549 = vmatpush.msrb.mxu2 %v2441_v14  ;;  %v2435_v13 = vld [vmem:[#allocation3 + $0x260] sm:$0xff]  ;;  %v2436_v37 = vld [vmem:[#allocation3 + $0x268] sm:$0xff]  ;;  %v8004_v57 = vld [vmem:[#allocation6 + $0x370] sm:$0xff] }
 0x796   :  { %2526 = vmatpush.msrb.mxu0 %v2452_v56  ;;  %2508 = vmatpush.msrb.mxu3 %v2443_v8  ;;  %v8000_v53 = vld [vmem:[#allocation6 + $0x360] sm:$0xff]  ;;  %v8002_v56 = vld [vmem:[#allocation6 + $0x368] sm:$0xff]  ;;  %v8017_v1 = vld [vmem:[#allocation6 + $0x350] sm:$0xff] }
 0x797   :  { %6203 = vtanh.f32 %v7946_v0  ;;  %2566 = vmatpush.msra.mxu1 %v2454_v59  ;;  %2550 = vmatpush.msrb.mxu2 %v2437_v44  ;;  %v8008_v59 = vld [vmem:[#allocation6 + $0x378] sm:$0xff]  ;;  %v8013_v61 = vld [vmem:[#allocation6 + $0x340] sm:$0xff]  ;;  %v8029_v12 = vld [vmem:[#allocation6 + $0x330] sm:$0xff] }
 0x798   :  { %2527 = vmatpush.msrb.mxu0 %v2448_v63  ;;  %2509 = vmatpush.msrb.mxu3 %v2439_v47  ;;  %v8015_v63 = vld [vmem:[#allocation6 + $0x348] sm:$0xff]  ;;  %v8025_v8 = vld [vmem:[#allocation6 + $0x320] sm:$0xff]  ;;  %v8033_v47 = vld [vmem:[#allocation6 + $0x338] sm:$0xff] }
 0x799   :  { %2567 = vmatpush.msra.mxu1 %v2450_v2  ;;  %v8021_v2 = vld [vmem:[#allocation6 + $0x358] sm:$0xff] }
 0x79a   :  { %2528 = vmatpush.msrb.mxu0 %v2444_v11  ;;  %2510 = vmatpush.msrb.mxu3 %v2435_v13  ;;  %v8027_v11 = vld [vmem:[#allocation6 + $0x328] sm:$0xff] }
 0x79b   :  { %2568 = vmatpush.msra.mxu1 %v2446_v15  ;;  %v8041_v13 = vld [vmem:[#allocation6 + $0x308] sm:$0xff] }
 0x79c   :  { %2529 = vmatpush.msrb.mxu0 %v2440_v26  ;;  %2511 = vmatpush.msrb.mxu3 %v2431_v62  ;;  %v8053_v62 = vld [vmem:[#allocation6 + $0x2e8] sm:$0xff] }
 0x79d   :  { %v6204_v33 = vpop.eup %6203  ;;  %2569 = vmatpush.msra.mxu1 %v2442_v16  ;;  %v8039_v16 = vld [vmem:[#allocation6 + $0x300] sm:$0xff] }
 0x79e   :  { %v2189_v35 = vmul.f32 %v6204_v33, %v2179_v5  ;;  %2530 = vmatpush.msrb.mxu0 %v2436_v37  ;;  %v2432_v33 = vld [vmem:[#allocation3 + $0x248] sm:$0xff]  ;;  %v2433_v5 = vld [vmem:[#allocation3 + $0x250] sm:$0xff]  ;;  %2512 = vmatpush.msrb.mxu3 %v2427_v58  ;;  %v8069_v58 = vld [vmem:[#allocation6 + $0x2c0] sm:$0xff] }
 0x79f   :  { %2570 = vmatpush.msra.mxu1 %v2438_v18  ;;  %2551 = vmatpush.msrb.mxu2 %v2433_v5  ;;  %v8043_v37 = vld [vmem:[#allocation6 + $0x310] sm:$0xff]  ;;  %v8049_v18 = vld [vmem:[#allocation6 + $0x318] sm:$0xff] }
 0x7a0   :  { %2190 = vst [vmem:[#allocation2] sm:$0x40] %v2189_v35  ;;  %v2256_v6 = vrot.slane %v2189_v35, 6  ;;  %2531 = vmatpush.msrb.mxu0 %v2432_v33  ;;  %v2434_v35 = vld [vmem:[#allocation3 + $0x258] sm:$0xff]  ;;  %2513 = vmatpush.msrb.mxu3 %v2423_v32  ;;  %v8060_v5 = vld [vmem:[#allocation6 + $0x2f0] sm:$0xff] }
 0x7a1   :  { %2571 = vmatpush.msra.mxu1 %v2434_v35  ;;  %2552 = vmatpush.msrb.mxu2 %v2429_v36  ;;  %v8062_v35 = vld [vmem:[#allocation6 + $0x2f8] sm:$0xff] }
 0x7a2   :  { %2274 = vmatmul.f32.vlgmr.msra.gmra.mxu3 %v2256_v6  ;;  %2294 = vmatmul.f32.vlgmr.msra.gmra.mxu0 %v2256_v6 }
 0x7a3   :  { %2314 = vmatmul.f32.vlgmr.msra.gmra.mxu2 %v2256_v6  ;;  %2334 = vmatmul.f32.vlgmr.msrb.gmra.mxu1 %v2256_v6 }
 0x7a4   :  { %2532 = vmatpush.msrb.mxu0 %v2428_v51  ;;  %2572 = vmatpush.msra.mxu1 %v2430_v55  ;;  %v8071_v51 = vld [vmem:[#allocation6 + $0x2c8] sm:$0xff]  ;;  %v8075_v55 = vld [vmem:[#allocation6 + $0x2d0] sm:$0xff] }
 0x7a5   :  { %2553 = vmatpush.msrb.mxu2 %v2425_v19  ;;  %2643 = vmatpush.msra.mxu3 %v7950_v10  ;;  %10374 = vst [vmem:[#allocation16_spill] sm:$0xff] %v8075_v55  ;;  %v8083_v19 = vld [vmem:[#allocation6 + $0x2a8] sm:$0xff] }
 0x7a6   :  { %2533 = vmatpush.msrb.mxu0 %v2424_v17  ;;  %2573 = vmatpush.msra.mxu1 %v2426_v4  ;;  %v8081_v17 = vld [vmem:[#allocation6 + $0x2a0] sm:$0xff]  ;;  %10377 = vst [vmem:[#allocation19_spill] sm:$0xff] %v8083_v19  ;;  %v8089_v4 = vld [vmem:[#allocation6 + $0x2b8] sm:$0xff] }
 0x7a7   :  { %2683 = vmatpush.msra.mxu2 %v7954_v3  ;;  %2644 = vmatpush.msra.mxu3 %v7960_v20  ;;  %10376 = vst [vmem:[#allocation18_spill] sm:$0xff] %v8081_v17 }
 0x7a8   :  { %2703 = vmatpush.msrb.mxu1 %v7956_v25  ;;  %10379 = vst [vmem:[#allocation21_spill] sm:$0xff] %v8089_v4 }
 0x7a9   :  { %2684 = vmatpush.msra.mxu2 %v7964_v22  ;;  %2645 = vmatpush.msra.mxu3 %v7974_v29 }
 0x7aa   :  { %2704 = vmatpush.msrb.mxu1 %v7969_v27 }
 0x7ab   :  { %2685 = vmatpush.msra.mxu2 %v7978_v38 }
 0x7ad   :  { %2686 = vmatpush.msra.mxu2 %v7990_v46 }
 0x7af   :  { %2687 = vmatpush.msra.mxu2 %v8004_v57 }
 0x7b1   :  { %2688 = vmatpush.msra.mxu2 %v8017_v1 }
 0x7b3   :  { %2689 = vmatpush.msra.mxu2 %v8029_v12 }
 0x7b5   :  { %2690 = vmatpush.msra.mxu2 %v8043_v37 }
 0x7b7   :  { %2691 = vmatpush.msra.mxu2 %v8060_v5 }
 0x7b9   :  { %2692 = vmatpush.msra.mxu2 %v8075_v55 }
 0x81f   :  { %v2295_v21 = vpop.f32.mrf.mxu0 }
 0x820   :  { %v2343_v45 = vrot.slane %v2295_v21, 1  ;;  %v2335_v44 = vpop.f32.mrf.mxu1 }
 0x821   :  { %v2345_v36 = vrot.slane %v2335_v44, 1  ;;  %v8117_v44 = vld [vmem:[#allocation6 + $0x268] sm:$0xff] }
 0x822   :  { %v2351_v6 = vadd.f32 %v2343_v45, %v10371_v52  ;;  %v7952_v52 = vld [vmem:[#allocation6 + $0x3e8] sm:$0xff]  ;;  %v8051_v45 = vld [vmem:[#allocation6 + $0x2e0] sm:$0xff]  ;;  %10385 = vst [vmem:[#allocation26_spill] sm:$0xff] %v8117_v44 }
 0x823   :  { %2663 = vmatpush.msra.mxu0 %v7952_v52 }
 0x824   :  { %v6030_v7 = vmul.f32 -1.442695, %v2351_v6 }
 0x825   :  { %v2275_v41 = vpop.f32.mrf.mxu3  ;;  %2664 = vmatpush.msra.mxu0 %v7962_v30 }
 0x826   :  { %6205 = vpow2.f32 %v6030_v7  ;;  %v2342_v54 = vrot.slane %v2275_v41, 1  ;;  %v2315_v60 = vpop.f32.mrf.mxu2  ;;  %v8077_v7 = vld [vmem:[#allocation6 + $0x2d8] sm:$0xff]  ;;  %v8087_v41 = vld [vmem:[#allocation6 + $0x2b0] sm:$0xff] }
 0x827   :  { %v2344_v40 = vrot.slane %v2315_v60, 1  ;;  %2665 = vmatpush.msra.mxu0 %v7976_v31  ;;  %10375 = vst [vmem:[#allocation17_spill] sm:$0xff] %v8077_v7  ;;  %v8094_v60 = vld [vmem:[#allocation6 + $0x280] sm:$0xff]  ;;  %2693 = vmatpush.msra.mxu2 %v8087_v41 }
 0x828   :  { %v2350_v23 = vadd.f32 %v2342_v54, %v10372_v34  ;;  %v7982_v34 = vld [vmem:[#allocation6 + $0x3b8] sm:$0xff]  ;;  %10378 = vst [vmem:[#allocation20_spill] sm:$0xff] %v8087_v41 }
 0x829   :  { %v2352_v28 = vadd.f32 %v2344_v40, %v10373_v43  ;;  %v7986_v43 = vld [vmem:[#allocation6 + $0x380] sm:$0xff]  ;;  %2705 = vmatpush.msrb.mxu1 %v7982_v34  ;;  %2666 = vmatpush.msra.mxu0 %v7988_v42  ;;  %10380 = vst [vmem:[#allocation22_spill] sm:$0xff] %v8094_v60  ;;  %v8096_v40 = vld [vmem:[#allocation6 + $0x288] sm:$0xff] }
 0x82a   :  { %v6029_v39 = vmul.f32 -1.442695, %v2350_v23  ;;  %2646 = vmatpush.msra.mxu3 %v7986_v43  ;;  %10381 = vst [vmem:[#allocation15_spill] sm:$0xff] %v8096_v40 }
 0x82b   :  { %v6031_v24 = vmul.f32 -1.442695, %v2352_v28  ;;  %2706 = vmatpush.msrb.mxu1 %v7994_v49  ;;  %2667 = vmatpush.msra.mxu0 %v8002_v56  ;;  %v2353_v28 = vadd.f32 %v2345_v36, %v10344_v9  ;;  %v8115_v9 = vld [vmem:[#allocation6 + $0x260] sm:$0xff] }
 0x82c   :  { %v6206_v48 = vpop.eup %6205  ;;  %6207 = vpow2.f32 %v6029_v39  ;;  %2647 = vmatpush.msra.mxu3 %v8000_v53  ;;  %v8103_v39 = vld [vmem:[#allocation6 + $0x290] sm:$0xff]  ;;  %10384 = vst [vmem:[#allocation25_spill] sm:$0xff] %v8115_v9 }
 0x82d   :  { %v7996_v50 = vadd.f32 1.0, %v6206_v48  ;;  %6209 = vpow2.f32 %v6031_v24  ;;  %2707 = vmatpush.msrb.mxu1 %v8008_v59  ;;  %2668 = vmatpush.msra.mxu0 %v8015_v63  ;;  %10382 = vst [vmem:[#allocation23_spill] sm:$0xff] %v8103_v39  ;;  %v8105_v24 = vld [vmem:[#allocation6 + $0x298] sm:$0xff] }
 0x82e   :  { %2648 = vmatpush.msra.mxu3 %v8013_v61  ;;  %10383 = vst [vmem:[#allocation24_spill] sm:$0xff] %v8105_v24  ;;  %2694 = vmatpush.msra.mxu2 %v8103_v39 }
 0x82f   :  { %6211 = vrcp.f32 %v7996_v50  ;;  %2708 = vmatpush.msrb.mxu1 %v8021_v2  ;;  %2669 = vmatpush.msra.mxu0 %v8027_v11  ;;  %vm2386_vm11 = vweird.f32 %v7996_v50 }
 0x830   :  { %2649 = vmatpush.msra.mxu3 %v8025_v8 }
 0x831   :  { %2709 = vmatpush.msrb.mxu1 %v8033_v47  ;;  %2670 = vmatpush.msra.mxu0 %v8041_v13 }
 0x832   :  { %v6208_v15 = vpop.eup %6207  ;;  %2650 = vmatpush.msra.mxu3 %v8039_v16 }
 0x833   :  { %v6210_v26 = vpop.eup %6209  ;;  %v8035_v14 = vadd.f32 1.0, %v6208_v15  ;;  %2710 = vmatpush.msrb.mxu1 %v8049_v18  ;;  %2671 = vmatpush.msra.mxu0 %v8053_v62 }
 0x834   :  { %v8045_v21 = vadd.f32 1.0, %v6210_v26  ;;  %2651 = vmatpush.msra.mxu3 %v8051_v45 }
 0x835   :  { %v8055_v33 = vpop.eup %6211  ;;  %6213 = vrcp.f32 %v8035_v14  ;;  %2711 = vmatpush.msrb.mxu1 %v8062_v35  ;;  %2672 = vmatpush.msra.mxu0 %v8071_v51  ;;  %vm2371_vm15 = vweird.f32 %v8035_v14 }
 0x836   :  { %v2382_v6 = vmul.f32 %v8055_v33, %v7996_v50  ;;  %6215 = vrcp.f32 %v8045_v21  ;;  %2652 = vmatpush.msra.mxu3 %v8069_v58  ;;  %vm2387_vm10 = vweird.f32 %v8055_v33  ;;  %vm2401_vm3 = vweird.f32 %v8045_v21 }
 0x837   :  { %2712 = vmatpush.msrb.mxu1 %v8077_v7  ;;  %2673 = vmatpush.msra.mxu0 %v8083_v19  ;;  %v8132_v19 = vld [vmem:[#allocation6 + $0x240] sm:$0xff]  ;;  %vm8138_vm12 = vmor %vm2386_vm11, %vm2387_vm10  ;;  %6217 = vtanh.f32 %v2353_v28  ;;  %v2375_v28 = vand.u32 2147483647, %v8035_v14 }
 0x838   :  { %v2383_v32 = vsub.f32 1.0, %v2382_v6  ;;  %2653 = vmatpush.msra.mxu3 %v8081_v17  ;;  %v2392_v6 = vand.u32 2147483648, %v7996_v50  ;;  %v8134_v17 = vld [vmem:[#allocation6 + $0x248] sm:$0xff] }
 0x839   :  { %2713 = vmatpush.msrb.mxu1 %v8089_v4  ;;  %2674 = vmatpush.msra.mxu0 %v8096_v40  ;;  %v2390_v4 = vand.u32 2147483647, %v7996_v50  ;;  %10386 = vst [vmem:[#allocation27_spill] sm:$0xff] %v8134_v17  ;;  %v8145_v50 = vld [vmem:[#allocation6 + $0x250] sm:$0xff]  ;;  %vm2376_vm1 = vcmp.eq.f32.partialorder %v2375_v28, 8.507059e+37 }
 0x83a   :  { %v2384_v54 = vmul.f32 %v8055_v33, %v2383_v32  ;;  %2654 = vmatpush.msra.mxu3 %v8094_v60  ;;  %v8124_v32 = vld [vmem:[#allocation6 + $0x270] sm:$0xff]  ;;  %v2377_v60 = vand.u32 2147483648, %v8035_v14  ;;  %v2393_v7 = vor.u32 1.1754944e-38, %v2392_v6  ;;  %v8173_v6 = vld [vmem:[#allocation6 + $0x208] sm:$0xff] }
 0x83b   :  { %v8098_v23 = vpop.eup %6213  ;;  %2714 = vmatpush.msrb.mxu1 %v8105_v24  ;;  %2675 = vmatpush.msra.mxu0 %v8117_v44  ;;  %v8159_v44 = vld [vmem:[#allocation6 + $0x228] sm:$0xff]  ;;  %vm2391_vm14 = vcmp.eq.f32.partialorder %v2390_v4, 8.507059e+37  ;;  %v8179_v4 = vld [vmem:[#allocation6 + $0x210] sm:$0xff] }
 0x83c   :  { %v8107_v48 = vpop.eup %6215  ;;  %v2385_v15 = vadd.f32 %v8055_v33, %v2384_v54  ;;  %v2367_v26 = vmul.f32 %v8098_v23, %v8035_v14  ;;  %v8126_v54 = vld [vmem:[#allocation6 + $0x278] sm:$0xff]  ;;  %2655 = vmatpush.msra.mxu3 %v8115_v9  ;;  %vm2372_vm13 = vweird.f32 %v8098_v23  ;;  %2695 = vmatpush.msra.mxu2 %v8124_v32  ;;  %v8157_v9 = vld [vmem:[#allocation6 + $0x220] sm:$0xff]  ;;  %10391 = vst [vmem:[#allocation30_spill] sm:$0xff] %v8159_v44 }
 0x83d   :  { %v2397_v36 = vmul.f32 %v8107_v48, %v8045_v21  ;;  %2715 = vmatpush.msrb.mxu1 %v8126_v54  ;;  %10390 = vst [vmem:[#allocation29_spill] sm:$0xff] %v8157_v9  ;;  %2676 = vmatpush.msra.mxu0 %v8134_v17  ;;  %vm2373_vm0 = vmor %vm2371_vm15, %vm2372_vm13  ;;  %v2378_v17 = vor.u32 1.1754944e-38, %v2377_v60  ;;  %v8181_v14 = vld [vmem:[#allocation6 + $0x218] sm:$0xff]  ;;  %vm2402_vm2 = vweird.f32 %v8107_v48 }
 0x83e   :  { %v2368_v41 = vsub.f32 1.0, %v2367_v26  ;;  %v8147_v26 = vld [vmem:[#allocation6 + $0x258] sm:$0xff]  ;;  %v2389_v24 = vsel %vm8138_vm12, %v8055_v33, %v2385_v15  ;;  %2656 = vmatpush.msra.mxu3 %v8132_v19  ;;  %v8163_v33 = vld [vmem:[#allocation6 + $0x230] sm:$0xff]  ;;  %2696 = vmatpush.msra.mxu2 %v8145_v50  ;;  %v8171_v15 = vld [vmem:[#allocation6 + $0x200] sm:$0xff] }
 0x83f   :  { %10389 = vst [vmem:[#allocation28_spill] sm:$0xff] %v8147_v26  ;;  %v2398_v55 = vsub.f32 1.0, %v2397_v36  ;;  %2716 = vmatpush.msrb.mxu1 %v8147_v26  ;;  %v2394_v36 = vsel %vm2391_vm14, %v2393_v7, %v2389_v24  ;;  %2677 = vmatpush.msra.mxu0 %v8159_v44  ;;  %v6218_v7 = vpop.eup %6217  ;;  %vm2403_vm4 = vmor %vm2401_vm3, %vm2402_vm2 }
 0x840   :  { %v2369_v39 = vmul.f32 %v8098_v23, %v2368_v41  ;;  %v8165_v41 = vld [vmem:[#allocation6 + $0x238] sm:$0xff]  ;;  %2657 = vmatpush.msra.mxu3 %v8157_v9  ;;  %2697 = vmatpush.msra.mxu2 %v8163_v33 }
 0x841   :  { %2717 = vmatpush.msrb.mxu1 %v8165_v41  ;;  %v2399_v60 = vmul.f32 %v8107_v48, %v2398_v55  ;;  %2678 = vmatpush.msra.mxu0 %v8173_v6  ;;  %v2405_v55 = vand.u32 2147483647, %v8045_v21 }
 0x842   :  { %v2370_v40 = vadd.f32 %v8098_v23, %v2369_v39  ;;  %v2413_v39 = vrot.slane %v7946_v0, 7  ;;  %2658 = vmatpush.msra.mxu3 %v8171_v15  ;;  %2698 = vmatpush.msra.mxu2 %v8179_v4 }
 0x843   :  { %2718 = vmatpush.msrb.mxu1 %v8181_v14  ;;  %vm2406_vm5 = vcmp.eq.f32.partialorder %v2405_v55, 8.507059e+37  ;;  %v10401_v55 = vld [vmem:[#allocation23_spill] sm:$0xff] }
 0x844   :  { %v2374_v26 = vsel %vm2373_vm0, %v8098_v23, %v2370_v40  ;;  %v2415_v44 = vmul.f32 %v2413_v39, %v2394_v36  ;;  %v2400_v23 = vadd.f32 %v8107_v48, %v2399_v60  ;;  %v10397_v60 = vld [vmem:[#allocation20_spill] sm:$0xff] }
 0x845   :  { %v2379_v24 = vsel %vm2376_vm1, %v2378_v17, %v2374_v26  ;;  %v2407_v17 = vand.u32 2147483648, %v8045_v21  ;;  %v10392_v21 = vmov 0.0  }
 0x846   :  { %v2416_v9 = vmul.f32 %v6218_v7, %v2379_v24  ;;  %v2404_v26 = vsel %vm2403_vm4, %v8107_v48, %v2400_v23  ;;  %v10393_v48 = vld [vmem:[#allocation16_spill] sm:$0xff]  ;;  %v10395_v7 = vld [vmem:[#allocation18_spill] sm:$0xff]  ;;  %v10396_v24 = vld [vmem:[#allocation19_spill] sm:$0xff] }
 0x847   :  { %v2408_v28 = vor.u32 1.1754944e-38, %v2407_v17  ;;  %v10399_v23 = vld [vmem:[#allocation22_spill] sm:$0xff]  ;;  %v10400_v17 = vld [vmem:[#allocation15_spill] sm:$0xff] }
 0x848   :  { %v2417_v0 = vadd.f32 %v2416_v9, %v2415_v44  ;;  %v10394_v44 = vld [vmem:[#allocation17_spill] sm:$0xff] }
 0x849   :  { %v2409_v36 = vsel %vm2406_vm5, %v2408_v28, %v2404_v26  ;;  %v10402_v26 = vld [vmem:[#allocation24_spill] sm:$0xff]  ;;  %v10403_v28 = vld [vmem:[#allocation25_spill] sm:$0xff] }
 0x84a   :  { %6219 = vtanh.f32 %v2417_v0  ;;  %v10398_v0 = vld [vmem:[#allocation21_spill] sm:$0xff] }
 0x850   :  { %v6220_v40 = vpop.eup %6219 }
 0x851   :  { %v2419_v39 = vmul.f32 %v6220_v40, %v2409_v36  ;;  %v10404_v40 = vld [vmem:[#allocation26_spill] sm:$0xff]  ;;  %v10405_v36 = vld [vmem:[#allocation27_spill] sm:$0xff] }
 0x853   :  { %2420 = vst [vmem:[#allocation2] sm:$0x80] %v2419_v39  ;;  %v10406_v39 = vld [vmem:[#allocation28_spill] sm:$0xff] }
 0x85a   :  { %v2421_v9 = vld [vmem:[#allocation2] sm:$0xff] }
 0x85b   :  { %2514 = vmatmul.f32.vlgmr.msrb.gmra.mxu3 %v2421_v9  ;;  %2534 = vmatmul.f32.vlgmr.msrb.gmra.mxu0 %v2421_v9 }
 0x85c   :  { %2554 = vmatmul.f32.vlgmr.msrb.gmra.mxu2 %v2421_v9  ;;  %2574 = vmatmul.f32.vlgmr.msra.gmra.mxu1 %v2421_v9  ;;  %v10407_v9 = vld [vmem:[#allocation29_spill] sm:$0xff] }
 0x85d   :  { %2855 = vmatpush.msrb.mxu3 %v7950_v10  ;;  %2875 = vmatpush.msrb.mxu0 %v7952_v52 }
 0x85e   :  { %2895 = vmatpush.msrb.mxu2 %v7954_v3  ;;  %2915 = vmatpush.msra.mxu1 %v7956_v25 }
 0x85f   :  { %2856 = vmatpush.msrb.mxu3 %v7960_v20  ;;  %2876 = vmatpush.msrb.mxu0 %v7962_v30 }
 0x860   :  { %2896 = vmatpush.msrb.mxu2 %v7964_v22  ;;  %2916 = vmatpush.msra.mxu1 %v7969_v27 }
 0x861   :  { %2857 = vmatpush.msrb.mxu3 %v7974_v29  ;;  %2877 = vmatpush.msrb.mxu0 %v7976_v31 }
 0x862   :  { %2897 = vmatpush.msrb.mxu2 %v7978_v38  ;;  %2917 = vmatpush.msra.mxu1 %v7982_v34 }
 0x863   :  { %2659 = vmatmul.f32.vlgmr.msra.gmra.mxu3 %v10392_v21  ;;  %2679 = vmatmul.f32.vlgmr.msra.gmra.mxu0 %v10392_v21 }
 0x864   :  { %2699 = vmatmul.f32.vlgmr.msra.gmra.mxu2 %v10392_v21  ;;  %2719 = vmatmul.f32.vlgmr.msrb.gmra.mxu1 %v10392_v21  ;;  %v10408_v21 = vld [vmem:[#allocation30_spill] sm:$0xff] }
 0x865   :  { %2858 = vmatpush.msrb.mxu3 %v7986_v43  ;;  %2878 = vmatpush.msrb.mxu0 %v7988_v42 }
 0x866   :  { %2898 = vmatpush.msrb.mxu2 %v7990_v46  ;;  %2918 = vmatpush.msra.mxu1 %v7994_v49 }
 0x867   :  { %2859 = vmatpush.msrb.mxu3 %v8000_v53  ;;  %2879 = vmatpush.msrb.mxu0 %v8002_v56 }
 0x868   :  { %2899 = vmatpush.msrb.mxu2 %v8004_v57  ;;  %2919 = vmatpush.msra.mxu1 %v8008_v59 }
 0x869   :  { %2860 = vmatpush.msrb.mxu3 %v8013_v61  ;;  %2880 = vmatpush.msrb.mxu0 %v8015_v63 }
 0x86a   :  { %2900 = vmatpush.msrb.mxu2 %v8017_v1  ;;  %2920 = vmatpush.msra.mxu1 %v8021_v2 }
 0x86b   :  { %2861 = vmatpush.msrb.mxu3 %v8025_v8  ;;  %2881 = vmatpush.msrb.mxu0 %v8027_v11 }
 0x86c   :  { %2901 = vmatpush.msrb.mxu2 %v8029_v12  ;;  %2921 = vmatpush.msra.mxu1 %v8033_v47 }
 0x86d   :  { %2862 = vmatpush.msrb.mxu3 %v8039_v16  ;;  %2882 = vmatpush.msrb.mxu0 %v8041_v13 }
 0x86e   :  { %2902 = vmatpush.msrb.mxu2 %v8043_v37  ;;  %2922 = vmatpush.msra.mxu1 %v8049_v18 }
 0x86f   :  { %2863 = vmatpush.msrb.mxu3 %v8051_v45  ;;  %2883 = vmatpush.msrb.mxu0 %v8053_v62 }
 0x870   :  { %2903 = vmatpush.msrb.mxu2 %v8060_v5  ;;  %2923 = vmatpush.msra.mxu1 %v8062_v35 }
 0x871   :  { %2864 = vmatpush.msrb.mxu3 %v8069_v58  ;;  %2884 = vmatpush.msrb.mxu0 %v8071_v51 }
 0x872   :  { %2904 = vmatpush.msrb.mxu2 %v10393_v48  ;;  %2924 = vmatpush.msra.mxu1 %v10394_v44 }
 0x873   :  { %2865 = vmatpush.msrb.mxu3 %v10395_v7  ;;  %2885 = vmatpush.msrb.mxu0 %v10396_v24 }
 0x874   :  { %2905 = vmatpush.msrb.mxu2 %v10397_v60  ;;  %2925 = vmatpush.msra.mxu1 %v10398_v0 }
 0x875   :  { %2866 = vmatpush.msrb.mxu3 %v10399_v23  ;;  %2886 = vmatpush.msrb.mxu0 %v10400_v17 }
 0x876   :  { %2906 = vmatpush.msrb.mxu2 %v10401_v55  ;;  %2926 = vmatpush.msra.mxu1 %v10402_v26 }
 0x877   :  { %2867 = vmatpush.msrb.mxu3 %v10403_v28  ;;  %2887 = vmatpush.msrb.mxu0 %v10404_v40 }
 0x878   :  { %2907 = vmatpush.msrb.mxu2 %v8124_v32  ;;  %2927 = vmatpush.msra.mxu1 %v8126_v54 }
 0x879   :  { %2868 = vmatpush.msrb.mxu3 %v8132_v19  ;;  %2888 = vmatpush.msrb.mxu0 %v10405_v36 }
 0x87a   :  { %2908 = vmatpush.msrb.mxu2 %v8145_v50  ;;  %2928 = vmatpush.msra.mxu1 %v10406_v39 }
 0x87b   :  { %2869 = vmatpush.msrb.mxu3 %v10407_v9  ;;  %2889 = vmatpush.msrb.mxu0 %v10408_v21 }
 0x87c   :  { %2909 = vmatpush.msrb.mxu2 %v8163_v33  ;;  %2929 = vmatpush.msra.mxu1 %v8165_v41 }
 0x87d   :  { %2870 = vmatpush.msrb.mxu3 %v8171_v15  ;;  %2890 = vmatpush.msrb.mxu0 %v8173_v6 }
 0x87e   :  { %2910 = vmatpush.msrb.mxu2 %v8179_v4  ;;  %2930 = vmatpush.msra.mxu1 %v8181_v14 }
 0x87f   :  { %3085 = vmatpush.msra.mxu3 %v7950_v10  ;;  %3105 = vmatpush.msra.mxu0 %v7952_v52  ;;  %v6032_v10 = vld [vmem:[%s10008_s11 + $0x4] sm:$0xf] }
 0x880   :  { %3125 = vmatpush.msra.mxu2 %v7954_v3  ;;  %3145 = vmatpush.msrb.mxu1 %v7956_v25  ;;  %v2491_v3 = vperm.slane %v6032_v10, 1 }
 0x881   :  { %3086 = vmatpush.msra.mxu3 %v7960_v20  ;;  %3106 = vmatpush.msra.mxu0 %v7962_v30 }
 0x882   :  { %3126 = vmatpush.msra.mxu2 %v7964_v22  ;;  %3146 = vmatpush.msrb.mxu1 %v7969_v27  ;;  %v2490_v27 = vperm.slane %v6032_v10, 0 }
 0x883   :  { %3087 = vmatpush.msra.mxu3 %v7974_v29  ;;  %3107 = vmatpush.msra.mxu0 %v7976_v31  ;;  %v2492_v31 = vperm.slane %v6032_v10, 2 }
 0x884   :  { %3127 = vmatpush.msra.mxu2 %v7978_v38  ;;  %3147 = vmatpush.msrb.mxu1 %v7982_v34 }
 0x885   :  { %3088 = vmatpush.msra.mxu3 %v7986_v43  ;;  %3108 = vmatpush.msra.mxu0 %v7988_v42 }
 0x886   :  { %3128 = vmatpush.msra.mxu2 %v7990_v46  ;;  %3148 = vmatpush.msrb.mxu1 %v7994_v49 }
 0x887   :  { %3089 = vmatpush.msra.mxu3 %v8000_v53  ;;  %3109 = vmatpush.msra.mxu0 %v8002_v56 }
 0x888   :  { %3129 = vmatpush.msra.mxu2 %v8004_v57  ;;  %3149 = vmatpush.msrb.mxu1 %v8008_v59 }
 0x889   :  { %3090 = vmatpush.msra.mxu3 %v8013_v61  ;;  %3110 = vmatpush.msra.mxu0 %v8015_v63 }
 0x88a   :  { %3130 = vmatpush.msra.mxu2 %v8017_v1  ;;  %3150 = vmatpush.msrb.mxu1 %v8021_v2 }
 0x88b   :  { %3091 = vmatpush.msra.mxu3 %v8025_v8  ;;  %3111 = vmatpush.msra.mxu0 %v8027_v11 }
 0x88c   :  { %3131 = vmatpush.msra.mxu2 %v8029_v12  ;;  %3151 = vmatpush.msrb.mxu1 %v8033_v47  ;;  %v2493_v47 = vperm.slane %v6032_v10, 3 }
 0x88d   :  { %3092 = vmatpush.msra.mxu3 %v8039_v16  ;;  %3112 = vmatpush.msra.mxu0 %v8041_v13 }
 0x88e   :  { %3132 = vmatpush.msra.mxu2 %v8043_v37  ;;  %3152 = vmatpush.msrb.mxu1 %v8049_v18 }
 0x88f   :  { %3093 = vmatpush.msra.mxu3 %v8051_v45  ;;  %3113 = vmatpush.msra.mxu0 %v8053_v62 }
 0x890   :  { %3133 = vmatpush.msra.mxu2 %v8060_v5  ;;  %3153 = vmatpush.msrb.mxu1 %v8062_v35 }
 0x891   :  { %3094 = vmatpush.msra.mxu3 %v8069_v58  ;;  %3114 = vmatpush.msra.mxu0 %v8071_v51 }
 0x892   :  { %3134 = vmatpush.msra.mxu2 %v10393_v48  ;;  %3154 = vmatpush.msrb.mxu1 %v10394_v44 }
 0x893   :  { %3095 = vmatpush.msra.mxu3 %v10395_v7  ;;  %3115 = vmatpush.msra.mxu0 %v10396_v24 }
 0x894   :  { %3135 = vmatpush.msra.mxu2 %v10397_v60  ;;  %3155 = vmatpush.msrb.mxu1 %v10398_v0 }
 0x895   :  { %3096 = vmatpush.msra.mxu3 %v10399_v23  ;;  %3116 = vmatpush.msra.mxu0 %v10400_v17 }
 0x896   :  { %3136 = vmatpush.msra.mxu2 %v10401_v55  ;;  %3156 = vmatpush.msrb.mxu1 %v10402_v26 }
 0x897   :  { %3097 = vmatpush.msra.mxu3 %v10403_v28  ;;  %3117 = vmatpush.msra.mxu0 %v10404_v40 }
 0x898   :  { %3137 = vmatpush.msra.mxu2 %v8124_v32  ;;  %3157 = vmatpush.msrb.mxu1 %v8126_v54 }
 0x899   :  { %3098 = vmatpush.msra.mxu3 %v8132_v19  ;;  %3118 = vmatpush.msra.mxu0 %v10405_v36 }
 0x89a   :  { %3138 = vmatpush.msra.mxu2 %v8145_v50  ;;  %3158 = vmatpush.msrb.mxu1 %v10406_v39 }
 0x89b   :  { %3099 = vmatpush.msra.mxu3 %v10407_v9  ;;  %3119 = vmatpush.msra.mxu0 %v10408_v21 }
 0x89c   :  { %3139 = vmatpush.msra.mxu2 %v8163_v33  ;;  %3159 = vmatpush.msrb.mxu1 %v8165_v41 }
 0x89d   :  { %3100 = vmatpush.msra.mxu3 %v8171_v15  ;;  %3120 = vmatpush.msra.mxu0 %v8173_v6 }
 0x89e   :  { %3140 = vmatpush.msra.mxu2 %v8179_v4  ;;  %3160 = vmatpush.msrb.mxu1 %v8181_v14 }
 0x8d8   :  { %v2535_v52 = vpop.f32.mrf.mxu0 }
 0x8d9   :  { %v8333_v20 = vadd.f32 %v2535_v52, %v2491_v3  ;;  %v2575_v63 = vpop.f32.mrf.mxu1 }
 0x8da   :  { %v8342_v18 = vadd.f32 %v2575_v63, %v2493_v47 }
 0x8db   :  { %10409 = vst [vmem:[#allocation31_spill] sm:$0xff] %v8333_v20 }
 0x8dc   :  { %10412 = vst [vmem:[#allocation34_spill] sm:$0xff] %v8342_v18 }
 0x8de   :  { %v2515_v25 = vpop.f32.mrf.mxu3 }
 0x8df   :  { %v2555_v30 = vpop.f32.mrf.mxu2  ;;  %v8336_v34 = vadd.f32 %v2515_v25, %v2490_v27 }
 0x8e0   :  { %v2680_v22 = vpop.f32.mrf.mxu0  ;;  %v8338_v43 = vadd.f32 %v2555_v30, %v2492_v31 }
 0x8e1   :  { %v2724_v29 = vadd.f32 %v2680_v22, %v8333_v20  ;;  %10410 = vst [vmem:[#allocation32_spill] sm:$0xff] %v8336_v34  ;;  %v2720_v37 = vpop.f32.mrf.mxu1 }
 0x8e2   :  { %10411 = vst [vmem:[#allocation33_spill] sm:$0xff] %v8338_v43  ;;  %v2726_v5 = vadd.f32 %v2720_v37, %v8342_v18 }
 0x8e3   :  { %v6034_v38 = vmul.f32 -1.442695, %v2724_v29 }
 0x8e5   :  { %6221 = vpow2.f32 %v6034_v38 }
 0x8e6   :  { %v2660_v42 = vpop.f32.mrf.mxu3 }
 0x8e7   :  { %v2723_v46 = vadd.f32 %v2660_v42, %v8336_v34  ;;  %v2700_v49 = vpop.f32.mrf.mxu2 }
 0x8e8   :  { %v2725_v53 = vadd.f32 %v2700_v49, %v8338_v43 }
 0x8e9   :  { %v6033_v56 = vmul.f32 -1.442695, %v2723_v46 }
 0x8ea   :  { %v6035_v57 = vmul.f32 -1.442695, %v2725_v53 }
 0x8eb   :  { %v6222_v59 = vpop.eup %6221  ;;  %6223 = vpow2.f32 %v6033_v56 }
 0x8ec   :  { %v2737_v61 = vadd.f32 1.0, %v6222_v59  ;;  %6225 = vpow2.f32 %v6035_v57 }
 0x8ee   :  { %6227 = vrcp.f32 %v2737_v61  ;;  %v2765_v19 = vand.u32 2147483648, %v2737_v61  ;;  %vm2759_vm7 = vweird.f32 %v2737_v61  ;;  %v2763_v54 = vand.u32 2147483647, %v2737_v61 }
 0x8f0   :  { %v2766_v4 = vor.u32 1.1754944e-38, %v2765_v19  ;;  %vm2764_vm10 = vcmp.eq.f32.partialorder %v2763_v54, 8.507059e+37 }
 0x8f1   :  { %v6224_v1 = vpop.eup %6223 }
 0x8f2   :  { %v6226_v2 = vpop.eup %6225  ;;  %v2736_v8 = vadd.f32 1.0, %v6224_v1 }
 0x8f3   :  { %v2738_v11 = vadd.f32 1.0, %v6226_v2 }
 0x8f4   :  { %v6228_v12 = vpop.eup %6227  ;;  %6229 = vrcp.f32 %v2736_v8  ;;  %v2750_v33 = vand.u32 2147483648, %v2736_v8  ;;  %v2748_v6 = vand.u32 2147483647, %v2736_v8  ;;  %vm2744_vm11 = vweird.f32 %v2736_v8 }
 0x8f5   :  { %v2755_v16 = vmul.f32 %v6228_v12, %v2737_v61  ;;  %6231 = vrcp.f32 %v2738_v11  ;;  %vm2760_vm6 = vweird.f32 %v6228_v12  ;;  %v2780_v28 = vand.u32 2147483648, %v2738_v11 }
 0x8f6   :  { %vm2761_vm8 = vmor %vm2759_vm7, %vm2760_vm6  ;;  %6233 = vtanh.f32 %v2726_v5  ;;  %v2751_v44 = vor.u32 1.1754944e-38, %v2750_v33  ;;  %vm2749_vm13 = vcmp.eq.f32.partialorder %v2748_v6, 8.507059e+37  ;;  %vm2774_vm15 = vweird.f32 %v2738_v11 }
 0x8f7   :  { %v2756_v13 = vsub.f32 1.0, %v2755_v16  ;;  %v2778_v40 = vand.u32 2147483647, %v2738_v11  ;;  %v2781_v39 = vor.u32 1.1754944e-38, %v2780_v28 }
 0x8f9   :  { %v2757_v45 = vmul.f32 %v6228_v12, %v2756_v13  ;;  %vm2779_vm1 = vcmp.eq.f32.partialorder %v2778_v40, 8.507059e+37 }
 0x8fa   :  { %v6230_v62 = vpop.eup %6229 }
 0x8fb   :  { %v6232_v35 = vpop.eup %6231  ;;  %v2758_v58 = vadd.f32 %v6228_v12, %v2757_v45  ;;  %v2740_v51 = vmul.f32 %v6230_v62, %v2736_v8  ;;  %vm2745_vm9 = vweird.f32 %v6230_v62 }
 0x8fc   :  { %v2770_v32 = vmul.f32 %v6232_v35, %v2738_v11  ;;  %vm2746_vm12 = vmor %vm2744_vm11, %vm2745_vm9  ;;  %v6234_v24 = vpop.eup %6233  ;;  %vm2775_vm14 = vweird.f32 %v6232_v35 }
 0x8fd   :  { %v2741_v50 = vsub.f32 1.0, %v2740_v51  ;;  %v2762_v41 = vsel %vm2761_vm8, %v6228_v12, %v2758_v58  ;;  %vm2776_vm0 = vmor %vm2774_vm15, %vm2775_vm14 }
 0x8fe   :  { %v2771_v14 = vsub.f32 1.0, %v2770_v32  ;;  %v2767_v48 = vsel %vm2764_vm10, %v2766_v4, %v2762_v41 }
 0x8ff   :  { %v2742_v15 = vmul.f32 %v6230_v62, %v2741_v50  ;;  %v2785_v23 = vmul.f32 0.0, %v2767_v48 }
 0x900   :  { %v2772_v0 = vmul.f32 %v6232_v35, %v2771_v14 }
 0x901   :  { %v2743_v21 = vadd.f32 %v6230_v62, %v2742_v15 }
 0x902   :  { %v2773_v26 = vadd.f32 %v6232_v35, %v2772_v0 }
 0x903   :  { %v2747_v7 = vsel %vm2746_vm12, %v6230_v62, %v2743_v21 }
 0x904   :  { %v2752_v60 = vsel %vm2749_vm13, %v2751_v44, %v2747_v7  ;;  %v2777_v36 = vsel %vm2776_vm0, %v6232_v35, %v2773_v26 }
 0x905   :  { %v2786_v17 = vmul.f32 %v6234_v24, %v2752_v60  ;;  %v2782_v10 = vsel %vm2779_vm1, %v2781_v39, %v2777_v36 }
 0x907   :  { %v8345_v55 = vadd.f32 %v2786_v17, %v2785_v23 }
 0x909   :  { %6235 = vtanh.f32 %v8345_v55  ;;  %v3010_v48 = vrot.slane %v8345_v55, 7 }
 0x90f   :  { %v6236_v9 = vpop.eup %6235 }
 0x910   :  { %v2789_v52 = vmul.f32 %v6236_v9, %v2782_v10 }
 0x912   :  { %2790 = vst [vmem:[#allocation2] sm:$0x1] %v2789_v52  ;;  %2871 = vmatmul.f32.vlgmr.msrb.gmra.mxu3 %v2789_v52  ;;  %2891 = vmatmul.f32.vlgmr.msrb.gmra.mxu0 %v2789_v52 }
 0x913   :  { %2911 = vmatmul.f32.vlgmr.msrb.gmra.mxu2 %v2789_v52  ;;  %2931 = vmatmul.f32.vlgmr.msra.gmra.mxu1 %v2789_v52  ;;  %v8356_v52 = vld [vmem:[#allocation6 + $0x3e0] sm:$0xff] }
 0x914   :  { %10413 = vst [vmem:[#allocation12_spill] sm:$0xff] %v8356_v52  ;;  %3315 = vmatpush.msrb.mxu3 %v8356_v52 }
 0x98f   :  { %v2892_v3 = vpop.f32.mrf.mxu0 }
 0x990   :  { %v2940_v25 = vrot.slane %v2892_v3, 7  ;;  %v2932_v1 = vpop.f32.mrf.mxu1  ;;  %v8358_v3 = vld [vmem:[#allocation6 + $0x3e8] sm:$0xff] }
 0x991   :  { %v2942_v12 = vrot.slane %v2932_v1, 7  ;;  %3335 = vmatpush.msrb.mxu0 %v8358_v3  ;;  %v8406_v1 = vld [vmem:[#allocation6 + $0x368] sm:$0xff] }
 0x992   :  { %v2948_v30 = vadd.f32 %v2940_v25, %v8333_v20  ;;  %v8360_v25 = vld [vmem:[#allocation6 + $0x3f0] sm:$0xff] }
 0x993   :  { %v2950_v37 = vadd.f32 %v2942_v12, %v8342_v18  ;;  %10414 = vst [vmem:[#allocation13_spill] sm:$0xff] %v8360_v25  ;;  %3355 = vmatpush.msrb.mxu2 %v8360_v25  ;;  %v8416_v12 = vld [vmem:[#allocation6 + $0x340] sm:$0xff] }
 0x994   :  { %v6037_v22 = vmul.f32 -1.442695, %v2948_v30  ;;  %v8364_v30 = vld [vmem:[#allocation6 + $0x3f8] sm:$0xff] }
 0x995   :  { %v2872_v27 = vpop.f32.mrf.mxu3  ;;  %3375 = vmatpush.msra.mxu1 %v8364_v30 }
 0x996   :  { %6237 = vpow2.f32 %v6037_v22  ;;  %v2939_v29 = vrot.slane %v2872_v27, 7  ;;  %v2912_v31 = vpop.f32.mrf.mxu2  ;;  %v8368_v22 = vld [vmem:[#allocation6 + $0x3c0] sm:$0xff]  ;;  %v8370_v27 = vld [vmem:[#allocation6 + $0x3c8] sm:$0xff] }
 0x997   :  { %v2941_v38 = vrot.slane %v2912_v31, 7  ;;  %10415 = vst [vmem:[#allocation14_spill] sm:$0xff] %v8370_v27  ;;  %3316 = vmatpush.msrb.mxu3 %v8368_v22  ;;  %3336 = vmatpush.msrb.mxu0 %v8370_v27  ;;  %v8376_v31 = vld [vmem:[#allocation6 + $0x3d8] sm:$0xff] }
 0x998   :  { %v2947_v42 = vadd.f32 %v2939_v29, %v8336_v34  ;;  %v8372_v29 = vld [vmem:[#allocation6 + $0x3d0] sm:$0xff]  ;;  %3376 = vmatpush.msra.mxu1 %v8376_v31 }
 0x999   :  { %v2949_v46 = vadd.f32 %v2941_v38, %v8338_v43  ;;  %3356 = vmatpush.msrb.mxu2 %v8372_v29  ;;  %v8380_v38 = vld [vmem:[#allocation6 + $0x3a0] sm:$0xff] }
 0x99a   :  { %v6036_v49 = vmul.f32 -1.442695, %v2947_v42  ;;  %v8382_v42 = vld [vmem:[#allocation6 + $0x3a8] sm:$0xff]  ;;  %3317 = vmatpush.msrb.mxu3 %v8380_v38 }
 0x99b   :  { %v6038_v53 = vmul.f32 -1.442695, %v2949_v46  ;;  %10416 = vst [vmem:[#allocation16_spill] sm:$0xff] %v8382_v42  ;;  %v8384_v46 = vld [vmem:[#allocation6 + $0x3b0] sm:$0xff]  ;;  %3337 = vmatpush.msrb.mxu0 %v8382_v42 }
 0x99c   :  { %v6238_v56 = vpop.eup %6237  ;;  %6239 = vpow2.f32 %v6036_v49  ;;  %v8388_v49 = vld [vmem:[#allocation6 + $0x3b8] sm:$0xff]  ;;  %3357 = vmatpush.msrb.mxu2 %v8384_v46 }
 0x99d   :  { %v2961_v57 = vadd.f32 1.0, %v6238_v56  ;;  %6241 = vpow2.f32 %v6038_v53  ;;  %10417 = vst [vmem:[#allocation17_spill] sm:$0xff] %v8388_v49  ;;  %3377 = vmatpush.msra.mxu1 %v8388_v49  ;;  %v8392_v53 = vld [vmem:[#allocation6 + $0x380] sm:$0xff]  ;;  %v8394_v56 = vld [vmem:[#allocation6 + $0x388] sm:$0xff] }
 0x99e   :  { %10418 = vst [vmem:[#allocation18_spill] sm:$0xff] %v8392_v53  ;;  %3318 = vmatpush.msrb.mxu3 %v8392_v53  ;;  %3338 = vmatpush.msrb.mxu0 %v8394_v56 }
 0x99f   :  { %6243 = vrcp.f32 %v2961_v57  ;;  %v2989_v35 = vand.u32 2147483648, %v2961_v57  ;;  %vm2983_vm3 = vweird.f32 %v2961_v57  ;;  %v2987_v51 = vand.u32 2147483647, %v2961_v57  ;;  %10419 = vst [vmem:[#allocation19_spill] sm:$0xff] %v8394_v56 }
 0x9a0   :  { %3339 = vmatpush.msrb.mxu0 %v8406_v1 }
 0x9a1   :  { %v2990_v41 = vor.u32 1.1754944e-38, %v2989_v35  ;;  %vm2988_vm6 = vcmp.eq.f32.partialorder %v2987_v51, 8.507059e+37 }
 0x9a2   :  { %v6240_v59 = vpop.eup %6239 }
 0x9a3   :  { %v6242_v61 = vpop.eup %6241  ;;  %v2960_v63 = vadd.f32 1.0, %v6240_v59  ;;  %v8400_v59 = vld [vmem:[#allocation6 + $0x398] sm:$0xff] }
 0x9a4   :  { %v2962_v2 = vadd.f32 1.0, %v6242_v61  ;;  %3378 = vmatpush.msra.mxu1 %v8400_v59 }
 0x9a5   :  { %v6244_v8 = vpop.eup %6243  ;;  %6245 = vrcp.f32 %v2960_v63  ;;  %v2974_v32 = vand.u32 2147483648, %v2960_v63  ;;  %v2972_v33 = vand.u32 2147483647, %v2960_v63  ;;  %vm2968_vm7 = vweird.f32 %v2960_v63 }
 0x9a6   :  { %v2979_v11 = vmul.f32 %v6244_v8, %v2961_v57  ;;  %6247 = vrcp.f32 %v2962_v2  ;;  %vm2984_vm2 = vweird.f32 %v6244_v8  ;;  %v3004_v26 = vand.u32 2147483648, %v2962_v2  ;;  %v8396_v57 = vld [vmem:[#allocation6 + $0x390] sm:$0xff] }
 0x9a7   :  { %vm2985_vm4 = vmor %vm2983_vm3, %vm2984_vm2  ;;  %6249 = vtanh.f32 %v2950_v37  ;;  %v2975_v14 = vor.u32 1.1754944e-38, %v2974_v32  ;;  %vm2973_vm9 = vcmp.eq.f32.partialorder %v2972_v33, 8.507059e+37  ;;  %vm2998_vm11 = vweird.f32 %v2962_v2  ;;  %3358 = vmatpush.msrb.mxu2 %v8396_v57  ;;  %v8425_v37 = vld [vmem:[#allocation6 + $0x358] sm:$0xff]  ;;  %v8443_v32 = vld [vmem:[#allocation6 + $0x308] sm:$0xff] }
 0x9a8   :  { %v2980_v47 = vsub.f32 1.0, %v2979_v11  ;;  %v3002_v28 = vand.u32 2147483647, %v2962_v2  ;;  %v3005_v36 = vor.u32 1.1754944e-38, %v3004_v26  ;;  %v8412_v11 = vld [vmem:[#allocation6 + $0x378] sm:$0xff]  ;;  %v8477_v26 = vld [vmem:[#allocation6 + $0x2a8] sm:$0xff] }
 0x9a9   :  { %3379 = vmatpush.msra.mxu1 %v8412_v11 }
 0x9aa   :  { %v2981_v16 = vmul.f32 %v6244_v8, %v2980_v47  ;;  %vm3003_vm13 = vcmp.eq.f32.partialorder %v3002_v28, 8.507059e+37  ;;  %v8418_v47 = vld [vmem:[#allocation6 + $0x348] sm:$0xff] }
 0x9ab   :  { %v6246_v13 = vpop.eup %6245  ;;  %3340 = vmatpush.msrb.mxu0 %v8418_v47  ;;  %3380 = vmatpush.msra.mxu1 %v8425_v37 }
 0x9ac   :  { %v6248_v45 = vpop.eup %6247  ;;  %v2982_v62 = vadd.f32 %v6244_v8, %v2981_v16  ;;  %v2964_v5 = vmul.f32 %v6246_v13, %v2960_v63  ;;  %vm2969_vm5 = vweird.f32 %v6246_v13  ;;  %v8404_v63 = vld [vmem:[#allocation6 + $0x360] sm:$0xff]  ;;  %v8420_v16 = vld [vmem:[#allocation6 + $0x350] sm:$0xff] }
 0x9ad   :  { %v2994_v58 = vmul.f32 %v6248_v45, %v2962_v2  ;;  %vm2970_vm8 = vmor %vm2968_vm7, %vm2969_vm5  ;;  %v6250_v44 = vpop.eup %6249  ;;  %vm2999_vm10 = vweird.f32 %v6248_v45  ;;  %v8408_v2 = vld [vmem:[#allocation6 + $0x370] sm:$0xff]  ;;  %3319 = vmatpush.msrb.mxu3 %v8404_v63 }
 0x9ae   :  { %v2965_v19 = vsub.f32 1.0, %v2964_v5  ;;  %v2986_v54 = vsel %vm2985_vm4, %v6244_v8, %v2982_v62  ;;  %vm3000_vm12 = vmor %vm2998_vm11, %vm2999_vm10  ;;  %3359 = vmatpush.msrb.mxu2 %v8408_v2  ;;  %v8431_v62 = vld [vmem:[#allocation6 + $0x328] sm:$0xff]  ;;  %v8433_v5 = vld [vmem:[#allocation6 + $0x330] sm:$0xff] }
 0x9af   :  { %v2995_v15 = vsub.f32 1.0, %v2994_v58  ;;  %v2991_v4 = vsel %vm2988_vm6, %v2990_v41, %v2986_v54  ;;  %3320 = vmatpush.msrb.mxu3 %v8416_v12  ;;  %3341 = vmatpush.msrb.mxu0 %v8431_v62  ;;  %v8437_v58 = vld [vmem:[#allocation6 + $0x338] sm:$0xff]  ;;  %v8445_v54 = vld [vmem:[#allocation6 + $0x310] sm:$0xff] }
 0x9b0   :  { %v2966_v50 = vmul.f32 %v6246_v13, %v2965_v19  ;;  %v3012_v60 = vmul.f32 %v3010_v48, %v2991_v4  ;;  %3360 = vmatpush.msrb.mxu2 %v8420_v16  ;;  %3381 = vmatpush.msra.mxu1 %v8437_v58  ;;  %v8441_v19 = vld [vmem:[#allocation6 + $0x300] sm:$0xff]  ;;  %v8449_v41 = vld [vmem:[#allocation6 + $0x318] sm:$0xff] }
 0x9b1   :  { %v2996_v24 = vmul.f32 %v6248_v45, %v2995_v15  ;;  %3342 = vmatpush.msrb.mxu0 %v8443_v32  ;;  %v8451_v15 = vld [vmem:[#allocation6 + $0x2e0] sm:$0xff] }
 0x9b2   :  { %v2967_v6 = vadd.f32 %v6246_v13, %v2966_v50  ;;  %3361 = vmatpush.msrb.mxu2 %v8433_v5  ;;  %3382 = vmatpush.msra.mxu1 %v8449_v41  ;;  %v8461_v48 = vld [vmem:[#allocation6 + $0x2c0] sm:$0xff] }
 0x9b3   :  { %v2997_v17 = vadd.f32 %v6248_v45, %v2996_v24  ;;  %v8468_v24 = vld [vmem:[#allocation6 + $0x2d0] sm:$0xff] }
 0x9b4   :  { %v2971_v21 = vsel %vm2970_vm8, %v6246_v13, %v2967_v6  ;;  %v8453_v6 = vld [vmem:[#allocation6 + $0x2e8] sm:$0xff]  ;;  %3362 = vmatpush.msrb.mxu2 %v8445_v54 }
 0x9b5   :  { %v2976_v7 = vsel %vm2973_vm9, %v2975_v14, %v2971_v21  ;;  %v3001_v40 = vsel %vm3000_vm12, %v6248_v45, %v2997_v17  ;;  %v8429_v45 = vld [vmem:[#allocation6 + $0x320] sm:$0xff]  ;;  %v8457_v14 = vld [vmem:[#allocation6 + $0x2f0] sm:$0xff]  ;;  %v8459_v21 = vld [vmem:[#allocation6 + $0x2f8] sm:$0xff]  ;;  %3343 = vmatpush.msrb.mxu0 %v8453_v6 }
 0x9b6   :  { %v3013_v0 = vmul.f32 %v6250_v44, %v2976_v7  ;;  %v3006_v55 = vsel %vm3003_vm13, %v3005_v36, %v3001_v40  ;;  %3321 = vmatpush.msrb.mxu3 %v8429_v45  ;;  %v8466_v7 = vld [vmem:[#allocation6 + $0x2c8] sm:$0xff]  ;;  %3363 = vmatpush.msrb.mxu2 %v8457_v14  ;;  %v8475_v17 = vld [vmem:[#allocation6 + $0x2a0] sm:$0xff]  ;;  %v8481_v40 = vld [vmem:[#allocation6 + $0x2b0] sm:$0xff] }
 0x9b7   :  { %3383 = vmatpush.msra.mxu1 %v8459_v21  ;;  %3344 = vmatpush.msrb.mxu0 %v8466_v7  ;;  %v8483_v36 = vld [vmem:[#allocation6 + $0x2b8] sm:$0xff] }
 0x9b8   :  { %v8353_v23 = vadd.f32 %v3013_v0, %v3012_v60  ;;  %3322 = vmatpush.msrb.mxu3 %v8441_v19  ;;  %v8470_v60 = vld [vmem:[#allocation6 + $0x2d8] sm:$0xff]  ;;  %3364 = vmatpush.msrb.mxu2 %v8468_v24 }
 0x9b9   :  { %3384 = vmatpush.msra.mxu1 %v8470_v60  ;;  %3345 = vmatpush.msrb.mxu0 %v8477_v26 }
 0x9ba   :  { %6251 = vtanh.f32 %v8353_v23  ;;  %3323 = vmatpush.msrb.mxu3 %v8451_v15  ;;  %3365 = vmatpush.msrb.mxu2 %v8481_v40 }
 0x9bb   :  { %3385 = vmatpush.msra.mxu1 %v8483_v36 }
 0x9bc   :  { %3324 = vmatpush.msrb.mxu3 %v8461_v48 }
 0x9be   :  { %3325 = vmatpush.msrb.mxu3 %v8475_v17 }
 0x9c0   :  { %v6252_v39 = vpop.eup %6251 }
 0x9c1   :  { %v3016_v9 = vmul.f32 %v6252_v39, %v3006_v55  ;;  %v8487_v55 = vld [vmem:[#allocation6 + $0x280] sm:$0xff] }
 0x9c2   :  { %3326 = vmatpush.msrb.mxu3 %v8487_v55 }
 0x9c3   :  { %3017 = vst [vmem:[#allocation2] sm:$0x2] %v3016_v9  ;;  %v3083_v10 = vrot.slane %v3016_v9, 1  ;;  %v8489_v9 = vld [vmem:[#allocation6 + $0x288] sm:$0xff] }
 0x9c4   :  { %3346 = vmatpush.msrb.mxu0 %v8489_v9 }
 0x9c5   :  { %3101 = vmatmul.f32.vlgmr.msra.gmra.mxu3 %v3083_v10  ;;  %3121 = vmatmul.f32.vlgmr.msra.gmra.mxu0 %v3083_v10 }
 0x9c6   :  { %3141 = vmatmul.f32.vlgmr.msra.gmra.mxu2 %v3083_v10  ;;  %3161 = vmatmul.f32.vlgmr.msrb.gmra.mxu1 %v3083_v10 }
 0xa42   :  { %v3122_v61 = vpop.f32.mrf.mxu0 }
 0xa43   :  { %v3170_v8 = vrot.slane %v3122_v61, 6  ;;  %v8493_v61 = vld [vmem:[#allocation6 + $0x290] sm:$0xff] }
 0xa44   :  { %10420 = vst [vmem:[#allocation20_spill] sm:$0xff] %v8493_v61  ;;  %3366 = vmatpush.msrb.mxu2 %v8493_v61 }
 0xa45   :  { %v3178_v13 = vadd.f32 %v3170_v8, %v8333_v20  ;;  %v8495_v8 = vld [vmem:[#allocation6 + $0x298] sm:$0xff] }
 0xa46   :  { %10421 = vst [vmem:[#allocation21_spill] sm:$0xff] %v8495_v8  ;;  %3386 = vmatpush.msra.mxu1 %v8495_v8  ;;  %v8534_v20 = vld [vmem:[#allocation6 + $0x238] sm:$0xff]  ;;  %v3162_v8 = vpop.f32.mrf.mxu1 }
 0xa47   :  { %v6040_v35 = vmul.f32 -1.442695, %v3178_v13  ;;  %10430 = vst [vmem:[#allocation29_spill] sm:$0xff] %v8534_v20 }
 0xa48   :  { %v3102_v51 = vpop.f32.mrf.mxu3 }
 0xa49   :  { %6253 = vpow2.f32 %v6040_v35  ;;  %v3169_v50 = vrot.slane %v3102_v51, 6  ;;  %v3142_v33 = vpop.f32.mrf.mxu2  ;;  %v8501_v35 = vld [vmem:[#allocation6 + $0x260] sm:$0xff]  ;;  %v8503_v51 = vld [vmem:[#allocation6 + $0x268] sm:$0xff] }
 0xa4a   :  { %v3171_v4 = vrot.slane %v3142_v33, 6  ;;  %10422 = vst [vmem:[#allocation22_spill] sm:$0xff] %v8501_v35  ;;  %v8509_v33 = vld [vmem:[#allocation6 + $0x278] sm:$0xff]  ;;  %3327 = vmatpush.msrb.mxu3 %v8501_v35  ;;  %3347 = vmatpush.msrb.mxu0 %v8503_v51 }
 0xa4b   :  { %v3177_v44 = vadd.f32 %v3169_v50, %v8336_v34  ;;  %10423 = vst [vmem:[#allocation15_spill] sm:$0xff] %v8503_v51  ;;  %v8507_v50 = vld [vmem:[#allocation6 + $0x270] sm:$0xff]  ;;  %3387 = vmatpush.msra.mxu1 %v8509_v33 }
 0xa4c   :  { %v3179_v0 = vadd.f32 %v3171_v4, %v8338_v43  ;;  %10424 = vst [vmem:[#allocation23_spill] sm:$0xff] %v8507_v50  ;;  %v8514_v4 = vld [vmem:[#allocation6 + $0x240] sm:$0xff]  ;;  %3367 = vmatpush.msrb.mxu2 %v8507_v50  ;;  %v8532_v34 = vld [vmem:[#allocation6 + $0x230] sm:$0xff]  ;;  %v8542_v50 = vld [vmem:[#allocation6 + $0x208] sm:$0xff] }
 0xa4d   :  { %v6039_v28 = vmul.f32 -1.442695, %v3177_v44  ;;  %10425 = vst [vmem:[#allocation24_spill] sm:$0xff] %v8509_v33  ;;  %v8516_v44 = vld [vmem:[#allocation6 + $0x248] sm:$0xff]  ;;  %3328 = vmatpush.msrb.mxu3 %v8514_v4  ;;  %v8540_v33 = vld [vmem:[#allocation6 + $0x200] sm:$0xff] }
 0xa4e   :  { %v6041_v39 = vmul.f32 -1.442695, %v3179_v0  ;;  %10426 = vst [vmem:[#allocation25_spill] sm:$0xff] %v8514_v4  ;;  %v8520_v0 = vld [vmem:[#allocation6 + $0x250] sm:$0xff]  ;;  %3348 = vmatpush.msrb.mxu0 %v8516_v44  ;;  %v8550_v4 = vld [vmem:[#allocation6 + $0x218] sm:$0xff] }
 0xa4f   :  { %v6254_v10 = vpop.eup %6253  ;;  %6255 = vpow2.f32 %v6039_v28  ;;  %10427 = vst [vmem:[#allocation26_spill] sm:$0xff] %v8516_v44  ;;  %v8522_v28 = vld [vmem:[#allocation6 + $0x258] sm:$0xff]  ;;  %3368 = vmatpush.msrb.mxu2 %v8520_v0  ;;  %v8548_v44 = vld [vmem:[#allocation6 + $0x210] sm:$0xff] }
 0xa50   :  { %v8497_v13 = vadd.f32 1.0, %v6254_v10  ;;  %6257 = vpow2.f32 %v6041_v39  ;;  %10428 = vst [vmem:[#allocation27_spill] sm:$0xff] %v8522_v28  ;;  %v8526_v39 = vld [vmem:[#allocation6 + $0x220] sm:$0xff]  ;;  %v8528_v10 = vld [vmem:[#allocation6 + $0x228] sm:$0xff]  ;;  %3388 = vmatpush.msra.mxu1 %v8522_v28 }
 0xa51   :  { %10429 = vst [vmem:[#allocation28_spill] sm:$0xff] %v8528_v10  ;;  %3329 = vmatpush.msrb.mxu3 %v8526_v39  ;;  %3349 = vmatpush.msrb.mxu0 %v8528_v10 }
 0xa52   :  { %6259 = vrcp.f32 %v8497_v13  ;;  %10431 = vst [vmem:[#allocation30_spill] sm:$0xff] %v8542_v50  ;;  %3369 = vmatpush.msrb.mxu2 %v8532_v34  ;;  %3389 = vmatpush.msra.mxu1 %v8534_v20  ;;  %vm3213_vm15 = vweird.f32 %v8497_v13 }
 0xa53   :  { %3330 = vmatpush.msrb.mxu3 %v8540_v33  ;;  %3350 = vmatpush.msrb.mxu0 %v8542_v50 }
 0xa54   :  { %3370 = vmatpush.msrb.mxu2 %v8548_v44  ;;  %3390 = vmatpush.msra.mxu1 %v8550_v4 }
 0xa55   :  { %v6256_v43 = vpop.eup %6255  ;;  %3545 = vmatpush.msra.mxu3 %v8356_v52  ;;  %3565 = vmatpush.msra.mxu0 %v8358_v3 }
 0xa56   :  { %v6258_v51 = vpop.eup %6257  ;;  %v8536_v35 = vadd.f32 1.0, %v6256_v43  ;;  %3585 = vmatpush.msra.mxu2 %v8360_v25  ;;  %3605 = vmatpush.msrb.mxu1 %v8364_v30 }
 0xa57   :  { %v8544_v61 = vadd.f32 1.0, %v6258_v51  ;;  %v3172_v51 = vrot.slane %v3162_v8, 6  ;;  %3546 = vmatpush.msra.mxu3 %v8368_v22  ;;  %3566 = vmatpush.msra.mxu0 %v8370_v27 }
 0xa58   :  { %v6260_v43 = vpop.eup %6259  ;;  %6261 = vrcp.f32 %v8536_v35  ;;  %3586 = vmatpush.msra.mxu2 %v8372_v29  ;;  %3606 = vmatpush.msrb.mxu1 %v8376_v31  ;;  %vm3198_vm3 = vweird.f32 %v8536_v35 }
 0xa59   :  { %v3209_v28 = vmul.f32 %v6260_v43, %v8497_v13  ;;  %6263 = vrcp.f32 %v8544_v61  ;;  %v3180_v8 = vadd.f32 %v3172_v51, %v8342_v18  ;;  %vm3214_vm14 = vweird.f32 %v6260_v43  ;;  %3547 = vmatpush.msra.mxu3 %v8380_v38  ;;  %3567 = vmatpush.msra.mxu0 %v8382_v42 }
 0xa5a   :  { %3587 = vmatpush.msra.mxu2 %v8384_v46  ;;  %3607 = vmatpush.msrb.mxu1 %v8388_v49  ;;  %vm8584_vm0 = vmor %vm3213_vm15, %vm3214_vm14  ;;  %v3204_v42 = vand.u32 2147483648, %v8536_v35  ;;  %vm3228_vm7 = vweird.f32 %v8544_v61 }
 0xa5b   :  { %v3210_v10 = vsub.f32 1.0, %v3209_v28  ;;  %3548 = vmatpush.msra.mxu3 %v8392_v53  ;;  %3568 = vmatpush.msra.mxu0 %v8394_v56  ;;  %6265 = vtanh.f32 %v3180_v8 }
 0xa5c   :  { %3588 = vmatpush.msra.mxu2 %v8396_v57  ;;  %3608 = vmatpush.msrb.mxu1 %v8400_v59 }
 0xa5d   :  { %v3211_v20 = vmul.f32 %v6260_v43, %v3210_v10  ;;  %v3219_v10 = vand.u32 2147483648, %v8497_v13  ;;  %3549 = vmatpush.msra.mxu3 %v8404_v63  ;;  %3569 = vmatpush.msra.mxu0 %v8406_v1 }
 0xa5e   :  { %v6262_v50 = vpop.eup %6261  ;;  %3589 = vmatpush.msra.mxu2 %v8408_v2  ;;  %3609 = vmatpush.msrb.mxu1 %v8412_v11 }
 0xa5f   :  { %v8570_v28 = vpop.eup %6263  ;;  %v3212_v52 = vadd.f32 %v6260_v43, %v3211_v20  ;;  %v3194_v25 = vmul.f32 %v6262_v50, %v8536_v35  ;;  %v3217_v20 = vand.u32 2147483647, %v8497_v13  ;;  %vm3199_vm1 = vweird.f32 %v6262_v50  ;;  %3550 = vmatpush.msra.mxu3 %v8416_v12  ;;  %3570 = vmatpush.msra.mxu0 %v8418_v47 }
 0xa60   :  { %v3224_v27 = vmul.f32 %v8570_v28, %v8544_v61  ;;  %v3220_v56 = vor.u32 1.1754944e-38, %v3219_v10  ;;  %vm3200_vm4 = vmor %vm3198_vm3, %vm3199_vm1  ;;  %3590 = vmatpush.msra.mxu2 %v8420_v16  ;;  %3610 = vmatpush.msrb.mxu1 %v8425_v37  ;;  %vm3229_vm6 = vweird.f32 %v8570_v28 }
 0xa61   :  { %v3195_v51 = vsub.f32 1.0, %v3194_v25  ;;  %v3216_v49 = vsel %vm8584_vm0, %v6260_v43, %v3212_v52  ;;  %v3202_v25 = vand.u32 2147483647, %v8536_v35  ;;  %vm3218_vm2 = vcmp.eq.f32.partialorder %v3217_v20, 8.507059e+37  ;;  %3551 = vmatpush.msra.mxu3 %v8429_v45  ;;  %3571 = vmatpush.msra.mxu0 %v8431_v62  ;;  %v6266_v35 = vpop.eup %6265  ;;  %vm3230_vm8 = vmor %vm3228_vm7, %vm3229_vm6 }
 0xa62   :  { %v3225_v53 = vsub.f32 1.0, %v3224_v27  ;;  %v3221_v18 = vsel %vm3218_vm2, %v3220_v56, %v3216_v49  ;;  %v3205_v52 = vor.u32 1.1754944e-38, %v3204_v42  ;;  %v3240_v27 = vrot.slane %v8353_v23, 7  ;;  %3591 = vmatpush.msra.mxu2 %v8433_v5  ;;  %3611 = vmatpush.msrb.mxu1 %v8437_v58 }
 0xa63   :  { %v3196_v13 = vmul.f32 %v6262_v50, %v3195_v51  ;;  %vm3203_vm5 = vcmp.eq.f32.partialorder %v3202_v25, 8.507059e+37  ;;  %3552 = vmatpush.msra.mxu3 %v8441_v19  ;;  %3572 = vmatpush.msra.mxu0 %v8443_v32  ;;  %v3234_v56 = vand.u32 2147483648, %v8544_v61  ;;  %v10435_v25 = vld [vmem:[#allocation21_spill] sm:$0xff] }
 0xa64   :  { %v3226_v20 = vmul.f32 %v8570_v28, %v3225_v53  ;;  %v3242_v42 = vmul.f32 %v3240_v27, %v3221_v18  ;;  %3592 = vmatpush.msra.mxu2 %v8445_v54  ;;  %3612 = vmatpush.msrb.mxu1 %v8449_v41  ;;  %v10437_v27 = vld [vmem:[#allocation15_spill] sm:$0xff] }
 0xa65   :  { %v3197_v8 = vadd.f32 %v6262_v50, %v3196_v13  ;;  %3553 = vmatpush.msra.mxu3 %v8451_v15  ;;  %3573 = vmatpush.msra.mxu0 %v8453_v6  ;;  %v3235_v13 = vor.u32 1.1754944e-38, %v3234_v56  ;;  %v10444_v56 = vld [vmem:[#allocation29_spill] sm:$0xff] }
 0xa66   :  { %v3227_v53 = vadd.f32 %v8570_v28, %v3226_v20  ;;  %3593 = vmatpush.msra.mxu2 %v8457_v14  ;;  %3613 = vmatpush.msrb.mxu1 %v8459_v21  ;;  %v10441_v20 = vld [vmem:[#allocation26_spill] sm:$0xff] }
 0xa67   :  { %v3201_v43 = vsel %vm3200_vm4, %v6262_v50, %v3197_v8  ;;  %3554 = vmatpush.msra.mxu3 %v8461_v48  ;;  %3574 = vmatpush.msra.mxu0 %v8466_v7  ;;  %v3232_v50 = vand.u32 2147483647, %v8544_v61  ;;  %v10434_v61 = vld [vmem:[#allocation20_spill] sm:$0xff] }
 0xa68   :  { %v3206_v10 = vsel %vm3203_vm5, %v3205_v52, %v3201_v43  ;;  %3594 = vmatpush.msra.mxu2 %v8468_v24  ;;  %3614 = vmatpush.msrb.mxu1 %v8470_v60  ;;  %v3231_v51 = vsel %vm3230_vm8, %v8570_v28, %v3227_v53  ;;  %v10436_v52 = vld [vmem:[#allocation22_spill] sm:$0xff]  ;;  %v10438_v43 = vld [vmem:[#allocation23_spill] sm:$0xff]  ;;  %v10443_v53 = vld [vmem:[#allocation28_spill] sm:$0xff] }
 0xa69   :  { %v3243_v49 = vmul.f32 %v6266_v35, %v3206_v10  ;;  %3555 = vmatpush.msra.mxu3 %v8475_v17  ;;  %3575 = vmatpush.msra.mxu0 %v8477_v26  ;;  %vm3233_vm9 = vcmp.eq.f32.partialorder %v3232_v50, 8.507059e+37  ;;  %v10439_v35 = vld [vmem:[#allocation24_spill] sm:$0xff]  ;;  %v10440_v10 = vld [vmem:[#allocation25_spill] sm:$0xff]  ;;  %v10445_v50 = vld [vmem:[#allocation30_spill] sm:$0xff] }
 0xa6a   :  { %3595 = vmatpush.msra.mxu2 %v8481_v40  ;;  %3615 = vmatpush.msrb.mxu1 %v8483_v36  ;;  %v3236_v18 = vsel %vm3233_vm9, %v3235_v13, %v3231_v51  ;;  %v10446_v51 = vld [vmem:[#allocation12_spill] sm:$0xff]  ;;  %v10447_v13 = vld [vmem:[#allocation13_spill] sm:$0xff] }
 0xa6b   :  { %v8613_v23 = vadd.f32 %v3243_v49, %v3242_v42  ;;  %3556 = vmatpush.msra.mxu3 %v8487_v55  ;;  %3576 = vmatpush.msra.mxu0 %v8489_v9  ;;  %v10442_v49 = vld [vmem:[#allocation27_spill] sm:$0xff] }
 0xa6c   :  { %3596 = vmatpush.msra.mxu2 %v10434_v61  ;;  %3616 = vmatpush.msrb.mxu1 %v10435_v25 }
 0xa6d   :  { %6267 = vtanh.f32 %v8613_v23  ;;  %3557 = vmatpush.msra.mxu3 %v10436_v52  ;;  %3577 = vmatpush.msra.mxu0 %v10437_v27 }
 0xa6e   :  { %3597 = vmatpush.msra.mxu2 %v10438_v43  ;;  %3617 = vmatpush.msrb.mxu1 %v10439_v35 }
 0xa6f   :  { %3558 = vmatpush.msra.mxu3 %v10440_v10  ;;  %3578 = vmatpush.msra.mxu0 %v10441_v20 }
 0xa70   :  { %3598 = vmatpush.msra.mxu2 %v8520_v0  ;;  %3618 = vmatpush.msrb.mxu1 %v10442_v49 }
 0xa71   :  { %3559 = vmatpush.msra.mxu3 %v8526_v39  ;;  %3579 = vmatpush.msra.mxu0 %v10443_v53 }
 0xa72   :  { %3599 = vmatpush.msra.mxu2 %v8532_v34  ;;  %3619 = vmatpush.msrb.mxu1 %v10444_v56 }
 0xa73   :  { %v6268_v8 = vpop.eup %6267  ;;  %3560 = vmatpush.msra.mxu3 %v8540_v33  ;;  %3580 = vmatpush.msra.mxu0 %v10445_v50 }
 0xa74   :  { %v3246_v28 = vmul.f32 %v6268_v8, %v3236_v18  ;;  %3600 = vmatpush.msra.mxu2 %v8548_v44  ;;  %3620 = vmatpush.msrb.mxu1 %v8550_v4  ;;  %v10448_v8 = vld [vmem:[#allocation14_spill] sm:$0xff]  ;;  %v10449_v18 = vld [vmem:[#allocation16_spill] sm:$0xff] }
 0xa76   :  { %3247 = vst [vmem:[#allocation2] sm:$0x4] %v3246_v28  ;;  %v3313_v42 = vrot.slane %v3246_v28, 2  ;;  %v10450_v28 = vld [vmem:[#allocation17_spill] sm:$0xff] }
 0xa78   :  { %3331 = vmatmul.f32.vlgmr.msrb.gmra.mxu3 %v3313_v42  ;;  %3351 = vmatmul.f32.vlgmr.msrb.gmra.mxu0 %v3313_v42 }
 0xa79   :  { %3371 = vmatmul.f32.vlgmr.msrb.gmra.mxu2 %v3313_v42  ;;  %3391 = vmatmul.f32.vlgmr.msra.gmra.mxu1 %v3313_v42  ;;  %v10452_v42 = vld [vmem:[#allocation19_spill] sm:$0xff] }
 0xa7a   :  { %3775 = vmatpush.msrb.mxu3 %v10446_v51  ;;  %3795 = vmatpush.msrb.mxu0 %v8358_v3  ;;  %v10451_v3 = vld [vmem:[#allocation18_spill] sm:$0xff] }
 0xa7b   :  { %3815 = vmatpush.msrb.mxu2 %v10447_v13  ;;  %3835 = vmatpush.msra.mxu1 %v8364_v30 }
 0xa7c   :  { %3776 = vmatpush.msrb.mxu3 %v8368_v22  ;;  %3796 = vmatpush.msrb.mxu0 %v10448_v8 }
 0xa7d   :  { %3816 = vmatpush.msrb.mxu2 %v8372_v29  ;;  %3836 = vmatpush.msra.mxu1 %v8376_v31  ;;  %v10453_v29 = vld [vmem:[#allocation31_spill] sm:$0xff] }
 0xa7e   :  { %3777 = vmatpush.msrb.mxu3 %v8380_v38  ;;  %3797 = vmatpush.msrb.mxu0 %v10449_v18 }
 0xa7f   :  { %3817 = vmatpush.msrb.mxu2 %v8384_v46  ;;  %3837 = vmatpush.msra.mxu1 %v10450_v28 }
 0xa80   :  { %3778 = vmatpush.msrb.mxu3 %v10451_v3  ;;  %3798 = vmatpush.msrb.mxu0 %v10452_v42 }
 0xa81   :  { %3818 = vmatpush.msrb.mxu2 %v8396_v57  ;;  %3838 = vmatpush.msra.mxu1 %v8400_v59 }
 0xa82   :  { %3779 = vmatpush.msrb.mxu3 %v8404_v63  ;;  %3799 = vmatpush.msrb.mxu0 %v8406_v1  ;;  %v10454_v63 = vld [vmem:[#allocation32_spill] sm:$0xff] }
 0xa83   :  { %3819 = vmatpush.msrb.mxu2 %v8408_v2  ;;  %3839 = vmatpush.msra.mxu1 %v8412_v11  ;;  %v10455_v2 = vld [vmem:[#allocation33_spill] sm:$0xff] }
 0xa84   :  { %3780 = vmatpush.msrb.mxu3 %v8416_v12  ;;  %3800 = vmatpush.msrb.mxu0 %v8418_v47 }
 0xa85   :  { %3820 = vmatpush.msrb.mxu2 %v8420_v16  ;;  %3840 = vmatpush.msra.mxu1 %v8425_v37 }
 0xa86   :  { %3781 = vmatpush.msrb.mxu3 %v8429_v45  ;;  %3801 = vmatpush.msrb.mxu0 %v8431_v62 }
 0xa87   :  { %3821 = vmatpush.msrb.mxu2 %v8433_v5  ;;  %3841 = vmatpush.msra.mxu1 %v8437_v58 }
 0xa88   :  { %3782 = vmatpush.msrb.mxu3 %v8441_v19  ;;  %3802 = vmatpush.msrb.mxu0 %v8443_v32 }
 0xa89   :  { %3822 = vmatpush.msrb.mxu2 %v8445_v54  ;;  %3842 = vmatpush.msra.mxu1 %v8449_v41 }
 0xa8a   :  { %3783 = vmatpush.msrb.mxu3 %v8451_v15  ;;  %3803 = vmatpush.msrb.mxu0 %v8453_v6 }
 0xa8b   :  { %3823 = vmatpush.msrb.mxu2 %v8457_v14  ;;  %3843 = vmatpush.msra.mxu1 %v8459_v21  ;;  %v10456_v21 = vld [vmem:[#allocation34_spill] sm:$0xff] }
 0xa8c   :  { %3784 = vmatpush.msrb.mxu3 %v8461_v48  ;;  %3804 = vmatpush.msrb.mxu0 %v8466_v7 }
 0xa8d   :  { %3824 = vmatpush.msrb.mxu2 %v8468_v24  ;;  %3844 = vmatpush.msra.mxu1 %v8470_v60 }
 0xa8e   :  { %3785 = vmatpush.msrb.mxu3 %v8475_v17  ;;  %3805 = vmatpush.msrb.mxu0 %v8477_v26 }
 0xa8f   :  { %3825 = vmatpush.msrb.mxu2 %v8481_v40  ;;  %3845 = vmatpush.msra.mxu1 %v8483_v36 }
 0xa90   :  { %3786 = vmatpush.msrb.mxu3 %v8487_v55  ;;  %3806 = vmatpush.msrb.mxu0 %v8489_v9 }
 0xa91   :  { %3826 = vmatpush.msrb.mxu2 %v10434_v61  ;;  %3846 = vmatpush.msra.mxu1 %v10435_v25 }
 0xa92   :  { %3787 = vmatpush.msrb.mxu3 %v10436_v52  ;;  %3807 = vmatpush.msrb.mxu0 %v10437_v27  ;;  %v3470_v52 = vrot.slane %v8613_v23, 7 }
 0xa93   :  { %3827 = vmatpush.msrb.mxu2 %v10438_v43  ;;  %3847 = vmatpush.msra.mxu1 %v10439_v35 }
 0xa94   :  { %3788 = vmatpush.msrb.mxu3 %v10440_v10  ;;  %3808 = vmatpush.msrb.mxu0 %v10441_v20 }
 0xa95   :  { %3828 = vmatpush.msrb.mxu2 %v8520_v0  ;;  %3848 = vmatpush.msra.mxu1 %v10442_v49 }
 0xa96   :  { %3789 = vmatpush.msrb.mxu3 %v8526_v39  ;;  %3809 = vmatpush.msrb.mxu0 %v10443_v53 }
 0xa97   :  { %3829 = vmatpush.msrb.mxu2 %v8532_v34  ;;  %3849 = vmatpush.msra.mxu1 %v10444_v56 }
 0xa98   :  { %3790 = vmatpush.msrb.mxu3 %v8540_v33  ;;  %3810 = vmatpush.msrb.mxu0 %v10445_v50 }
 0xa99   :  { %3830 = vmatpush.msrb.mxu2 %v8548_v44  ;;  %3850 = vmatpush.msra.mxu1 %v8550_v4 }
 0xaf5   :  { %v3352_v30 = vpop.f32.mrf.mxu0 }
 0xaf6   :  { %v3400_v22 = vrot.slane %v3352_v30, 5  ;;  %v3392_v58 = vpop.f32.mrf.mxu1 }
 0xaf7   :  { %v3402_v41 = vrot.slane %v3392_v58, 5 }
 0xaf8   :  { %v3408_v31 = vadd.f32 %v3400_v22, %v10453_v29 }
 0xaf9   :  { %v3410_v48 = vadd.f32 %v3402_v41, %v10456_v21 }
 0xafa   :  { %v6043_v38 = vmul.f32 -1.442695, %v3408_v31 }
 0xafb   :  { %v3332_v46 = vpop.f32.mrf.mxu3 }
 0xafc   :  { %6269 = vpow2.f32 %v6043_v38  ;;  %v3399_v57 = vrot.slane %v3332_v46, 5  ;;  %v3372_v59 = vpop.f32.mrf.mxu2 }
 0xafd   :  { %v3401_v34 = vrot.slane %v3372_v59, 5 }
 0xafe   :  { %v3407_v1 = vadd.f32 %v3399_v57, %v10454_v63 }
 0xaff   :  { %v3409_v11 = vadd.f32 %v3401_v34, %v10455_v2 }
 0xb00   :  { %v6042_v12 = vmul.f32 -1.442695, %v3407_v1 }
 0xb01   :  { %v6044_v47 = vmul.f32 -1.442695, %v3409_v11 }
 0xb02   :  { %v6270_v16 = vpop.eup %6269  ;;  %6271 = vpow2.f32 %v6042_v12 }
 0xb03   :  { %v3421_v37 = vadd.f32 1.0, %v6270_v16  ;;  %6273 = vpow2.f32 %v6044_v47 }
 0xb05   :  { %6275 = vrcp.f32 %v3421_v37  ;;  %v3449_v17 = vand.u32 2147483648, %v3421_v37  ;;  %vm3443_vm11 = vweird.f32 %v3421_v37  ;;  %v3447_v40 = vand.u32 2147483647, %v3421_v37 }
 0xb07   :  { %v3450_v44 = vor.u32 1.1754944e-38, %v3449_v17  ;;  %vm3448_vm14 = vcmp.eq.f32.partialorder %v3447_v40, 8.507059e+37 }
 0xb08   :  { %v6272_v45 = vpop.eup %6271 }
 0xb09   :  { %v6274_v62 = vpop.eup %6273  ;;  %v3420_v5 = vadd.f32 1.0, %v6272_v45 }
 0xb0a   :  { %v3422_v19 = vadd.f32 1.0, %v6274_v62 }
 0xb0b   :  { %v6276_v32 = vpop.eup %6275  ;;  %6277 = vrcp.f32 %v3420_v5  ;;  %v3434_v55 = vand.u32 2147483648, %v3420_v5  ;;  %v3432_v4 = vand.u32 2147483647, %v3420_v5  ;;  %vm3428_vm15 = vweird.f32 %v3420_v5 }
 0xb0c   :  { %v3439_v54 = vmul.f32 %v6276_v32, %v3421_v37  ;;  %6279 = vrcp.f32 %v3422_v19  ;;  %vm3444_vm10 = vweird.f32 %v6276_v32  ;;  %v3464_v50 = vand.u32 2147483648, %v3422_v19 }
 0xb0d   :  { %vm3445_vm12 = vmor %vm3443_vm11, %vm3444_vm10  ;;  %6281 = vtanh.f32 %v3410_v48  ;;  %v3435_v25 = vor.u32 1.1754944e-38, %v3434_v55  ;;  %vm3433_vm1 = vcmp.eq.f32.partialorder %v3432_v4, 8.507059e+37  ;;  %vm3458_vm3 = vweird.f32 %v3422_v19 }
 0xb0e   :  { %v3440_v15 = vsub.f32 1.0, %v3439_v54  ;;  %v3462_v51 = vand.u32 2147483647, %v3422_v19  ;;  %v3465_v8 = vor.u32 1.1754944e-38, %v3464_v50 }
 0xb10   :  { %v3441_v6 = vmul.f32 %v6276_v32, %v3440_v15  ;;  %vm3463_vm5 = vcmp.eq.f32.partialorder %v3462_v51, 8.507059e+37 }
 0xb11   :  { %v6278_v14 = vpop.eup %6277 }
 0xb12   :  { %v6280_v7 = vpop.eup %6279  ;;  %v3442_v24 = vadd.f32 %v6276_v32, %v3441_v6  ;;  %v3424_v60 = vmul.f32 %v6278_v14, %v3420_v5  ;;  %vm3429_vm13 = vweird.f32 %v6278_v14 }
 0xb13   :  { %v3454_v26 = vmul.f32 %v6280_v7, %v3422_v19  ;;  %vm3430_vm0 = vmor %vm3428_vm15, %vm3429_vm13  ;;  %v6282_v43 = vpop.eup %6281  ;;  %vm3459_vm2 = vweird.f32 %v6280_v7 }
 0xb14   :  { %v3425_v36 = vsub.f32 1.0, %v3424_v60  ;;  %v3446_v9 = vsel %vm3445_vm12, %v6276_v32, %v3442_v24  ;;  %vm3460_vm4 = vmor %vm3458_vm3, %vm3459_vm2 }
 0xb15   :  { %v3455_v0 = vsub.f32 1.0, %v3454_v26  ;;  %v3451_v61 = vsel %vm3448_vm14, %v3450_v44, %v3446_v9 }
 0xb16   :  { %v3426_v33 = vmul.f32 %v6278_v14, %v3425_v36  ;;  %v3472_v20 = vmul.f32 %v3470_v52, %v3451_v61 }
 0xb17   :  { %v3456_v10 = vmul.f32 %v6280_v7, %v3455_v0 }
 0xb18   :  { %v3427_v39 = vadd.f32 %v6278_v14, %v3426_v33 }
 0xb19   :  { %v3457_v56 = vadd.f32 %v6280_v7, %v3456_v10 }
 0xb1a   :  { %v3431_v27 = vsel %vm3430_vm0, %v6278_v14, %v3427_v39 }
 0xb1b   :  { %v3436_v35 = vsel %vm3433_vm1, %v3435_v25, %v3431_v27  ;;  %v3461_v13 = vsel %vm3460_vm4, %v6280_v7, %v3457_v56 }
 0xb1c   :  { %v3473_v49 = vmul.f32 %v6282_v43, %v3436_v35  ;;  %v3466_v18 = vsel %vm3463_vm5, %v3465_v8, %v3461_v13 }
 0xb1e   :  { %v8723_v53 = vadd.f32 %v3473_v49, %v3472_v20 }
 0xb20   :  { %6283 = vtanh.f32 %v8723_v53  ;;  %v3700_v25 = vrot.slane %v8723_v53, 7 }
 0xb26   :  { %v6284_v23 = vpop.eup %6283 }
 0xb27   :  { %v3476_v28 = vmul.f32 %v6284_v23, %v3466_v18 }
 0xb29   :  { %3477 = vst [vmem:[#allocation2] sm:$0x8] %v3476_v28  ;;  %v3543_v3 = vrot.slane %v3476_v28, 3 }
 0xb2b   :  { %3561 = vmatmul.f32.vlgmr.msra.gmra.mxu3 %v3543_v3  ;;  %3581 = vmatmul.f32.vlgmr.msra.gmra.mxu0 %v3543_v3 }
 0xb2c   :  { %3601 = vmatmul.f32.vlgmr.msra.gmra.mxu2 %v3543_v3  ;;  %3621 = vmatmul.f32.vlgmr.msrb.gmra.mxu1 %v3543_v3  ;;  %v8734_v3 = vld [vmem:[#allocation6 + $0x3e0] sm:$0xff] }
 0xb2d   :  { %4005 = vmatpush.msra.mxu3 %v8734_v3 }
 0xba8   :  { %v3582_v42 = vpop.f32.mrf.mxu0 }
 0xba9   :  { %v3630_v30 = vrot.slane %v3582_v42, 4  ;;  %v3622_v5 = vpop.f32.mrf.mxu1  ;;  %v8736_v42 = vld [vmem:[#allocation6 + $0x3e8] sm:$0xff] }
 0xbaa   :  { %v3632_v54 = vrot.slane %v3622_v5, 4  ;;  %4025 = vmatpush.msra.mxu0 %v8736_v42  ;;  %v8784_v5 = vld [vmem:[#allocation6 + $0x368] sm:$0xff] }
 0xbab   :  { %v3638_v22 = vadd.f32 %v3630_v30, %v10453_v29  ;;  %v8738_v30 = vld [vmem:[#allocation6 + $0x3f0] sm:$0xff] }
 0xbac   :  { %v3640_v14 = vadd.f32 %v3632_v54, %v10456_v21  ;;  %4045 = vmatpush.msra.mxu2 %v8738_v30  ;;  %v8794_v54 = vld [vmem:[#allocation6 + $0x340] sm:$0xff] }
 0xbad   :  { %v6046_v31 = vmul.f32 -1.442695, %v3638_v22  ;;  %v8742_v22 = vld [vmem:[#allocation6 + $0x3f8] sm:$0xff] }
 0xbae   :  { %v3562_v38 = vpop.f32.mrf.mxu3  ;;  %4065 = vmatpush.msrb.mxu1 %v8742_v22 }
 0xbaf   :  { %6285 = vpow2.f32 %v6046_v31  ;;  %v3629_v46 = vrot.slane %v3562_v38, 4  ;;  %v3602_v57 = vpop.f32.mrf.mxu2  ;;  %v8746_v31 = vld [vmem:[#allocation6 + $0x3c0] sm:$0xff]  ;;  %v8748_v38 = vld [vmem:[#allocation6 + $0x3c8] sm:$0xff] }
 0xbb0   :  { %v3631_v59 = vrot.slane %v3602_v57, 4  ;;  %4006 = vmatpush.msra.mxu3 %v8746_v31  ;;  %4026 = vmatpush.msra.mxu0 %v8748_v38  ;;  %v8754_v57 = vld [vmem:[#allocation6 + $0x3d8] sm:$0xff] }
 0xbb1   :  { %v3637_v34 = vadd.f32 %v3629_v46, %v10454_v63  ;;  %v8750_v46 = vld [vmem:[#allocation6 + $0x3d0] sm:$0xff]  ;;  %4066 = vmatpush.msrb.mxu1 %v8754_v57 }
 0xbb2   :  { %v3639_v1 = vadd.f32 %v3631_v59, %v10455_v2  ;;  %4046 = vmatpush.msra.mxu2 %v8750_v46  ;;  %v8758_v59 = vld [vmem:[#allocation6 + $0x3a0] sm:$0xff] }
 0xbb3   :  { %v6045_v11 = vmul.f32 -1.442695, %v3637_v34  ;;  %v8760_v34 = vld [vmem:[#allocation6 + $0x3a8] sm:$0xff]  ;;  %4007 = vmatpush.msra.mxu3 %v8758_v59 }
 0xbb4   :  { %v6047_v12 = vmul.f32 -1.442695, %v3639_v1  ;;  %v8762_v1 = vld [vmem:[#allocation6 + $0x3b0] sm:$0xff]  ;;  %4027 = vmatpush.msra.mxu0 %v8760_v34 }
 0xbb5   :  { %v6286_v47 = vpop.eup %6285  ;;  %6287 = vpow2.f32 %v6045_v11  ;;  %v8766_v11 = vld [vmem:[#allocation6 + $0x3b8] sm:$0xff]  ;;  %4047 = vmatpush.msra.mxu2 %v8762_v1 }
 0xbb6   :  { %v3651_v16 = vadd.f32 1.0, %v6286_v47  ;;  %6289 = vpow2.f32 %v6047_v12  ;;  %4067 = vmatpush.msrb.mxu1 %v8766_v11  ;;  %v8770_v12 = vld [vmem:[#allocation6 + $0x380] sm:$0xff]  ;;  %v8772_v47 = vld [vmem:[#allocation6 + $0x388] sm:$0xff] }
 0xbb7   :  { %4008 = vmatpush.msra.mxu3 %v8770_v12  ;;  %4028 = vmatpush.msra.mxu0 %v8772_v47 }
 0xbb8   :  { %6291 = vrcp.f32 %v3651_v16  ;;  %v3679_v60 = vand.u32 2147483648, %v3651_v16  ;;  %vm3673_vm7 = vweird.f32 %v3651_v16  ;;  %v3677_v26 = vand.u32 2147483647, %v3651_v16 }
 0xbb9   :  { %4029 = vmatpush.msra.mxu0 %v8784_v5 }
 0xbba   :  { %v3680_v4 = vor.u32 1.1754944e-38, %v3679_v60  ;;  %vm3678_vm10 = vcmp.eq.f32.partialorder %v3677_v26, 8.507059e+37 }
 0xbbb   :  { %v6288_v37 = vpop.eup %6287 }
 0xbbc   :  { %v6290_v45 = vpop.eup %6289  ;;  %v3650_v62 = vadd.f32 1.0, %v6288_v37  ;;  %v8778_v37 = vld [vmem:[#allocation6 + $0x398] sm:$0xff] }
 0xbbd   :  { %v3652_v58 = vadd.f32 1.0, %v6290_v45  ;;  %4068 = vmatpush.msrb.mxu1 %v8778_v37 }
 0xbbe   :  { %v6292_v19 = vpop.eup %6291  ;;  %6293 = vrcp.f32 %v3650_v62  ;;  %v3664_v36 = vand.u32 2147483648, %v3650_v62  ;;  %v3662_v33 = vand.u32 2147483647, %v3650_v62  ;;  %vm3658_vm11 = vweird.f32 %v3650_v62 }
 0xbbf   :  { %v3669_v32 = vmul.f32 %v6292_v19, %v3651_v16  ;;  %6295 = vrcp.f32 %v3652_v58  ;;  %vm3674_vm6 = vweird.f32 %v6292_v19  ;;  %v3694_v50 = vand.u32 2147483648, %v3652_v58  ;;  %v8774_v16 = vld [vmem:[#allocation6 + $0x390] sm:$0xff] }
 0xbc0   :  { %vm3675_vm8 = vmor %vm3673_vm7, %vm3674_vm6  ;;  %6297 = vtanh.f32 %v3640_v14  ;;  %v3665_v61 = vor.u32 1.1754944e-38, %v3664_v36  ;;  %vm3663_vm13 = vcmp.eq.f32.partialorder %v3662_v33, 8.507059e+37  ;;  %vm3688_vm15 = vweird.f32 %v3652_v58  ;;  %4048 = vmatpush.msra.mxu2 %v8774_v16  ;;  %v8803_v14 = vld [vmem:[#allocation6 + $0x358] sm:$0xff]  ;;  %v8821_v36 = vld [vmem:[#allocation6 + $0x308] sm:$0xff] }
 0xbc1   :  { %v3670_v41 = vsub.f32 1.0, %v3669_v32  ;;  %v3692_v51 = vand.u32 2147483647, %v3652_v58  ;;  %v3695_v8 = vor.u32 1.1754944e-38, %v3694_v50  ;;  %v8790_v32 = vld [vmem:[#allocation6 + $0x378] sm:$0xff]  ;;  %v8855_v50 = vld [vmem:[#allocation6 + $0x2a8] sm:$0xff] }
 0xbc2   :  { %4069 = vmatpush.msrb.mxu1 %v8790_v32 }
 0xbc3   :  { %v3671_v15 = vmul.f32 %v6292_v19, %v3670_v41  ;;  %vm3693_vm1 = vcmp.eq.f32.partialorder %v3692_v51, 8.507059e+37  ;;  %v8796_v41 = vld [vmem:[#allocation6 + $0x348] sm:$0xff] }
 0xbc4   :  { %v6294_v6 = vpop.eup %6293  ;;  %4030 = vmatpush.msra.mxu0 %v8796_v41  ;;  %4070 = vmatpush.msrb.mxu1 %v8803_v14 }
 0xbc5   :  { %v6296_v48 = vpop.eup %6295  ;;  %v3672_v7 = vadd.f32 %v6292_v19, %v3671_v15  ;;  %v3654_v24 = vmul.f32 %v6294_v6, %v3650_v62  ;;  %vm3659_vm9 = vweird.f32 %v6294_v6  ;;  %v8782_v62 = vld [vmem:[#allocation6 + $0x360] sm:$0xff]  ;;  %v8798_v15 = vld [vmem:[#allocation6 + $0x350] sm:$0xff] }
 0xbc6   :  { %v3684_v17 = vmul.f32 %v6296_v48, %v3652_v58  ;;  %vm3660_vm12 = vmor %vm3658_vm11, %vm3659_vm9  ;;  %v6298_v27 = vpop.eup %6297  ;;  %vm3689_vm14 = vweird.f32 %v6296_v48  ;;  %v8786_v58 = vld [vmem:[#allocation6 + $0x370] sm:$0xff]  ;;  %4009 = vmatpush.msra.mxu3 %v8782_v62 }
 0xbc7   :  { %v3655_v40 = vsub.f32 1.0, %v3654_v24  ;;  %v3676_v55 = vsel %vm3675_vm8, %v6292_v19, %v3672_v7  ;;  %vm3690_vm0 = vmor %vm3688_vm15, %vm3689_vm14  ;;  %4049 = vmatpush.msra.mxu2 %v8786_v58  ;;  %v8809_v7 = vld [vmem:[#allocation6 + $0x328] sm:$0xff]  ;;  %v8811_v24 = vld [vmem:[#allocation6 + $0x330] sm:$0xff] }
 0xbc8   :  { %v3685_v44 = vsub.f32 1.0, %v3684_v17  ;;  %v3681_v39 = vsel %vm3678_vm10, %v3680_v4, %v3676_v55  ;;  %4010 = vmatpush.msra.mxu3 %v8794_v54  ;;  %4031 = vmatpush.msra.mxu0 %v8809_v7  ;;  %v8815_v17 = vld [vmem:[#allocation6 + $0x338] sm:$0xff]  ;;  %v8823_v55 = vld [vmem:[#allocation6 + $0x310] sm:$0xff] }
 0xbc9   :  { %v3656_v9 = vmul.f32 %v6294_v6, %v3655_v40  ;;  %v3702_v10 = vmul.f32 %v3700_v25, %v3681_v39  ;;  %4050 = vmatpush.msra.mxu2 %v8798_v15  ;;  %4071 = vmatpush.msrb.mxu1 %v8815_v17  ;;  %v8819_v40 = vld [vmem:[#allocation6 + $0x300] sm:$0xff]  ;;  %v8827_v4 = vld [vmem:[#allocation6 + $0x318] sm:$0xff] }
 0xbca   :  { %v3686_v35 = vmul.f32 %v6296_v48, %v3685_v44  ;;  %4032 = vmatpush.msra.mxu0 %v8821_v36  ;;  %v8829_v44 = vld [vmem:[#allocation6 + $0x2e0] sm:$0xff]  ;;  %v8837_v25 = vld [vmem:[#allocation6 + $0x2f8] sm:$0xff] }
 0xbcb   :  { %v3657_v0 = vadd.f32 %v6294_v6, %v3656_v9  ;;  %4051 = vmatpush.msra.mxu2 %v8811_v24  ;;  %4072 = vmatpush.msrb.mxu1 %v8827_v4 }
 0xbcc   :  { %v3687_v56 = vadd.f32 %v6296_v48, %v3686_v35  ;;  %v8846_v35 = vld [vmem:[#allocation6 + $0x2d0] sm:$0xff] }
 0xbcd   :  { %v3661_v52 = vsel %vm3660_vm12, %v6294_v6, %v3657_v0  ;;  %v8831_v0 = vld [vmem:[#allocation6 + $0x2e8] sm:$0xff]  ;;  %4052 = vmatpush.msra.mxu2 %v8823_v55  ;;  %4073 = vmatpush.msrb.mxu1 %v8837_v25 }
 0xbce   :  { %v3666_v43 = vsel %vm3663_vm13, %v3665_v61, %v3661_v52  ;;  %v3691_v13 = vsel %vm3690_vm0, %v6296_v48, %v3687_v56  ;;  %v8807_v48 = vld [vmem:[#allocation6 + $0x320] sm:$0xff]  ;;  %v8835_v61 = vld [vmem:[#allocation6 + $0x2f0] sm:$0xff]  ;;  %4033 = vmatpush.msra.mxu0 %v8831_v0 }
 0xbcf   :  { %v3703_v20 = vmul.f32 %v6298_v27, %v3666_v43  ;;  %v3696_v23 = vsel %vm3693_vm1, %v3695_v8, %v3691_v13  ;;  %4011 = vmatpush.msra.mxu3 %v8807_v48  ;;  %v8839_v52 = vld [vmem:[#allocation6 + $0x2c0] sm:$0xff]  ;;  %v8844_v43 = vld [vmem:[#allocation6 + $0x2c8] sm:$0xff]  ;;  %4053 = vmatpush.msra.mxu2 %v8835_v61  ;;  %v8859_v13 = vld [vmem:[#allocation6 + $0x2b0] sm:$0xff] }
 0xbd0   :  { %v8853_v56 = vld [vmem:[#allocation6 + $0x2a0] sm:$0xff]  ;;  %4034 = vmatpush.msra.mxu0 %v8844_v43  ;;  %v8861_v8 = vld [vmem:[#allocation6 + $0x2b8] sm:$0xff] }
 0xbd1   :  { %v8731_v49 = vadd.f32 %v3703_v20, %v3702_v10  ;;  %4012 = vmatpush.msra.mxu3 %v8819_v40  ;;  %v8848_v10 = vld [vmem:[#allocation6 + $0x2d8] sm:$0xff]  ;;  %4054 = vmatpush.msra.mxu2 %v8846_v35 }
 0xbd2   :  { %4074 = vmatpush.msrb.mxu1 %v8848_v10  ;;  %4035 = vmatpush.msra.mxu0 %v8855_v50 }
 0xbd3   :  { %6299 = vtanh.f32 %v8731_v49  ;;  %4013 = vmatpush.msra.mxu3 %v8829_v44  ;;  %4055 = vmatpush.msra.mxu2 %v8859_v13 }
 0xbd4   :  { %4075 = vmatpush.msrb.mxu1 %v8861_v8 }
 0xbd5   :  { %4014 = vmatpush.msra.mxu3 %v8839_v52 }
 0xbd7   :  { %4015 = vmatpush.msra.mxu3 %v8853_v56 }
 0xbd9   :  { %v6300_v53 = vpop.eup %6299 }
 0xbda   :  { %v3706_v18 = vmul.f32 %v6300_v53, %v3696_v23  ;;  %v8865_v23 = vld [vmem:[#allocation6 + $0x280] sm:$0xff] }
 0xbdb   :  { %4016 = vmatpush.msra.mxu3 %v8865_v23 }
 0xbdc   :  { %3707 = vst [vmem:[#allocation2] sm:$0x10] %v3706_v18  ;;  %v3773_v28 = vrot.slane %v3706_v18, 4  ;;  %v8867_v18 = vld [vmem:[#allocation6 + $0x288] sm:$0xff] }
 0xbdd   :  { %4036 = vmatpush.msra.mxu0 %v8867_v18 }
 0xbde   :  { %3791 = vmatmul.f32.vlgmr.msrb.gmra.mxu3 %v3773_v28  ;;  %3811 = vmatmul.f32.vlgmr.msrb.gmra.mxu0 %v3773_v28 }
 0xbdf   :  { %3831 = vmatmul.f32.vlgmr.msrb.gmra.mxu2 %v3773_v28  ;;  %3851 = vmatmul.f32.vlgmr.msra.gmra.mxu1 %v3773_v28 }
 0xc5b   :  { %v3812_v45 = vpop.f32.mrf.mxu0 }
 0xc5c   :  { %v3860_v19 = vrot.slane %v3812_v45, 3  ;;  %v8871_v45 = vld [vmem:[#allocation6 + $0x290] sm:$0xff] }
 0xc5d   :  { %10457 = vst [vmem:[#allocation20_spill] sm:$0xff] %v8871_v45  ;;  %4056 = vmatpush.msra.mxu2 %v8871_v45 }
 0xc5e   :  { %v3868_v6 = vadd.f32 %v3860_v19, %v10453_v29  ;;  %v8873_v19 = vld [vmem:[#allocation6 + $0x298] sm:$0xff] }
 0xc5f   :  { %10458 = vst [vmem:[#allocation21_spill] sm:$0xff] %v8873_v19  ;;  %4076 = vmatpush.msrb.mxu1 %v8873_v19  ;;  %v8912_v29 = vld [vmem:[#allocation6 + $0x238] sm:$0xff]  ;;  %v3852_v19 = vpop.f32.mrf.mxu1 }
 0xc60   :  { %v6049_v60 = vmul.f32 -1.442695, %v3868_v6  ;;  %10467 = vst [vmem:[#allocation29_spill] sm:$0xff] %v8912_v29 }
 0xc61   :  { %v3792_v26 = vpop.f32.mrf.mxu3 }
 0xc62   :  { %6301 = vpow2.f32 %v6049_v60  ;;  %v3859_v9 = vrot.slane %v3792_v26, 3  ;;  %v3832_v33 = vpop.f32.mrf.mxu2  ;;  %v8879_v60 = vld [vmem:[#allocation6 + $0x260] sm:$0xff]  ;;  %v8881_v26 = vld [vmem:[#allocation6 + $0x268] sm:$0xff] }
 0xc63   :  { %v3861_v39 = vrot.slane %v3832_v33, 3  ;;  %10459 = vst [vmem:[#allocation22_spill] sm:$0xff] %v8879_v60  ;;  %v8887_v33 = vld [vmem:[#allocation6 + $0x278] sm:$0xff]  ;;  %4017 = vmatpush.msra.mxu3 %v8879_v60  ;;  %4037 = vmatpush.msra.mxu0 %v8881_v26 }
 0xc64   :  { %v3867_v27 = vadd.f32 %v3859_v9, %v10454_v63  ;;  %10460 = vst [vmem:[#allocation15_spill] sm:$0xff] %v8881_v26  ;;  %v8885_v9 = vld [vmem:[#allocation6 + $0x270] sm:$0xff]  ;;  %4077 = vmatpush.msrb.mxu1 %v8887_v33 }
 0xc65   :  { %v3869_v20 = vadd.f32 %v3861_v39, %v10455_v2  ;;  %10461 = vst [vmem:[#allocation23_spill] sm:$0xff] %v8885_v9  ;;  %v8892_v39 = vld [vmem:[#allocation6 + $0x240] sm:$0xff]  ;;  %4057 = vmatpush.msra.mxu2 %v8885_v9  ;;  %v8910_v63 = vld [vmem:[#allocation6 + $0x230] sm:$0xff]  ;;  %v8920_v9 = vld [vmem:[#allocation6 + $0x208] sm:$0xff] }
 0xc66   :  { %v6048_v51 = vmul.f32 -1.442695, %v3867_v27  ;;  %10462 = vst [vmem:[#allocation24_spill] sm:$0xff] %v8887_v33  ;;  %v8894_v27 = vld [vmem:[#allocation6 + $0x248] sm:$0xff]  ;;  %4018 = vmatpush.msra.mxu3 %v8892_v39  ;;  %v8918_v33 = vld [vmem:[#allocation6 + $0x200] sm:$0xff] }
 0xc67   :  { %v6050_v53 = vmul.f32 -1.442695, %v3869_v20  ;;  %10463 = vst [vmem:[#allocation25_spill] sm:$0xff] %v8892_v39  ;;  %v8898_v20 = vld [vmem:[#allocation6 + $0x250] sm:$0xff]  ;;  %4038 = vmatpush.msra.mxu0 %v8894_v27  ;;  %v8928_v39 = vld [vmem:[#allocation6 + $0x218] sm:$0xff] }
 0xc68   :  { %v6302_v28 = vpop.eup %6301  ;;  %6303 = vpow2.f32 %v6048_v51  ;;  %10464 = vst [vmem:[#allocation26_spill] sm:$0xff] %v8894_v27  ;;  %v8900_v51 = vld [vmem:[#allocation6 + $0x258] sm:$0xff]  ;;  %4058 = vmatpush.msra.mxu2 %v8898_v20  ;;  %v8926_v27 = vld [vmem:[#allocation6 + $0x210] sm:$0xff] }
 0xc69   :  { %v8875_v6 = vadd.f32 1.0, %v6302_v28  ;;  %6305 = vpow2.f32 %v6050_v53  ;;  %10465 = vst [vmem:[#allocation27_spill] sm:$0xff] %v8900_v51  ;;  %v8904_v53 = vld [vmem:[#allocation6 + $0x220] sm:$0xff]  ;;  %v8906_v28 = vld [vmem:[#allocation6 + $0x228] sm:$0xff]  ;;  %4078 = vmatpush.msrb.mxu1 %v8900_v51 }
 0xc6a   :  { %10466 = vst [vmem:[#allocation28_spill] sm:$0xff] %v8906_v28  ;;  %4019 = vmatpush.msra.mxu3 %v8904_v53  ;;  %4039 = vmatpush.msra.mxu0 %v8906_v28 }
 0xc6b   :  { %6307 = vrcp.f32 %v8875_v6  ;;  %10468 = vst [vmem:[#allocation30_spill] sm:$0xff] %v8920_v9  ;;  %4059 = vmatpush.msra.mxu2 %v8910_v63  ;;  %4079 = vmatpush.msrb.mxu1 %v8912_v29  ;;  %vm3903_vm3 = vweird.f32 %v8875_v6 }
 0xc6c   :  { %4020 = vmatpush.msra.mxu3 %v8918_v33  ;;  %4040 = vmatpush.msra.mxu0 %v8920_v9 }
 0xc6d   :  { %4060 = vmatpush.msra.mxu2 %v8926_v27  ;;  %4080 = vmatpush.msrb.mxu1 %v8928_v39 }
 0xc6e   :  { %v6304_v2 = vpop.eup %6303  ;;  %4235 = vmatpush.msrb.mxu3 %v8734_v3  ;;  %4255 = vmatpush.msrb.mxu0 %v8736_v42 }
 0xc6f   :  { %v6306_v26 = vpop.eup %6305  ;;  %v8914_v60 = vadd.f32 1.0, %v6304_v2  ;;  %4275 = vmatpush.msrb.mxu2 %v8738_v30  ;;  %4295 = vmatpush.msra.mxu1 %v8742_v22  ;;  %v3909_v30 = vand.u32 2147483648, %v8875_v6 }
 0xc70   :  { %v8922_v45 = vadd.f32 1.0, %v6306_v26  ;;  %v3862_v26 = vrot.slane %v3852_v19, 3  ;;  %4236 = vmatpush.msrb.mxu3 %v8746_v31  ;;  %4256 = vmatpush.msrb.mxu0 %v8748_v38 }
 0xc71   :  { %v6308_v2 = vpop.eup %6307  ;;  %6309 = vrcp.f32 %v8914_v60  ;;  %4276 = vmatpush.msrb.mxu2 %v8750_v46  ;;  %4296 = vmatpush.msra.mxu1 %v8754_v57  ;;  %v3894_v46 = vand.u32 2147483648, %v8914_v60  ;;  %vm3888_vm7 = vweird.f32 %v8914_v60 }
 0xc72   :  { %v3899_v51 = vmul.f32 %v6308_v2, %v8875_v6  ;;  %6311 = vrcp.f32 %v8922_v45  ;;  %v3870_v19 = vadd.f32 %v3862_v26, %v10456_v21  ;;  %vm3904_vm2 = vweird.f32 %v6308_v2  ;;  %4237 = vmatpush.msrb.mxu3 %v8758_v59  ;;  %4257 = vmatpush.msrb.mxu0 %v8760_v34 }
 0xc73   :  { %4277 = vmatpush.msrb.mxu2 %v8762_v1  ;;  %4297 = vmatpush.msra.mxu1 %v8766_v11  ;;  %vm8962_vm4 = vmor %vm3903_vm3, %vm3904_vm2  ;;  %v3892_v34 = vand.u32 2147483647, %v8914_v60  ;;  %v3910_v1 = vor.u32 1.1754944e-38, %v3909_v30  ;;  %vm3918_vm11 = vweird.f32 %v8922_v45 }
 0xc74   :  { %v3900_v28 = vsub.f32 1.0, %v3899_v51  ;;  %4238 = vmatpush.msrb.mxu3 %v8770_v12  ;;  %4258 = vmatpush.msrb.mxu0 %v8772_v47  ;;  %6313 = vtanh.f32 %v3870_v19 }
 0xc75   :  { %4278 = vmatpush.msrb.mxu2 %v8774_v16  ;;  %4298 = vmatpush.msra.mxu1 %v8778_v37  ;;  %v3895_v16 = vor.u32 1.1754944e-38, %v3894_v46  ;;  %v3930_v37 = vrot.slane %v8731_v49, 7  ;;  %vm3893_vm9 = vcmp.eq.f32.partialorder %v3892_v34, 8.507059e+37 }
 0xc76   :  { %v3901_v29 = vmul.f32 %v6308_v2, %v3900_v28  ;;  %4239 = vmatpush.msrb.mxu3 %v8782_v62  ;;  %4259 = vmatpush.msrb.mxu0 %v8784_v5 }
 0xc77   :  { %v6310_v9 = vpop.eup %6309  ;;  %4279 = vmatpush.msrb.mxu2 %v8786_v58  ;;  %4299 = vmatpush.msra.mxu1 %v8790_v32 }
 0xc78   :  { %v8948_v51 = vpop.eup %6311  ;;  %v3902_v3 = vadd.f32 %v6308_v2, %v3901_v29  ;;  %v3884_v42 = vmul.f32 %v6310_v9, %v8914_v60  ;;  %v3907_v29 = vand.u32 2147483647, %v8875_v6  ;;  %vm3889_vm5 = vweird.f32 %v6310_v9  ;;  %4240 = vmatpush.msrb.mxu3 %v8794_v54  ;;  %4260 = vmatpush.msrb.mxu0 %v8796_v41 }
 0xc79   :  { %v3914_v22 = vmul.f32 %v8948_v51, %v8922_v45  ;;  %vm3890_vm8 = vmor %vm3888_vm7, %vm3889_vm5  ;;  %4280 = vmatpush.msrb.mxu2 %v8798_v15  ;;  %4300 = vmatpush.msra.mxu1 %v8803_v14  ;;  %vm3919_vm10 = vweird.f32 %v8948_v51  ;;  %v3924_v14 = vand.u32 2147483648, %v8922_v45 }
 0xc7a   :  { %v3885_v31 = vsub.f32 1.0, %v3884_v42  ;;  %v3906_v57 = vsel %vm8962_vm4, %v6308_v2, %v3902_v3  ;;  %vm3908_vm6 = vcmp.eq.f32.partialorder %v3907_v29, 8.507059e+37  ;;  %4241 = vmatpush.msrb.mxu3 %v8807_v48  ;;  %4261 = vmatpush.msrb.mxu0 %v8809_v7  ;;  %v6314_v5 = vpop.eup %6313  ;;  %v3922_v48 = vand.u32 2147483647, %v8922_v45  ;;  %vm3920_vm12 = vmor %vm3918_vm11, %vm3919_vm10  ;;  %v10485_v2 = vld [vmem:[#allocation33_spill] sm:$0xff] }
 0xc7b   :  { %v3915_v11 = vsub.f32 1.0, %v3914_v22  ;;  %v3911_v47 = vsel %vm3908_vm6, %v3910_v1, %v3906_v57  ;;  %4281 = vmatpush.msrb.mxu2 %v8811_v24  ;;  %4301 = vmatpush.msra.mxu1 %v8815_v17  ;;  %v3925_v24 = vor.u32 1.1754944e-38, %v3924_v14  ;;  %v10471_v17 = vld [vmem:[#allocation20_spill] sm:$0xff] }
 0xc7c   :  { %v3886_v59 = vmul.f32 %v6310_v9, %v3885_v31  ;;  %v3932_v54 = vmul.f32 %v3930_v37, %v3911_v47  ;;  %4242 = vmatpush.msrb.mxu3 %v8819_v40  ;;  %4262 = vmatpush.msrb.mxu0 %v8821_v36  ;;  %vm3923_vm13 = vcmp.eq.f32.partialorder %v3922_v48, 8.507059e+37  ;;  %v10472_v40 = vld [vmem:[#allocation21_spill] sm:$0xff] }
 0xc7d   :  { %v3916_v32 = vmul.f32 %v8948_v51, %v3915_v11  ;;  %4282 = vmatpush.msrb.mxu2 %v8823_v55  ;;  %4302 = vmatpush.msra.mxu1 %v8827_v4  ;;  %v10473_v4 = vld [vmem:[#allocation22_spill] sm:$0xff] }
 0xc7e   :  { %v3887_v12 = vadd.f32 %v6310_v9, %v3886_v59  ;;  %4243 = vmatpush.msrb.mxu3 %v8829_v44  ;;  %4263 = vmatpush.msrb.mxu0 %v8831_v0  ;;  %v10474_v44 = vld [vmem:[#allocation15_spill] sm:$0xff] }
 0xc7f   :  { %v3917_v15 = vadd.f32 %v8948_v51, %v3916_v32  ;;  %4283 = vmatpush.msrb.mxu2 %v8835_v61  ;;  %4303 = vmatpush.msra.mxu1 %v8837_v25  ;;  %v10475_v61 = vld [vmem:[#allocation23_spill] sm:$0xff]  ;;  %v10476_v25 = vld [vmem:[#allocation24_spill] sm:$0xff] }
 0xc80   :  { %v3891_v62 = vsel %vm3890_vm8, %v6310_v9, %v3887_v12  ;;  %4244 = vmatpush.msrb.mxu3 %v8839_v52  ;;  %4264 = vmatpush.msrb.mxu0 %v8844_v43  ;;  %v10477_v52 = vld [vmem:[#allocation25_spill] sm:$0xff]  ;;  %v10478_v43 = vld [vmem:[#allocation26_spill] sm:$0xff] }
 0xc81   :  { %v3896_v58 = vsel %vm3893_vm9, %v3895_v16, %v3891_v62  ;;  %4284 = vmatpush.msrb.mxu2 %v8846_v35  ;;  %4304 = vmatpush.msra.mxu1 %v8848_v10  ;;  %v3921_v7 = vsel %vm3920_vm12, %v8948_v51, %v3917_v15  ;;  %v10479_v10 = vld [vmem:[#allocation27_spill] sm:$0xff] }
 0xc82   :  { %v3933_v41 = vmul.f32 %v6314_v5, %v3896_v58  ;;  %4245 = vmatpush.msrb.mxu3 %v8853_v56  ;;  %4265 = vmatpush.msrb.mxu0 %v8855_v50  ;;  %v3926_v55 = vsel %vm3923_vm13, %v3925_v24, %v3921_v7  ;;  %v10480_v56 = vld [vmem:[#allocation28_spill] sm:$0xff]  ;;  %v10481_v50 = vld [vmem:[#allocation29_spill] sm:$0xff] }
 0xc83   :  { %4285 = vmatpush.msrb.mxu2 %v8859_v13  ;;  %4305 = vmatpush.msra.mxu1 %v8861_v8  ;;  %v10482_v13 = vld [vmem:[#allocation30_spill] sm:$0xff] }
 0xc84   :  { %v8991_v49 = vadd.f32 %v3933_v41, %v3932_v54  ;;  %4246 = vmatpush.msrb.mxu3 %v8865_v23  ;;  %4266 = vmatpush.msrb.mxu0 %v8867_v18  ;;  %v10483_v18 = vld [vmem:[#allocation31_spill] sm:$0xff] }
 0xc85   :  { %4286 = vmatpush.msrb.mxu2 %v10471_v17  ;;  %4306 = vmatpush.msra.mxu1 %v10472_v40 }
 0xc86   :  { %6315 = vtanh.f32 %v8991_v49  ;;  %4247 = vmatpush.msrb.mxu3 %v10473_v4  ;;  %4267 = vmatpush.msrb.mxu0 %v10474_v44  ;;  %v4160_v24 = vrot.slane %v8991_v49, 7 }
 0xc87   :  { %4287 = vmatpush.msrb.mxu2 %v10475_v61  ;;  %4307 = vmatpush.msra.mxu1 %v10476_v25 }
 0xc88   :  { %4248 = vmatpush.msrb.mxu3 %v10477_v52  ;;  %4268 = vmatpush.msrb.mxu0 %v10478_v43 }
 0xc89   :  { %4288 = vmatpush.msrb.mxu2 %v8898_v20  ;;  %4308 = vmatpush.msra.mxu1 %v10479_v10 }
 0xc8a   :  { %4249 = vmatpush.msrb.mxu3 %v8904_v53  ;;  %4269 = vmatpush.msrb.mxu0 %v10480_v56  ;;  %v10484_v53 = vld [vmem:[#allocation32_spill] sm:$0xff] }
 0xc8b   :  { %4289 = vmatpush.msrb.mxu2 %v8910_v63  ;;  %4309 = vmatpush.msra.mxu1 %v10481_v50 }
 0xc8c   :  { %v6316_v36 = vpop.eup %6315  ;;  %4250 = vmatpush.msrb.mxu3 %v8918_v33  ;;  %4270 = vmatpush.msrb.mxu0 %v10482_v13  ;;  %v4460_v13 = vld [vmem:[#allocation3 + $0x5e0] sm:$0xff] }
 0xc8d   :  { %v3936_v0 = vmul.f32 %v6316_v36, %v3926_v55  ;;  %4290 = vmatpush.msrb.mxu2 %v8926_v27  ;;  %4310 = vmatpush.msra.mxu1 %v8928_v39 }
 0xc8f   :  { %3937 = vst [vmem:[#allocation2] sm:$0x20] %v3936_v0  ;;  %v4003_v35 = vrot.slane %v3936_v0, 5 }
 0xc91   :  { %4021 = vmatmul.f32.vlgmr.msra.gmra.mxu3 %v4003_v35  ;;  %4041 = vmatmul.f32.vlgmr.msra.gmra.mxu0 %v4003_v35 }
 0xc92   :  { %4061 = vmatmul.f32.vlgmr.msra.gmra.mxu2 %v4003_v35  ;;  %4081 = vmatmul.f32.vlgmr.msrb.gmra.mxu1 %v4003_v35 }
 0xc93   :  { %4475 = vmatpush.msra.mxu3 %v4460_v13  ;;  %v4404_v13 = vld [vmem:[#allocation3 + $0x420] sm:$0xff] }
 0xd0e   :  { %v4042_v8 = vpop.f32.mrf.mxu0 }
 0xd0f   :  { %v4090_v23 = vrot.slane %v4042_v8, 2  ;;  %v4082_v30 = vpop.f32.mrf.mxu1  ;;  %v4461_v8 = vld [vmem:[#allocation3 + $0x5e8] sm:$0xff] }
 0xd10   :  { %v4092_v38 = vrot.slane %v4082_v30, 2  ;;  %4495 = vmatpush.msra.mxu0 %v4461_v8  ;;  %v4446_v30 = vld [vmem:[#allocation3 + $0x570] sm:$0xff]  ;;  %v4405_v8 = vld [vmem:[#allocation3 + $0x428] sm:$0xff] }
 0xd11   :  { %v4098_v45 = vadd.f32 %v4090_v23, %v10483_v18  ;;  %v4462_v23 = vld [vmem:[#allocation3 + $0x5f0] sm:$0xff] }
 0xd12   :  { %v4100_v34 = vadd.f32 %v4092_v38, %v10456_v21  ;;  %4515 = vmatpush.msra.mxu2 %v4462_v23  ;;  %v4442_v38 = vld [vmem:[#allocation3 + $0x550] sm:$0xff] }
 0xd13   :  { %v6052_v6 = vmul.f32 -1.442695, %v4098_v45  ;;  %v4463_v45 = vld [vmem:[#allocation3 + $0x5f8] sm:$0xff]  ;;  %v4406_v23 = vld [vmem:[#allocation3 + $0x430] sm:$0xff] }
 0xd14   :  { %v4022_v60 = vpop.f32.mrf.mxu3  ;;  %4535 = vmatpush.msrb.mxu1 %v4463_v45  ;;  %v4407_v45 = vld [vmem:[#allocation3 + $0x438] sm:$0xff] }
 0xd15   :  { %6317 = vpow2.f32 %v6052_v6  ;;  %v4089_v9 = vrot.slane %v4022_v60, 2  ;;  %v4062_v20 = vpop.f32.mrf.mxu2  ;;  %v4456_v6 = vld [vmem:[#allocation3 + $0x5c0] sm:$0xff]  ;;  %v4457_v60 = vld [vmem:[#allocation3 + $0x5c8] sm:$0xff] }
 0xd16   :  { %v4091_v63 = vrot.slane %v4062_v20, 2  ;;  %4476 = vmatpush.msra.mxu3 %v4456_v6  ;;  %4496 = vmatpush.msra.mxu0 %v4457_v60  ;;  %v4459_v20 = vld [vmem:[#allocation3 + $0x5d8] sm:$0xff]  ;;  %v4400_v60 = vld [vmem:[#allocation3 + $0x400] sm:$0xff] }
 0xd17   :  { %v4097_v28 = vadd.f32 %v4089_v9, %v10484_v53  ;;  %v4458_v9 = vld [vmem:[#allocation3 + $0x5d0] sm:$0xff]  ;;  %4536 = vmatpush.msrb.mxu1 %v4459_v20 }
 0xd18   :  { %v4099_v33 = vadd.f32 %v4091_v63, %v10485_v2  ;;  %4516 = vmatpush.msra.mxu2 %v4458_v9  ;;  %v4452_v63 = vld [vmem:[#allocation3 + $0x5a0] sm:$0xff]  ;;  %v4401_v9 = vld [vmem:[#allocation3 + $0x408] sm:$0xff]  ;;  %v4402_v20 = vld [vmem:[#allocation3 + $0x410] sm:$0xff] }
 0xd19   :  { %v6051_v26 = vmul.f32 -1.442695, %v4097_v28  ;;  %v4453_v28 = vld [vmem:[#allocation3 + $0x5a8] sm:$0xff]  ;;  %4477 = vmatpush.msra.mxu3 %v4452_v63 }
 0xd1a   :  { %v6053_v19 = vmul.f32 -1.442695, %v4099_v33  ;;  %v4454_v33 = vld [vmem:[#allocation3 + $0x5b0] sm:$0xff]  ;;  %4497 = vmatpush.msra.mxu0 %v4453_v28  ;;  %v4403_v28 = vld [vmem:[#allocation3 + $0x418] sm:$0xff] }
 0xd1b   :  { %v6318_v51 = vpop.eup %6317  ;;  %6319 = vpow2.f32 %v6051_v26  ;;  %v4455_v26 = vld [vmem:[#allocation3 + $0x5b8] sm:$0xff]  ;;  %4517 = vmatpush.msra.mxu2 %v4454_v33  ;;  %v9041_v33 = vld [vmem:[#allocation6 + $0x5e0] sm:$0xff] }
 0xd1c   :  { %v4111_v27 = vadd.f32 1.0, %v6318_v51  ;;  %6321 = vpow2.f32 %v6053_v19  ;;  %4537 = vmatpush.msrb.mxu1 %v4455_v26  ;;  %v4448_v19 = vld [vmem:[#allocation3 + $0x580] sm:$0xff]  ;;  %v4449_v51 = vld [vmem:[#allocation3 + $0x588] sm:$0xff] }
 0xd1d   :  { %4478 = vmatpush.msra.mxu3 %v4448_v19  ;;  %4498 = vmatpush.msra.mxu0 %v4449_v51  ;;  %v9045_v51 = vld [vmem:[#allocation6 + $0x5f0] sm:$0xff] }
 0xd1e   :  { %6323 = vrcp.f32 %v4111_v27  ;;  %v4139_v47 = vand.u32 2147483648, %v4111_v27  ;;  %vm4133_vm15 = vweird.f32 %v4111_v27  ;;  %v4137_v37 = vand.u32 2147483647, %v4111_v27 }
 0xd20   :  { %v4140_v41 = vor.u32 1.1754944e-38, %v4139_v47  ;;  %vm4138_vm2 = vcmp.eq.f32.partialorder %v4137_v37, 8.507059e+37  ;;  %v4434_v47 = vld [vmem:[#allocation3 + $0x510] sm:$0xff]  ;;  %v4428_v37 = vld [vmem:[#allocation3 + $0x4e0] sm:$0xff] }
 0xd21   :  { %v6320_v39 = vpop.eup %6319 }
 0xd22   :  { %v6322_v3 = vpop.eup %6321  ;;  %v4110_v42 = vadd.f32 1.0, %v6320_v39  ;;  %v4451_v39 = vld [vmem:[#allocation3 + $0x598] sm:$0xff] }
 0xd23   :  { %v4112_v22 = vadd.f32 1.0, %v6322_v3  ;;  %4538 = vmatpush.msrb.mxu1 %v4451_v39  ;;  %v4444_v3 = vld [vmem:[#allocation3 + $0x560] sm:$0xff] }
 0xd24   :  { %v6324_v29 = vpop.eup %6323  ;;  %6325 = vrcp.f32 %v4110_v42  ;;  %v4124_v5 = vand.u32 2147483648, %v4110_v42  ;;  %v4122_v54 = vand.u32 2147483647, %v4110_v42  ;;  %vm4118_vm3 = vweird.f32 %v4110_v42  ;;  %4479 = vmatpush.msra.mxu3 %v4444_v3  ;;  %v9051_v3 = vld [vmem:[#allocation6 + $0x5c0] sm:$0xff] }
 0xd25   :  { %v4129_v31 = vmul.f32 %v6324_v29, %v4111_v27  ;;  %6327 = vrcp.f32 %v4112_v22  ;;  %vm4134_vm14 = vweird.f32 %v6324_v29  ;;  %v4154_v25 = vand.u32 2147483648, %v4112_v22  ;;  %v4450_v27 = vld [vmem:[#allocation3 + $0x590] sm:$0xff] }
 0xd26   :  { %vm4135_vm0 = vmor %vm4133_vm15, %vm4134_vm14  ;;  %6329 = vtanh.f32 %v4100_v34  ;;  %v4125_v7 = vor.u32 1.1754944e-38, %v4124_v5  ;;  %vm4123_vm5 = vcmp.eq.f32.partialorder %v4122_v54, 8.507059e+37  ;;  %vm4148_vm7 = vweird.f32 %v4112_v22  ;;  %4518 = vmatpush.msra.mxu2 %v4450_v27  ;;  %v4438_v34 = vld [vmem:[#allocation3 + $0x530] sm:$0xff]  ;;  %v4425_v54 = vld [vmem:[#allocation3 + $0x4c8] sm:$0xff] }
 0xd27   :  { %v4130_v46 = vsub.f32 1.0, %v4129_v31  ;;  %v4152_v52 = vand.u32 2147483647, %v4112_v22  ;;  %v4155_v35 = vor.u32 1.1754944e-38, %v4154_v25  ;;  %v4441_v31 = vld [vmem:[#allocation3 + $0x548] sm:$0xff]  ;;  %v4430_v5 = vld [vmem:[#allocation3 + $0x4f0] sm:$0xff] }
 0xd28   :  { %4519 = vmatpush.msra.mxu2 %v4446_v30  ;;  %v9047_v27 = vld [vmem:[#allocation6 + $0x5f8] sm:$0xff]  ;;  %v9055_v30 = vld [vmem:[#allocation6 + $0x5d0] sm:$0xff] }
 0xd29   :  { %v4131_v57 = vmul.f32 %v6324_v29, %v4130_v46  ;;  %vm4153_vm9 = vcmp.eq.f32.partialorder %v4152_v52, 8.507059e+37  ;;  %v4443_v46 = vld [vmem:[#allocation3 + $0x558] sm:$0xff] }
 0xd2a   :  { %v6326_v59 = vpop.eup %6325  ;;  %4520 = vmatpush.msra.mxu2 %v4442_v38  ;;  %v4415_v52 = vld [vmem:[#allocation3 + $0x478] sm:$0xff]  ;;  %v9065_v38 = vld [vmem:[#allocation6 + $0x5a0] sm:$0xff] }
 0xd2b   :  { %v6328_v1 = vpop.eup %6327  ;;  %v4132_v11 = vadd.f32 %v6324_v29, %v4131_v57  ;;  %v4114_v12 = vmul.f32 %v6326_v59, %v4110_v42  ;;  %vm4119_vm1 = vweird.f32 %v6326_v59  ;;  %v4445_v42 = vld [vmem:[#allocation3 + $0x568] sm:$0xff]  ;;  %v4436_v57 = vld [vmem:[#allocation3 + $0x520] sm:$0xff] }
 0xd2c   :  { %v4144_v16 = vmul.f32 %v6328_v1, %v4112_v22  ;;  %vm4120_vm4 = vmor %vm4118_vm3, %vm4119_vm1  ;;  %v6330_v40 = vpop.eup %6329  ;;  %vm4149_vm6 = vweird.f32 %v6328_v1  ;;  %4499 = vmatpush.msra.mxu0 %v4445_v42  ;;  %v4447_v22 = vld [vmem:[#allocation3 + $0x578] sm:$0xff]  ;;  %4521 = vmatpush.msra.mxu2 %v4438_v34  ;;  %v9053_v42 = vld [vmem:[#allocation6 + $0x5c8] sm:$0xff] }
 0xd2d   :  { %v4115_v62 = vsub.f32 1.0, %v4114_v12  ;;  %v4136_v58 = vsel %vm4135_vm0, %v6324_v29, %v4132_v11  ;;  %vm4150_vm8 = vmor %vm4148_vm7, %vm4149_vm6  ;;  %4539 = vmatpush.msrb.mxu1 %v4447_v22  ;;  %v4440_v29 = vld [vmem:[#allocation3 + $0x540] sm:$0xff]  ;;  %v4433_v12 = vld [vmem:[#allocation3 + $0x508] sm:$0xff] }
 0xd2e   :  { %v4145_v15 = vsub.f32 1.0, %v4144_v16  ;;  %v4141_v48 = vsel %vm4138_vm2, %v4140_v41, %v4136_v58  ;;  %4480 = vmatpush.msra.mxu3 %v4440_v29  ;;  %4500 = vmatpush.msra.mxu0 %v4441_v31  ;;  %v4432_v11 = vld [vmem:[#allocation3 + $0x500] sm:$0xff]  ;;  %v4435_v16 = vld [vmem:[#allocation3 + $0x518] sm:$0xff]  ;;  %v4426_v41 = vld [vmem:[#allocation3 + $0x4d0] sm:$0xff] }
 0xd2f   :  { %v4116_v32 = vmul.f32 %v6326_v59, %v4115_v62  ;;  %v4162_v4 = vmul.f32 %v4160_v24, %v4141_v48  ;;  %4540 = vmatpush.msrb.mxu1 %v4443_v46  ;;  %4522 = vmatpush.msra.mxu2 %v4434_v47  ;;  %v4429_v62 = vld [vmem:[#allocation3 + $0x4e8] sm:$0xff]  ;;  %v4431_v58 = vld [vmem:[#allocation3 + $0x4f8] sm:$0xff] }
 0xd30   :  { %v4146_v55 = vmul.f32 %v6328_v1, %v4145_v15  ;;  %4481 = vmatpush.msra.mxu3 %v4436_v57  ;;  %v4427_v15 = vld [vmem:[#allocation3 + $0x4d8] sm:$0xff]  ;;  %v4421_v48 = vld [vmem:[#allocation3 + $0x4a8] sm:$0xff]  ;;  %v9069_v57 = vld [vmem:[#allocation6 + $0x5b0] sm:$0xff] }
 0xd31   :  { %v4117_v14 = vadd.f32 %v6326_v59, %v4116_v32  ;;  %4523 = vmatpush.msra.mxu2 %v4430_v5  ;;  %v4424_v32 = vld [vmem:[#allocation3 + $0x4c0] sm:$0xff]  ;;  %v4423_v24 = vld [vmem:[#allocation3 + $0x4b8] sm:$0xff]  ;;  %v9067_v46 = vld [vmem:[#allocation6 + $0x5a8] sm:$0xff] }
 0xd32   :  { %v4147_v61 = vadd.f32 %v6328_v1, %v4146_v55  ;;  %4482 = vmatpush.msra.mxu3 %v4432_v11  ;;  %v4419_v55 = vld [vmem:[#allocation3 + $0x498] sm:$0xff]  ;;  %v9081_v11 = vld [vmem:[#allocation6 + $0x590] sm:$0xff] }
 0xd33   :  { %v4121_v17 = vsel %vm4120_vm4, %v6326_v59, %v4117_v14  ;;  %v4437_v59 = vld [vmem:[#allocation3 + $0x528] sm:$0xff]  ;;  %4524 = vmatpush.msra.mxu2 %v4426_v41  ;;  %v4420_v14 = vld [vmem:[#allocation3 + $0x4a0] sm:$0xff]  ;;  %v9060_v29 = vld [vmem:[#allocation6 + $0x5d8] sm:$0xff] }
 0xd34   :  { %v4126_v36 = vsel %vm4123_vm5, %v4125_v7, %v4121_v17  ;;  %v4151_v43 = vsel %vm4150_vm8, %v6328_v1, %v4147_v61  ;;  %4501 = vmatpush.msra.mxu0 %v4437_v59  ;;  %v4439_v1 = vld [vmem:[#allocation3 + $0x538] sm:$0xff]  ;;  %4483 = vmatpush.msra.mxu3 %v4428_v37  ;;  %v4422_v7 = vld [vmem:[#allocation3 + $0x4b0] sm:$0xff]  ;;  %v4416_v17 = vld [vmem:[#allocation3 + $0x480] sm:$0xff] }
 0xd35   :  { %v4163_v44 = vmul.f32 %v6330_v40, %v4126_v36  ;;  %v4156_v10 = vsel %vm4153_vm9, %v4155_v35, %v4151_v43  ;;  %4541 = vmatpush.msrb.mxu1 %v4439_v1  ;;  %4525 = vmatpush.msra.mxu2 %v4422_v7  ;;  %v4417_v40 = vld [vmem:[#allocation3 + $0x488] sm:$0xff]  ;;  %v4418_v36 = vld [vmem:[#allocation3 + $0x490] sm:$0xff]  ;;  %v4408_v35 = vld [vmem:[#allocation3 + $0x440] sm:$0xff] }
 0xd36   :  { %4502 = vmatpush.msra.mxu0 %v4433_v12  ;;  %4484 = vmatpush.msra.mxu3 %v4424_v32  ;;  %v4414_v61 = vld [vmem:[#allocation3 + $0x470] sm:$0xff]  ;;  %v9079_v1 = vld [vmem:[#allocation6 + $0x588] sm:$0xff]  ;;  %v9085_v47 = vld [vmem:[#allocation6 + $0x598] sm:$0xff] }
 0xd37   :  { %v9037_v0 = vadd.f32 %v4163_v44, %v4162_v4  ;;  %4542 = vmatpush.msrb.mxu1 %v4435_v16  ;;  %4526 = vmatpush.msra.mxu2 %v4418_v36  ;;  %v4412_v4 = vld [vmem:[#allocation3 + $0x460] sm:$0xff]  ;;  %v4413_v44 = vld [vmem:[#allocation3 + $0x468] sm:$0xff]  ;;  %v9095_v5 = vld [vmem:[#allocation6 + $0x570] sm:$0xff] }
 0xd38   :  { %4503 = vmatpush.msra.mxu0 %v4429_v62  ;;  %4485 = vmatpush.msra.mxu3 %v4420_v14  ;;  %v9091_v37 = vld [vmem:[#allocation6 + $0x560] sm:$0xff]  ;;  %v9093_v62 = vld [vmem:[#allocation6 + $0x568] sm:$0xff]  ;;  %v9108_v41 = vld [vmem:[#allocation6 + $0x550] sm:$0xff] }
 0xd39   :  { %6331 = vtanh.f32 %v9037_v0  ;;  %4543 = vmatpush.msrb.mxu1 %v4431_v58  ;;  %4527 = vmatpush.msra.mxu2 %v4414_v61  ;;  %v9099_v58 = vld [vmem:[#allocation6 + $0x578] sm:$0xff]  ;;  %v9104_v32 = vld [vmem:[#allocation6 + $0x540] sm:$0xff]  ;;  %v9120_v7 = vld [vmem:[#allocation6 + $0x530] sm:$0xff] }
 0xd3a   :  { %4504 = vmatpush.msra.mxu0 %v4425_v54  ;;  %4486 = vmatpush.msra.mxu3 %v4416_v17  ;;  %v9106_v54 = vld [vmem:[#allocation6 + $0x548] sm:$0xff]  ;;  %v9116_v14 = vld [vmem:[#allocation6 + $0x520] sm:$0xff]  ;;  %v9124_v17 = vld [vmem:[#allocation6 + $0x538] sm:$0xff] }
 0xd3b   :  { %4544 = vmatpush.msrb.mxu1 %v4427_v15  ;;  %v9112_v15 = vld [vmem:[#allocation6 + $0x558] sm:$0xff] }
 0xd3c   :  { %4505 = vmatpush.msra.mxu0 %v4421_v48  ;;  %4487 = vmatpush.msra.mxu3 %v4412_v4  ;;  %v9118_v48 = vld [vmem:[#allocation6 + $0x528] sm:$0xff] }
 0xd3d   :  { %4545 = vmatpush.msrb.mxu1 %v4423_v24  ;;  %v9132_v4 = vld [vmem:[#allocation6 + $0x508] sm:$0xff] }
 0xd3e   :  { %4506 = vmatpush.msra.mxu0 %v4417_v40  ;;  %4488 = vmatpush.msra.mxu3 %v4408_v35  ;;  %v9144_v35 = vld [vmem:[#allocation6 + $0x4e8] sm:$0xff] }
 0xd3f   :  { %v6332_v49 = vpop.eup %6331  ;;  %4546 = vmatpush.msrb.mxu1 %v4419_v55  ;;  %v9130_v55 = vld [vmem:[#allocation6 + $0x500] sm:$0xff] }
 0xd40   :  { %v4166_v56 = vmul.f32 %v6332_v49, %v4156_v10  ;;  %4507 = vmatpush.msra.mxu0 %v4413_v44  ;;  %v4409_v49 = vld [vmem:[#allocation3 + $0x448] sm:$0xff]  ;;  %v4410_v10 = vld [vmem:[#allocation3 + $0x450] sm:$0xff]  ;;  %4489 = vmatpush.msra.mxu3 %v4404_v13  ;;  %v9160_v13 = vld [vmem:[#allocation6 + $0x4c0] sm:$0xff] }
 0xd41   :  { %4547 = vmatpush.msrb.mxu1 %v4415_v52  ;;  %4528 = vmatpush.msra.mxu2 %v4410_v10  ;;  %v9134_v44 = vld [vmem:[#allocation6 + $0x510] sm:$0xff]  ;;  %v9140_v52 = vld [vmem:[#allocation6 + $0x518] sm:$0xff] }
 0xd42   :  { %4167 = vst [vmem:[#allocation2] sm:$0x40] %v4166_v56  ;;  %v4233_v50 = vrot.slane %v4166_v56, 6  ;;  %4508 = vmatpush.msra.mxu0 %v4409_v49  ;;  %v4411_v56 = vld [vmem:[#allocation3 + $0x458] sm:$0xff]  ;;  %4490 = vmatpush.msra.mxu3 %v4400_v60  ;;  %v9151_v10 = vld [vmem:[#allocation6 + $0x4f0] sm:$0xff] }
 0xd43   :  { %4548 = vmatpush.msrb.mxu1 %v4411_v56  ;;  %4529 = vmatpush.msra.mxu2 %v4406_v23  ;;  %v9153_v56 = vld [vmem:[#allocation6 + $0x4f8] sm:$0xff] }
 0xd44   :  { %4251 = vmatmul.f32.vlgmr.msrb.gmra.mxu3 %v4233_v50  ;;  %4271 = vmatmul.f32.vlgmr.msrb.gmra.mxu0 %v4233_v50 }
 0xd45   :  { %4291 = vmatmul.f32.vlgmr.msrb.gmra.mxu2 %v4233_v50  ;;  %4311 = vmatmul.f32.vlgmr.msra.gmra.mxu1 %v4233_v50 }
 0xd46   :  { %4509 = vmatpush.msra.mxu0 %v4405_v8  ;;  %4549 = vmatpush.msrb.mxu1 %v4407_v45  ;;  %v9162_v8 = vld [vmem:[#allocation6 + $0x4c8] sm:$0xff]  ;;  %v9166_v45 = vld [vmem:[#allocation6 + $0x4d0] sm:$0xff] }
 0xd47   :  { %4530 = vmatpush.msra.mxu2 %v4402_v20  ;;  %4620 = vmatpush.msrb.mxu3 %v9041_v33  ;;  %10486 = vst [vmem:[#allocation12_spill] sm:$0xff] %v9166_v45  ;;  %v9174_v20 = vld [vmem:[#allocation6 + $0x4a8] sm:$0xff] }
 0xd48   :  { %4510 = vmatpush.msra.mxu0 %v4401_v9  ;;  %4550 = vmatpush.msrb.mxu1 %v4403_v28  ;;  %v9172_v9 = vld [vmem:[#allocation6 + $0x4a0] sm:$0xff]  ;;  %10489 = vst [vmem:[#allocation16_spill] sm:$0xff] %v9174_v20  ;;  %v9180_v28 = vld [vmem:[#allocation6 + $0x4b8] sm:$0xff] }
 0xd49   :  { %4660 = vmatpush.msrb.mxu2 %v9045_v51  ;;  %4621 = vmatpush.msrb.mxu3 %v9051_v3  ;;  %10488 = vst [vmem:[#allocation14_spill] sm:$0xff] %v9172_v9 }
 0xd4a   :  { %4680 = vmatpush.msra.mxu1 %v9047_v27  ;;  %10491 = vst [vmem:[#allocation18_spill] sm:$0xff] %v9180_v28 }
 0xd4b   :  { %4661 = vmatpush.msrb.mxu2 %v9055_v30  ;;  %4622 = vmatpush.msrb.mxu3 %v9065_v38 }
 0xd4c   :  { %4681 = vmatpush.msra.mxu1 %v9060_v29 }
 0xd4d   :  { %4662 = vmatpush.msrb.mxu2 %v9069_v57 }
 0xd4f   :  { %4663 = vmatpush.msrb.mxu2 %v9081_v11 }
 0xd51   :  { %4664 = vmatpush.msrb.mxu2 %v9095_v5 }
 0xd53   :  { %4665 = vmatpush.msrb.mxu2 %v9108_v41 }
 0xd55   :  { %4666 = vmatpush.msrb.mxu2 %v9120_v7 }
 0xd57   :  { %4667 = vmatpush.msrb.mxu2 %v9134_v44 }
 0xd59   :  { %4668 = vmatpush.msrb.mxu2 %v9151_v10 }
 0xd5b   :  { %4669 = vmatpush.msrb.mxu2 %v9166_v45 }
 0xdc1   :  { %v4272_v25 = vpop.f32.mrf.mxu0 }
 0xdc2   :  { %v4320_v43 = vrot.slane %v4272_v25, 1  ;;  %v4312_v61 = vpop.f32.mrf.mxu1 }
 0xdc3   :  { %v4322_v23 = vrot.slane %v4312_v61, 1  ;;  %v9208_v61 = vld [vmem:[#allocation6 + $0x468] sm:$0xff] }
 0xdc4   :  { %v4328_v50 = vadd.f32 %v4320_v43, %v10483_v18  ;;  %v9043_v18 = vld [vmem:[#allocation6 + $0x5e8] sm:$0xff]  ;;  %v9142_v43 = vld [vmem:[#allocation6 + $0x4e0] sm:$0xff]  ;;  %10497 = vst [vmem:[#allocation15_spill] sm:$0xff] %v9208_v61 }
 0xdc5   :  { %4640 = vmatpush.msrb.mxu0 %v9043_v18 }
 0xdc6   :  { %v6055_v6 = vmul.f32 -1.442695, %v4328_v50 }
 0xdc7   :  { %v4252_v63 = vpop.f32.mrf.mxu3  ;;  %4641 = vmatpush.msrb.mxu0 %v9053_v42 }
 0xdc8   :  { %6333 = vpow2.f32 %v6055_v6  ;;  %v4319_v26 = vrot.slane %v4252_v63, 1  ;;  %v4292_v19 = vpop.f32.mrf.mxu2  ;;  %v9168_v6 = vld [vmem:[#allocation6 + $0x4d8] sm:$0xff]  ;;  %v9178_v63 = vld [vmem:[#allocation6 + $0x4b0] sm:$0xff] }
 0xdc9   :  { %v4321_v39 = vrot.slane %v4292_v19, 1  ;;  %4642 = vmatpush.msrb.mxu0 %v9067_v46  ;;  %10487 = vst [vmem:[#allocation13_spill] sm:$0xff] %v9168_v6  ;;  %v9185_v19 = vld [vmem:[#allocation6 + $0x480] sm:$0xff]  ;;  %4670 = vmatpush.msrb.mxu2 %v9178_v63 }
 0xdca   :  { %v4327_v22 = vadd.f32 %v4319_v26, %v10484_v53  ;;  %v9073_v53 = vld [vmem:[#allocation6 + $0x5b8] sm:$0xff]  ;;  %10490 = vst [vmem:[#allocation17_spill] sm:$0xff] %v9178_v63 }
 0xdcb   :  { %v4329_v31 = vadd.f32 %v4321_v39, %v10485_v2  ;;  %v9077_v2 = vld [vmem:[#allocation6 + $0x580] sm:$0xff]  ;;  %4682 = vmatpush.msra.mxu1 %v9073_v53  ;;  %4643 = vmatpush.msrb.mxu0 %v9079_v1  ;;  %10492 = vst [vmem:[#allocation19_spill] sm:$0xff] %v9185_v19  ;;  %v9187_v39 = vld [vmem:[#allocation6 + $0x488] sm:$0xff] }
 0xdcc   :  { %v6054_v59 = vmul.f32 -1.442695, %v4327_v22  ;;  %4623 = vmatpush.msrb.mxu3 %v9077_v2  ;;  %10493 = vst [vmem:[#allocation34_spill] sm:$0xff] %v9187_v39 }
 0xdcd   :  { %v6056_v34 = vmul.f32 -1.442695, %v4329_v31  ;;  %4683 = vmatpush.msra.mxu1 %v9085_v47  ;;  %4644 = vmatpush.msrb.mxu0 %v9093_v62  ;;  %v4330_v31 = vadd.f32 %v4322_v23, %v10456_v21  ;;  %v9206_v21 = vld [vmem:[#allocation6 + $0x460] sm:$0xff] }
 0xdce   :  { %v6334_v12 = vpop.eup %6333  ;;  %6335 = vpow2.f32 %v6054_v59  ;;  %4624 = vmatpush.msrb.mxu3 %v9091_v37  ;;  %v9194_v59 = vld [vmem:[#allocation6 + $0x490] sm:$0xff]  ;;  %10496 = vst [vmem:[#allocation22_spill] sm:$0xff] %v9206_v21 }
 0xdcf   :  { %v9087_v16 = vadd.f32 1.0, %v6334_v12  ;;  %6337 = vpow2.f32 %v6056_v34  ;;  %4684 = vmatpush.msra.mxu1 %v9099_v58  ;;  %4645 = vmatpush.msrb.mxu0 %v9106_v54  ;;  %10494 = vst [vmem:[#allocation20_spill] sm:$0xff] %v9194_v59  ;;  %v9196_v34 = vld [vmem:[#allocation6 + $0x498] sm:$0xff] }
 0xdd0   :  { %4625 = vmatpush.msrb.mxu3 %v9104_v32  ;;  %10495 = vst [vmem:[#allocation21_spill] sm:$0xff] %v9196_v34  ;;  %4671 = vmatpush.msrb.mxu2 %v9194_v59 }
 0xdd1   :  { %6339 = vrcp.f32 %v9087_v16  ;;  %4685 = vmatpush.msra.mxu1 %v9112_v15  ;;  %4646 = vmatpush.msrb.mxu0 %v9118_v48  ;;  %vm4363_vm11 = vweird.f32 %v9087_v16 }
 0xdd2   :  { %4626 = vmatpush.msrb.mxu3 %v9116_v14 }
 0xdd3   :  { %4686 = vmatpush.msra.mxu1 %v9124_v17  ;;  %4647 = vmatpush.msrb.mxu0 %v9132_v4 }
 0xdd4   :  { %v6336_v24 = vpop.eup %6335  ;;  %4627 = vmatpush.msrb.mxu3 %v9130_v55 }
 0xdd5   :  { %v6338_v40 = vpop.eup %6337  ;;  %v9126_v36 = vadd.f32 1.0, %v6336_v24  ;;  %4687 = vmatpush.msra.mxu1 %v9140_v52  ;;  %4648 = vmatpush.msrb.mxu0 %v9144_v35 }
 0xdd6   :  { %v9136_v25 = vadd.f32 1.0, %v6338_v40  ;;  %4628 = vmatpush.msrb.mxu3 %v9142_v43 }
 0xdd7   :  { %v9146_v49 = vpop.eup %6339  ;;  %6341 = vrcp.f32 %v9126_v36  ;;  %4688 = vmatpush.msra.mxu1 %v9153_v56  ;;  %4649 = vmatpush.msrb.mxu0 %v9162_v8  ;;  %vm4348_vm15 = vweird.f32 %v9126_v36 }
 0xdd8   :  { %v4359_v50 = vmul.f32 %v9146_v49, %v9087_v16  ;;  %6343 = vrcp.f32 %v9136_v25  ;;  %4629 = vmatpush.msrb.mxu3 %v9160_v13  ;;  %vm4364_vm10 = vweird.f32 %v9146_v49  ;;  %vm4378_vm3 = vweird.f32 %v9136_v25 }
 0xdd9   :  { %4689 = vmatpush.msra.mxu1 %v9168_v6  ;;  %4650 = vmatpush.msrb.mxu0 %v9174_v20  ;;  %v9223_v20 = vld [vmem:[#allocation6 + $0x440] sm:$0xff]  ;;  %vm9229_vm12 = vmor %vm4363_vm11, %vm4364_vm10  ;;  %6345 = vtanh.f32 %v4330_v31  ;;  %v4352_v31 = vand.u32 2147483647, %v9126_v36 }
 0xdda   :  { %v4360_v60 = vsub.f32 1.0, %v4359_v50  ;;  %4630 = vmatpush.msrb.mxu3 %v9172_v9  ;;  %v4369_v50 = vand.u32 2147483648, %v9087_v16  ;;  %10500 = vst [vmem:[#allocation25_spill] sm:$0xff] %v9223_v20  ;;  %v9225_v9 = vld [vmem:[#allocation6 + $0x448] sm:$0xff] }
 0xddb   :  { %4690 = vmatpush.msra.mxu1 %v9180_v28  ;;  %4651 = vmatpush.msrb.mxu0 %v9187_v39  ;;  %v4367_v28 = vand.u32 2147483647, %v9087_v16  ;;  %10501 = vst [vmem:[#allocation26_spill] sm:$0xff] %v9225_v9  ;;  %v9236_v16 = vld [vmem:[#allocation6 + $0x450] sm:$0xff]  ;;  %vm4353_vm1 = vcmp.eq.f32.partialorder %v4352_v31, 8.507059e+37 }
 0xddc   :  { %v4361_v26 = vmul.f32 %v9146_v49, %v4360_v60  ;;  %4631 = vmatpush.msrb.mxu3 %v9185_v19  ;;  %v9215_v60 = vld [vmem:[#allocation6 + $0x470] sm:$0xff]  ;;  %v4354_v19 = vand.u32 2147483648, %v9126_v36  ;;  %10504 = vst [vmem:[#allocation27_spill] sm:$0xff] %v9236_v16  ;;  %v4370_v6 = vor.u32 1.1754944e-38, %v4369_v50  ;;  %v9264_v50 = vld [vmem:[#allocation6 + $0x408] sm:$0xff] }
 0xddd   :  { %v9189_v22 = vpop.eup %6341  ;;  %10498 = vst [vmem:[#allocation23_spill] sm:$0xff] %v9215_v60  ;;  %4691 = vmatpush.msra.mxu1 %v9196_v34  ;;  %4652 = vmatpush.msrb.mxu0 %v9208_v61  ;;  %v9250_v61 = vld [vmem:[#allocation6 + $0x428] sm:$0xff]  ;;  %vm4368_vm14 = vcmp.eq.f32.partialorder %v4367_v28, 8.507059e+37  ;;  %v9270_v28 = vld [vmem:[#allocation6 + $0x410] sm:$0xff] }
 0xdde   :  { %v9198_v12 = vpop.eup %6343  ;;  %v4362_v24 = vadd.f32 %v9146_v49, %v4361_v26  ;;  %v4344_v40 = vmul.f32 %v9189_v22, %v9126_v36  ;;  %v9217_v26 = vld [vmem:[#allocation6 + $0x478] sm:$0xff]  ;;  %4632 = vmatpush.msrb.mxu3 %v9206_v21  ;;  %vm4349_vm13 = vweird.f32 %v9189_v22  ;;  %4672 = vmatpush.msrb.mxu2 %v9215_v60  ;;  %v9248_v21 = vld [vmem:[#allocation6 + $0x420] sm:$0xff]  ;;  %10507 = vst [vmem:[#allocation30_spill] sm:$0xff] %v9250_v61 }
 0xddf   :  { %v4374_v23 = vmul.f32 %v9198_v12, %v9136_v25  ;;  %10499 = vst [vmem:[#allocation24_spill] sm:$0xff] %v9217_v26  ;;  %4692 = vmatpush.msra.mxu1 %v9217_v26  ;;  %4653 = vmatpush.msrb.mxu0 %v9225_v9  ;;  %vm4350_vm0 = vmor %vm4348_vm15, %vm4349_vm13  ;;  %v4355_v9 = vor.u32 1.1754944e-38, %v4354_v19  ;;  %v9272_v36 = vld [vmem:[#allocation6 + $0x418] sm:$0xff]  ;;  %vm4379_vm2 = vweird.f32 %v9198_v12 }
 0xde0   :  { %v4345_v63 = vsub.f32 1.0, %v4344_v40  ;;  %v9238_v40 = vld [vmem:[#allocation6 + $0x458] sm:$0xff]  ;;  %v4366_v34 = vsel %vm9229_vm12, %v9146_v49, %v4362_v24  ;;  %10506 = vst [vmem:[#allocation29_spill] sm:$0xff] %v9248_v21  ;;  %4633 = vmatpush.msrb.mxu3 %v9223_v20  ;;  %v9254_v49 = vld [vmem:[#allocation6 + $0x430] sm:$0xff]  ;;  %4673 = vmatpush.msrb.mxu2 %v9236_v16  ;;  %v9262_v24 = vld [vmem:[#allocation6 + $0x400] sm:$0xff] }
 0xde1   :  { %10505 = vst [vmem:[#allocation28_spill] sm:$0xff] %v9238_v40  ;;  %v4375_v45 = vsub.f32 1.0, %v4374_v23  ;;  %4693 = vmatpush.msra.mxu1 %v9238_v40  ;;  %v4371_v23 = vsel %vm4368_vm14, %v4370_v6, %v4366_v34  ;;  %4654 = vmatpush.msrb.mxu0 %v9250_v61  ;;  %v6346_v6 = vpop.eup %6345  ;;  %vm4380_vm4 = vmor %vm4378_vm3, %vm4379_vm2 }
 0xde2   :  { %v4346_v59 = vmul.f32 %v9189_v22, %v4345_v63  ;;  %10508 = vst [vmem:[#allocation31_spill] sm:$0xff] %v9254_v49  ;;  %v9256_v63 = vld [vmem:[#allocation6 + $0x438] sm:$0xff]  ;;  %4634 = vmatpush.msrb.mxu3 %v9248_v21  ;;  %4674 = vmatpush.msrb.mxu2 %v9254_v49 }
 0xde3   :  { %10509 = vst [vmem:[#allocation32_spill] sm:$0xff] %v9256_v63  ;;  %4694 = vmatpush.msra.mxu1 %v9256_v63  ;;  %v4376_v19 = vmul.f32 %v9198_v12, %v4375_v45  ;;  %4655 = vmatpush.msrb.mxu0 %v9264_v50  ;;  %v4382_v45 = vand.u32 2147483647, %v9136_v25 }
 0xde4   :  { %v4347_v39 = vadd.f32 %v9189_v22, %v4346_v59  ;;  %10510 = vst [vmem:[#allocation33_spill] sm:$0xff] %v9262_v24  ;;  %v4390_v59 = vrot.slane %v9037_v0, 7  ;;  %4635 = vmatpush.msrb.mxu3 %v9262_v24  ;;  %4675 = vmatpush.msrb.mxu2 %v9270_v28 }
 0xde5   :  { %10511 = vst [vmem:[#allocation35_spill] sm:$0xff] %v9264_v50  ;;  %4695 = vmatpush.msra.mxu1 %v9272_v36  ;;  %vm4383_vm5 = vcmp.eq.f32.partialorder %v4382_v45, 8.507059e+37  ;;  %v10523_v45 = vld [vmem:[#allocation20_spill] sm:$0xff] }
 0xde6   :  { %10512 = vst [vmem:[#allocation36_spill] sm:$0xff] %v9270_v28  ;;  %v4351_v40 = vsel %vm4350_vm0, %v9189_v22, %v4347_v39  ;;  %v4392_v61 = vmul.f32 %v4390_v59, %v4371_v23  ;;  %v4377_v22 = vadd.f32 %v9198_v12, %v4376_v19  ;;  %v10519_v19 = vld [vmem:[#allocation17_spill] sm:$0xff] }
 0xde7   :  { %10513 = vst [vmem:[#allocation37_spill] sm:$0xff] %v9272_v36  ;;  %v4356_v34 = vsel %vm4353_vm1, %v4355_v9, %v4351_v40  ;;  %v4384_v9 = vand.u32 2147483648, %v9136_v25  ;;  %v10514_v25 = vmov 0.0  }
 0xde8   :  { %v4393_v21 = vmul.f32 %v6346_v6, %v4356_v34  ;;  %v4381_v40 = vsel %vm4380_vm4, %v9198_v12, %v4377_v22  ;;  %v10515_v12 = vld [vmem:[#allocation12_spill] sm:$0xff]  ;;  %v10517_v6 = vld [vmem:[#allocation14_spill] sm:$0xff]  ;;  %v10521_v22 = vld [vmem:[#allocation19_spill] sm:$0xff] }
 0xde9   :  { %v4385_v31 = vor.u32 1.1754944e-38, %v4384_v9  ;;  %v10518_v34 = vld [vmem:[#allocation16_spill] sm:$0xff]  ;;  %v10522_v9 = vld [vmem:[#allocation34_spill] sm:$0xff] }
 0xdea   :  { %v4394_v0 = vadd.f32 %v4393_v21, %v4392_v61  ;;  %v10516_v61 = vld [vmem:[#allocation13_spill] sm:$0xff] }
 0xdeb   :  { %v4386_v23 = vsel %vm4383_vm5, %v4385_v31, %v4381_v40  ;;  %v10524_v40 = vld [vmem:[#allocation21_spill] sm:$0xff]  ;;  %v10525_v31 = vld [vmem:[#allocation22_spill] sm:$0xff] }
 0xdec   :  { %6347 = vtanh.f32 %v4394_v0  ;;  %v10520_v0 = vld [vmem:[#allocation18_spill] sm:$0xff] }
 0xdf2   :  { %v6348_v39 = vpop.eup %6347 }
 0xdf3   :  { %v4396_v59 = vmul.f32 %v6348_v39, %v4386_v23  ;;  %v10526_v39 = vld [vmem:[#allocation15_spill] sm:$0xff]  ;;  %v10527_v23 = vld [vmem:[#allocation26_spill] sm:$0xff] }
 0xdf5   :  { %4397 = vst [vmem:[#allocation2] sm:$0x80] %v4396_v59  ;;  %v10528_v59 = vld [vmem:[#allocation28_spill] sm:$0xff] }
 0xdfc   :  { %v4398_v21 = vld [vmem:[#allocation2] sm:$0xff] }
 0xdfd   :  { %4491 = vmatmul.f32.vlgmr.msra.gmra.mxu3 %v4398_v21  ;;  %4511 = vmatmul.f32.vlgmr.msra.gmra.mxu0 %v4398_v21 }
 0xdfe   :  { %4531 = vmatmul.f32.vlgmr.msra.gmra.mxu2 %v4398_v21  ;;  %4551 = vmatmul.f32.vlgmr.msrb.gmra.mxu1 %v4398_v21  ;;  %v10529_v21 = vld [vmem:[#allocation29_spill] sm:$0xff] }
 0xdff   :  { %4767 = vmatpush.msra.mxu3 %v9041_v33  ;;  %4787 = vmatpush.msra.mxu0 %v9043_v18 }
 0xe00   :  { %4807 = vmatpush.msra.mxu2 %v9045_v51  ;;  %4827 = vmatpush.msrb.mxu1 %v9047_v27 }
 0xe01   :  { %4768 = vmatpush.msra.mxu3 %v9051_v3  ;;  %4788 = vmatpush.msra.mxu0 %v9053_v42 }
 0xe02   :  { %4808 = vmatpush.msra.mxu2 %v9055_v30  ;;  %4828 = vmatpush.msrb.mxu1 %v9060_v29 }
 0xe03   :  { %4769 = vmatpush.msra.mxu3 %v9065_v38  ;;  %4789 = vmatpush.msra.mxu0 %v9067_v46 }
 0xe04   :  { %4809 = vmatpush.msra.mxu2 %v9069_v57  ;;  %4829 = vmatpush.msrb.mxu1 %v9073_v53 }
 0xe05   :  { %4636 = vmatmul.f32.vlgmr.msrb.gmra.mxu3 %v10514_v25  ;;  %4656 = vmatmul.f32.vlgmr.msrb.gmra.mxu0 %v10514_v25 }
 0xe06   :  { %4676 = vmatmul.f32.vlgmr.msrb.gmra.mxu2 %v10514_v25  ;;  %4696 = vmatmul.f32.vlgmr.msra.gmra.mxu1 %v10514_v25  ;;  %v10530_v25 = vld [vmem:[#allocation30_spill] sm:$0xff] }
 0xe07   :  { %4770 = vmatpush.msra.mxu3 %v9077_v2  ;;  %4790 = vmatpush.msra.mxu0 %v9079_v1 }
 0xe08   :  { %4810 = vmatpush.msra.mxu2 %v9081_v11  ;;  %4830 = vmatpush.msrb.mxu1 %v9085_v47 }
 0xe09   :  { %4771 = vmatpush.msra.mxu3 %v9091_v37  ;;  %4791 = vmatpush.msra.mxu0 %v9093_v62 }
 0xe0a   :  { %4811 = vmatpush.msra.mxu2 %v9095_v5  ;;  %4831 = vmatpush.msrb.mxu1 %v9099_v58 }
 0xe0b   :  { %4772 = vmatpush.msra.mxu3 %v9104_v32  ;;  %4792 = vmatpush.msra.mxu0 %v9106_v54 }
 0xe0c   :  { %4812 = vmatpush.msra.mxu2 %v9108_v41  ;;  %4832 = vmatpush.msrb.mxu1 %v9112_v15 }
 0xe0d   :  { %4773 = vmatpush.msra.mxu3 %v9116_v14  ;;  %4793 = vmatpush.msra.mxu0 %v9118_v48 }
 0xe0e   :  { %4813 = vmatpush.msra.mxu2 %v9120_v7  ;;  %4833 = vmatpush.msrb.mxu1 %v9124_v17 }
 0xe0f   :  { %4774 = vmatpush.msra.mxu3 %v9130_v55  ;;  %4794 = vmatpush.msra.mxu0 %v9132_v4 }
 0xe10   :  { %4814 = vmatpush.msra.mxu2 %v9134_v44  ;;  %4834 = vmatpush.msrb.mxu1 %v9140_v52 }
 0xe11   :  { %4775 = vmatpush.msra.mxu3 %v9142_v43  ;;  %4795 = vmatpush.msra.mxu0 %v9144_v35 }
 0xe12   :  { %4815 = vmatpush.msra.mxu2 %v9151_v10  ;;  %4835 = vmatpush.msrb.mxu1 %v9153_v56 }
 0xe13   :  { %4776 = vmatpush.msra.mxu3 %v9160_v13  ;;  %4796 = vmatpush.msra.mxu0 %v9162_v8 }
 0xe14   :  { %4816 = vmatpush.msra.mxu2 %v10515_v12  ;;  %4836 = vmatpush.msrb.mxu1 %v10516_v61 }
 0xe15   :  { %4777 = vmatpush.msra.mxu3 %v10517_v6  ;;  %4797 = vmatpush.msra.mxu0 %v10518_v34 }
 0xe16   :  { %4817 = vmatpush.msra.mxu2 %v10519_v19  ;;  %4837 = vmatpush.msrb.mxu1 %v10520_v0 }
 0xe17   :  { %4778 = vmatpush.msra.mxu3 %v10521_v22  ;;  %4798 = vmatpush.msra.mxu0 %v10522_v9 }
 0xe18   :  { %4818 = vmatpush.msra.mxu2 %v10523_v45  ;;  %4838 = vmatpush.msrb.mxu1 %v10524_v40 }
 0xe19   :  { %4779 = vmatpush.msra.mxu3 %v10525_v31  ;;  %4799 = vmatpush.msra.mxu0 %v10526_v39 }
 0xe1a   :  { %4819 = vmatpush.msra.mxu2 %v9215_v60  ;;  %4839 = vmatpush.msrb.mxu1 %v9217_v26 }
 0xe1b   :  { %4780 = vmatpush.msra.mxu3 %v9223_v20  ;;  %4800 = vmatpush.msra.mxu0 %v10527_v23 }
 0xe1c   :  { %4820 = vmatpush.msra.mxu2 %v9236_v16  ;;  %4840 = vmatpush.msrb.mxu1 %v10528_v59 }
 0xe1d   :  { %4781 = vmatpush.msra.mxu3 %v10529_v21  ;;  %4801 = vmatpush.msra.mxu0 %v10530_v25 }
 0xe1e   :  { %4821 = vmatpush.msra.mxu2 %v9254_v49  ;;  %4841 = vmatpush.msrb.mxu1 %v9256_v63 }
 0xe1f   :  { %4782 = vmatpush.msra.mxu3 %v9262_v24  ;;  %4802 = vmatpush.msra.mxu0 %v9264_v50 }
 0xe20   :  { %4822 = vmatpush.msra.mxu2 %v9270_v28  ;;  %4842 = vmatpush.msrb.mxu1 %v9272_v36 }
 0xe21   :  { %4932 = vmatpush.msrb.mxu3 %v9041_v33  ;;  %4952 = vmatpush.msrb.mxu0 %v9043_v18 }
 0xe22   :  { %4972 = vmatpush.msrb.mxu2 %v9045_v51  ;;  %4992 = vmatpush.msra.mxu1 %v9047_v27 }
 0xe23   :  { %4933 = vmatpush.msrb.mxu3 %v9051_v3  ;;  %4953 = vmatpush.msrb.mxu0 %v9053_v42 }
 0xe24   :  { %4973 = vmatpush.msrb.mxu2 %v9055_v30  ;;  %4993 = vmatpush.msra.mxu1 %v9060_v29 }
 0xe25   :  { %4934 = vmatpush.msrb.mxu3 %v9065_v38  ;;  %4954 = vmatpush.msrb.mxu0 %v9067_v46 }
 0xe26   :  { %4974 = vmatpush.msrb.mxu2 %v9069_v57  ;;  %4994 = vmatpush.msra.mxu1 %v9073_v53 }
 0xe27   :  { %4935 = vmatpush.msrb.mxu3 %v9077_v2  ;;  %4955 = vmatpush.msrb.mxu0 %v9079_v1 }
 0xe28   :  { %4975 = vmatpush.msrb.mxu2 %v9081_v11  ;;  %4995 = vmatpush.msra.mxu1 %v9085_v47 }
 0xe29   :  { %4936 = vmatpush.msrb.mxu3 %v9091_v37  ;;  %4956 = vmatpush.msrb.mxu0 %v9093_v62 }
 0xe2a   :  { %4976 = vmatpush.msrb.mxu2 %v9095_v5  ;;  %4996 = vmatpush.msra.mxu1 %v9099_v58 }
 0xe2b   :  { %4937 = vmatpush.msrb.mxu3 %v9104_v32  ;;  %4957 = vmatpush.msrb.mxu0 %v9106_v54 }
 0xe2c   :  { %4977 = vmatpush.msrb.mxu2 %v9108_v41  ;;  %4997 = vmatpush.msra.mxu1 %v9112_v15 }
 0xe2d   :  { %4938 = vmatpush.msrb.mxu3 %v9116_v14  ;;  %4958 = vmatpush.msrb.mxu0 %v9118_v48 }
 0xe2e   :  { %4978 = vmatpush.msrb.mxu2 %v9120_v7  ;;  %4998 = vmatpush.msra.mxu1 %v9124_v17 }
 0xe2f   :  { %4939 = vmatpush.msrb.mxu3 %v9130_v55  ;;  %4959 = vmatpush.msrb.mxu0 %v9132_v4 }
 0xe30   :  { %4979 = vmatpush.msrb.mxu2 %v9134_v44  ;;  %4999 = vmatpush.msra.mxu1 %v9140_v52 }
 0xe31   :  { %4940 = vmatpush.msrb.mxu3 %v9142_v43  ;;  %4960 = vmatpush.msrb.mxu0 %v9144_v35 }
 0xe32   :  { %4980 = vmatpush.msrb.mxu2 %v9151_v10  ;;  %5000 = vmatpush.msra.mxu1 %v9153_v56 }
 0xe33   :  { %4941 = vmatpush.msrb.mxu3 %v9160_v13  ;;  %4961 = vmatpush.msrb.mxu0 %v9162_v8 }
 0xe34   :  { %4981 = vmatpush.msrb.mxu2 %v10515_v12  ;;  %5001 = vmatpush.msra.mxu1 %v10516_v61 }
 0xe35   :  { %4942 = vmatpush.msrb.mxu3 %v10517_v6  ;;  %4962 = vmatpush.msrb.mxu0 %v10518_v34 }
 0xe36   :  { %4982 = vmatpush.msrb.mxu2 %v10519_v19  ;;  %5002 = vmatpush.msra.mxu1 %v10520_v0 }
 0xe37   :  { %4943 = vmatpush.msrb.mxu3 %v10521_v22  ;;  %4963 = vmatpush.msrb.mxu0 %v10522_v9 }
 0xe38   :  { %4983 = vmatpush.msrb.mxu2 %v10523_v45  ;;  %5003 = vmatpush.msra.mxu1 %v10524_v40 }
 0xe39   :  { %4944 = vmatpush.msrb.mxu3 %v10525_v31  ;;  %4964 = vmatpush.msrb.mxu0 %v10526_v39 }
 0xe3a   :  { %4984 = vmatpush.msrb.mxu2 %v9215_v60  ;;  %5004 = vmatpush.msra.mxu1 %v9217_v26 }
 0xe3b   :  { %4945 = vmatpush.msrb.mxu3 %v9223_v20  ;;  %4965 = vmatpush.msrb.mxu0 %v10527_v23 }
 0xe3c   :  { %4985 = vmatpush.msrb.mxu2 %v9236_v16  ;;  %5005 = vmatpush.msra.mxu1 %v10528_v59  ;;  %v6057_v59 = vld [vmem:[%s10008_s11 + $0x8] sm:$0xf] }
 0xe3d   :  { %4946 = vmatpush.msrb.mxu3 %v10529_v21  ;;  %4966 = vmatpush.msrb.mxu0 %v10530_v25  ;;  %v4468_v21 = vperm.slane %v6057_v59, 1  ;;  %v4469_v26 = vperm.slane %v6057_v59, 2 }
 0xe3e   :  { %4986 = vmatpush.msrb.mxu2 %v9254_v49  ;;  %5006 = vmatpush.msra.mxu1 %v9256_v63  ;;  %v4467_v63 = vperm.slane %v6057_v59, 0 }
 0xe3f   :  { %4947 = vmatpush.msrb.mxu3 %v9262_v24  ;;  %4967 = vmatpush.msrb.mxu0 %v9264_v50 }
 0xe40   :  { %4987 = vmatpush.msrb.mxu2 %v9270_v28  ;;  %5007 = vmatpush.msra.mxu1 %v9272_v36 }
 0xe7a   :  { %v4512_v16 = vpop.f32.mrf.mxu0 }
 0xe7b   :  { %v9424_v25 = vadd.f32 %v4512_v16, %v4468_v21 }
 0xe7d   :  { %10531 = vst [vmem:[#allocation38_spill] sm:$0xff] %v9424_v25 }
 0xe80   :  { %v4492_v23 = vpop.f32.mrf.mxu3 }
 0xe81   :  { %v4532_v49 = vpop.f32.mrf.mxu2  ;;  %v9427_v60 = vadd.f32 %v4492_v23, %v4467_v63 }
 0xe82   :  { %v4657_v20 = vpop.f32.mrf.mxu0  ;;  %v9429_v36 = vadd.f32 %v4532_v49, %v4469_v26  ;;  %v4470_v49 = vperm.slane %v6057_v59, 3 }
 0xe83   :  { %v4701_v24 = vadd.f32 %v4657_v20, %v9424_v25  ;;  %10532 = vst [vmem:[#allocation39_spill] sm:$0xff] %v9427_v60  ;;  %v4552_v20 = vpop.f32.mrf.mxu1 }
 0xe84   :  { %10533 = vst [vmem:[#allocation40_spill] sm:$0xff] %v9429_v36 }
 0xe85   :  { %v6059_v50 = vmul.f32 -1.442695, %v4701_v24 }
 0xe87   :  { %6349 = vpow2.f32 %v6059_v50 }
 0xe88   :  { %v4637_v28 = vpop.f32.mrf.mxu3 }
 0xe89   :  { %v4700_v39 = vadd.f32 %v4637_v28, %v9427_v60  ;;  %v4677_v31 = vpop.f32.mrf.mxu2 }
 0xe8a   :  { %v4702_v40 = vadd.f32 %v4677_v31, %v9429_v36  ;;  %v9433_v31 = vadd.f32 %v4552_v20, %v4470_v49 }
 0xe8b   :  { %v6058_v16 = vmul.f32 -1.442695, %v4700_v39  ;;  %v4697_v60 = vpop.f32.mrf.mxu1 }
 0xe8c   :  { %v6060_v21 = vmul.f32 -1.442695, %v4702_v40  ;;  %10534 = vst [vmem:[#allocation41_spill] sm:$0xff] %v9433_v31 }
 0xe8d   :  { %v6350_v45 = vpop.eup %6349  ;;  %6351 = vpow2.f32 %v6058_v16 }
 0xe8e   :  { %v4714_v9 = vadd.f32 1.0, %v6350_v45  ;;  %6353 = vpow2.f32 %v6060_v21  ;;  %v4703_v45 = vadd.f32 %v4697_v60, %v9433_v31 }
 0xe90   :  { %6355 = vrcp.f32 %v4714_v9  ;;  %v4742_v22 = vand.u32 2147483648, %v4714_v9  ;;  %vm4736_vm7 = vweird.f32 %v4714_v9 }
 0xe92   :  { %v4743_v49 = vor.u32 1.1754944e-38, %v4742_v22 }
 0xe93   :  { %v6352_v24 = vpop.eup %6351 }
 0xe94   :  { %v6354_v63 = vpop.eup %6353  ;;  %v4713_v23 = vadd.f32 1.0, %v6352_v24 }
 0xe95   :  { %v4715_v50 = vadd.f32 1.0, %v6354_v63  ;;  %v4740_v63 = vand.u32 2147483647, %v4714_v9 }
 0xe96   :  { %v6356_v26 = vpop.eup %6355  ;;  %6357 = vrcp.f32 %v4713_v23  ;;  %v4727_v0 = vand.u32 2147483648, %v4713_v23  ;;  %v4725_v20 = vand.u32 2147483647, %v4713_v23  ;;  %vm4721_vm11 = vweird.f32 %v4713_v23 }
 0xe97   :  { %v4732_v25 = vmul.f32 %v6356_v26, %v4714_v9  ;;  %6359 = vrcp.f32 %v4715_v50  ;;  %vm4737_vm6 = vweird.f32 %v6356_v26  ;;  %vm4741_vm10 = vcmp.eq.f32.partialorder %v4740_v63, 8.507059e+37 }
 0xe98   :  { %vm4738_vm8 = vmor %vm4736_vm7, %vm4737_vm6  ;;  %6361 = vtanh.f32 %v4703_v45  ;;  %v4728_v31 = vor.u32 1.1754944e-38, %v4727_v0  ;;  %vm4726_vm13 = vcmp.eq.f32.partialorder %v4725_v20, 8.507059e+37  ;;  %vm4751_vm15 = vweird.f32 %v4715_v50 }
 0xe99   :  { %v4733_v28 = vsub.f32 1.0, %v4732_v25 }
 0xe9b   :  { %v4734_v40 = vmul.f32 %v6356_v26, %v4733_v28 }
 0xe9c   :  { %v6358_v39 = vpop.eup %6357 }
 0xe9d   :  { %v6360_v16 = vpop.eup %6359  ;;  %v4735_v21 = vadd.f32 %v6356_v26, %v4734_v40  ;;  %v4717_v36 = vmul.f32 %v6358_v39, %v4713_v23  ;;  %vm4722_vm9 = vweird.f32 %v6358_v39 }
 0xe9e   :  { %v4747_v24 = vmul.f32 %v6360_v16, %v4715_v50  ;;  %vm4723_vm12 = vmor %vm4721_vm11, %vm4722_vm9  ;;  %v6362_v6 = vpop.eup %6361  ;;  %vm4752_vm14 = vweird.f32 %v6360_v16 }
 0xe9f   :  { %v4718_v59 = vsub.f32 1.0, %v4717_v36  ;;  %v4739_v25 = vsel %vm4738_vm8, %v6356_v26, %v4735_v21  ;;  %v4757_v21 = vand.u32 2147483648, %v4715_v50  ;;  %vm4753_vm0 = vmor %vm4751_vm15, %vm4752_vm14 }
 0xea0   :  { %v4748_v28 = vsub.f32 1.0, %v4747_v24  ;;  %v4744_v40 = vsel %vm4741_vm10, %v4743_v49, %v4739_v25 }
 0xea1   :  { %v4719_v19 = vmul.f32 %v6358_v39, %v4718_v59  ;;  %v4762_v61 = vmul.f32 0.0, %v4744_v40  ;;  %v4758_v23 = vor.u32 1.1754944e-38, %v4757_v21 }
 0xea2   :  { %v4749_v36 = vmul.f32 %v6360_v16, %v4748_v28 }
 0xea3   :  { %v4720_v60 = vadd.f32 %v6358_v39, %v4719_v19  ;;  %v4755_v19 = vand.u32 2147483647, %v4715_v50 }
 0xea4   :  { %v4750_v26 = vadd.f32 %v6360_v16, %v4749_v36 }
 0xea5   :  { %v4724_v34 = vsel %vm4723_vm12, %v6358_v39, %v4720_v60  ;;  %vm4756_vm1 = vcmp.eq.f32.partialorder %v4755_v19, 8.507059e+37 }
 0xea6   :  { %v4729_v9 = vsel %vm4726_vm13, %v4728_v31, %v4724_v34  ;;  %v4754_v22 = vsel %vm4753_vm0, %v6360_v16, %v4750_v26 }
 0xea7   :  { %v4763_v45 = vmul.f32 %v6362_v6, %v4729_v9  ;;  %v4759_v39 = vsel %vm4756_vm1, %v4758_v23, %v4754_v22 }
 0xea9   :  { %v9436_v12 = vadd.f32 %v4763_v45, %v4762_v61  ;;  %v10564_v45 = vld [vmem:[#allocation41_spill] sm:$0xff] }
 0xeab   :  { %6363 = vtanh.f32 %v9436_v12 }
 0xeb1   :  { %v6364_v0 = vpop.eup %6363 }
 0xeb2   :  { %v4766_v24 = vmul.f32 %v6364_v0, %v4759_v39 }
 0xeb4   :  { %4783 = vmatmul.f32.vlgmr.msra.gmra.mxu3 %v4766_v24  ;;  %4803 = vmatmul.f32.vlgmr.msra.gmra.mxu0 %v4766_v24 }
 0xeb5   :  { %4823 = vmatmul.f32.vlgmr.msra.gmra.mxu2 %v4766_v24  ;;  %4843 = vmatmul.f32.vlgmr.msrb.gmra.mxu1 %v4766_v24 }
 0xeb6   :  { %5097 = vmatpush.msra.mxu3 %v9041_v33  ;;  %5117 = vmatpush.msra.mxu0 %v9043_v18  ;;  %v10535_v33 = vld [vmem:[#allocation12_spill] sm:$0xff]  ;;  %v10536_v18 = vld [vmem:[#allocation13_spill] sm:$0xff] }
 0xeb7   :  { %5137 = vmatpush.msra.mxu2 %v9045_v51  ;;  %5157 = vmatpush.msrb.mxu1 %v9047_v27  ;;  %v10537_v51 = vld [vmem:[#allocation14_spill] sm:$0xff]  ;;  %v10538_v27 = vld [vmem:[#allocation16_spill] sm:$0xff] }
 0xeb8   :  { %5098 = vmatpush.msra.mxu3 %v9051_v3  ;;  %5118 = vmatpush.msra.mxu0 %v9053_v42  ;;  %v10539_v3 = vld [vmem:[#allocation17_spill] sm:$0xff]  ;;  %v10540_v42 = vld [vmem:[#allocation18_spill] sm:$0xff] }
 0xeb9   :  { %5138 = vmatpush.msra.mxu2 %v9055_v30  ;;  %5158 = vmatpush.msrb.mxu1 %v9060_v29  ;;  %v10541_v30 = vld [vmem:[#allocation19_spill] sm:$0xff]  ;;  %v10542_v29 = vld [vmem:[#allocation34_spill] sm:$0xff] }
 0xeba   :  { %5099 = vmatpush.msra.mxu3 %v9065_v38  ;;  %5119 = vmatpush.msra.mxu0 %v9067_v46  ;;  %v10543_v38 = vld [vmem:[#allocation20_spill] sm:$0xff]  ;;  %v10544_v46 = vld [vmem:[#allocation21_spill] sm:$0xff] }
 0xebb   :  { %5139 = vmatpush.msra.mxu2 %v9069_v57  ;;  %5159 = vmatpush.msrb.mxu1 %v9073_v53  ;;  %v10545_v57 = vld [vmem:[#allocation22_spill] sm:$0xff]  ;;  %v10546_v53 = vld [vmem:[#allocation15_spill] sm:$0xff] }
 0xebc   :  { %5100 = vmatpush.msra.mxu3 %v9077_v2  ;;  %5120 = vmatpush.msra.mxu0 %v9079_v1  ;;  %v10547_v2 = vld [vmem:[#allocation23_spill] sm:$0xff]  ;;  %v10548_v1 = vld [vmem:[#allocation24_spill] sm:$0xff] }
 0xebd   :  { %5140 = vmatpush.msra.mxu2 %v9081_v11  ;;  %5160 = vmatpush.msrb.mxu1 %v9085_v47  ;;  %v10549_v11 = vld [vmem:[#allocation25_spill] sm:$0xff]  ;;  %v10550_v47 = vld [vmem:[#allocation26_spill] sm:$0xff] }
 0xebe   :  { %5101 = vmatpush.msra.mxu3 %v9091_v37  ;;  %5121 = vmatpush.msra.mxu0 %v9093_v62  ;;  %v10551_v37 = vld [vmem:[#allocation27_spill] sm:$0xff]  ;;  %v10552_v62 = vld [vmem:[#allocation28_spill] sm:$0xff] }
 0xebf   :  { %5141 = vmatpush.msra.mxu2 %v9095_v5  ;;  %5161 = vmatpush.msrb.mxu1 %v9099_v58  ;;  %v10553_v5 = vld [vmem:[#allocation29_spill] sm:$0xff]  ;;  %v10554_v58 = vld [vmem:[#allocation30_spill] sm:$0xff] }
 0xec0   :  { %5102 = vmatpush.msra.mxu3 %v9104_v32  ;;  %5122 = vmatpush.msra.mxu0 %v9106_v54  ;;  %v10555_v32 = vld [vmem:[#allocation31_spill] sm:$0xff]  ;;  %v10556_v54 = vld [vmem:[#allocation32_spill] sm:$0xff] }
 0xec1   :  { %5142 = vmatpush.msra.mxu2 %v9108_v41  ;;  %5162 = vmatpush.msrb.mxu1 %v9112_v15  ;;  %v10557_v41 = vld [vmem:[#allocation33_spill] sm:$0xff]  ;;  %v10558_v15 = vld [vmem:[#allocation35_spill] sm:$0xff] }
 0xec2   :  { %5103 = vmatpush.msra.mxu3 %v9116_v14  ;;  %5123 = vmatpush.msra.mxu0 %v9118_v48  ;;  %v10559_v14 = vld [vmem:[#allocation36_spill] sm:$0xff]  ;;  %v10560_v48 = vld [vmem:[#allocation37_spill] sm:$0xff] }
 0xec3   :  { %5143 = vmatpush.msra.mxu2 %v9120_v7  ;;  %5163 = vmatpush.msrb.mxu1 %v9124_v17 }
 0xec4   :  { %5104 = vmatpush.msra.mxu3 %v9130_v55  ;;  %5124 = vmatpush.msra.mxu0 %v9132_v4  ;;  %v10561_v55 = vld [vmem:[#allocation38_spill] sm:$0xff] }
 0xec5   :  { %5144 = vmatpush.msra.mxu2 %v9134_v44  ;;  %5164 = vmatpush.msrb.mxu1 %v9140_v52 }
 0xec6   :  { %5105 = vmatpush.msra.mxu3 %v9142_v43  ;;  %5125 = vmatpush.msra.mxu0 %v9144_v35 }
 0xec7   :  { %5145 = vmatpush.msra.mxu2 %v9151_v10  ;;  %5165 = vmatpush.msrb.mxu1 %v9153_v56  ;;  %v10562_v56 = vld [vmem:[#allocation39_spill] sm:$0xff] }
 0xec8   :  { %5106 = vmatpush.msra.mxu3 %v9160_v13  ;;  %5126 = vmatpush.msra.mxu0 %v9162_v8  ;;  %v10563_v8 = vld [vmem:[#allocation40_spill] sm:$0xff] }
 0xec9   :  { %5146 = vmatpush.msra.mxu2 %v10535_v33  ;;  %5166 = vmatpush.msrb.mxu1 %v10536_v18 }
 0xeca   :  { %5107 = vmatpush.msra.mxu3 %v10537_v51  ;;  %5127 = vmatpush.msra.mxu0 %v10538_v27 }
 0xecb   :  { %5147 = vmatpush.msra.mxu2 %v10539_v3  ;;  %5167 = vmatpush.msrb.mxu1 %v10540_v42 }
 0xecc   :  { %5108 = vmatpush.msra.mxu3 %v10541_v30  ;;  %5128 = vmatpush.msra.mxu0 %v10542_v29 }
 0xecd   :  { %5148 = vmatpush.msra.mxu2 %v10543_v38  ;;  %5168 = vmatpush.msrb.mxu1 %v10544_v46 }
 0xece   :  { %5109 = vmatpush.msra.mxu3 %v10545_v57  ;;  %5129 = vmatpush.msra.mxu0 %v10546_v53 }
 0xecf   :  { %5149 = vmatpush.msra.mxu2 %v10547_v2  ;;  %5169 = vmatpush.msrb.mxu1 %v10548_v1 }
 0xed0   :  { %5110 = vmatpush.msra.mxu3 %v10549_v11  ;;  %5130 = vmatpush.msra.mxu0 %v10550_v47 }
 0xed1   :  { %5150 = vmatpush.msra.mxu2 %v10551_v37  ;;  %5170 = vmatpush.msrb.mxu1 %v10552_v62 }
 0xed2   :  { %5111 = vmatpush.msra.mxu3 %v10553_v5  ;;  %5131 = vmatpush.msra.mxu0 %v10554_v58 }
 0xed3   :  { %5151 = vmatpush.msra.mxu2 %v10555_v32  ;;  %5171 = vmatpush.msrb.mxu1 %v10556_v54 }
 0xed4   :  { %5112 = vmatpush.msra.mxu3 %v10557_v41  ;;  %5132 = vmatpush.msra.mxu0 %v10558_v15 }
 0xed5   :  { %5152 = vmatpush.msra.mxu2 %v10559_v14  ;;  %5172 = vmatpush.msrb.mxu1 %v10560_v48 }
 0xf31   :  { %v4804_v7 = vpop.f32.mrf.mxu0 }
 0xf32   :  { %v4852_v17 = vrot.slane %v4804_v7, 7  ;;  %v4844_v25 = vpop.f32.mrf.mxu1 }
 0xf33   :  { %v4854_v60 = vrot.slane %v4844_v25, 7 }
 0xf34   :  { %v4860_v4 = vadd.f32 %v4852_v17, %v10561_v55 }
 0xf35   :  { %v4862_v26 = vadd.f32 %v4854_v60, %v10564_v45  ;;  %v9514_v60 = vld [vmem:[#allocation6 + $0x5e8] sm:$0xff] }
 0xf36   :  { %v6062_v44 = vmul.f32 -1.442695, %v4860_v4 }
 0xf37   :  { %v4784_v52 = vpop.f32.mrf.mxu3 }
 0xf38   :  { %6365 = vpow2.f32 %v6062_v44  ;;  %v4851_v43 = vrot.slane %v4784_v52, 7  ;;  %v4824_v35 = vpop.f32.mrf.mxu2  ;;  %v4922_v44 = vrot.slane %v9436_v12, 7 }
 0xf39   :  { %v4853_v10 = vrot.slane %v4824_v35, 7 }
 0xf3a   :  { %v4859_v13 = vadd.f32 %v4851_v43, %v10562_v56 }
 0xf3b   :  { %v4861_v61 = vadd.f32 %v4853_v10, %v10563_v8 }
 0xf3c   :  { %v6061_v6 = vmul.f32 -1.442695, %v4859_v13 }
 0xf3d   :  { %v6063_v34 = vmul.f32 -1.442695, %v4861_v61 }
 0xf3e   :  { %v6366_v50 = vpop.eup %6365  ;;  %6367 = vpow2.f32 %v6061_v6 }
 0xf3f   :  { %v4873_v31 = vadd.f32 1.0, %v6366_v50  ;;  %6369 = vpow2.f32 %v6063_v34 }
 0xf41   :  { %6371 = vrcp.f32 %v4873_v31  ;;  %v4901_v23 = vand.u32 2147483648, %v4873_v31  ;;  %vm4895_vm3 = vweird.f32 %v4873_v31  ;;  %v4899_v39 = vand.u32 2147483647, %v4873_v31 }
 0xf43   :  { %v4902_v3 = vor.u32 1.1754944e-38, %v4901_v23  ;;  %vm4900_vm6 = vcmp.eq.f32.partialorder %v4899_v39, 8.507059e+37  ;;  %v9541_v23 = vld [vmem:[#allocation6 + $0x5b0] sm:$0xff]  ;;  %v9547_v39 = vld [vmem:[#allocation6 + $0x580] sm:$0xff] }
 0xf44   :  { %v6368_v16 = vpop.eup %6367 }
 0xf45   :  { %v6370_v63 = vpop.eup %6369  ;;  %v4872_v59 = vadd.f32 1.0, %v6368_v16 }
 0xf46   :  { %v4874_v20 = vadd.f32 1.0, %v6370_v63 }
 0xf47   :  { %v6372_v49 = vpop.eup %6371  ;;  %6373 = vrcp.f32 %v4872_v59  ;;  %v4886_v33 = vand.u32 2147483648, %v4872_v59  ;;  %v4884_v27 = vand.u32 2147483647, %v4872_v59  ;;  %vm4880_vm7 = vweird.f32 %v4872_v59 }
 0xf48   :  { %v4891_v28 = vmul.f32 %v6372_v49, %v4873_v31  ;;  %6375 = vrcp.f32 %v4874_v20  ;;  %vm4896_vm2 = vweird.f32 %v6372_v49  ;;  %v4916_v50 = vand.u32 2147483648, %v4874_v20 }
 0xf49   :  { %vm4897_vm4 = vmor %vm4895_vm3, %vm4896_vm2  ;;  %6377 = vtanh.f32 %v4862_v26  ;;  %v4887_v4 = vor.u32 1.1754944e-38, %v4886_v33  ;;  %vm4885_vm9 = vcmp.eq.f32.partialorder %v4884_v27, 8.507059e+37  ;;  %vm4910_vm11 = vweird.f32 %v4874_v20  ;;  %v9529_v26 = vld [vmem:[#allocation6 + $0x5d0] sm:$0xff]  ;;  %v9562_v27 = vld [vmem:[#allocation6 + $0x568] sm:$0xff] }
 0xf4a   :  { %v4892_v40 = vsub.f32 1.0, %v4891_v28  ;;  %v4914_v31 = vand.u32 2147483647, %v4874_v20  ;;  %v4917_v63 = vor.u32 1.1754944e-38, %v4916_v50  ;;  %v9511_v28 = vld [vmem:[#allocation6 + $0x5e0] sm:$0xff]  ;;  %v9553_v33 = vld [vmem:[#allocation6 + $0x590] sm:$0xff] }
 0xf4b   :  { %v9604_v50 = vld [vmem:[#allocation6 + $0x518] sm:$0xff] }
 0xf4c   :  { %v4893_v9 = vmul.f32 %v6372_v49, %v4892_v40  ;;  %vm4915_vm13 = vcmp.eq.f32.partialorder %v4914_v31, 8.507059e+37  ;;  %v9520_v40 = vld [vmem:[#allocation6 + $0x5f8] sm:$0xff]  ;;  %v9607_v31 = vld [vmem:[#allocation6 + $0x4e0] sm:$0xff] }
 0xf4d   :  { %v6374_v36 = vpop.eup %6373 }
 0xf4e   :  { %v6376_v21 = vpop.eup %6375  ;;  %v4894_v19 = vadd.f32 %v6372_v49, %v4893_v9  ;;  %v4876_v22 = vmul.f32 %v6374_v36, %v4872_v59  ;;  %vm4881_vm5 = vweird.f32 %v6374_v36  ;;  %v9523_v9 = vld [vmem:[#allocation6 + $0x5c0] sm:$0xff] }
 0xf4f   :  { %v4906_v0 = vmul.f32 %v6376_v21, %v4874_v20  ;;  %vm4882_vm8 = vmor %vm4880_vm7, %vm4881_vm5  ;;  %v6378_v43 = vpop.eup %6377  ;;  %vm4911_vm10 = vweird.f32 %v6376_v21  ;;  %v9517_v20 = vld [vmem:[#allocation6 + $0x5f0] sm:$0xff] }
 0xf50   :  { %v4877_v24 = vsub.f32 1.0, %v4876_v22  ;;  %v4898_v18 = vsel %vm4897_vm4, %v6372_v49, %v4894_v19  ;;  %vm4912_vm12 = vmor %vm4910_vm11, %vm4911_vm10  ;;  %v9535_v19 = vld [vmem:[#allocation6 + $0x5a0] sm:$0xff]  ;;  %v9538_v22 = vld [vmem:[#allocation6 + $0x5a8] sm:$0xff] }
 0xf51   :  { %v4907_v42 = vsub.f32 1.0, %v4906_v0  ;;  %v4903_v17 = vsel %vm4900_vm6, %v4902_v3, %v4898_v18  ;;  %v9544_v0 = vld [vmem:[#allocation6 + $0x5b8] sm:$0xff]  ;;  %v9565_v3 = vld [vmem:[#allocation6 + $0x570] sm:$0xff] }
 0xf52   :  { %v4878_v51 = vmul.f32 %v6374_v36, %v4877_v24  ;;  %v4924_v13 = vmul.f32 %v4922_v44, %v4903_v17  ;;  %v9550_v24 = vld [vmem:[#allocation6 + $0x588] sm:$0xff]  ;;  %v9556_v18 = vld [vmem:[#allocation6 + $0x598] sm:$0xff] }
 0xf53   :  { %v4908_v10 = vmul.f32 %v6376_v21, %v4907_v42  ;;  %v9568_v42 = vld [vmem:[#allocation6 + $0x578] sm:$0xff]  ;;  %v9574_v17 = vld [vmem:[#allocation6 + $0x548] sm:$0xff] }
 0xf54   :  { %v4879_v7 = vadd.f32 %v6374_v36, %v4878_v51  ;;  %v9559_v51 = vld [vmem:[#allocation6 + $0x560] sm:$0xff]  ;;  %v9580_v44 = vld [vmem:[#allocation6 + $0x558] sm:$0xff] }
 0xf55   :  { %v4909_v34 = vadd.f32 %v6376_v21, %v4908_v10  ;;  %v9592_v10 = vld [vmem:[#allocation6 + $0x538] sm:$0xff] }
 0xf56   :  { %v4883_v52 = vsel %vm4882_vm8, %v6374_v36, %v4879_v7  ;;  %v9526_v36 = vld [vmem:[#allocation6 + $0x5c8] sm:$0xff]  ;;  %v9571_v7 = vld [vmem:[#allocation6 + $0x540] sm:$0xff] }
 0xf57   :  { %v4888_v35 = vsel %vm4885_vm9, %v4887_v4, %v4883_v52  ;;  %v4913_v16 = vsel %vm4912_vm12, %v6376_v21, %v4909_v34  ;;  %v9532_v21 = vld [vmem:[#allocation6 + $0x5d8] sm:$0xff]  ;;  %v9577_v4 = vld [vmem:[#allocation6 + $0x550] sm:$0xff]  ;;  %v9583_v52 = vld [vmem:[#allocation6 + $0x520] sm:$0xff] }
 0xf58   :  { %v4925_v61 = vmul.f32 %v6378_v43, %v4888_v35  ;;  %v4918_v59 = vsel %vm4915_vm13, %v4917_v63, %v4913_v16  ;;  %v9586_v43 = vld [vmem:[#allocation6 + $0x528] sm:$0xff]  ;;  %v9589_v35 = vld [vmem:[#allocation6 + $0x530] sm:$0xff] }
 0xf59   :  { %v9601_v34 = vld [vmem:[#allocation6 + $0x510] sm:$0xff]  ;;  %v9610_v16 = vld [vmem:[#allocation6 + $0x4e8] sm:$0xff] }
 0xf5a   :  { %v9508_v6 = vadd.f32 %v4925_v61, %v4924_v13  ;;  %v9595_v13 = vld [vmem:[#allocation6 + $0x500] sm:$0xff]  ;;  %v9598_v61 = vld [vmem:[#allocation6 + $0x508] sm:$0xff]  ;;  %10565 = vst [vmem:[#allocation12_spill] sm:$0xff] %v9610_v16  ;;  %v9613_v63 = vld [vmem:[#allocation6 + $0x4f0] sm:$0xff] }
 0xf5b   :  { %10566 = vst [vmem:[#allocation13_spill] sm:$0xff] %v9613_v63 }
 0xf5c   :  { %6379 = vtanh.f32 %v9508_v6 }
 0xf62   :  { %v6380_v12 = vpop.eup %6379 }
 0xf63   :  { %v4928_v25 = vmul.f32 %v6380_v12, %v4918_v59  ;;  %v9616_v12 = vld [vmem:[#allocation6 + $0x4f8] sm:$0xff]  ;;  %v9619_v59 = vld [vmem:[#allocation6 + $0x4c0] sm:$0xff] }
 0xf64   :  { %10567 = vst [vmem:[#allocation14_spill] sm:$0xff] %v9616_v12 }
 0xf65   :  { %v4930_v49 = vrot.slane %v4928_v25, 1  ;;  %10568 = vst [vmem:[#allocation16_spill] sm:$0xff] %v9619_v59  ;;  %v9622_v25 = vld [vmem:[#allocation6 + $0x4c8] sm:$0xff] }
 0xf66   :  { %10569 = vst [vmem:[#allocation17_spill] sm:$0xff] %v9622_v25 }
 0xf67   :  { %4948 = vmatmul.f32.vlgmr.msrb.gmra.mxu3 %v4930_v49  ;;  %4968 = vmatmul.f32.vlgmr.msrb.gmra.mxu0 %v4930_v49 }
 0xf68   :  { %4988 = vmatmul.f32.vlgmr.msrb.gmra.mxu2 %v4930_v49  ;;  %5008 = vmatmul.f32.vlgmr.msra.gmra.mxu1 %v4930_v49  ;;  %v9625_v49 = vld [vmem:[#allocation6 + $0x4d0] sm:$0xff] }
 0xf69   :  { %5262 = vmatpush.msrb.mxu3 %v9511_v28  ;;  %5282 = vmatpush.msrb.mxu0 %v9514_v60  ;;  %10570 = vst [vmem:[#allocation18_spill] sm:$0xff] %v9625_v49 }
 0xf6a   :  { %5302 = vmatpush.msrb.mxu2 %v9517_v20  ;;  %5322 = vmatpush.msra.mxu1 %v9520_v40 }
 0xf6b   :  { %5263 = vmatpush.msrb.mxu3 %v9523_v9  ;;  %5283 = vmatpush.msrb.mxu0 %v9526_v36 }
 0xf6c   :  { %5303 = vmatpush.msrb.mxu2 %v9529_v26  ;;  %5323 = vmatpush.msra.mxu1 %v9532_v21 }
 0xf6d   :  { %5264 = vmatpush.msrb.mxu3 %v9535_v19  ;;  %5284 = vmatpush.msrb.mxu0 %v9538_v22 }
 0xf6e   :  { %5304 = vmatpush.msrb.mxu2 %v9541_v23  ;;  %5324 = vmatpush.msra.mxu1 %v9544_v0 }
 0xf6f   :  { %5265 = vmatpush.msrb.mxu3 %v9547_v39  ;;  %5285 = vmatpush.msrb.mxu0 %v9550_v24 }
 0xf70   :  { %5305 = vmatpush.msrb.mxu2 %v9553_v33  ;;  %5325 = vmatpush.msra.mxu1 %v9556_v18 }
 0xf71   :  { %5266 = vmatpush.msrb.mxu3 %v9559_v51  ;;  %5286 = vmatpush.msrb.mxu0 %v9562_v27 }
 0xf72   :  { %5306 = vmatpush.msrb.mxu2 %v9565_v3  ;;  %5326 = vmatpush.msra.mxu1 %v9568_v42 }
 0xf73   :  { %5267 = vmatpush.msrb.mxu3 %v9571_v7  ;;  %5287 = vmatpush.msrb.mxu0 %v9574_v17 }
 0xf74   :  { %5307 = vmatpush.msrb.mxu2 %v9577_v4  ;;  %5327 = vmatpush.msra.mxu1 %v9580_v44 }
 0xf75   :  { %5268 = vmatpush.msrb.mxu3 %v9583_v52  ;;  %5288 = vmatpush.msrb.mxu0 %v9586_v43 }
 0xf76   :  { %5308 = vmatpush.msrb.mxu2 %v9589_v35  ;;  %5328 = vmatpush.msra.mxu1 %v9592_v10 }
 0xf77   :  { %5269 = vmatpush.msrb.mxu3 %v9595_v13  ;;  %5289 = vmatpush.msrb.mxu0 %v9598_v61 }
 0xf78   :  { %5309 = vmatpush.msrb.mxu2 %v9601_v34  ;;  %5329 = vmatpush.msra.mxu1 %v9604_v50 }
 0xf79   :  { %5270 = vmatpush.msrb.mxu3 %v9607_v31  ;;  %5290 = vmatpush.msrb.mxu0 %v9610_v16  ;;  %v9628_v16 = vld [vmem:[#allocation6 + $0x4d8] sm:$0xff] }
 0xf7a   :  { %5310 = vmatpush.msrb.mxu2 %v9613_v63  ;;  %5330 = vmatpush.msra.mxu1 %v9616_v12  ;;  %10571 = vst [vmem:[#allocation19_spill] sm:$0xff] %v9628_v16  ;;  %v9631_v63 = vld [vmem:[#allocation6 + $0x4a0] sm:$0xff]  ;;  %v9634_v12 = vld [vmem:[#allocation6 + $0x4a8] sm:$0xff] }
 0xf7b   :  { %5271 = vmatpush.msrb.mxu3 %v9619_v59  ;;  %5291 = vmatpush.msrb.mxu0 %v9622_v25  ;;  %10572 = vst [vmem:[#allocation34_spill] sm:$0xff] %v9631_v63  ;;  %v9637_v59 = vld [vmem:[#allocation6 + $0x4b0] sm:$0xff]  ;;  %v9640_v25 = vld [vmem:[#allocation6 + $0x4b8] sm:$0xff] }
 0xf7c   :  { %5311 = vmatpush.msrb.mxu2 %v9625_v49  ;;  %5331 = vmatpush.msra.mxu1 %v9628_v16  ;;  %10573 = vst [vmem:[#allocation20_spill] sm:$0xff] %v9634_v12 }
 0xf7d   :  { %5272 = vmatpush.msrb.mxu3 %v9631_v63  ;;  %5292 = vmatpush.msrb.mxu0 %v9634_v12  ;;  %10574 = vst [vmem:[#allocation21_spill] sm:$0xff] %v9637_v59 }
 0xf7e   :  { %5312 = vmatpush.msrb.mxu2 %v9637_v59  ;;  %10575 = vst [vmem:[#allocation22_spill] sm:$0xff] %v9640_v25  ;;  %5332 = vmatpush.msra.mxu1 %v9640_v25 }
 0xf7f   :  { %5273 = vmatpush.msrb.mxu3 %v10541_v30  ;;  %5293 = vmatpush.msrb.mxu0 %v10542_v29 }
 0xf80   :  { %5313 = vmatpush.msrb.mxu2 %v10543_v38  ;;  %5333 = vmatpush.msra.mxu1 %v10544_v46 }
 0xf81   :  { %5274 = vmatpush.msrb.mxu3 %v10545_v57  ;;  %5294 = vmatpush.msrb.mxu0 %v10546_v53 }
 0xf82   :  { %5314 = vmatpush.msrb.mxu2 %v10547_v2  ;;  %5334 = vmatpush.msra.mxu1 %v10548_v1 }
 0xf83   :  { %5275 = vmatpush.msrb.mxu3 %v10549_v11  ;;  %5295 = vmatpush.msrb.mxu0 %v10550_v47 }
 0xf84   :  { %5315 = vmatpush.msrb.mxu2 %v10551_v37  ;;  %5335 = vmatpush.msra.mxu1 %v10552_v62 }
 0xf85   :  { %5276 = vmatpush.msrb.mxu3 %v10553_v5  ;;  %5296 = vmatpush.msrb.mxu0 %v10554_v58 }
 0xf86   :  { %5316 = vmatpush.msrb.mxu2 %v10555_v32  ;;  %5336 = vmatpush.msra.mxu1 %v10556_v54 }
 0xf87   :  { %5277 = vmatpush.msrb.mxu3 %v10557_v41  ;;  %5297 = vmatpush.msrb.mxu0 %v10558_v15 }
 0xf88   :  { %5317 = vmatpush.msrb.mxu2 %v10559_v14  ;;  %5337 = vmatpush.msra.mxu1 %v10560_v48 }
 0xfe4   :  { %v4969_v30 = vpop.f32.mrf.mxu0 }
 0xfe5   :  { %v5017_v29 = vrot.slane %v4969_v30, 6  ;;  %v5009_v15 = vpop.f32.mrf.mxu1 }
 0xfe7   :  { %v5025_v38 = vadd.f32 %v5017_v29, %v10561_v55  ;;  %v5019_v29 = vrot.slane %v5009_v15, 6 }
 0xfe9   :  { %v6065_v46 = vmul.f32 -1.442695, %v5025_v38 }
 0xfea   :  { %v4949_v57 = vpop.f32.mrf.mxu3 }
 0xfeb   :  { %6381 = vpow2.f32 %v6065_v46  ;;  %v5016_v53 = vrot.slane %v4949_v57, 6  ;;  %v4989_v2 = vpop.f32.mrf.mxu2 }
 0xfec   :  { %v5018_v1 = vrot.slane %v4989_v2, 6 }
 0xfed   :  { %v5024_v11 = vadd.f32 %v5016_v53, %v10562_v56  ;;  %v5027_v53 = vadd.f32 %v5019_v29, %v10564_v45  ;;  %v5087_v56 = vrot.slane %v9508_v6, 7 }
 0xfee   :  { %v5026_v47 = vadd.f32 %v5018_v1, %v10563_v8 }
 0xfef   :  { %v6064_v37 = vmul.f32 -1.442695, %v5024_v11 }
 0xff0   :  { %v6066_v62 = vmul.f32 -1.442695, %v5026_v47 }
 0xff1   :  { %v6382_v5 = vpop.eup %6381  ;;  %6383 = vpow2.f32 %v6064_v37 }
 0xff2   :  { %v5038_v58 = vadd.f32 1.0, %v6382_v5  ;;  %6385 = vpow2.f32 %v6066_v62 }
 0xff4   :  { %6387 = vrcp.f32 %v5038_v58  ;;  %v5066_v47 = vand.u32 2147483648, %v5038_v58  ;;  %vm5060_vm15 = vweird.f32 %v5038_v58  ;;  %v5064_v62 = vand.u32 2147483647, %v5038_v58 }
 0xff6   :  { %vm5065_vm2 = vcmp.eq.f32.partialorder %v5064_v62, 8.507059e+37 }
 0xff7   :  { %v6384_v32 = vpop.eup %6383 }
 0xff8   :  { %v6386_v54 = vpop.eup %6385  ;;  %v5037_v41 = vadd.f32 1.0, %v6384_v32 }
 0xff9   :  { %v5039_v14 = vadd.f32 1.0, %v6386_v54 }
 0xffa   :  { %v6388_v48 = vpop.eup %6387  ;;  %6389 = vrcp.f32 %v5037_v41  ;;  %v5051_v32 = vand.u32 2147483648, %v5037_v41  ;;  %v5049_v15 = vand.u32 2147483647, %v5037_v41  ;;  %vm5045_vm3 = vweird.f32 %v5037_v41 }
 0xffb   :  { %v5056_v30 = vmul.f32 %v6388_v48, %v5038_v58  ;;  %6391 = vrcp.f32 %v5039_v14  ;;  %vm5061_vm14 = vweird.f32 %v6388_v48  ;;  %vm5075_vm7 = vweird.f32 %v5039_v14 }
 0xffc   :  { %vm5062_vm0 = vmor %vm5060_vm15, %vm5061_vm14  ;;  %6393 = vtanh.f32 %v5027_v53  ;;  %v5052_v45 = vor.u32 1.1754944e-38, %v5051_v32  ;;  %vm5050_vm5 = vcmp.eq.f32.partialorder %v5049_v15, 8.507059e+37  ;;  %v10581_v32 = vld [vmem:[#allocation22_spill] sm:$0xff]  ;;  %v9718_v15 = vld [vmem:[#allocation6 + $0x488] sm:$0xff] }
 0xffd   :  { %v5057_v38 = vsub.f32 1.0, %v5056_v30  ;;  %v5067_v30 = vor.u32 1.1754944e-38, %v5066_v47  ;;  %v5081_v47 = vand.u32 2147483648, %v5039_v14  ;;  %10583 = vst [vmem:[#allocation23_spill] sm:$0xff] %v9718_v15 }
 0xfff   :  { %v5058_v46 = vmul.f32 %v6388_v48, %v5057_v38 }
0x1000   :  { %v6390_v57 = vpop.eup %6389 }
0x1001   :  { %v6392_v2 = vpop.eup %6391  ;;  %v5059_v1 = vadd.f32 %v6388_v48, %v5058_v46  ;;  %v5041_v11 = vmul.f32 %v6390_v57, %v5037_v41  ;;  %vm5046_vm1 = vweird.f32 %v6390_v57 }
0x1002   :  { %v5071_v37 = vmul.f32 %v6392_v2, %v5039_v14  ;;  %vm5047_vm4 = vmor %vm5045_vm3, %vm5046_vm1  ;;  %v6394_v58 = vpop.eup %6393  ;;  %vm5076_vm6 = vweird.f32 %v6392_v2 }
0x1003   :  { %v5042_v5 = vsub.f32 1.0, %v5041_v11  ;;  %v5063_v54 = vsel %vm5062_vm0, %v6388_v48, %v5059_v1  ;;  %vm5077_vm8 = vmor %vm5075_vm7, %vm5076_vm6 }
0x1004   :  { %v5072_v38 = vsub.f32 1.0, %v5071_v37  ;;  %v5068_v46 = vsel %vm5065_vm2, %v5067_v30, %v5063_v54  ;;  %v5082_v37 = vor.u32 1.1754944e-38, %v5081_v47  ;;  %v9715_v54 = vld [vmem:[#allocation6 + $0x480] sm:$0xff]  ;;  %v9721_v30 = vld [vmem:[#allocation6 + $0x490] sm:$0xff]  ;;  %v9748_v47 = vld [vmem:[#allocation6 + $0x458] sm:$0xff] }
0x1005   :  { %v5043_v8 = vmul.f32 %v6390_v57, %v5042_v5  ;;  %v5089_v25 = vmul.f32 %v5087_v56, %v5068_v46  ;;  %v10576_v56 = vld [vmem:[#allocation12_spill] sm:$0xff]  ;;  %10582 = vst [vmem:[#allocation15_spill] sm:$0xff] %v9715_v54 }
0x1006   :  { %v5073_v53 = vmul.f32 %v6392_v2, %v5072_v38  ;;  %10584 = vst [vmem:[#allocation24_spill] sm:$0xff] %v9721_v30  ;;  %v9724_v38 = vld [vmem:[#allocation6 + $0x498] sm:$0xff]  ;;  %v9730_v46 = vld [vmem:[#allocation6 + $0x468] sm:$0xff] }
0x1007   :  { %v5044_v29 = vadd.f32 %v6390_v57, %v5043_v8  ;;  %v5079_v8 = vand.u32 2147483647, %v5039_v14  ;;  %v10579_v14 = vld [vmem:[#allocation16_spill] sm:$0xff]  ;;  %10585 = vst [vmem:[#allocation25_spill] sm:$0xff] %v9724_v38 }
0x1008   :  { %v5074_v5 = vadd.f32 %v6392_v2, %v5073_v53  ;;  %10587 = vst [vmem:[#allocation27_spill] sm:$0xff] %v9730_v46  ;;  %v9739_v53 = vld [vmem:[#allocation6 + $0x440] sm:$0xff] }
0x1009   :  { %v5048_v55 = vsel %vm5047_vm4, %v6390_v57, %v5044_v29  ;;  %vm5080_vm9 = vcmp.eq.f32.partialorder %v5079_v8, 8.507059e+37  ;;  %v9727_v29 = vld [vmem:[#allocation6 + $0x460] sm:$0xff]  ;;  %10590 = vst [vmem:[#allocation30_spill] sm:$0xff] %v9739_v53 }
0x100a   :  { %v5053_v11 = vsel %vm5050_vm5, %v5052_v45, %v5048_v55  ;;  %v5078_v41 = vsel %vm5077_vm8, %v6392_v2, %v5074_v5  ;;  %v10577_v45 = vld [vmem:[#allocation13_spill] sm:$0xff]  ;;  %10586 = vst [vmem:[#allocation26_spill] sm:$0xff] %v9727_v29  ;;  %v9751_v8 = vld [vmem:[#allocation6 + $0x420] sm:$0xff] }
0x100b   :  { %v5090_v48 = vmul.f32 %v6394_v58, %v5053_v11  ;;  %v5083_v57 = vsel %vm5080_vm9, %v5082_v37, %v5078_v41  ;;  %v10580_v2 = vld [vmem:[#allocation17_spill] sm:$0xff]  ;;  %v9736_v11 = vld [vmem:[#allocation6 + $0x478] sm:$0xff]  ;;  %10593 = vst [vmem:[#allocation33_spill] sm:$0xff] %v9748_v47 }
0x100c   :  { %v9733_v58 = vld [vmem:[#allocation6 + $0x470] sm:$0xff]  ;;  %10589 = vst [vmem:[#allocation29_spill] sm:$0xff] %v9736_v11  ;;  %v9754_v41 = vld [vmem:[#allocation6 + $0x428] sm:$0xff] }
0x100d   :  { %v9668_v1 = vadd.f32 %v5090_v48, %v5089_v25  ;;  %v10578_v25 = vld [vmem:[#allocation14_spill] sm:$0xff]  ;;  %10588 = vst [vmem:[#allocation28_spill] sm:$0xff] %v9733_v58  ;;  %v9742_v48 = vld [vmem:[#allocation6 + $0x448] sm:$0xff] }
0x100e   :  { %10591 = vst [vmem:[#allocation31_spill] sm:$0xff] %v9742_v48  ;;  %v9745_v5 = vld [vmem:[#allocation6 + $0x450] sm:$0xff] }
0x100f   :  { %6395 = vtanh.f32 %v9668_v1  ;;  %10592 = vst [vmem:[#allocation32_spill] sm:$0xff] %v9745_v5  ;;  %v9757_v37 = vld [vmem:[#allocation6 + $0x430] sm:$0xff] }
0x1010   :  { %10594 = vst [vmem:[#allocation35_spill] sm:$0xff] %v9751_v8 }
0x1011   :  { %10595 = vst [vmem:[#allocation36_spill] sm:$0xff] %v9754_v41 }
0x1012   :  { %10596 = vst [vmem:[#allocation37_spill] sm:$0xff] %v9757_v37 }
0x1015   :  { %v6396_v6 = vpop.eup %6395 }
0x1016   :  { %v5093_v62 = vmul.f32 %v6396_v6, %v5083_v57  ;;  %v9760_v6 = vld [vmem:[#allocation6 + $0x438] sm:$0xff]  ;;  %v9763_v57 = vld [vmem:[#allocation6 + $0x400] sm:$0xff] }
0x1017   :  { %10597 = vst [vmem:[#allocation12_spill] sm:$0xff] %v9760_v6 }
0x1018   :  { %v5095_v55 = vrot.slane %v5093_v62, 2  ;;  %10598 = vst [vmem:[#allocation13_spill] sm:$0xff] %v9763_v57  ;;  %v9766_v62 = vld [vmem:[#allocation6 + $0x408] sm:$0xff] }
0x1019   :  { %10599 = vst [vmem:[#allocation14_spill] sm:$0xff] %v9766_v62 }
0x101a   :  { %5113 = vmatmul.f32.vlgmr.msra.gmra.mxu3 %v5095_v55  ;;  %5133 = vmatmul.f32.vlgmr.msra.gmra.mxu0 %v5095_v55 }
0x101b   :  { %5153 = vmatmul.f32.vlgmr.msra.gmra.mxu2 %v5095_v55  ;;  %5173 = vmatmul.f32.vlgmr.msrb.gmra.mxu1 %v5095_v55  ;;  %v9769_v55 = vld [vmem:[#allocation6 + $0x410] sm:$0xff] }
0x101c   :  { %5427 = vmatpush.msra.mxu3 %v9511_v28  ;;  %5447 = vmatpush.msra.mxu0 %v9514_v60  ;;  %10600 = vst [vmem:[#allocation16_spill] sm:$0xff] %v9769_v55 }
0x101d   :  { %5467 = vmatpush.msra.mxu2 %v9517_v20  ;;  %5487 = vmatpush.msrb.mxu1 %v9520_v40 }
0x101e   :  { %5428 = vmatpush.msra.mxu3 %v9523_v9  ;;  %5448 = vmatpush.msra.mxu0 %v9526_v36 }
0x101f   :  { %5468 = vmatpush.msra.mxu2 %v9529_v26  ;;  %5488 = vmatpush.msrb.mxu1 %v9532_v21 }
0x1020   :  { %5429 = vmatpush.msra.mxu3 %v9535_v19  ;;  %5449 = vmatpush.msra.mxu0 %v9538_v22 }
0x1021   :  { %5469 = vmatpush.msra.mxu2 %v9541_v23  ;;  %5489 = vmatpush.msrb.mxu1 %v9544_v0 }
0x1022   :  { %5430 = vmatpush.msra.mxu3 %v9547_v39  ;;  %5450 = vmatpush.msra.mxu0 %v9550_v24 }
0x1023   :  { %5470 = vmatpush.msra.mxu2 %v9553_v33  ;;  %5490 = vmatpush.msrb.mxu1 %v9556_v18 }
0x1024   :  { %5431 = vmatpush.msra.mxu3 %v9559_v51  ;;  %5451 = vmatpush.msra.mxu0 %v9562_v27 }
0x1025   :  { %5471 = vmatpush.msra.mxu2 %v9565_v3  ;;  %5491 = vmatpush.msrb.mxu1 %v9568_v42 }
0x1026   :  { %5432 = vmatpush.msra.mxu3 %v9571_v7  ;;  %5452 = vmatpush.msra.mxu0 %v9574_v17 }
0x1027   :  { %5472 = vmatpush.msra.mxu2 %v9577_v4  ;;  %5492 = vmatpush.msrb.mxu1 %v9580_v44 }
0x1028   :  { %5433 = vmatpush.msra.mxu3 %v9583_v52  ;;  %5453 = vmatpush.msra.mxu0 %v9586_v43 }
0x1029   :  { %5473 = vmatpush.msra.mxu2 %v9589_v35  ;;  %5493 = vmatpush.msrb.mxu1 %v9592_v10 }
0x102a   :  { %5434 = vmatpush.msra.mxu3 %v9595_v13  ;;  %5454 = vmatpush.msra.mxu0 %v9598_v61 }
0x102b   :  { %5474 = vmatpush.msra.mxu2 %v9601_v34  ;;  %5494 = vmatpush.msrb.mxu1 %v9604_v50 }
0x102c   :  { %5435 = vmatpush.msra.mxu3 %v9607_v31  ;;  %5455 = vmatpush.msra.mxu0 %v10576_v56 }
0x102d   :  { %5475 = vmatpush.msra.mxu2 %v10577_v45  ;;  %5495 = vmatpush.msrb.mxu1 %v10578_v25 }
0x102e   :  { %5436 = vmatpush.msra.mxu3 %v10579_v14  ;;  %5456 = vmatpush.msra.mxu0 %v10580_v2 }
0x102f   :  { %5476 = vmatpush.msra.mxu2 %v9625_v49  ;;  %5496 = vmatpush.msrb.mxu1 %v9628_v16 }
0x1030   :  { %5437 = vmatpush.msra.mxu3 %v9631_v63  ;;  %5457 = vmatpush.msra.mxu0 %v9634_v12  ;;  %v5252_v63 = vrot.slane %v9668_v1, 7 }
0x1031   :  { %5477 = vmatpush.msra.mxu2 %v9637_v59  ;;  %5497 = vmatpush.msrb.mxu1 %v10581_v32 }
0x1032   :  { %5438 = vmatpush.msra.mxu3 %v9715_v54  ;;  %5458 = vmatpush.msra.mxu0 %v9718_v15 }
0x1033   :  { %5478 = vmatpush.msra.mxu2 %v9721_v30  ;;  %5498 = vmatpush.msrb.mxu1 %v9724_v38 }
0x1034   :  { %5439 = vmatpush.msra.mxu3 %v9727_v29  ;;  %5459 = vmatpush.msra.mxu0 %v9730_v46  ;;  %v10604_v46 = vld [vmem:[#allocation40_spill] sm:$0xff] }
0x1035   :  { %5479 = vmatpush.msra.mxu2 %v9733_v58  ;;  %5499 = vmatpush.msrb.mxu1 %v9736_v11  ;;  %v10603_v58 = vld [vmem:[#allocation39_spill] sm:$0xff] }
0x1036   :  { %5440 = vmatpush.msra.mxu3 %v9739_v53  ;;  %5460 = vmatpush.msra.mxu0 %v9742_v48 }
0x1037   :  { %5480 = vmatpush.msra.mxu2 %v9745_v5  ;;  %5500 = vmatpush.msrb.mxu1 %v9748_v47  ;;  %v10602_v47 = vld [vmem:[#allocation38_spill] sm:$0xff] }
0x1038   :  { %5441 = vmatpush.msra.mxu3 %v9751_v8  ;;  %5461 = vmatpush.msra.mxu0 %v9754_v41  ;;  %v9772_v41 = vld [vmem:[#allocation6 + $0x418] sm:$0xff] }
0x1039   :  { %5481 = vmatpush.msra.mxu2 %v9757_v37  ;;  %5501 = vmatpush.msrb.mxu1 %v9760_v6  ;;  %10601 = vst [vmem:[#allocation17_spill] sm:$0xff] %v9772_v41 }
0x103a   :  { %5442 = vmatpush.msra.mxu3 %v9763_v57  ;;  %5462 = vmatpush.msra.mxu0 %v9766_v62 }
0x103b   :  { %5482 = vmatpush.msra.mxu2 %v9769_v55  ;;  %5502 = vmatpush.msrb.mxu1 %v9772_v41 }
0x1097   :  { %v5134_v37 = vpop.f32.mrf.mxu0 }
0x1098   :  { %v5182_v8 = vrot.slane %v5134_v37, 5 }
0x109a   :  { %v5190_v6 = vadd.f32 %v5182_v8, %v10602_v47 }
0x109c   :  { %v6068_v5 = vmul.f32 -1.442695, %v5190_v6  ;;  %v5174_v6 = vpop.f32.mrf.mxu1 }
0x109d   :  { %v5114_v48 = vpop.f32.mrf.mxu3 }
0x109e   :  { %6397 = vpow2.f32 %v6068_v5  ;;  %v5181_v57 = vrot.slane %v5114_v48, 5  ;;  %v5154_v53 = vpop.f32.mrf.mxu2 }
0x109f   :  { %v5183_v11 = vrot.slane %v5154_v53, 5  ;;  %v5184_v53 = vrot.slane %v5174_v6, 5 }
0x10a0   :  { %v5189_v62 = vadd.f32 %v5181_v57, %v10603_v58 }
0x10a1   :  { %v5191_v29 = vadd.f32 %v5183_v11, %v10604_v46 }
0x10a2   :  { %v6067_v38 = vmul.f32 -1.442695, %v5189_v62  ;;  %v10605_v62 = vld [vmem:[#allocation41_spill] sm:$0xff] }
0x10a3   :  { %v6069_v55 = vmul.f32 -1.442695, %v5191_v29  ;;  %v5192_v29 = vadd.f32 %v5184_v53, %v10605_v62 }
0x10a4   :  { %v6398_v30 = vpop.eup %6397  ;;  %6399 = vpow2.f32 %v6067_v38 }
0x10a5   :  { %v5203_v15 = vadd.f32 1.0, %v6398_v30  ;;  %6401 = vpow2.f32 %v6069_v55 }
0x10a7   :  { %6403 = vrcp.f32 %v5203_v15  ;;  %v5231_v55 = vand.u32 2147483648, %v5203_v15  ;;  %vm5225_vm11 = vweird.f32 %v5203_v15 }
0x10aa   :  { %v6400_v37 = vpop.eup %6399 }
0x10ab   :  { %v6402_v41 = vpop.eup %6401  ;;  %v5202_v8 = vadd.f32 1.0, %v6400_v37  ;;  %v5229_v37 = vand.u32 2147483647, %v5203_v15 }
0x10ac   :  { %v5204_v47 = vadd.f32 1.0, %v6402_v41 }
0x10ad   :  { %v6404_v5 = vpop.eup %6403  ;;  %6405 = vrcp.f32 %v5202_v8  ;;  %v5216_v41 = vand.u32 2147483648, %v5202_v8  ;;  %v5214_v6 = vand.u32 2147483647, %v5202_v8  ;;  %vm5230_vm14 = vcmp.eq.f32.partialorder %v5229_v37, 8.507059e+37  ;;  %v10611_v37 = vld [vmem:[#allocation22_spill] sm:$0xff] }
0x10ae   :  { %v5221_v48 = vmul.f32 %v6404_v5, %v5203_v15  ;;  %6407 = vrcp.f32 %v5204_v47  ;;  %vm5226_vm10 = vweird.f32 %v6404_v5  ;;  %vm5210_vm15 = vweird.f32 %v5202_v8 }
0x10af   :  { %vm5227_vm12 = vmor %vm5225_vm11, %vm5226_vm10  ;;  %6409 = vtanh.f32 %v5192_v29  ;;  %v5217_v62 = vor.u32 1.1754944e-38, %v5216_v41  ;;  %vm5215_vm1 = vcmp.eq.f32.partialorder %v5214_v6, 8.507059e+37  ;;  %vm5240_vm3 = vweird.f32 %v5204_v47  ;;  %v10612_v41 = vld [vmem:[#allocation15_spill] sm:$0xff] }
0x10b0   :  { %v5222_v57 = vsub.f32 1.0, %v5221_v48  ;;  %v5232_v48 = vor.u32 1.1754944e-38, %v5231_v55  ;;  %v10613_v6 = vld [vmem:[#allocation23_spill] sm:$0xff] }
0x10b2   :  { %v5223_v58 = vmul.f32 %v6404_v5, %v5222_v57 }
0x10b3   :  { %v6406_v11 = vpop.eup %6405 }
0x10b4   :  { %v6408_v46 = vpop.eup %6407  ;;  %v5224_v38 = vadd.f32 %v6404_v5, %v5223_v58  ;;  %v5206_v30 = vmul.f32 %v6406_v11, %v5202_v8  ;;  %vm5211_vm13 = vweird.f32 %v6406_v11 }
0x10b5   :  { %v5236_v54 = vmul.f32 %v6408_v46, %v5204_v47  ;;  %vm5212_vm0 = vmor %vm5210_vm15, %vm5211_vm13  ;;  %v6410_v15 = vpop.eup %6409  ;;  %vm5241_vm2 = vweird.f32 %v6408_v46 }
0x10b6   :  { %v5207_v32 = vsub.f32 1.0, %v5206_v30  ;;  %v5228_v59 = vsel %vm5227_vm12, %v6404_v5, %v5224_v38  ;;  %vm5242_vm4 = vmor %vm5240_vm3, %vm5241_vm2 }
0x10b7   :  { %v5237_v57 = vsub.f32 1.0, %v5236_v54  ;;  %v5233_v58 = vsel %vm5230_vm14, %v5232_v48, %v5228_v59  ;;  %v5246_v54 = vand.u32 2147483648, %v5204_v47  ;;  %v10614_v48 = vld [vmem:[#allocation24_spill] sm:$0xff] }
0x10b8   :  { %v5208_v12 = vmul.f32 %v6406_v11, %v5207_v32  ;;  %v5254_v49 = vmul.f32 %v5252_v63, %v5233_v58  ;;  %v10606_v63 = vld [vmem:[#allocation18_spill] sm:$0xff]  ;;  %v10617_v58 = vld [vmem:[#allocation27_spill] sm:$0xff] }
0x10b9   :  { %v5238_v29 = vmul.f32 %v6408_v46, %v5237_v57  ;;  %v5247_v8 = vor.u32 1.1754944e-38, %v5246_v54  ;;  %v10615_v57 = vld [vmem:[#allocation25_spill] sm:$0xff] }
0x10ba   :  { %v5209_v53 = vadd.f32 %v6406_v11, %v5208_v12  ;;  %v5244_v12 = vand.u32 2147483647, %v5204_v47  ;;  %v10609_v47 = vld [vmem:[#allocation20_spill] sm:$0xff]  ;;  %v10623_v54 = vld [vmem:[#allocation33_spill] sm:$0xff] }
0x10bb   :  { %v5239_v38 = vadd.f32 %v6408_v46, %v5238_v29  ;;  %v10620_v29 = vld [vmem:[#allocation30_spill] sm:$0xff] }
0x10bc   :  { %v5213_v16 = vsel %vm5212_vm0, %v6406_v11, %v5209_v53  ;;  %vm5245_vm5 = vcmp.eq.f32.partialorder %v5244_v12, 8.507059e+37  ;;  %v10616_v53 = vld [vmem:[#allocation26_spill] sm:$0xff]  ;;  %v10624_v12 = vld [vmem:[#allocation35_spill] sm:$0xff] }
0x10bd   :  { %v5218_v30 = vsel %vm5215_vm1, %v5217_v62, %v5213_v16  ;;  %v5243_v59 = vsel %vm5242_vm4, %v6408_v46, %v5239_v38  ;;  %v10608_v46 = vld [vmem:[#allocation34_spill] sm:$0xff]  ;;  %v10610_v62 = vld [vmem:[#allocation21_spill] sm:$0xff]  ;;  %v10622_v38 = vld [vmem:[#allocation32_spill] sm:$0xff] }
0x10be   :  { %v5255_v5 = vmul.f32 %v6410_v15, %v5218_v30  ;;  %v5248_v11 = vsel %vm5245_vm5, %v5247_v8, %v5243_v59  ;;  %v10618_v15 = vld [vmem:[#allocation28_spill] sm:$0xff]  ;;  %v10619_v30 = vld [vmem:[#allocation29_spill] sm:$0xff] }
0x10bf   :  { %v10625_v59 = vld [vmem:[#allocation36_spill] sm:$0xff]  ;;  %v10626_v8 = vld [vmem:[#allocation37_spill] sm:$0xff] }
0x10c0   :  { %v9780_v32 = vadd.f32 %v5255_v5, %v5254_v49  ;;  %v10607_v49 = vld [vmem:[#allocation19_spill] sm:$0xff] }
0x10c1   :  { %v10621_v5 = vld [vmem:[#allocation31_spill] sm:$0xff] }
0x10c2   :  { %6411 = vtanh.f32 %v9780_v32 }
0x10c8   :  { %v6412_v1 = vpop.eup %6411 }
0x10c9   :  { %v5258_v55 = vmul.f32 %v6412_v1, %v5248_v11  ;;  %v10627_v1 = vld [vmem:[#allocation12_spill] sm:$0xff]  ;;  %v10628_v11 = vld [vmem:[#allocation13_spill] sm:$0xff] }
0x10cb   :  { %v5260_v16 = vrot.slane %v5258_v55, 3  ;;  %v10629_v55 = vld [vmem:[#allocation14_spill] sm:$0xff] }
0x10cd   :  { %5278 = vmatmul.f32.vlgmr.msrb.gmra.mxu3 %v5260_v16  ;;  %5298 = vmatmul.f32.vlgmr.msrb.gmra.mxu0 %v5260_v16 }
0x10ce   :  { %5318 = vmatmul.f32.vlgmr.msrb.gmra.mxu2 %v5260_v16  ;;  %5338 = vmatmul.f32.vlgmr.msra.gmra.mxu1 %v5260_v16  ;;  %v10630_v16 = vld [vmem:[#allocation16_spill] sm:$0xff] }
0x10cf   :  { %5592 = vmatpush.msrb.mxu3 %v9511_v28  ;;  %5612 = vmatpush.msrb.mxu0 %v9514_v60 }
0x10d0   :  { %5632 = vmatpush.msrb.mxu2 %v9517_v20  ;;  %5652 = vmatpush.msra.mxu1 %v9520_v40 }
0x10d1   :  { %5593 = vmatpush.msrb.mxu3 %v9523_v9  ;;  %5613 = vmatpush.msrb.mxu0 %v9526_v36 }
0x10d2   :  { %5633 = vmatpush.msrb.mxu2 %v9529_v26  ;;  %5653 = vmatpush.msra.mxu1 %v9532_v21 }
0x10d3   :  { %5594 = vmatpush.msrb.mxu3 %v9535_v19  ;;  %5614 = vmatpush.msrb.mxu0 %v9538_v22 }
0x10d4   :  { %5634 = vmatpush.msrb.mxu2 %v9541_v23  ;;  %5654 = vmatpush.msra.mxu1 %v9544_v0 }
0x10d5   :  { %5595 = vmatpush.msrb.mxu3 %v9547_v39  ;;  %5615 = vmatpush.msrb.mxu0 %v9550_v24 }
0x10d6   :  { %5635 = vmatpush.msrb.mxu2 %v9553_v33  ;;  %5655 = vmatpush.msra.mxu1 %v9556_v18 }
0x10d7   :  { %5596 = vmatpush.msrb.mxu3 %v9559_v51  ;;  %5616 = vmatpush.msrb.mxu0 %v9562_v27 }
0x10d8   :  { %5636 = vmatpush.msrb.mxu2 %v9565_v3  ;;  %5656 = vmatpush.msra.mxu1 %v9568_v42 }
0x10d9   :  { %5597 = vmatpush.msrb.mxu3 %v9571_v7  ;;  %5617 = vmatpush.msrb.mxu0 %v9574_v17 }
0x10da   :  { %5637 = vmatpush.msrb.mxu2 %v9577_v4  ;;  %5657 = vmatpush.msra.mxu1 %v9580_v44 }
0x10db   :  { %5598 = vmatpush.msrb.mxu3 %v9583_v52  ;;  %5618 = vmatpush.msrb.mxu0 %v9586_v43 }
0x10dc   :  { %5638 = vmatpush.msrb.mxu2 %v9589_v35  ;;  %5658 = vmatpush.msra.mxu1 %v9592_v10 }
0x10dd   :  { %5599 = vmatpush.msrb.mxu3 %v9595_v13  ;;  %5619 = vmatpush.msrb.mxu0 %v9598_v61 }
0x10de   :  { %5639 = vmatpush.msrb.mxu2 %v9601_v34  ;;  %5659 = vmatpush.msra.mxu1 %v9604_v50 }
0x10df   :  { %5600 = vmatpush.msrb.mxu3 %v9607_v31  ;;  %5620 = vmatpush.msrb.mxu0 %v10576_v56 }
0x10e0   :  { %5640 = vmatpush.msrb.mxu2 %v10577_v45  ;;  %5660 = vmatpush.msra.mxu1 %v10578_v25 }
0x10e1   :  { %5601 = vmatpush.msrb.mxu3 %v10579_v14  ;;  %5621 = vmatpush.msrb.mxu0 %v10580_v2 }
0x10e2   :  { %5641 = vmatpush.msrb.mxu2 %v10606_v63  ;;  %5661 = vmatpush.msra.mxu1 %v10607_v49 }
0x10e3   :  { %5602 = vmatpush.msrb.mxu3 %v10608_v46  ;;  %5622 = vmatpush.msrb.mxu0 %v10609_v47  ;;  %v5417_v46 = vrot.slane %v9780_v32, 7 }
0x10e4   :  { %5642 = vmatpush.msrb.mxu2 %v10610_v62  ;;  %5662 = vmatpush.msra.mxu1 %v10611_v37 }
0x10e5   :  { %5603 = vmatpush.msrb.mxu3 %v10612_v41  ;;  %5623 = vmatpush.msrb.mxu0 %v10613_v6 }
0x10e6   :  { %5643 = vmatpush.msrb.mxu2 %v10614_v48  ;;  %5663 = vmatpush.msra.mxu1 %v10615_v57  ;;  %v10634_v57 = vld [vmem:[#allocation40_spill] sm:$0xff] }
0x10e7   :  { %5604 = vmatpush.msrb.mxu3 %v10616_v53  ;;  %5624 = vmatpush.msrb.mxu0 %v10617_v58  ;;  %v10633_v53 = vld [vmem:[#allocation39_spill] sm:$0xff] }
0x10e8   :  { %5644 = vmatpush.msrb.mxu2 %v10618_v15  ;;  %5664 = vmatpush.msra.mxu1 %v10619_v30  ;;  %v10632_v30 = vld [vmem:[#allocation38_spill] sm:$0xff] }
0x10e9   :  { %5605 = vmatpush.msrb.mxu3 %v10620_v29  ;;  %5625 = vmatpush.msrb.mxu0 %v10621_v5  ;;  %v10631_v29 = vld [vmem:[#allocation17_spill] sm:$0xff] }
0x10ea   :  { %5645 = vmatpush.msrb.mxu2 %v10622_v38  ;;  %5665 = vmatpush.msra.mxu1 %v10623_v54 }
0x10eb   :  { %5606 = vmatpush.msrb.mxu3 %v10624_v12  ;;  %5626 = vmatpush.msrb.mxu0 %v10625_v59 }
0x10ec   :  { %5646 = vmatpush.msrb.mxu2 %v10626_v8  ;;  %5666 = vmatpush.msra.mxu1 %v10627_v1 }
0x10ed   :  { %5607 = vmatpush.msrb.mxu3 %v10628_v11  ;;  %5627 = vmatpush.msrb.mxu0 %v10629_v55 }
0x10ee   :  { %5647 = vmatpush.msrb.mxu2 %v10630_v16  ;;  %5667 = vmatpush.msra.mxu1 %v10631_v29 }
0x114a   :  { %v5299_v5 = vpop.f32.mrf.mxu0 }
0x114b   :  { %v5347_v38 = vrot.slane %v5299_v5, 4 }
0x114d   :  { %v5355_v54 = vadd.f32 %v5347_v38, %v10632_v30 }
0x114f   :  { %v6071_v15 = vmul.f32 -1.442695, %v5355_v54  ;;  %v5339_v54 = vpop.f32.mrf.mxu1 }
0x1150   :  { %v5279_v12 = vpop.f32.mrf.mxu3 }
0x1151   :  { %6413 = vpow2.f32 %v6071_v15  ;;  %v5346_v59 = vrot.slane %v5279_v12, 4  ;;  %v5319_v58 = vpop.f32.mrf.mxu2 }
0x1152   :  { %v5348_v8 = vrot.slane %v5319_v58, 4  ;;  %v5349_v58 = vrot.slane %v5339_v54, 4 }
0x1153   :  { %v5354_v1 = vadd.f32 %v5346_v59, %v10633_v53 }
0x1154   :  { %v5356_v11 = vadd.f32 %v5348_v8, %v10634_v57 }
0x1155   :  { %v6070_v48 = vmul.f32 -1.442695, %v5354_v1  ;;  %v10635_v1 = vld [vmem:[#allocation41_spill] sm:$0xff] }
0x1156   :  { %v6072_v55 = vmul.f32 -1.442695, %v5356_v11  ;;  %v5357_v11 = vadd.f32 %v5349_v58, %v10635_v1 }
0x1157   :  { %v6414_v6 = vpop.eup %6413  ;;  %6415 = vpow2.f32 %v6070_v48 }
0x1158   :  { %v5368_v16 = vadd.f32 1.0, %v6414_v6  ;;  %6417 = vpow2.f32 %v6072_v55 }
0x115a   :  { %6419 = vrcp.f32 %v5368_v16  ;;  %v5396_v55 = vand.u32 2147483648, %v5368_v16  ;;  %vm5390_vm7 = vweird.f32 %v5368_v16 }
0x115d   :  { %v6416_v5 = vpop.eup %6415 }
0x115e   :  { %v6418_v29 = vpop.eup %6417  ;;  %v5367_v38 = vadd.f32 1.0, %v6416_v5  ;;  %v5394_v5 = vand.u32 2147483647, %v5368_v16 }
0x115f   :  { %v5369_v30 = vadd.f32 1.0, %v6418_v29 }
0x1160   :  { %v6420_v15 = vpop.eup %6419  ;;  %6421 = vrcp.f32 %v5367_v38  ;;  %v5381_v29 = vand.u32 2147483648, %v5367_v38  ;;  %v5379_v54 = vand.u32 2147483647, %v5367_v38  ;;  %vm5395_vm10 = vcmp.eq.f32.partialorder %v5394_v5, 8.507059e+37 }
0x1161   :  { %v5386_v12 = vmul.f32 %v6420_v15, %v5368_v16  ;;  %6423 = vrcp.f32 %v5369_v30  ;;  %vm5391_vm6 = vweird.f32 %v6420_v15  ;;  %vm5375_vm11 = vweird.f32 %v5367_v38 }
0x1162   :  { %vm5392_vm8 = vmor %vm5390_vm7, %vm5391_vm6  ;;  %6425 = vtanh.f32 %v5357_v11  ;;  %v5382_v1 = vor.u32 1.1754944e-38, %v5381_v29  ;;  %vm5380_vm13 = vcmp.eq.f32.partialorder %v5379_v54, 8.507059e+37  ;;  %vm5405_vm15 = vweird.f32 %v5369_v30 }
0x1163   :  { %v5387_v59 = vsub.f32 1.0, %v5386_v12  ;;  %v5397_v12 = vor.u32 1.1754944e-38, %v5396_v55 }
0x1165   :  { %v5388_v53 = vmul.f32 %v6420_v15, %v5387_v59 }
0x1166   :  { %v6422_v8 = vpop.eup %6421 }
0x1167   :  { %v6424_v57 = vpop.eup %6423  ;;  %v5389_v48 = vadd.f32 %v6420_v15, %v5388_v53  ;;  %v5371_v6 = vmul.f32 %v6422_v8, %v5367_v38  ;;  %vm5376_vm9 = vweird.f32 %v6422_v8 }
0x1168   :  { %v5401_v41 = vmul.f32 %v6424_v57, %v5369_v30  ;;  %vm5377_vm12 = vmor %vm5375_vm11, %vm5376_vm9  ;;  %v6426_v16 = vpop.eup %6425  ;;  %vm5406_vm14 = vweird.f32 %v6424_v57 }
0x1169   :  { %v5372_v37 = vsub.f32 1.0, %v5371_v6  ;;  %v5393_v62 = vsel %vm5392_vm8, %v6420_v15, %v5389_v48  ;;  %vm5407_vm0 = vmor %vm5405_vm15, %vm5406_vm14 }
0x116a   :  { %v5402_v59 = vsub.f32 1.0, %v5401_v41  ;;  %v5398_v53 = vsel %vm5395_vm10, %v5397_v12, %v5393_v62  ;;  %v5411_v41 = vand.u32 2147483648, %v5369_v30 }
0x116b   :  { %v5373_v47 = vmul.f32 %v6422_v8, %v5372_v37  ;;  %v5419_v63 = vmul.f32 %v5417_v46, %v5398_v53 }
0x116c   :  { %v5403_v11 = vmul.f32 %v6424_v57, %v5402_v59  ;;  %v5412_v38 = vor.u32 1.1754944e-38, %v5411_v41 }
0x116d   :  { %v5374_v58 = vadd.f32 %v6422_v8, %v5373_v47  ;;  %v5409_v47 = vand.u32 2147483647, %v5369_v30 }
0x116e   :  { %v5404_v48 = vadd.f32 %v6424_v57, %v5403_v11 }
0x116f   :  { %v5378_v49 = vsel %vm5377_vm12, %v6422_v8, %v5374_v58  ;;  %vm5410_vm1 = vcmp.eq.f32.partialorder %v5409_v47, 8.507059e+37 }
0x1170   :  { %v5383_v6 = vsel %vm5380_vm13, %v5382_v1, %v5378_v49  ;;  %v5408_v62 = vsel %vm5407_vm0, %v6424_v57, %v5404_v48  ;;  %v10665_v48 = vld [vmem:[#allocation41_spill] sm:$0xff] }
0x1171   :  { %v5420_v15 = vmul.f32 %v6426_v16, %v5383_v6  ;;  %v5413_v8 = vsel %vm5410_vm1, %v5412_v38, %v5408_v62 }
0x1173   :  { %v9852_v37 = vadd.f32 %v5420_v15, %v5419_v63 }
0x1175   :  { %6427 = vtanh.f32 %v9852_v37 }
0x117b   :  { %v6428_v32 = vpop.eup %6427 }
0x117c   :  { %v5423_v55 = vmul.f32 %v6428_v32, %v5413_v8 }
0x117e   :  { %v5425_v49 = vrot.slane %v5423_v55, 4 }
0x1180   :  { %5443 = vmatmul.f32.vlgmr.msra.gmra.mxu3 %v5425_v49  ;;  %5463 = vmatmul.f32.vlgmr.msra.gmra.mxu0 %v5425_v49 }
0x1181   :  { %5483 = vmatmul.f32.vlgmr.msra.gmra.mxu2 %v5425_v49  ;;  %5503 = vmatmul.f32.vlgmr.msrb.gmra.mxu1 %v5425_v49 }
0x1182   :  { %5757 = vmatpush.msra.mxu3 %v9511_v28  ;;  %5777 = vmatpush.msra.mxu0 %v9514_v60  ;;  %v10636_v28 = vld [vmem:[#allocation18_spill] sm:$0xff]  ;;  %v10637_v60 = vld [vmem:[#allocation19_spill] sm:$0xff] }
0x1183   :  { %5797 = vmatpush.msra.mxu2 %v9517_v20  ;;  %5817 = vmatpush.msrb.mxu1 %v9520_v40  ;;  %v10638_v20 = vld [vmem:[#allocation34_spill] sm:$0xff]  ;;  %v10639_v40 = vld [vmem:[#allocation20_spill] sm:$0xff] }
0x1184   :  { %5758 = vmatpush.msra.mxu3 %v9523_v9  ;;  %5778 = vmatpush.msra.mxu0 %v9526_v36  ;;  %v10640_v9 = vld [vmem:[#allocation21_spill] sm:$0xff]  ;;  %v10641_v36 = vld [vmem:[#allocation22_spill] sm:$0xff] }
0x1185   :  { %5798 = vmatpush.msra.mxu2 %v9529_v26  ;;  %5818 = vmatpush.msrb.mxu1 %v9532_v21  ;;  %v10642_v26 = vld [vmem:[#allocation15_spill] sm:$0xff] }
0x1186   :  { %5759 = vmatpush.msra.mxu3 %v9535_v19  ;;  %5779 = vmatpush.msra.mxu0 %v9538_v22  ;;  %v10643_v21 = vld [vmem:[#allocation23_spill] sm:$0xff]  ;;  %v10644_v19 = vld [vmem:[#allocation24_spill] sm:$0xff]  ;;  %v10645_v22 = vld [vmem:[#allocation25_spill] sm:$0xff] }
0x1187   :  { %5799 = vmatpush.msra.mxu2 %v9541_v23  ;;  %5819 = vmatpush.msrb.mxu1 %v9544_v0  ;;  %v10646_v23 = vld [vmem:[#allocation26_spill] sm:$0xff]  ;;  %v10647_v0 = vld [vmem:[#allocation27_spill] sm:$0xff] }
0x1188   :  { %5760 = vmatpush.msra.mxu3 %v9547_v39  ;;  %5780 = vmatpush.msra.mxu0 %v9550_v24  ;;  %v10648_v39 = vld [vmem:[#allocation28_spill] sm:$0xff]  ;;  %v10649_v24 = vld [vmem:[#allocation29_spill] sm:$0xff] }
0x1189   :  { %5800 = vmatpush.msra.mxu2 %v9553_v33  ;;  %5820 = vmatpush.msrb.mxu1 %v9556_v18  ;;  %v10650_v33 = vld [vmem:[#allocation30_spill] sm:$0xff]  ;;  %v10651_v18 = vld [vmem:[#allocation31_spill] sm:$0xff] }
0x118a   :  { %5761 = vmatpush.msra.mxu3 %v9559_v51  ;;  %5781 = vmatpush.msra.mxu0 %v9562_v27  ;;  %v10652_v51 = vld [vmem:[#allocation32_spill] sm:$0xff]  ;;  %v10653_v27 = vld [vmem:[#allocation33_spill] sm:$0xff] }
0x118b   :  { %5801 = vmatpush.msra.mxu2 %v9565_v3  ;;  %5821 = vmatpush.msrb.mxu1 %v9568_v42  ;;  %v10654_v3 = vld [vmem:[#allocation35_spill] sm:$0xff]  ;;  %v10655_v42 = vld [vmem:[#allocation36_spill] sm:$0xff] }
0x118c   :  { %5762 = vmatpush.msra.mxu3 %v9571_v7  ;;  %5782 = vmatpush.msra.mxu0 %v9574_v17  ;;  %v10656_v7 = vld [vmem:[#allocation37_spill] sm:$0xff]  ;;  %v10657_v17 = vld [vmem:[#allocation12_spill] sm:$0xff] }
0x118d   :  { %5802 = vmatpush.msra.mxu2 %v9577_v4  ;;  %5822 = vmatpush.msrb.mxu1 %v9580_v44  ;;  %v10658_v4 = vld [vmem:[#allocation13_spill] sm:$0xff]  ;;  %v10659_v44 = vld [vmem:[#allocation14_spill] sm:$0xff] }
0x118e   :  { %5763 = vmatpush.msra.mxu3 %v9583_v52  ;;  %5783 = vmatpush.msra.mxu0 %v9586_v43  ;;  %v10660_v52 = vld [vmem:[#allocation16_spill] sm:$0xff]  ;;  %v10661_v43 = vld [vmem:[#allocation17_spill] sm:$0xff] }
0x118f   :  { %5803 = vmatpush.msra.mxu2 %v9589_v35  ;;  %5823 = vmatpush.msrb.mxu1 %v9592_v10 }
0x1190   :  { %5764 = vmatpush.msra.mxu3 %v9595_v13  ;;  %5784 = vmatpush.msra.mxu0 %v9598_v61  ;;  %v10662_v13 = vld [vmem:[#allocation38_spill] sm:$0xff] }
0x1191   :  { %5804 = vmatpush.msra.mxu2 %v9601_v34  ;;  %5824 = vmatpush.msrb.mxu1 %v9604_v50 }
0x1192   :  { %5765 = vmatpush.msra.mxu3 %v9607_v31  ;;  %5785 = vmatpush.msra.mxu0 %v10576_v56 }
0x1193   :  { %5805 = vmatpush.msra.mxu2 %v10577_v45  ;;  %5825 = vmatpush.msrb.mxu1 %v10578_v25  ;;  %v10663_v25 = vld [vmem:[#allocation39_spill] sm:$0xff] }
0x1194   :  { %5766 = vmatpush.msra.mxu3 %v10579_v14  ;;  %5786 = vmatpush.msra.mxu0 %v10580_v2  ;;  %v10664_v2 = vld [vmem:[#allocation40_spill] sm:$0xff] }
0x1195   :  { %5806 = vmatpush.msra.mxu2 %v10636_v28  ;;  %5826 = vmatpush.msrb.mxu1 %v10637_v60 }
0x1196   :  { %5767 = vmatpush.msra.mxu3 %v10638_v20  ;;  %5787 = vmatpush.msra.mxu0 %v10639_v40 }
0x1197   :  { %5807 = vmatpush.msra.mxu2 %v10640_v9  ;;  %5827 = vmatpush.msrb.mxu1 %v10641_v36 }
0x1198   :  { %5768 = vmatpush.msra.mxu3 %v10642_v26  ;;  %5788 = vmatpush.msra.mxu0 %v10643_v21 }
0x1199   :  { %5808 = vmatpush.msra.mxu2 %v10644_v19  ;;  %5828 = vmatpush.msrb.mxu1 %v10645_v22  ;;  %v5582_v22 = vrot.slane %v9852_v37, 7 }
0x119a   :  { %5769 = vmatpush.msra.mxu3 %v10646_v23  ;;  %5789 = vmatpush.msra.mxu0 %v10647_v0 }
0x119b   :  { %5809 = vmatpush.msra.mxu2 %v10648_v39  ;;  %5829 = vmatpush.msrb.mxu1 %v10649_v24 }
0x119c   :  { %5770 = vmatpush.msra.mxu3 %v10650_v33  ;;  %5790 = vmatpush.msra.mxu0 %v10651_v18 }
0x119d   :  { %5810 = vmatpush.msra.mxu2 %v10652_v51  ;;  %5830 = vmatpush.msrb.mxu1 %v10653_v27 }
0x119e   :  { %5771 = vmatpush.msra.mxu3 %v10654_v3  ;;  %5791 = vmatpush.msra.mxu0 %v10655_v42 }
0x119f   :  { %5811 = vmatpush.msra.mxu2 %v10656_v7  ;;  %5831 = vmatpush.msrb.mxu1 %v10657_v17 }
0x11a0   :  { %5772 = vmatpush.msra.mxu3 %v10658_v4  ;;  %5792 = vmatpush.msra.mxu0 %v10659_v44 }
0x11a1   :  { %5812 = vmatpush.msra.mxu2 %v10660_v52  ;;  %5832 = vmatpush.msrb.mxu1 %v10661_v43 }
0x11fd   :  { %v5464_v35 = vpop.f32.mrf.mxu0 }
0x11fe   :  { %v5512_v10 = vrot.slane %v5464_v35, 3  ;;  %v5504_v12 = vpop.f32.mrf.mxu1 }
0x11ff   :  { %v5514_v16 = vrot.slane %v5504_v12, 3 }
0x1200   :  { %v5520_v61 = vadd.f32 %v5512_v10, %v10662_v13 }
0x1201   :  { %v5522_v41 = vadd.f32 %v5514_v16, %v10665_v48 }
0x1202   :  { %v6074_v34 = vmul.f32 -1.442695, %v5520_v61 }
0x1203   :  { %v5444_v50 = vpop.f32.mrf.mxu3 }
0x1204   :  { %6429 = vpow2.f32 %v6074_v34  ;;  %v5511_v31 = vrot.slane %v5444_v50, 3  ;;  %v5484_v56 = vpop.f32.mrf.mxu2 }
0x1205   :  { %v5513_v45 = vrot.slane %v5484_v56, 3 }
0x1206   :  { %v5519_v14 = vadd.f32 %v5511_v31, %v10663_v25 }
0x1207   :  { %v5521_v63 = vadd.f32 %v5513_v45, %v10664_v2 }
0x1208   :  { %v6073_v46 = vmul.f32 -1.442695, %v5519_v14 }
0x1209   :  { %v6075_v57 = vmul.f32 -1.442695, %v5521_v63 }
0x120a   :  { %v6430_v30 = vpop.eup %6429  ;;  %6431 = vpow2.f32 %v6073_v46 }
0x120b   :  { %v5533_v1 = vadd.f32 1.0, %v6430_v30  ;;  %6433 = vpow2.f32 %v6075_v57 }
0x120d   :  { %6435 = vrcp.f32 %v5533_v1  ;;  %v5561_v32 = vand.u32 2147483648, %v5533_v1  ;;  %vm5555_vm3 = vweird.f32 %v5533_v1  ;;  %v5559_v55 = vand.u32 2147483647, %v5533_v1 }
0x120f   :  { %v5562_v9 = vor.u32 1.1754944e-38, %v5561_v32  ;;  %vm5560_vm6 = vcmp.eq.f32.partialorder %v5559_v55, 8.507059e+37 }
0x1210   :  { %v6432_v5 = vpop.eup %6431 }
0x1211   :  { %v6434_v29 = vpop.eup %6433  ;;  %v5532_v54 = vadd.f32 1.0, %v6432_v5 }
0x1212   :  { %v5534_v59 = vadd.f32 1.0, %v6434_v29 }
0x1213   :  { %v6436_v58 = vpop.eup %6435  ;;  %6437 = vrcp.f32 %v5532_v54  ;;  %v5546_v28 = vand.u32 2147483648, %v5532_v54  ;;  %v5544_v40 = vand.u32 2147483647, %v5532_v54  ;;  %vm5540_vm7 = vweird.f32 %v5532_v54 }
0x1214   :  { %v5551_v53 = vmul.f32 %v6436_v58, %v5533_v1  ;;  %6439 = vrcp.f32 %v5534_v59  ;;  %vm5556_vm2 = vweird.f32 %v6436_v58  ;;  %v5576_v3 = vand.u32 2147483648, %v5534_v59 }
0x1215   :  { %vm5557_vm4 = vmor %vm5555_vm3, %vm5556_vm2  ;;  %6441 = vtanh.f32 %v5522_v41  ;;  %v5547_v19 = vor.u32 1.1754944e-38, %v5546_v28  ;;  %vm5545_vm9 = vcmp.eq.f32.partialorder %v5544_v40, 8.507059e+37  ;;  %vm5570_vm11 = vweird.f32 %v5534_v59 }
0x1216   :  { %v5552_v6 = vsub.f32 1.0, %v5551_v53  ;;  %v5574_v42 = vand.u32 2147483647, %v5534_v59  ;;  %v5577_v17 = vor.u32 1.1754944e-38, %v5576_v3 }
0x1218   :  { %v5553_v11 = vmul.f32 %v6436_v58, %v5552_v6  ;;  %vm5575_vm13 = vcmp.eq.f32.partialorder %v5574_v42, 8.507059e+37 }
0x1219   :  { %v6438_v15 = vpop.eup %6437 }
0x121a   :  { %v6440_v47 = vpop.eup %6439  ;;  %v5554_v62 = vadd.f32 %v6436_v58, %v5553_v11  ;;  %v5536_v38 = vmul.f32 %v6438_v15, %v5532_v54  ;;  %vm5541_vm5 = vweird.f32 %v6438_v15 }
0x121b   :  { %v5566_v8 = vmul.f32 %v6440_v47, %v5534_v59  ;;  %vm5542_vm8 = vmor %vm5540_vm7, %vm5541_vm5  ;;  %v6442_v0 = vpop.eup %6441  ;;  %vm5571_vm10 = vweird.f32 %v6440_v47 }
0x121c   :  { %v5537_v49 = vsub.f32 1.0, %v5536_v38  ;;  %v5558_v60 = vsel %vm5557_vm4, %v6436_v58, %v5554_v62  ;;  %vm5572_vm12 = vmor %vm5570_vm11, %vm5571_vm10 }
0x121d   :  { %v5567_v36 = vsub.f32 1.0, %v5566_v8  ;;  %v5563_v21 = vsel %vm5560_vm6, %v5562_v9, %v5558_v60 }
0x121e   :  { %v5538_v20 = vmul.f32 %v6438_v15, %v5537_v49  ;;  %v5584_v33 = vmul.f32 %v5582_v22, %v5563_v21 }
0x121f   :  { %v5568_v24 = vmul.f32 %v6440_v47, %v5567_v36 }
0x1220   :  { %v5539_v26 = vadd.f32 %v6438_v15, %v5538_v20 }
0x1221   :  { %v5569_v27 = vadd.f32 %v6440_v47, %v5568_v24 }
0x1222   :  { %v5543_v23 = vsel %vm5542_vm8, %v6438_v15, %v5539_v26 }
0x1223   :  { %v5548_v39 = vsel %vm5545_vm9, %v5547_v19, %v5543_v23  ;;  %v5573_v7 = vsel %vm5572_vm12, %v6440_v47, %v5569_v27 }
0x1224   :  { %v5585_v18 = vmul.f32 %v6442_v0, %v5548_v39  ;;  %v5578_v4 = vsel %vm5575_vm13, %v5577_v17, %v5573_v7 }
0x1226   :  { %v9924_v51 = vadd.f32 %v5585_v18, %v5584_v33 }
0x1228   :  { %6443 = vtanh.f32 %v9924_v51  ;;  %v5747_v19 = vrot.slane %v9924_v51, 7 }
0x122e   :  { %v6444_v37 = vpop.eup %6443 }
0x122f   :  { %v5588_v44 = vmul.f32 %v6444_v37, %v5578_v4 }
0x1231   :  { %v5590_v52 = vrot.slane %v5588_v44, 5 }
0x1233   :  { %5608 = vmatmul.f32.vlgmr.msrb.gmra.mxu3 %v5590_v52  ;;  %5628 = vmatmul.f32.vlgmr.msrb.gmra.mxu0 %v5590_v52 }
0x1234   :  { %5648 = vmatmul.f32.vlgmr.msrb.gmra.mxu2 %v5590_v52  ;;  %5668 = vmatmul.f32.vlgmr.msra.gmra.mxu1 %v5590_v52  ;;  %v5934_v52 = vld [vmem:[%s10009_s12 + $0x78] sm:$0xff] }
0x1235   :  { %5939 = vmatpush.msrb.mxu3 %v5934_v52 }
0x12b0   :  { %v5629_v43 = vpop.f32.mrf.mxu0 }
0x12b1   :  { %v5677_v35 = vrot.slane %v5629_v43, 2  ;;  %v5669_v54 = vpop.f32.mrf.mxu1  ;;  %v5933_v43 = vld [vmem:[%s10009_s12 + $0x70] sm:$0xff] }
0x12b2   :  { %v5679_v53 = vrot.slane %v5669_v54, 2  ;;  %5940 = vmatpush.msrb.mxu3 %v5933_v43 }
0x12b3   :  { %v5685_v10 = vadd.f32 %v5677_v35, %v10662_v13  ;;  %v5932_v35 = vld [vmem:[%s10009_s12 + $0x68] sm:$0xff] }
0x12b4   :  { %v5687_v15 = vadd.f32 %v5679_v53, %v10665_v48  ;;  %5941 = vmatpush.msrb.mxu3 %v5932_v35  ;;  %v5923_v53 = vld [vmem:[%s10009_s12 + $0x20] sm:$0xff] }
0x12b5   :  { %v6077_v61 = vmul.f32 -1.442695, %v5685_v10  ;;  %v5931_v10 = vld [vmem:[%s10009_s12 + $0x60] sm:$0xff] }
0x12b6   :  { %v5609_v34 = vpop.f32.mrf.mxu3  ;;  %5942 = vmatpush.msrb.mxu3 %v5931_v10 }
0x12b7   :  { %6445 = vpow2.f32 %v6077_v61  ;;  %v5676_v50 = vrot.slane %v5609_v34, 2  ;;  %v5649_v31 = vpop.f32.mrf.mxu2  ;;  %v5930_v34 = vld [vmem:[%s10009_s12 + $0x58] sm:$0xff] }
0x12b8   :  { %v5678_v56 = vrot.slane %v5649_v31, 2  ;;  %5943 = vmatpush.msrb.mxu3 %v5930_v34  ;;  %v5929_v31 = vld [vmem:[%s10009_s12 + $0x50] sm:$0xff] }
0x12b9   :  { %v5684_v45 = vadd.f32 %v5676_v50, %v10663_v25 }
0x12ba   :  { %v5686_v14 = vadd.f32 %v5678_v56, %v10664_v2  ;;  %5944 = vmatpush.msrb.mxu3 %v5929_v31 }
0x12bb   :  { %v6076_v63 = vmul.f32 -1.442695, %v5684_v45  ;;  %v5928_v45 = vld [vmem:[%s10009_s12 + $0x48] sm:$0xff] }
0x12bc   :  { %v6078_v46 = vmul.f32 -1.442695, %v5686_v14  ;;  %5945 = vmatpush.msrb.mxu3 %v5928_v45 }
0x12bd   :  { %v6446_v57 = vpop.eup %6445  ;;  %6447 = vpow2.f32 %v6076_v63 }
0x12be   :  { %v5698_v30 = vadd.f32 1.0, %v6446_v57  ;;  %6449 = vpow2.f32 %v6078_v46  ;;  %v5927_v46 = vld [vmem:[%s10009_s12 + $0x40] sm:$0xff] }
0x12bf   :  { %5946 = vmatpush.msrb.mxu3 %v5927_v46 }
0x12c0   :  { %6451 = vrcp.f32 %v5698_v30  ;;  %v5726_v38 = vand.u32 2147483648, %v5698_v30  ;;  %vm5720_vm15 = vweird.f32 %v5698_v30  ;;  %v5724_v8 = vand.u32 2147483647, %v5698_v30 }
0x12c2   :  { %v5727_v40 = vor.u32 1.1754944e-38, %v5726_v38  ;;  %vm5725_vm2 = vcmp.eq.f32.partialorder %v5724_v8, 8.507059e+37 }
0x12c3   :  { %v6448_v1 = vpop.eup %6447 }
0x12c4   :  { %v6450_v5 = vpop.eup %6449  ;;  %v5697_v29 = vadd.f32 1.0, %v6448_v1 }
0x12c5   :  { %v5699_v12 = vadd.f32 1.0, %v6450_v5  ;;  %v5925_v5 = vld [vmem:[%s10009_s12 + $0x30] sm:$0xff] }
0x12c6   :  { %v6452_v59 = vpop.eup %6451  ;;  %6453 = vrcp.f32 %v5697_v29  ;;  %v5711_v49 = vand.u32 2147483648, %v5697_v29  ;;  %v5709_v20 = vand.u32 2147483647, %v5697_v29  ;;  %vm5705_vm3 = vweird.f32 %v5697_v29 }
0x12c7   :  { %v5716_v58 = vmul.f32 %v6452_v59, %v5698_v30  ;;  %6455 = vrcp.f32 %v5699_v12  ;;  %vm5721_vm14 = vweird.f32 %v6452_v59  ;;  %v5741_v3 = vand.u32 2147483648, %v5699_v12 }
0x12c8   :  { %vm5722_vm0 = vmor %vm5720_vm15, %vm5721_vm14  ;;  %6457 = vtanh.f32 %v5687_v15  ;;  %v5712_v21 = vor.u32 1.1754944e-38, %v5711_v49  ;;  %vm5710_vm5 = vcmp.eq.f32.partialorder %v5709_v20, 8.507059e+37  ;;  %vm5735_vm7 = vweird.f32 %v5699_v12 }
0x12c9   :  { %v5717_v16 = vsub.f32 1.0, %v5716_v58  ;;  %v5739_v42 = vand.u32 2147483647, %v5699_v12  ;;  %v5742_v17 = vor.u32 1.1754944e-38, %v5741_v3 }
0x12cb   :  { %v5718_v6 = vmul.f32 %v6452_v59, %v5717_v16  ;;  %vm5740_vm9 = vcmp.eq.f32.partialorder %v5739_v42, 8.507059e+37 }
0x12cc   :  { %v6454_v11 = vpop.eup %6453 }
0x12cd   :  { %v6456_v41 = vpop.eup %6455  ;;  %v5719_v47 = vadd.f32 %v6452_v59, %v5718_v6  ;;  %v5701_v62 = vmul.f32 %v6454_v11, %v5697_v29  ;;  %vm5706_vm1 = vweird.f32 %v6454_v11 }
0x12ce   :  { %v5731_v32 = vmul.f32 %v6456_v41, %v5699_v12  ;;  %vm5707_vm4 = vmor %vm5705_vm3, %vm5706_vm1  ;;  %v6458_v23 = vpop.eup %6457  ;;  %vm5736_vm6 = vweird.f32 %v6456_v41  ;;  %v5924_v12 = vld [vmem:[%s10009_s12 + $0x28] sm:$0xff] }
0x12cf   :  { %v5702_v55 = vsub.f32 1.0, %v5701_v62  ;;  %v5723_v28 = vsel %vm5722_vm0, %v6452_v59, %v5719_v47  ;;  %vm5737_vm8 = vmor %vm5735_vm7, %vm5736_vm6  ;;  %v5919_v62 = vld [vmem:[%s10009_s12] sm:$0xff]  ;;  %vm5959_vm6 = vcmask 360448  }
0x12d0   :  { %v5732_v9 = vsub.f32 1.0, %v5731_v32  ;;  %v5728_v26 = vsel %vm5725_vm2, %v5727_v40, %v5723_v28 }
0x12d1   :  { %v5703_v60 = vmul.f32 %v6454_v11, %v5702_v55  ;;  %v5749_v24 = vmul.f32 %v5747_v19, %v5728_v26 }
0x12d2   :  { %v5733_v39 = vmul.f32 %v6456_v41, %v5732_v9 }
0x12d3   :  { %v5704_v36 = vadd.f32 %v6454_v11, %v5703_v60 }
0x12d4   :  { %v5734_v27 = vadd.f32 %v6456_v41, %v5733_v39 }
0x12d5   :  { %v5708_v22 = vsel %vm5707_vm4, %v6454_v11, %v5704_v36  ;;  %v5920_v11 = vld [vmem:[%s10009_s12 + $0x8] sm:$0xff] }
0x12d6   :  { %v5713_v0 = vsel %vm5710_vm5, %v5712_v21, %v5708_v22  ;;  %v5738_v7 = vsel %vm5737_vm8, %v6456_v41, %v5734_v27 }
0x12d7   :  { %v5750_v33 = vmul.f32 %v6458_v23, %v5713_v0  ;;  %v5743_v37 = vsel %vm5740_vm9, %v5742_v17, %v5738_v7 }
0x12d9   :  { %v9932_v18 = vadd.f32 %v5750_v33, %v5749_v24 }
0x12db   :  { %6459 = vtanh.f32 %v9932_v18  ;;  %v5912_v17 = vrot.slane %v9932_v18, 7 }
0x12e1   :  { %v6460_v51 = vpop.eup %6459 }
0x12e2   :  { %v5753_v4 = vmul.f32 %v6460_v51, %v5743_v37 }
0x12e4   :  { %v5755_v44 = vrot.slane %v5753_v4, 6 }
0x12e6   :  { %5773 = vmatmul.f32.vlgmr.msra.gmra.mxu3 %v5755_v44  ;;  %5793 = vmatmul.f32.vlgmr.msra.gmra.mxu0 %v5755_v44 }
0x12e7   :  { %5813 = vmatmul.f32.vlgmr.msra.gmra.mxu2 %v5755_v44  ;;  %5833 = vmatmul.f32.vlgmr.msrb.gmra.mxu1 %v5755_v44 }
0x1363   :  { %v5794_v61 = vpop.f32.mrf.mxu0 }
0x1364   :  { %v5842_v50 = vrot.slane %v5794_v61, 1  ;;  %v5834_v38 = vpop.f32.mrf.mxu1 }
0x1365   :  { %v5844_v49 = vrot.slane %v5834_v38, 1 }
0x1366   :  { %v5850_v56 = vadd.f32 %v5842_v50, %v10662_v13  ;;  %v5926_v13 = vld [vmem:[%s10009_s12 + $0x38] sm:$0xff] }
0x1367   :  { %5947 = vmatpush.msrb.mxu3 %v5926_v13  ;;  %v5852_v40 = vadd.f32 %v5844_v49, %v10665_v48 }
0x1368   :  { %v6080_v14 = vmul.f32 -1.442695, %v5850_v56 }
0x1369   :  { %v5774_v63 = vpop.f32.mrf.mxu3  ;;  %5948 = vmatpush.msrb.mxu3 %v5925_v5 }
0x136a   :  { %6461 = vpow2.f32 %v6080_v14  ;;  %v5841_v57 = vrot.slane %v5774_v63, 1  ;;  %v5814_v30 = vpop.f32.mrf.mxu2  ;;  %v5935_v63 = vld [vmem:[%s10010_s13] sm:$0x1] }
0x136b   :  { %v5843_v1 = vrot.slane %v5814_v30, 1  ;;  %5949 = vmatpush.msrb.mxu3 %v5924_v12 }
0x136c   :  { %v5849_v29 = vadd.f32 %v5841_v57, %v10663_v25  ;;  %v5922_v25 = vld [vmem:[%s10009_s12 + $0x18] sm:$0xff] }
0x136d   :  { %v5851_v54 = vadd.f32 %v5843_v1, %v10664_v2  ;;  %5950 = vmatpush.msrb.mxu3 %v5923_v53  ;;  %v5921_v2 = vld [vmem:[%s10009_s12 + $0x10] sm:$0xff] }
0x136e   :  { %v6079_v59 = vmul.f32 -1.442695, %v5849_v29 }
0x136f   :  { %v6081_v58 = vmul.f32 -1.442695, %v5851_v54  ;;  %5951 = vmatpush.msrb.mxu3 %v5922_v25 }
0x1370   :  { %v6462_v16 = vpop.eup %6461  ;;  %6463 = vpow2.f32 %v6079_v59 }
0x1371   :  { %v5863_v6 = vadd.f32 1.0, %v6462_v16  ;;  %6465 = vpow2.f32 %v6081_v58  ;;  %5952 = vmatpush.msrb.mxu3 %v5921_v2 }
0x1373   :  { %6467 = vrcp.f32 %v5863_v6  ;;  %5953 = vmatpush.msrb.mxu3 %v5920_v11  ;;  %v5891_v21 = vand.u32 2147483648, %v5863_v6  ;;  %vm5885_vm11 = vweird.f32 %v5863_v6  ;;  %v5889_v22 = vand.u32 2147483647, %v5863_v6 }
0x1375   :  { %5954 = vmatpush.msrb.mxu3 %v5919_v62  ;;  %v5892_v27 = vor.u32 1.1754944e-38, %v5891_v21  ;;  %vm5890_vm14 = vcmp.eq.f32.partialorder %v5889_v22, 8.507059e+37 }
0x1376   :  { %v6464_v15 = vpop.eup %6463 }
0x1377   :  { %v6466_v41 = vpop.eup %6465  ;;  %v5862_v47 = vadd.f32 1.0, %v6464_v15 }
0x1378   :  { %v5864_v32 = vadd.f32 1.0, %v6466_v41 }
0x1379   :  { %v6468_v8 = vpop.eup %6467  ;;  %6469 = vrcp.f32 %v5862_v47  ;;  %v5876_v0 = vand.u32 2147483648, %v5862_v47  ;;  %v5874_v33 = vand.u32 2147483647, %v5862_v47  ;;  %vm5870_vm15 = vweird.f32 %v5862_v47 }
0x137a   :  { %v5881_v55 = vmul.f32 %v6468_v8, %v5863_v6  ;;  %6471 = vrcp.f32 %v5864_v32  ;;  %vm5886_vm10 = vweird.f32 %v6468_v8  ;;  %v5906_v61 = vand.u32 2147483648, %v5864_v32 }
0x137b   :  { %vm5887_vm12 = vmor %vm5885_vm11, %vm5886_vm10  ;;  %6473 = vtanh.f32 %v5852_v40  ;;  %v5877_v7 = vor.u32 1.1754944e-38, %v5876_v0  ;;  %vm5875_vm1 = vcmp.eq.f32.partialorder %v5874_v33, 8.507059e+37  ;;  %vm5900_vm3 = vweird.f32 %v5864_v32 }
0x137c   :  { %v5882_v28 = vsub.f32 1.0, %v5881_v55  ;;  %v5904_v34 = vand.u32 2147483647, %v5864_v32  ;;  %v5907_v31 = vor.u32 1.1754944e-38, %v5906_v61 }
0x137e   :  { %v5883_v60 = vmul.f32 %v6468_v8, %v5882_v28  ;;  %vm5905_vm5 = vcmp.eq.f32.partialorder %v5904_v34, 8.507059e+37 }
0x137f   :  { %v6470_v20 = vpop.eup %6469 }
0x1380   :  { %v6472_v9 = vpop.eup %6471  ;;  %v5884_v36 = vadd.f32 %v6468_v8, %v5883_v60  ;;  %v5866_v26 = vmul.f32 %v6470_v20, %v5862_v47  ;;  %vm5871_vm13 = vweird.f32 %v6470_v20 }
0x1381   :  { %v5896_v19 = vmul.f32 %v6472_v9, %v5864_v32  ;;  %vm5872_vm0 = vmor %vm5870_vm15, %vm5871_vm13  ;;  %v6474_v37 = vpop.eup %6473  ;;  %vm5901_vm2 = vweird.f32 %v6472_v9 }
0x1382   :  { %v5867_v23 = vsub.f32 1.0, %v5866_v26  ;;  %v5888_v39 = vsel %vm5887_vm12, %v6468_v8, %v5884_v36  ;;  %vm5902_vm4 = vmor %vm5900_vm3, %vm5901_vm2 }
0x1383   :  { %v5897_v3 = vsub.f32 1.0, %v5896_v19  ;;  %v5893_v42 = vsel %vm5890_vm14, %v5892_v27, %v5888_v39 }
0x1384   :  { %v5868_v24 = vmul.f32 %v6470_v20, %v5867_v23  ;;  %v5914_v52 = vmul.f32 %v5912_v17, %v5893_v42 }
0x1385   :  { %v5898_v44 = vmul.f32 %v6472_v9, %v5897_v3 }
0x1386   :  { %v5869_v48 = vadd.f32 %v6470_v20, %v5868_v24 }
0x1387   :  { %v5899_v10 = vadd.f32 %v6472_v9, %v5898_v44 }
0x1388   :  { %v5873_v51 = vsel %vm5872_vm0, %v6470_v20, %v5869_v48 }
0x1389   :  { %v5878_v4 = vsel %vm5875_vm1, %v5877_v7, %v5873_v51  ;;  %v5903_v50 = vsel %vm5902_vm4, %v6472_v9, %v5899_v10 }
0x138a   :  { %v5915_v43 = vmul.f32 %v6474_v37, %v5878_v4  ;;  %v5908_v18 = vsel %vm5905_vm5, %v5907_v31, %v5903_v50 }
0x138c   :  { %v5916_v35 = vadd.f32 %v5915_v43, %v5914_v52 }
0x138e   :  { %6475 = vtanh.f32 %v5916_v35 }
0x1394   :  { %v6476_v56 = vpop.eup %6475 }
0x1395   :  { %v5918_v45 = vmul.f32 %v6476_v56, %v5908_v18 }
0x1397   :  { %v5937_v14 = vrot.slane %v5918_v45, 7 }
0x1399   :  { %5955 = vmatmul.f32.vlgmr.msrb.gmra.mxu3 %v5937_v14 }
0x141c   :  { %v5956_v46 = vpop.f32.mrf.mxu3 }
0x141d   :  { %v5957_v57 = vadd.f32 %v5956_v46, %v5935_v63 }
0x141f   :  { %v5960_v30 = vsel %vm5959_vm6, %v5957_v57, -inf }
0x1420   :  { %5961 = vmax.xlane.f32.xlu0 %v5960_v30 }
0x1493   :  { %v5962_v13 = vpop.xlane.xlu0 %5961 }
0x1494   :  { %v5963_v1 = vsub.f32 %v5957_v57, %v5962_v13 }
0x1496   :  { %v5964_v5 = vmul.f32 1.442695, %v5963_v1 }
0x1498   :  { %6477 = vpow2.f32 %v5964_v5 }
0x149e   :  { %v6478_v29 = vpop.eup %6477 }
0x149f   :  { %v5966_v54 = vsel %vm5959_vm6, %v6478_v29, 0.0 }
0x14a0   :  { %5967 = vadd.xlane.f32.xlu1 %v5966_v54 }
0x1513   :  { %v5968_v12 = vpop.xlane.xlu1 %5967 }
0x1514   :  { %6479 = vrcp.f32 %v5968_v12 }
0x151a   :  { %v6480_v59 = vpop.eup %6479 }
0x151b   :  { %v5970_v58 = vmul.f32 %v6480_v59, %v6478_v29 }
0x151d   :  { %5971 = vst.msk [vmem:[#allocation8] sm:$0x1] %vm5959_vm6, %v5970_v58 }
0x151e   :  { %5982 = dma.vmem_to_hbm [thread:$0]  %s5978_s9, 16, %s5980_s25, [#allocation5]  }
0x151f   :  { %6621 = dma.done.wait [#allocation5], 16  }
0x1520   :  { %6622 = vsyncadd [#allocation5], 4294967280 }
0x1521   :  { %5987 = vsyncpa [#allocation4], 1 }
0x1522   :  { %5988 = vsyncpa [#allocation7], 1 }
0x1523   :  { %5989 = vsyncpa [#allocation5], 1 }

</bundles_post_ra>
